<compile_context>
chip_gen: v7x
topology: tpu7x:2x2x1
jax: 0.10.0
libtpu: 0.0.40
codegen_flags: <defaults>
</compile_context>

<pallas_src>
import functools

import jax
import jax.numpy as jnp
from jax.experimental import pallas as pl
from jax.experimental.pallas import tpu as pltpu

# Module hyper-parameters (defaults of MetaAttDecoderRNN).
EMBED = 8
HIDDEN = 16
OUTPUT = 2
OBS_LEN = 20
NUM_LAYERS = 1
# TODO(synk): num_layers > 1 would chain additional MetaLSTMCell stages; only
# the default config (num_layers=1) is implemented.

LANES = 128          # lane width of the packed weight / bias slabs
XPAD = 8             # OUTPUT padded to 8 lanes (zero padding keeps dots exact)
TIME_BLOCK = 16      # G: decode steps per grid iteration (16 * XPAD == 128)

# --- fused weight-slab row layout (all segments 8-row aligned) ---------------
R_W1 = 0                        # declinear1                   (XPAD,   EMBED)
R_HFUSE = R_W1 + 8              # [attn[E:, :] | h2h]          (HIDDEN, 84)
R_EFUSE = R_HFUSE + 16          # [attn[:E, :] | comb[H:, :]]  (EMBED,  28)
R_I2H = R_EFUSE + 8             # lstm1.i2h                    (EMBED,  64)
R_W2 = R_I2H + 8                # declinear2                   (HIDDEN, XPAD)
R_TOTAL = R_W2 + 16             # 56 rows

N_HFUSE = OBS_LEN + 4 * HIDDEN  # 84
N_EFUSE = OBS_LEN + EMBED       # 28

# --- packed bias-slab row layout (one bias per row of an (8, LANES) slab) ----
ROW_B1, ROW_BATTN, ROW_BCOMB, ROW_BLSTM, ROW_B2 = 0, 1, 2, 3, 4


def _decoder_block_kernel(x_ref, h0_ref, c0_ref, enccmb_ref, w_ref, b_ref,
                          o_ref, hT_ref, cT_ref, h_st, c_st,
                          *, seq_len, block):
    g = pl.program_id(0)
    Bp = h_st.shape[0]

    # Initialize the recurrent state from the inputs on the first block.
    @pl.when(g == 0)
    def _():
        h_st[...] = h0_ref[...]
        c_st[...] = c0_ref[...]

    # Static slices of the VMEM-resident weight / bias slabs (no per-step DMA).
    w1 = w_ref[R_W1:R_W1 + XPAD, :EMBED]
    w_h = w_ref[R_HFUSE:R_HFUSE + HIDDEN, :N_HFUSE]     # [attn_h | h2h]
    w_e = w_ref[R_EFUSE:R_EFUSE + EMBED, :N_EFUSE]      # [attn_e | comb_e]
    w_i2h = w_ref[R_I2H:R_I2H + EMBED, :4 * HIDDEN]
    w2 = w_ref[R_W2:R_W2 + HIDDEN, :XPAD]

    b1 = b_ref[ROW_B1:ROW_B1 + 1, :EMBED]
    b_att = b_ref[ROW_BATTN:ROW_BATTN + 1, :OBS_LEN]
    b_cmb = b_ref[ROW_BCOMB:ROW_BCOMB + 1, :EMBED]
    b_lstm = b_ref[ROW_BLSTM:ROW_BLSTM + 1, :4 * HIDDEN]
    b2 = b_ref[ROW_B2:ROW_B2 + 1, :XPAD]

    # Hoisted one-hot row masks for building the block-diagonal attention LHS.
    row_ids = jax.lax.broadcasted_iota(jnp.int32, (Bp, 1), 0)
    col_masks = [(row_ids == k).astype(jnp.float32) for k in range(Bp)]
    # TODO(synk): for large padded batches (Bp >> 8) the block-diagonal dot's
    # Bp-fold redundancy stops being free; revert to a per-row bmm path there.

    h = h_st[...]
    c = c_st[...]

    for j in range(block):   # static unroll -> static lane offsets everywhere
        x = x_ref[j]                                             # (Bp, XPAD)

        # declinear1 + leaky_relu (negative_slope = 0.01, torch default).
        e = jnp.dot(x, w1, preferred_element_type=jnp.float32) + b1
        embedded = jnp.where(e > 0, e, 0.01 * e)                 # (Bp, EMBED)

        # Fused same-source dots (split by static lane slices).
        hz = jnp.dot(h, w_h, preferred_element_type=jnp.float32)         # (Bp, 84)
        ez = jnp.dot(embedded, w_e, preferred_element_type=jnp.float32)  # (Bp, 28)

        # softmax(attn(cat(embedded, h))) with an exact divide.
        logits = ez[:, :OBS_LEN] + hz[:, :OBS_LEN] + b_att
        logits = logits - jnp.max(logits, axis=1, keepdims=True)
        p = jnp.exp(logits)
        attn_w = p / jnp.sum(p, axis=1, keepdims=True)           # (Bp, OBS_LEN)

        # bmm(attn_w, enc) @ W_comb_a folded into a single MXU dot:
        # block-diag(attn_w) (Bp, Bp*L) @ (enc @ W_comb_a) (Bp*L, E).
        a_blk = jnp.concatenate(
            [attn_w * col_masks[k] for k in range(Bp)], axis=1)  # (Bp, Bp*L)
        comb = jnp.dot(a_blk, enccmb_ref[...],
                       preferred_element_type=jnp.float32)       # (Bp, EMBED)
        comb = jnp.maximum(comb + ez[:, OBS_LEN:N_EFUSE] + b_cmb, 0.0)

        # MetaLSTMCell (gate order i, f, o | g), (b_i2h + b_h2h) pre-fused.
        preact = jnp.dot(comb, w_i2h, preferred_element_type=jnp.float32)
        preact = preact + hz[:, OBS_LEN:N_HFUSE] + b_lstm        # (Bp, 4H)
        gates = jax.nn.sigmoid(preact[:, :3 * HIDDEN])
        g_t = jnp.tanh(preact[:, 3 * HIDDEN:])
        i_t = gates[:, :HIDDEN]
        f_t = gates[:, HIDDEN:2 * HIDDEN]
        o_t = gates[:, 2 * HIDDEN:3 * HIDDEN]
        c_new = c * f_t + i_t * g_t
        h_new = o_t * jnp.tanh(c_new)

        # declinear2 -> static 8-lane sub-slice of the lane-dense output row.
        out = jnp.dot(h_new, w2, preferred_element_type=jnp.float32) + b2
        o_ref[0, :, j * XPAD:(j + 1) * XPAD] = out

        # Freeze the state on padded time steps (t >= seq_len).
        valid = (g * block + j) < seq_len
        h = jnp.where(valid, h_new, h)
        c = jnp.where(valid, c_new, c)

    # Carry state across grid blocks; emit final state once at the last block.
    h_st[...] = h
    c_st[...] = c

    @pl.when(g == pl.num_programs(0) - 1)
    def _():
        hT_ref[...] = h
        cT_ref[...] = c


def _pack_params(p):
    """Pack the weights into one (56,128) slab and one (8,128) bias slab
    (f32, lane-padded, 8-row-aligned, same-source weights pre-fused)."""
    f32 = jnp.float32

    def seg(w, rows):
        r, c = w.shape
        return jnp.pad(w.astype(f32), ((0, rows - r), (0, LANES - c)))

    w_attn = p["w_attn"].astype(f32)           # (EMBED + HIDDEN, OBS_LEN)
    w_comb = p["w_comb"].astype(f32)           # (HIDDEN + EMBED, EMBED)
    h_fused = jnp.concatenate([w_attn[EMBED:], p["w_h2h"].astype(f32)], axis=1)
    e_fused = jnp.concatenate([w_attn[:EMBED], w_comb[HIDDEN:]], axis=1)

    w_slab = jnp.concatenate([
        seg(p["w1"], 8),       # R_W1
        seg(h_fused, 16),      # R_HFUSE  [attn_h | h2h]      (16, 84)
        seg(e_fused, 8),       # R_EFUSE  [attn_e | comb_e]   (8, 28)
        seg(p["w_i2h"], 8),    # R_I2H
        seg(p["w2"], 16),      # R_W2
    ], axis=0)                 # (56, 128)

    def brow(b):
        b = b.astype(f32).reshape(1, -1)
        return jnp.pad(b, ((0, 0), (0, LANES - b.shape[1])))

    b_slab = jnp.concatenate([
        brow(p["b1"]),                      # ROW_B1
        brow(p["b_attn"]),                  # ROW_BATTN
        brow(p["b_comb"]),                  # ROW_BCOMB
        brow(p["b_i2h"] + p["b_h2h"]),      # ROW_BLSTM (fused LSTM bias)
        brow(p["b2"]),                      # ROW_B2
        jnp.zeros((3, LANES), f32),
    ], axis=0)                              # (8, 128)
    return w_slab, b_slab


@jax.jit
def meta_att_decoder_forward(x_seq, h0, c0, enc, params):
    """Run the decoder for all T steps in one Pallas call.

    x_seq: (T, B, OUTPUT); h0, c0: (B, HIDDEN); enc: (B, OBS_LEN, HIDDEN).
    Returns (outputs (T, B, OUTPUT), h_T (B, HIDDEN), c_T (B, HIDDEN)).
    """
    f32 = jnp.float32
    T, B, _ = x_seq.shape
    G = TIME_BLOCK
    Bp = max(8, ((B + 7) // 8) * 8)        # pad batch to a sublane multiple
    Tb = -(-T // G)                        # grid blocks along time
    Tp = Tb * G

    x_p = jnp.pad(x_seq.astype(f32),
                  ((0, Tp - T), (0, Bp - B), (0, XPAD - OUTPUT)))
    h_p = jnp.pad(h0.astype(f32), ((0, Bp - B), (0, 0)))
    c_p = jnp.pad(c0.astype(f32), ((0, Bp - B), (0, 0)))
    enc_p = jnp.pad(enc.astype(f32), ((0, Bp - B), (0, 0), (0, 0)))

    w_slab, b_slab = _pack_params(params)
    # Fold attn_combine's attn_applied weight into the (time-invariant) encoder
    # outputs once: enc_cmb[b*L + l, e] = sum_h enc[b, l, h] * W_comb_a[h, e].
    w_cmb_a = params["w_comb"][:HIDDEN].astype(f32)
    enc_cmb = jnp.einsum("blh,he->ble", enc_p, w_cmb_a).reshape(
        Bp * OBS_LEN, EMBED)

    kernel = functools.partial(_decoder_block_kernel, seq_len=T, block=G)

    packed, h_T, c_T = pl.pallas_call(
        kernel,
        out_shape=(
            jax.ShapeDtypeStruct((Tb, Bp, G * XPAD), f32),   # time-packed out
            jax.ShapeDtypeStruct((Bp, HIDDEN), f32),         # h_T
            jax.ShapeDtypeStruct((Bp, HIDDEN), f32),         # c_T
        ),
        grid_spec=pltpu.PrefetchScalarGridSpec(
            num_scalar_prefetch=0,
            grid=(Tb,),
            in_specs=[
                pl.BlockSpec((G, Bp, XPAD), lambda g: (g, 0, 0)),          # x blk
                pl.BlockSpec((Bp, HIDDEN), lambda g: (0, 0)),              # h0
                pl.BlockSpec((Bp, HIDDEN), lambda g: (0, 0)),              # c0
                pl.BlockSpec((Bp * OBS_LEN, EMBED), lambda g: (0, 0)),     # enc@Wa
                pl.BlockSpec((R_TOTAL, LANES), lambda g: (0, 0)),          # W slab
                pl.BlockSpec((8, LANES), lambda g: (0, 0)),                # b slab
            ],
            out_specs=[
                pl.BlockSpec((1, Bp, G * XPAD), lambda g: (g, 0, 0)),
                pl.BlockSpec((Bp, HIDDEN), lambda g: (0, 0)),
                pl.BlockSpec((Bp, HIDDEN), lambda g: (0, 0)),
            ],
            scratch_shapes=[pltpu.VMEM((Bp, HIDDEN), f32),
                            pltpu.VMEM((Bp, HIDDEN), f32)],
        ),
        compiler_params=pltpu.CompilerParams(
            dimension_semantics=("arbitrary",)),   # sequential recurrence
    )(x_p, h_p, c_p, enc_cmb, w_slab, b_slab)

    # lane index = (local step j) * XPAD + output channel
    outputs = (packed.reshape(Tb, Bp, G, XPAD)
                     .transpose(0, 2, 1, 3)
                     .reshape(Tp, Bp, XPAD)[:T, :B, :OUTPUT])
    return outputs, h_T[:B], c_T[:B]


def meta_att_decoder_step(x, h, c, enc, params):
    """Single decoder step (exactly the PyTorch module's forward())."""
    out, h_t, c_t = meta_att_decoder_forward(x[None], h, c, enc, params)
    return out[0], h_t, c_t


# --------------------------- pure-JAX reference ------------------------------
def _reference_step(x, h, c, enc, p):
    e = x @ p["w1"] + p["b1"]
    embedded = jnp.where(e > 0, e, 0.01 * e)
    attn_in = jnp.concatenate([embedded, h], axis=1)
    attn_w = jax.nn.softmax(attn_in @ p["w_attn"] + p["b_attn"], axis=1)
    attn_applied = jnp.einsum("bl,blh->bh", attn_w, enc)
    comb = jnp.maximum(
        jnp.concatenate([attn_applied, embedded], axis=1) @ p["w_comb"]
        + p["b_comb"], 0.0)
    preact = comb @ p["w_i2h"] + p["b_i2h"] + h @ p["w_h2h"] + p["b_h2h"]
    gates = jax.nn.sigmoid(preact[:, :3 * HIDDEN])
    g_t = jnp.tanh(preact[:, 3 * HIDDEN:])
    i_t, f_t, o_t = (gates[:, :HIDDEN], gates[:, HIDDEN:2 * HIDDEN],
                     gates[:, 2 * HIDDEN:3 * HIDDEN])
    c_t = c * f_t + i_t * g_t
    h_t = o_t * jnp.tanh(c_t)
    return h_t @ p["w2"] + p["b2"], h_t, c_t


def _reference_forward(x_seq, h0, c0, enc, p):
    h, c = h0, c0
    outs = []
    for t in range(x_seq.shape[0]):
        o, h, c = _reference_step(x_seq[t], h, c, enc, p)
        outs.append(o)
    return jnp.stack(outs, axis=0), h, c


def _init_params(key):
    ks = jax.random.split(key, 12)
    u = lambda k, shape, s: jax.random.uniform(k, shape, jnp.float32, -s, s)
    std = 1.0 / (HIDDEN ** 0.5)
    return {
        # declinear1: torch weight (out=E, in=O) stored transposed (O, E)
        "w1": u(ks[0], (OUTPUT, EMBED), 0.5),
        "b1": jnp.zeros((1, EMBED), jnp.float32),
        # attn: in = E + H*num_layers, out = OBS_LEN
        "w_attn": u(ks[1], (EMBED + HIDDEN * NUM_LAYERS, OBS_LEN), 0.3),
        "b_attn": u(ks[2], (1, OBS_LEN), 0.1),
        # attn_combine: in = H + E, out = E
        "w_comb": u(ks[3], (HIDDEN + EMBED, EMBED), 0.3),
        "b_comb": u(ks[4], (1, EMBED), 0.1),
        # lstm1.i2h: in = E, out = 4H
        "w_i2h": u(ks[5], (EMBED, 4 * HIDDEN), std),
        "b_i2h": u(ks[6], (1, 4 * HIDDEN), std),
        # lstm1.h2h: in = H, out = 4H
        "w_h2h": u(ks[7], (HIDDEN, 4 * HIDDEN), std),
        "b_h2h": u(ks[8], (1, 4 * HIDDEN), std),
        # declinear2: in = H, out = O
        "w2": u(ks[9], (HIDDEN, OUTPUT), 0.3),
        "b2": u(ks[10], (1, OUTPUT), 0.1),
    }


if __name__ == "__main__":
    key = jax.random.PRNGKey(0)
    kp, kx, kh, kc, ke = jax.random.split(key, 5)

    # T=20 exercises both the multi-block recurrence carry (2 grid blocks of
    # G=16) and the padded-timestep masking (last 12 steps of block 2).
    T, B = 20, 4
    params = _init_params(kp)
    x_seq = jax.random.normal(kx, (T, B, OUTPUT), jnp.float32)
    h0 = jax.random.normal(kh, (B, HIDDEN), jnp.float32)
    c0 = jax.random.normal(kc, (B, HIDDEN), jnp.float32)
    enc = jax.random.normal(ke, (B, OBS_LEN, HIDDEN), jnp.float32)

    out, h_T, c_T = jax.block_until_ready(
        meta_att_decoder_forward(x_seq, h0, c0, enc, params))

    ref_out, ref_h, ref_c = _reference_forward(x_seq, h0, c0, enc, params)
    # Exact softmax divide now; only f32 reassociation noise remains.
    tol = dict(atol=1e-3, rtol=1e-3)
    assert jnp.allclose(out, ref_out, **tol)
    assert jnp.allclose(h_T, ref_h, **tol)
    assert jnp.allclose(c_T, ref_c, **tol)

    print("KERNEL_OK")
</pallas_src>

<mosaic_0001>
module attributes {stable_mosaic.version = 11 : i64} {
  func.func @_decoder_block_kernel(%arg0: i32, %arg1: memref<16x8x8xf32, #tpu.memory_space<vmem>>, %arg2: memref<8x16xf32, #tpu.memory_space<vmem>>, %arg3: memref<8x16xf32, #tpu.memory_space<vmem>>, %arg4: memref<160x8xf32, #tpu.memory_space<vmem>>, %arg5: memref<56x128xf32, #tpu.memory_space<vmem>>, %arg6: memref<8x128xf32, #tpu.memory_space<vmem>>, %arg7: memref<1x8x128xf32, #tpu.memory_space<vmem>>, %arg8: memref<8x16xf32, #tpu.memory_space<vmem>>, %arg9: memref<8x16xf32, #tpu.memory_space<vmem>>, %arg10: memref<8x16xf32, #tpu.memory_space<vmem>>, %arg11: memref<8x16xf32, #tpu.memory_space<vmem>>) attributes {dimension_semantics = [#tpu.dimension_semantics<arbitrary>], iteration_bounds = array<i64: 2>, scalar_prefetch = 0 : i64, scratch_operands = 2 : i64, tpu.core_type = #tpu.core_type<tc>, window_params = [{transform_indices = @transform_0, window_bounds = array<i64: 16, 8, 8>}, {pipeline_mode = #tpu.pipeline_mode<synchronous>, transform_indices = @transform_1, window_bounds = array<i64: 8, 16>}, {pipeline_mode = #tpu.pipeline_mode<synchronous>, transform_indices = @transform_2, window_bounds = array<i64: 8, 16>}, {pipeline_mode = #tpu.pipeline_mode<synchronous>, transform_indices = @transform_3, window_bounds = array<i64: 160, 8>}, {pipeline_mode = #tpu.pipeline_mode<synchronous>, transform_indices = @transform_4, window_bounds = array<i64: 56, 128>}, {pipeline_mode = #tpu.pipeline_mode<synchronous>, transform_indices = @transform_5, window_bounds = array<i64: 8, 128>}, {transform_indices = @transform_6, window_bounds = array<i64: 1, 8, 128>}, {pipeline_mode = #tpu.pipeline_mode<synchronous>, transform_indices = @transform_7, window_bounds = array<i64: 8, 16>}, {pipeline_mode = #tpu.pipeline_mode<synchronous>, transform_indices = @transform_8, window_bounds = array<i64: 8, 16>}]} {
    %c0_i32 = arith.constant 0 : i32
    %0 = arith.cmpi eq, %arg0, %c0_i32 : i32
    %1 = arith.extui %0 : i1 to i32
    %c0_i32_0 = arith.constant 0 : i32
    %2 = arith.cmpi ne, %1, %c0_i32_0 : i32
    scf.if %2 {
      %c0_359 = arith.constant 0 : index
      %c0_360 = arith.constant 0 : index
      %1381 = vector.load %arg2[%c0_359, %c0_360] : memref<8x16xf32, #tpu.memory_space<vmem>>, vector<8x16xf32>
      %c0_361 = arith.constant 0 : index
      %c0_362 = arith.constant 0 : index
      %1382 = vector.load %arg10[%c0_361, %c0_362] : memref<8x16xf32, #tpu.memory_space<vmem>>, vector<8x16xf32>
      tpu.vector_store %arg10[%c0_361, %c0_362], %1381 {strides = array<i32>} : memref<8x16xf32, #tpu.memory_space<vmem>>, vector<8x16xf32>,
      %c0_363 = arith.constant 0 : index
      %c0_364 = arith.constant 0 : index
      %1383 = vector.load %arg3[%c0_363, %c0_364] : memref<8x16xf32, #tpu.memory_space<vmem>>, vector<8x16xf32>
      %c0_365 = arith.constant 0 : index
      %c0_366 = arith.constant 0 : index
      %1384 = vector.load %arg11[%c0_365, %c0_366] : memref<8x16xf32, #tpu.memory_space<vmem>>, vector<8x16xf32>
      tpu.vector_store %arg11[%c0_365, %c0_366], %1383 {strides = array<i32>} : memref<8x16xf32, #tpu.memory_space<vmem>>, vector<8x16xf32>,
    } else {
    }
    %c0 = arith.constant 0 : index
    %c0_1 = arith.constant 0 : index
    %3 = vector.load %arg5[%c0, %c0_1] : memref<56x128xf32, #tpu.memory_space<vmem>>, vector<8x8xf32>
    %c8 = arith.constant 8 : index
    %c0_2 = arith.constant 0 : index
    %4 = vector.load %arg5[%c8, %c0_2] : memref<56x128xf32, #tpu.memory_space<vmem>>, vector<16x84xf32>
    %c24 = arith.constant 24 : index
    %c0_3 = arith.constant 0 : index
    %5 = vector.load %arg5[%c24, %c0_3] : memref<56x128xf32, #tpu.memory_space<vmem>>, vector<8x28xf32>
    %c32 = arith.constant 32 : index
    %c0_4 = arith.constant 0 : index
    %6 = vector.load %arg5[%c32, %c0_4] : memref<56x128xf32, #tpu.memory_space<vmem>>, vector<8x64xf32>
    %c40 = arith.constant 40 : index
    %c0_5 = arith.constant 0 : index
    %7 = vector.load %arg5[%c40, %c0_5] : memref<56x128xf32, #tpu.memory_space<vmem>>, vector<16x8xf32>
    %c0_6 = arith.constant 0 : index
    %c0_7 = arith.constant 0 : index
    %8 = vector.load %arg6[%c0_6, %c0_7] : memref<8x128xf32, #tpu.memory_space<vmem>>, vector<1x8xf32>
    %c1 = arith.constant 1 : index
    %c0_8 = arith.constant 0 : index
    %9 = vector.load %arg6[%c1, %c0_8] : memref<8x128xf32, #tpu.memory_space<vmem>>, vector<1x20xf32>
    %c2 = arith.constant 2 : index
    %c0_9 = arith.constant 0 : index
    %10 = vector.load %arg6[%c2, %c0_9] : memref<8x128xf32, #tpu.memory_space<vmem>>, vector<1x8xf32>
    %c3 = arith.constant 3 : index
    %c0_10 = arith.constant 0 : index
    %11 = vector.load %arg6[%c3, %c0_10] : memref<8x128xf32, #tpu.memory_space<vmem>>, vector<1x64xf32>
    %c4 = arith.constant 4 : index
    %c0_11 = arith.constant 0 : index
    %12 = vector.load %arg6[%c4, %c0_11] : memref<8x128xf32, #tpu.memory_space<vmem>>, vector<1x8xf32>
    %13 = tpu.iota {dimensions = array<i32: 0>} : vector<8x1xi32>
    %c0_i32_12 = arith.constant 0 : i32
    %14 = vector.broadcast %c0_i32_12 : i32 to vector<8x1xi32>
    %15 = arith.cmpi eq, %13, %14 : vector<8x1xi32>
    %16 = arith.extui %15 : vector<8x1xi1> to vector<8x1xi32>
    %17 = arith.sitofp %16 : vector<8x1xi32> to vector<8x1xf32>
    %c1_i32 = arith.constant 1 : i32
    %18 = vector.broadcast %c1_i32 : i32 to vector<8x1xi32>
    %19 = arith.cmpi eq, %13, %18 : vector<8x1xi32>
    %20 = arith.extui %19 : vector<8x1xi1> to vector<8x1xi32>
    %21 = arith.sitofp %20 : vector<8x1xi32> to vector<8x1xf32>
    %c2_i32 = arith.constant 2 : i32
    %22 = vector.broadcast %c2_i32 : i32 to vector<8x1xi32>
    %23 = arith.cmpi eq, %13, %22 : vector<8x1xi32>
    %24 = arith.extui %23 : vector<8x1xi1> to vector<8x1xi32>
    %25 = arith.sitofp %24 : vector<8x1xi32> to vector<8x1xf32>
    %c3_i32 = arith.constant 3 : i32
    %26 = vector.broadcast %c3_i32 : i32 to vector<8x1xi32>
    %27 = arith.cmpi eq, %13, %26 : vector<8x1xi32>
    %28 = arith.extui %27 : vector<8x1xi1> to vector<8x1xi32>
    %29 = arith.sitofp %28 : vector<8x1xi32> to vector<8x1xf32>
    %c4_i32 = arith.constant 4 : i32
    %30 = vector.broadcast %c4_i32 : i32 to vector<8x1xi32>
    %31 = arith.cmpi eq, %13, %30 : vector<8x1xi32>
    %32 = arith.extui %31 : vector<8x1xi1> to vector<8x1xi32>
    %33 = arith.sitofp %32 : vector<8x1xi32> to vector<8x1xf32>
    %c5_i32 = arith.constant 5 : i32
    %34 = vector.broadcast %c5_i32 : i32 to vector<8x1xi32>
    %35 = arith.cmpi eq, %13, %34 : vector<8x1xi32>
    %36 = arith.extui %35 : vector<8x1xi1> to vector<8x1xi32>
    %37 = arith.sitofp %36 : vector<8x1xi32> to vector<8x1xf32>
    %c6_i32 = arith.constant 6 : i32
    %38 = vector.broadcast %c6_i32 : i32 to vector<8x1xi32>
    %39 = arith.cmpi eq, %13, %38 : vector<8x1xi32>
    %40 = arith.extui %39 : vector<8x1xi1> to vector<8x1xi32>
    %41 = arith.sitofp %40 : vector<8x1xi32> to vector<8x1xf32>
    %c7_i32 = arith.constant 7 : i32
    %42 = vector.broadcast %c7_i32 : i32 to vector<8x1xi32>
    %43 = arith.cmpi eq, %13, %42 : vector<8x1xi32>
    %44 = arith.extui %43 : vector<8x1xi1> to vector<8x1xi32>
    %45 = arith.sitofp %44 : vector<8x1xi32> to vector<8x1xf32>
    %c0_13 = arith.constant 0 : index
    %c0_14 = arith.constant 0 : index
    %46 = vector.load %arg10[%c0_13, %c0_14] : memref<8x16xf32, #tpu.memory_space<vmem>>, vector<8x16xf32>
    %c0_15 = arith.constant 0 : index
    %c0_16 = arith.constant 0 : index
    %47 = vector.load %arg11[%c0_15, %c0_16] : memref<8x16xf32, #tpu.memory_space<vmem>>, vector<8x16xf32>
    %c0_17 = arith.constant 0 : index
    %c0_18 = arith.constant 0 : index
    %c0_19 = arith.constant 0 : index
    %48 = vector.load %arg1[%c0_17, %c0_18, %c0_19] : memref<16x8x8xf32, #tpu.memory_space<vmem>>, vector<1x8x8xf32>
    %49 = vector.shape_cast %48 : vector<1x8x8xf32> to vector<8x8xf32>
    %cst = arith.constant dense<0.000000e+00> : vector<8x8xf32>
    %50 = tpu.matmul %49, %3, %cst {dimension_numbers = #tpu.dot_dimension_numbers<[1], [0], [0], [1], [0, 0, 1, 1], [], []>} : vector<8x8xf32>, vector<8x8xf32>, vector<8x8xf32> -> vector<8x8xf32>
    %51 = vector.broadcast %8 : vector<1x8xf32> to vector<8x8xf32>
    %52 = arith.addf %50, %51 : vector<8x8xf32>
    %cst_20 = arith.constant 0.000000e+00 : f32
    %53 = vector.broadcast %cst_20 : f32 to vector<8x8xf32>
    %54 = arith.cmpf ogt, %52, %53 : vector<8x8xf32>
    %cst_21 = arith.constant 0.00999999977 : f32
    %55 = vector.broadcast %cst_21 : f32 to vector<8x8xf32>
    %56 = arith.mulf %55, %52 : vector<8x8xf32>
    %57 = arith.select %54, %52, %56 : vector<8x8xi1>, vector<8x8xf32>
    %cst_22 = arith.constant dense<0.000000e+00> : vector<8x84xf32>
    %58 = tpu.matmul %46, %4, %cst_22 {dimension_numbers = #tpu.dot_dimension_numbers<[1], [0], [0], [1], [0, 0, 1, 1], [], []>} : vector<8x16xf32>, vector<16x84xf32>, vector<8x84xf32> -> vector<8x84xf32>
    %cst_23 = arith.constant dense<0.000000e+00> : vector<8x28xf32>
    %59 = tpu.matmul %57, %5, %cst_23 {dimension_numbers = #tpu.dot_dimension_numbers<[1], [0], [0], [1], [0, 0, 1, 1], [], []>} : vector<8x8xf32>, vector<8x28xf32>, vector<8x28xf32> -> vector<8x28xf32>
    %60 = vector.extract_strided_slice %59 {offsets = [0, 0], sizes = [8, 20], strides = [1, 1]} : vector<8x28xf32> to vector<8x20xf32>
    %61 = vector.extract_strided_slice %58 {offsets = [0, 0], sizes = [8, 20], strides = [1, 1]} : vector<8x84xf32> to vector<8x20xf32>
    %62 = arith.addf %60, %61 : vector<8x20xf32>
    %63 = vector.broadcast %9 : vector<1x20xf32> to vector<8x20xf32>
    %64 = arith.addf %62, %63 : vector<8x20xf32>
    %cst_24 = arith.constant dense<0xFF800000> : vector<8xf32>
    %65 = vector.multi_reduction <maximumf>, %64, %cst_24 [1] : vector<8x20xf32> to vector<8xf32>
    %66 = vector.shape_cast %65 : vector<8xf32> to vector<8x1xf32>
    %67 = vector.broadcast %66 : vector<8x1xf32> to vector<8x20xf32>
    %68 = arith.subf %64, %67 : vector<8x20xf32>
    %69 = math.exp %68 : vector<8x20xf32>
    %cst_25 = arith.constant dense<0.000000e+00> : vector<8xf32>
    %70 = vector.multi_reduction <add>, %69, %cst_25 [1] : vector<8x20xf32> to vector<8xf32>
    %71 = vector.shape_cast %70 : vector<8xf32> to vector<8x1xf32>
    %72 = vector.broadcast %71 : vector<8x1xf32> to vector<8x20xf32>
    %73 = arith.divf %69, %72 : vector<8x20xf32>
    %74 = vector.broadcast %17 : vector<8x1xf32> to vector<8x20xf32>
    %75 = arith.mulf %73, %74 : vector<8x20xf32>
    %76 = vector.broadcast %21 : vector<8x1xf32> to vector<8x20xf32>
    %77 = arith.mulf %73, %76 : vector<8x20xf32>
    %78 = vector.broadcast %25 : vector<8x1xf32> to vector<8x20xf32>
    %79 = arith.mulf %73, %78 : vector<8x20xf32>
    %80 = vector.broadcast %29 : vector<8x1xf32> to vector<8x20xf32>
    %81 = arith.mulf %73, %80 : vector<8x20xf32>
    %82 = vector.broadcast %33 : vector<8x1xf32> to vector<8x20xf32>
    %83 = arith.mulf %73, %82 : vector<8x20xf32>
    %84 = vector.broadcast %37 : vector<8x1xf32> to vector<8x20xf32>
    %85 = arith.mulf %73, %84 : vector<8x20xf32>
    %86 = vector.broadcast %41 : vector<8x1xf32> to vector<8x20xf32>
    %87 = arith.mulf %73, %86 : vector<8x20xf32>
    %88 = vector.broadcast %45 : vector<8x1xf32> to vector<8x20xf32>
    %89 = arith.mulf %73, %88 : vector<8x20xf32>
    %90 = tpu.concatenate %75, %77, %79, %81, %83, %85, %87, %89 in 1 : vector<8x20xf32>, vector<8x20xf32>, vector<8x20xf32>, vector<8x20xf32>, vector<8x20xf32>, vector<8x20xf32>, vector<8x20xf32>, vector<8x20xf32> -> vector<8x160xf32>
    %c0_26 = arith.constant 0 : index
    %c0_27 = arith.constant 0 : index
    %91 = vector.load %arg4[%c0_26, %c0_27] : memref<160x8xf32, #tpu.memory_space<vmem>>, vector<160x8xf32>
    %cst_28 = arith.constant dense<0.000000e+00> : vector<8x8xf32>
    %92 = tpu.matmul %90, %91, %cst_28 {dimension_numbers = #tpu.dot_dimension_numbers<[1], [0], [0], [1], [0, 0, 1, 1], [], []>} : vector<8x160xf32>, vector<160x8xf32>, vector<8x8xf32> -> vector<8x8xf32>
    %93 = vector.extract_strided_slice %59 {offsets = [0, 20], sizes = [8, 8], strides = [1, 1]} : vector<8x28xf32> to vector<8x8xf32>
    %94 = arith.addf %92, %93 : vector<8x8xf32>
    %95 = vector.broadcast %10 : vector<1x8xf32> to vector<8x8xf32>
    %96 = arith.addf %94, %95 : vector<8x8xf32>
    %cst_29 = arith.constant 0.000000e+00 : f32
    %97 = vector.broadcast %cst_29 : f32 to vector<8x8xf32>
    %98 = arith.maximumf %96, %97 : vector<8x8xf32>
    %cst_30 = arith.constant dense<0.000000e+00> : vector<8x64xf32>
    %99 = tpu.matmul %98, %6, %cst_30 {dimension_numbers = #tpu.dot_dimension_numbers<[1], [0], [0], [1], [0, 0, 1, 1], [], []>} : vector<8x8xf32>, vector<8x64xf32>, vector<8x64xf32> -> vector<8x64xf32>
    %100 = vector.extract_strided_slice %58 {offsets = [0, 20], sizes = [8, 64], strides = [1, 1]} : vector<8x84xf32> to vector<8x64xf32>
    %101 = arith.addf %99, %100 : vector<8x64xf32>
    %102 = vector.broadcast %11 : vector<1x64xf32> to vector<8x64xf32>
    %103 = arith.addf %101, %102 : vector<8x64xf32>
    %104 = vector.extract_strided_slice %103 {offsets = [0, 0], sizes = [8, 48], strides = [1, 1]} : vector<8x64xf32> to vector<8x48xf32>
    %105 = arith.negf %104 : vector<8x48xf32>
    %106 = math.exp %105 : vector<8x48xf32>
    %cst_31 = arith.constant 1.000000e+00 : f32
    %107 = vector.broadcast %cst_31 : f32 to vector<8x48xf32>
    %108 = arith.addf %107, %106 : vector<8x48xf32>
    %109 = arith.divf %107, %108 : vector<8x48xf32>
    %110 = vector.extract_strided_slice %103 {offsets = [0, 48], sizes = [8, 16], strides = [1, 1]} : vector<8x64xf32> to vector<8x16xf32>
    %111 = math.tanh %110 : vector<8x16xf32>
    %112 = vector.extract_strided_slice %109 {offsets = [0, 0], sizes = [8, 16], strides = [1, 1]} : vector<8x48xf32> to vector<8x16xf32>
    %113 = vector.extract_strided_slice %109 {offsets = [0, 16], sizes = [8, 16], strides = [1, 1]} : vector<8x48xf32> to vector<8x16xf32>
    %114 = vector.extract_strided_slice %109 {offsets = [0, 32], sizes = [8, 16], strides = [1, 1]} : vector<8x48xf32> to vector<8x16xf32>
    %115 = arith.mulf %47, %113 : vector<8x16xf32>
    %116 = arith.mulf %112, %111 : vector<8x16xf32>
    %117 = arith.addf %115, %116 : vector<8x16xf32>
    %118 = math.tanh %117 : vector<8x16xf32>
    %119 = arith.mulf %114, %118 : vector<8x16xf32>
    %cst_32 = arith.constant dense<0.000000e+00> : vector<8x8xf32>
    %120 = tpu.matmul %119, %7, %cst_32 {dimension_numbers = #tpu.dot_dimension_numbers<[1], [0], [0], [1], [0, 0, 1, 1], [], []>} : vector<8x16xf32>, vector<16x8xf32>, vector<8x8xf32> -> vector<8x8xf32>
    %121 = vector.broadcast %12 : vector<1x8xf32> to vector<8x8xf32>
    %122 = arith.addf %120, %121 : vector<8x8xf32>
    %c0_33 = arith.constant 0 : index
    %c0_34 = arith.constant 0 : index
    %c0_35 = arith.constant 0 : index
    %123 = vector.load %arg7[%c0_33, %c0_34, %c0_35] : memref<1x8x128xf32, #tpu.memory_space<vmem>>, vector<1x8x8xf32>
    %124 = vector.shape_cast %123 : vector<1x8x8xf32> to vector<8x8xf32>
    %125 = vector.shape_cast %122 : vector<8x8xf32> to vector<1x8x8xf32>
    tpu.vector_store %arg7[%c0_33, %c0_34, %c0_35], %125 {strides = array<i32>} : memref<1x8x128xf32, #tpu.memory_space<vmem>>, vector<1x8x8xf32>,
    %c16_i32 = arith.constant 16 : i32
    %126 = arith.muli %arg0, %c16_i32 : i32
    %c0_i32_36 = arith.constant 0 : i32
    %127 = arith.addi %126, %c0_i32_36 : i32
    %c20_i32 = arith.constant 20 : i32
    %128 = arith.cmpi slt, %127, %c20_i32 : i32
    %129 = arith.select %128, %119, %46 : vector<8x16xf32>
    %130 = arith.select %128, %117, %47 : vector<8x16xf32>
    %c1_37 = arith.constant 1 : index
    %c0_38 = arith.constant 0 : index
    %c0_39 = arith.constant 0 : index
    %131 = vector.load %arg1[%c1_37, %c0_38, %c0_39] : memref<16x8x8xf32, #tpu.memory_space<vmem>>, vector<1x8x8xf32>
    %132 = vector.shape_cast %131 : vector<1x8x8xf32> to vector<8x8xf32>
    %cst_40 = arith.constant dense<0.000000e+00> : vector<8x8xf32>
    %133 = tpu.matmul %132, %3, %cst_40 {dimension_numbers = #tpu.dot_dimension_numbers<[1], [0], [0], [1], [0, 0, 1, 1], [], []>} : vector<8x8xf32>, vector<8x8xf32>, vector<8x8xf32> -> vector<8x8xf32>
    %134 = vector.broadcast %8 : vector<1x8xf32> to vector<8x8xf32>
    %135 = arith.addf %133, %134 : vector<8x8xf32>
    %cst_41 = arith.constant 0.000000e+00 : f32
    %136 = vector.broadcast %cst_41 : f32 to vector<8x8xf32>
    %137 = arith.cmpf ogt, %135, %136 : vector<8x8xf32>
    %cst_42 = arith.constant 0.00999999977 : f32
    %138 = vector.broadcast %cst_42 : f32 to vector<8x8xf32>
    %139 = arith.mulf %138, %135 : vector<8x8xf32>
    %140 = arith.select %137, %135, %139 : vector<8x8xi1>, vector<8x8xf32>
    %cst_43 = arith.constant dense<0.000000e+00> : vector<8x84xf32>
    %141 = tpu.matmul %129, %4, %cst_43 {dimension_numbers = #tpu.dot_dimension_numbers<[1], [0], [0], [1], [0, 0, 1, 1], [], []>} : vector<8x16xf32>, vector<16x84xf32>, vector<8x84xf32> -> vector<8x84xf32>
    %cst_44 = arith.constant dense<0.000000e+00> : vector<8x28xf32>
    %142 = tpu.matmul %140, %5, %cst_44 {dimension_numbers = #tpu.dot_dimension_numbers<[1], [0], [0], [1], [0, 0, 1, 1], [], []>} : vector<8x8xf32>, vector<8x28xf32>, vector<8x28xf32> -> vector<8x28xf32>
    %143 = vector.extract_strided_slice %142 {offsets = [0, 0], sizes = [8, 20], strides = [1, 1]} : vector<8x28xf32> to vector<8x20xf32>
    %144 = vector.extract_strided_slice %141 {offsets = [0, 0], sizes = [8, 20], strides = [1, 1]} : vector<8x84xf32> to vector<8x20xf32>
    %145 = arith.addf %143, %144 : vector<8x20xf32>
    %146 = vector.broadcast %9 : vector<1x20xf32> to vector<8x20xf32>
    %147 = arith.addf %145, %146 : vector<8x20xf32>
    %cst_45 = arith.constant dense<0xFF800000> : vector<8xf32>
    %148 = vector.multi_reduction <maximumf>, %147, %cst_45 [1] : vector<8x20xf32> to vector<8xf32>
    %149 = vector.shape_cast %148 : vector<8xf32> to vector<8x1xf32>
    %150 = vector.broadcast %149 : vector<8x1xf32> to vector<8x20xf32>
    %151 = arith.subf %147, %150 : vector<8x20xf32>
    %152 = math.exp %151 : vector<8x20xf32>
    %cst_46 = arith.constant dense<0.000000e+00> : vector<8xf32>
    %153 = vector.multi_reduction <add>, %152, %cst_46 [1] : vector<8x20xf32> to vector<8xf32>
    %154 = vector.shape_cast %153 : vector<8xf32> to vector<8x1xf32>
    %155 = vector.broadcast %154 : vector<8x1xf32> to vector<8x20xf32>
    %156 = arith.divf %152, %155 : vector<8x20xf32>
    %157 = vector.broadcast %17 : vector<8x1xf32> to vector<8x20xf32>
    %158 = arith.mulf %156, %157 : vector<8x20xf32>
    %159 = vector.broadcast %21 : vector<8x1xf32> to vector<8x20xf32>
    %160 = arith.mulf %156, %159 : vector<8x20xf32>
    %161 = vector.broadcast %25 : vector<8x1xf32> to vector<8x20xf32>
    %162 = arith.mulf %156, %161 : vector<8x20xf32>
    %163 = vector.broadcast %29 : vector<8x1xf32> to vector<8x20xf32>
    %164 = arith.mulf %156, %163 : vector<8x20xf32>
    %165 = vector.broadcast %33 : vector<8x1xf32> to vector<8x20xf32>
    %166 = arith.mulf %156, %165 : vector<8x20xf32>
    %167 = vector.broadcast %37 : vector<8x1xf32> to vector<8x20xf32>
    %168 = arith.mulf %156, %167 : vector<8x20xf32>
    %169 = vector.broadcast %41 : vector<8x1xf32> to vector<8x20xf32>
    %170 = arith.mulf %156, %169 : vector<8x20xf32>
    %171 = vector.broadcast %45 : vector<8x1xf32> to vector<8x20xf32>
    %172 = arith.mulf %156, %171 : vector<8x20xf32>
    %173 = tpu.concatenate %158, %160, %162, %164, %166, %168, %170, %172 in 1 : vector<8x20xf32>, vector<8x20xf32>, vector<8x20xf32>, vector<8x20xf32>, vector<8x20xf32>, vector<8x20xf32>, vector<8x20xf32>, vector<8x20xf32> -> vector<8x160xf32>
    %c0_47 = arith.constant 0 : index
    %c0_48 = arith.constant 0 : index
    %174 = vector.load %arg4[%c0_47, %c0_48] : memref<160x8xf32, #tpu.memory_space<vmem>>, vector<160x8xf32>
    %cst_49 = arith.constant dense<0.000000e+00> : vector<8x8xf32>
    %175 = tpu.matmul %173, %174, %cst_49 {dimension_numbers = #tpu.dot_dimension_numbers<[1], [0], [0], [1], [0, 0, 1, 1], [], []>} : vector<8x160xf32>, vector<160x8xf32>, vector<8x8xf32> -> vector<8x8xf32>
    %176 = vector.extract_strided_slice %142 {offsets = [0, 20], sizes = [8, 8], strides = [1, 1]} : vector<8x28xf32> to vector<8x8xf32>
    %177 = arith.addf %175, %176 : vector<8x8xf32>
    %178 = vector.broadcast %10 : vector<1x8xf32> to vector<8x8xf32>
    %179 = arith.addf %177, %178 : vector<8x8xf32>
    %cst_50 = arith.constant 0.000000e+00 : f32
    %180 = vector.broadcast %cst_50 : f32 to vector<8x8xf32>
    %181 = arith.maximumf %179, %180 : vector<8x8xf32>
    %cst_51 = arith.constant dense<0.000000e+00> : vector<8x64xf32>
    %182 = tpu.matmul %181, %6, %cst_51 {dimension_numbers = #tpu.dot_dimension_numbers<[1], [0], [0], [1], [0, 0, 1, 1], [], []>} : vector<8x8xf32>, vector<8x64xf32>, vector<8x64xf32> -> vector<8x64xf32>
    %183 = vector.extract_strided_slice %141 {offsets = [0, 20], sizes = [8, 64], strides = [1, 1]} : vector<8x84xf32> to vector<8x64xf32>
    %184 = arith.addf %182, %183 : vector<8x64xf32>
    %185 = vector.broadcast %11 : vector<1x64xf32> to vector<8x64xf32>
    %186 = arith.addf %184, %185 : vector<8x64xf32>
    %187 = vector.extract_strided_slice %186 {offsets = [0, 0], sizes = [8, 48], strides = [1, 1]} : vector<8x64xf32> to vector<8x48xf32>
    %188 = arith.negf %187 : vector<8x48xf32>
    %189 = math.exp %188 : vector<8x48xf32>
    %cst_52 = arith.constant 1.000000e+00 : f32
    %190 = vector.broadcast %cst_52 : f32 to vector<8x48xf32>
    %191 = arith.addf %190, %189 : vector<8x48xf32>
    %192 = arith.divf %190, %191 : vector<8x48xf32>
    %193 = vector.extract_strided_slice %186 {offsets = [0, 48], sizes = [8, 16], strides = [1, 1]} : vector<8x64xf32> to vector<8x16xf32>
    %194 = math.tanh %193 : vector<8x16xf32>
    %195 = vector.extract_strided_slice %192 {offsets = [0, 0], sizes = [8, 16], strides = [1, 1]} : vector<8x48xf32> to vector<8x16xf32>
    %196 = vector.extract_strided_slice %192 {offsets = [0, 16], sizes = [8, 16], strides = [1, 1]} : vector<8x48xf32> to vector<8x16xf32>
    %197 = vector.extract_strided_slice %192 {offsets = [0, 32], sizes = [8, 16], strides = [1, 1]} : vector<8x48xf32> to vector<8x16xf32>
    %198 = arith.mulf %130, %196 : vector<8x16xf32>
    %199 = arith.mulf %195, %194 : vector<8x16xf32>
    %200 = arith.addf %198, %199 : vector<8x16xf32>
    %201 = math.tanh %200 : vector<8x16xf32>
    %202 = arith.mulf %197, %201 : vector<8x16xf32>
    %cst_53 = arith.constant dense<0.000000e+00> : vector<8x8xf32>
    %203 = tpu.matmul %202, %7, %cst_53 {dimension_numbers = #tpu.dot_dimension_numbers<[1], [0], [0], [1], [0, 0, 1, 1], [], []>} : vector<8x16xf32>, vector<16x8xf32>, vector<8x8xf32> -> vector<8x8xf32>
    %204 = vector.broadcast %12 : vector<1x8xf32> to vector<8x8xf32>
    %205 = arith.addf %203, %204 : vector<8x8xf32>
    %c0_54 = arith.constant 0 : index
    %c0_55 = arith.constant 0 : index
    %c8_56 = arith.constant 8 : index
    %206 = vector.load %arg7[%c0_54, %c0_55, %c8_56] : memref<1x8x128xf32, #tpu.memory_space<vmem>>, vector<1x8x8xf32>
    %207 = vector.shape_cast %206 : vector<1x8x8xf32> to vector<8x8xf32>
    %208 = vector.shape_cast %205 : vector<8x8xf32> to vector<1x8x8xf32>
    tpu.vector_store %arg7[%c0_54, %c0_55, %c8_56], %208 {strides = array<i32>} : memref<1x8x128xf32, #tpu.memory_space<vmem>>, vector<1x8x8xf32>,
    %c16_i32_57 = arith.constant 16 : i32
    %209 = arith.muli %arg0, %c16_i32_57 : i32
    %c1_i32_58 = arith.constant 1 : i32
    %210 = arith.addi %209, %c1_i32_58 : i32
    %c20_i32_59 = arith.constant 20 : i32
    %211 = arith.cmpi slt, %210, %c20_i32_59 : i32
    %212 = arith.select %211, %202, %129 : vector<8x16xf32>
    %213 = arith.select %211, %200, %130 : vector<8x16xf32>
    %c2_60 = arith.constant 2 : index
    %c0_61 = arith.constant 0 : index
    %c0_62 = arith.constant 0 : index
    %214 = vector.load %arg1[%c2_60, %c0_61, %c0_62] : memref<16x8x8xf32, #tpu.memory_space<vmem>>, vector<1x8x8xf32>
    %215 = vector.shape_cast %214 : vector<1x8x8xf32> to vector<8x8xf32>
    %cst_63 = arith.constant dense<0.000000e+00> : vector<8x8xf32>
    %216 = tpu.matmul %215, %3, %cst_63 {dimension_numbers = #tpu.dot_dimension_numbers<[1], [0], [0], [1], [0, 0, 1, 1], [], []>} : vector<8x8xf32>, vector<8x8xf32>, vector<8x8xf32> -> vector<8x8xf32>
    %217 = vector.broadcast %8 : vector<1x8xf32> to vector<8x8xf32>
    %218 = arith.addf %216, %217 : vector<8x8xf32>
    %cst_64 = arith.constant 0.000000e+00 : f32
    %219 = vector.broadcast %cst_64 : f32 to vector<8x8xf32>
    %220 = arith.cmpf ogt, %218, %219 : vector<8x8xf32>
    %cst_65 = arith.constant 0.00999999977 : f32
    %221 = vector.broadcast %cst_65 : f32 to vector<8x8xf32>
    %222 = arith.mulf %221, %218 : vector<8x8xf32>
    %223 = arith.select %220, %218, %222 : vector<8x8xi1>, vector<8x8xf32>
    %cst_66 = arith.constant dense<0.000000e+00> : vector<8x84xf32>
    %224 = tpu.matmul %212, %4, %cst_66 {dimension_numbers = #tpu.dot_dimension_numbers<[1], [0], [0], [1], [0, 0, 1, 1], [], []>} : vector<8x16xf32>, vector<16x84xf32>, vector<8x84xf32> -> vector<8x84xf32>
    %cst_67 = arith.constant dense<0.000000e+00> : vector<8x28xf32>
    %225 = tpu.matmul %223, %5, %cst_67 {dimension_numbers = #tpu.dot_dimension_numbers<[1], [0], [0], [1], [0, 0, 1, 1], [], []>} : vector<8x8xf32>, vector<8x28xf32>, vector<8x28xf32> -> vector<8x28xf32>
    %226 = vector.extract_strided_slice %225 {offsets = [0, 0], sizes = [8, 20], strides = [1, 1]} : vector<8x28xf32> to vector<8x20xf32>
    %227 = vector.extract_strided_slice %224 {offsets = [0, 0], sizes = [8, 20], strides = [1, 1]} : vector<8x84xf32> to vector<8x20xf32>
    %228 = arith.addf %226, %227 : vector<8x20xf32>
    %229 = vector.broadcast %9 : vector<1x20xf32> to vector<8x20xf32>
    %230 = arith.addf %228, %229 : vector<8x20xf32>
    %cst_68 = arith.constant dense<0xFF800000> : vector<8xf32>
    %231 = vector.multi_reduction <maximumf>, %230, %cst_68 [1] : vector<8x20xf32> to vector<8xf32>
    %232 = vector.shape_cast %231 : vector<8xf32> to vector<8x1xf32>
    %233 = vector.broadcast %232 : vector<8x1xf32> to vector<8x20xf32>
    %234 = arith.subf %230, %233 : vector<8x20xf32>
    %235 = math.exp %234 : vector<8x20xf32>
    %cst_69 = arith.constant dense<0.000000e+00> : vector<8xf32>
    %236 = vector.multi_reduction <add>, %235, %cst_69 [1] : vector<8x20xf32> to vector<8xf32>
    %237 = vector.shape_cast %236 : vector<8xf32> to vector<8x1xf32>
    %238 = vector.broadcast %237 : vector<8x1xf32> to vector<8x20xf32>
    %239 = arith.divf %235, %238 : vector<8x20xf32>
    %240 = vector.broadcast %17 : vector<8x1xf32> to vector<8x20xf32>
    %241 = arith.mulf %239, %240 : vector<8x20xf32>
    %242 = vector.broadcast %21 : vector<8x1xf32> to vector<8x20xf32>
    %243 = arith.mulf %239, %242 : vector<8x20xf32>
    %244 = vector.broadcast %25 : vector<8x1xf32> to vector<8x20xf32>
    %245 = arith.mulf %239, %244 : vector<8x20xf32>
    %246 = vector.broadcast %29 : vector<8x1xf32> to vector<8x20xf32>
    %247 = arith.mulf %239, %246 : vector<8x20xf32>
    %248 = vector.broadcast %33 : vector<8x1xf32> to vector<8x20xf32>
    %249 = arith.mulf %239, %248 : vector<8x20xf32>
    %250 = vector.broadcast %37 : vector<8x1xf32> to vector<8x20xf32>
    %251 = arith.mulf %239, %250 : vector<8x20xf32>
    %252 = vector.broadcast %41 : vector<8x1xf32> to vector<8x20xf32>
    %253 = arith.mulf %239, %252 : vector<8x20xf32>
    %254 = vector.broadcast %45 : vector<8x1xf32> to vector<8x20xf32>
    %255 = arith.mulf %239, %254 : vector<8x20xf32>
    %256 = tpu.concatenate %241, %243, %245, %247, %249, %251, %253, %255 in 1 : vector<8x20xf32>, vector<8x20xf32>, vector<8x20xf32>, vector<8x20xf32>, vector<8x20xf32>, vector<8x20xf32>, vector<8x20xf32>, vector<8x20xf32> -> vector<8x160xf32>
    %c0_70 = arith.constant 0 : index
    %c0_71 = arith.constant 0 : index
    %257 = vector.load %arg4[%c0_70, %c0_71] : memref<160x8xf32, #tpu.memory_space<vmem>>, vector<160x8xf32>
    %cst_72 = arith.constant dense<0.000000e+00> : vector<8x8xf32>
    %258 = tpu.matmul %256, %257, %cst_72 {dimension_numbers = #tpu.dot_dimension_numbers<[1], [0], [0], [1], [0, 0, 1, 1], [], []>} : vector<8x160xf32>, vector<160x8xf32>, vector<8x8xf32> -> vector<8x8xf32>
    %259 = vector.extract_strided_slice %225 {offsets = [0, 20], sizes = [8, 8], strides = [1, 1]} : vector<8x28xf32> to vector<8x8xf32>
    %260 = arith.addf %258, %259 : vector<8x8xf32>
    %261 = vector.broadcast %10 : vector<1x8xf32> to vector<8x8xf32>
    %262 = arith.addf %260, %261 : vector<8x8xf32>
    %cst_73 = arith.constant 0.000000e+00 : f32
    %263 = vector.broadcast %cst_73 : f32 to vector<8x8xf32>
    %264 = arith.maximumf %262, %263 : vector<8x8xf32>
    %cst_74 = arith.constant dense<0.000000e+00> : vector<8x64xf32>
    %265 = tpu.matmul %264, %6, %cst_74 {dimension_numbers = #tpu.dot_dimension_numbers<[1], [0], [0], [1], [0, 0, 1, 1], [], []>} : vector<8x8xf32>, vector<8x64xf32>, vector<8x64xf32> -> vector<8x64xf32>
    %266 = vector.extract_strided_slice %224 {offsets = [0, 20], sizes = [8, 64], strides = [1, 1]} : vector<8x84xf32> to vector<8x64xf32>
    %267 = arith.addf %265, %266 : vector<8x64xf32>
    %268 = vector.broadcast %11 : vector<1x64xf32> to vector<8x64xf32>
    %269 = arith.addf %267, %268 : vector<8x64xf32>
    %270 = vector.extract_strided_slice %269 {offsets = [0, 0], sizes = [8, 48], strides = [1, 1]} : vector<8x64xf32> to vector<8x48xf32>
    %271 = arith.negf %270 : vector<8x48xf32>
    %272 = math.exp %271 : vector<8x48xf32>
    %cst_75 = arith.constant 1.000000e+00 : f32
    %273 = vector.broadcast %cst_75 : f32 to vector<8x48xf32>
    %274 = arith.addf %273, %272 : vector<8x48xf32>
    %275 = arith.divf %273, %274 : vector<8x48xf32>
    %276 = vector.extract_strided_slice %269 {offsets = [0, 48], sizes = [8, 16], strides = [1, 1]} : vector<8x64xf32> to vector<8x16xf32>
    %277 = math.tanh %276 : vector<8x16xf32>
    %278 = vector.extract_strided_slice %275 {offsets = [0, 0], sizes = [8, 16], strides = [1, 1]} : vector<8x48xf32> to vector<8x16xf32>
    %279 = vector.extract_strided_slice %275 {offsets = [0, 16], sizes = [8, 16], strides = [1, 1]} : vector<8x48xf32> to vector<8x16xf32>
    %280 = vector.extract_strided_slice %275 {offsets = [0, 32], sizes = [8, 16], strides = [1, 1]} : vector<8x48xf32> to vector<8x16xf32>
    %281 = arith.mulf %213, %279 : vector<8x16xf32>
    %282 = arith.mulf %278, %277 : vector<8x16xf32>
    %283 = arith.addf %281, %282 : vector<8x16xf32>
    %284 = math.tanh %283 : vector<8x16xf32>
    %285 = arith.mulf %280, %284 : vector<8x16xf32>
    %cst_76 = arith.constant dense<0.000000e+00> : vector<8x8xf32>
    %286 = tpu.matmul %285, %7, %cst_76 {dimension_numbers = #tpu.dot_dimension_numbers<[1], [0], [0], [1], [0, 0, 1, 1], [], []>} : vector<8x16xf32>, vector<16x8xf32>, vector<8x8xf32> -> vector<8x8xf32>
    %287 = vector.broadcast %12 : vector<1x8xf32> to vector<8x8xf32>
    %288 = arith.addf %286, %287 : vector<8x8xf32>
    %c0_77 = arith.constant 0 : index
    %c0_78 = arith.constant 0 : index
    %c16 = arith.constant 16 : index
    %289 = vector.load %arg7[%c0_77, %c0_78, %c16] : memref<1x8x128xf32, #tpu.memory_space<vmem>>, vector<1x8x8xf32>
    %290 = vector.shape_cast %289 : vector<1x8x8xf32> to vector<8x8xf32>
    %291 = vector.shape_cast %288 : vector<8x8xf32> to vector<1x8x8xf32>
    tpu.vector_store %arg7[%c0_77, %c0_78, %c16], %291 {strides = array<i32>} : memref<1x8x128xf32, #tpu.memory_space<vmem>>, vector<1x8x8xf32>,
    %c16_i32_79 = arith.constant 16 : i32
    %292 = arith.muli %arg0, %c16_i32_79 : i32
    %c2_i32_80 = arith.constant 2 : i32
    %293 = arith.addi %292, %c2_i32_80 : i32
    %c20_i32_81 = arith.constant 20 : i32
    %294 = arith.cmpi slt, %293, %c20_i32_81 : i32
    %295 = arith.select %294, %285, %212 : vector<8x16xf32>
    %296 = arith.select %294, %283, %213 : vector<8x16xf32>
    %c3_82 = arith.constant 3 : index
    %c0_83 = arith.constant 0 : index
    %c0_84 = arith.constant 0 : index
    %297 = vector.load %arg1[%c3_82, %c0_83, %c0_84] : memref<16x8x8xf32, #tpu.memory_space<vmem>>, vector<1x8x8xf32>
    %298 = vector.shape_cast %297 : vector<1x8x8xf32> to vector<8x8xf32>
    %cst_85 = arith.constant dense<0.000000e+00> : vector<8x8xf32>
    %299 = tpu.matmul %298, %3, %cst_85 {dimension_numbers = #tpu.dot_dimension_numbers<[1], [0], [0], [1], [0, 0, 1, 1], [], []>} : vector<8x8xf32>, vector<8x8xf32>, vector<8x8xf32> -> vector<8x8xf32>
    %300 = vector.broadcast %8 : vector<1x8xf32> to vector<8x8xf32>
    %301 = arith.addf %299, %300 : vector<8x8xf32>
    %cst_86 = arith.constant 0.000000e+00 : f32
    %302 = vector.broadcast %cst_86 : f32 to vector<8x8xf32>
    %303 = arith.cmpf ogt, %301, %302 : vector<8x8xf32>
    %cst_87 = arith.constant 0.00999999977 : f32
    %304 = vector.broadcast %cst_87 : f32 to vector<8x8xf32>
    %305 = arith.mulf %304, %301 : vector<8x8xf32>
    %306 = arith.select %303, %301, %305 : vector<8x8xi1>, vector<8x8xf32>
    %cst_88 = arith.constant dense<0.000000e+00> : vector<8x84xf32>
    %307 = tpu.matmul %295, %4, %cst_88 {dimension_numbers = #tpu.dot_dimension_numbers<[1], [0], [0], [1], [0, 0, 1, 1], [], []>} : vector<8x16xf32>, vector<16x84xf32>, vector<8x84xf32> -> vector<8x84xf32>
    %cst_89 = arith.constant dense<0.000000e+00> : vector<8x28xf32>
    %308 = tpu.matmul %306, %5, %cst_89 {dimension_numbers = #tpu.dot_dimension_numbers<[1], [0], [0], [1], [0, 0, 1, 1], [], []>} : vector<8x8xf32>, vector<8x28xf32>, vector<8x28xf32> -> vector<8x28xf32>
    %309 = vector.extract_strided_slice %308 {offsets = [0, 0], sizes = [8, 20], strides = [1, 1]} : vector<8x28xf32> to vector<8x20xf32>
    %310 = vector.extract_strided_slice %307 {offsets = [0, 0], sizes = [8, 20], strides = [1, 1]} : vector<8x84xf32> to vector<8x20xf32>
    %311 = arith.addf %309, %310 : vector<8x20xf32>
    %312 = vector.broadcast %9 : vector<1x20xf32> to vector<8x20xf32>
    %313 = arith.addf %311, %312 : vector<8x20xf32>
    %cst_90 = arith.constant dense<0xFF800000> : vector<8xf32>
    %314 = vector.multi_reduction <maximumf>, %313, %cst_90 [1] : vector<8x20xf32> to vector<8xf32>
    %315 = vector.shape_cast %314 : vector<8xf32> to vector<8x1xf32>
    %316 = vector.broadcast %315 : vector<8x1xf32> to vector<8x20xf32>
    %317 = arith.subf %313, %316 : vector<8x20xf32>
    %318 = math.exp %317 : vector<8x20xf32>
    %cst_91 = arith.constant dense<0.000000e+00> : vector<8xf32>
    %319 = vector.multi_reduction <add>, %318, %cst_91 [1] : vector<8x20xf32> to vector<8xf32>
    %320 = vector.shape_cast %319 : vector<8xf32> to vector<8x1xf32>
    %321 = vector.broadcast %320 : vector<8x1xf32> to vector<8x20xf32>
    %322 = arith.divf %318, %321 : vector<8x20xf32>
    %323 = vector.broadcast %17 : vector<8x1xf32> to vector<8x20xf32>
    %324 = arith.mulf %322, %323 : vector<8x20xf32>
    %325 = vector.broadcast %21 : vector<8x1xf32> to vector<8x20xf32>
    %326 = arith.mulf %322, %325 : vector<8x20xf32>
    %327 = vector.broadcast %25 : vector<8x1xf32> to vector<8x20xf32>
    %328 = arith.mulf %322, %327 : vector<8x20xf32>
    %329 = vector.broadcast %29 : vector<8x1xf32> to vector<8x20xf32>
    %330 = arith.mulf %322, %329 : vector<8x20xf32>
    %331 = vector.broadcast %33 : vector<8x1xf32> to vector<8x20xf32>
    %332 = arith.mulf %322, %331 : vector<8x20xf32>
    %333 = vector.broadcast %37 : vector<8x1xf32> to vector<8x20xf32>
    %334 = arith.mulf %322, %333 : vector<8x20xf32>
    %335 = vector.broadcast %41 : vector<8x1xf32> to vector<8x20xf32>
    %336 = arith.mulf %322, %335 : vector<8x20xf32>
    %337 = vector.broadcast %45 : vector<8x1xf32> to vector<8x20xf32>
    %338 = arith.mulf %322, %337 : vector<8x20xf32>
    %339 = tpu.concatenate %324, %326, %328, %330, %332, %334, %336, %338 in 1 : vector<8x20xf32>, vector<8x20xf32>, vector<8x20xf32>, vector<8x20xf32>, vector<8x20xf32>, vector<8x20xf32>, vector<8x20xf32>, vector<8x20xf32> -> vector<8x160xf32>
    %c0_92 = arith.constant 0 : index
    %c0_93 = arith.constant 0 : index
    %340 = vector.load %arg4[%c0_92, %c0_93] : memref<160x8xf32, #tpu.memory_space<vmem>>, vector<160x8xf32>
    %cst_94 = arith.constant dense<0.000000e+00> : vector<8x8xf32>
    %341 = tpu.matmul %339, %340, %cst_94 {dimension_numbers = #tpu.dot_dimension_numbers<[1], [0], [0], [1], [0, 0, 1, 1], [], []>} : vector<8x160xf32>, vector<160x8xf32>, vector<8x8xf32> -> vector<8x8xf32>
    %342 = vector.extract_strided_slice %308 {offsets = [0, 20], sizes = [8, 8], strides = [1, 1]} : vector<8x28xf32> to vector<8x8xf32>
    %343 = arith.addf %341, %342 : vector<8x8xf32>
    %344 = vector.broadcast %10 : vector<1x8xf32> to vector<8x8xf32>
    %345 = arith.addf %343, %344 : vector<8x8xf32>
    %cst_95 = arith.constant 0.000000e+00 : f32
    %346 = vector.broadcast %cst_95 : f32 to vector<8x8xf32>
    %347 = arith.maximumf %345, %346 : vector<8x8xf32>
    %cst_96 = arith.constant dense<0.000000e+00> : vector<8x64xf32>
    %348 = tpu.matmul %347, %6, %cst_96 {dimension_numbers = #tpu.dot_dimension_numbers<[1], [0], [0], [1], [0, 0, 1, 1], [], []>} : vector<8x8xf32>, vector<8x64xf32>, vector<8x64xf32> -> vector<8x64xf32>
    %349 = vector.extract_strided_slice %307 {offsets = [0, 20], sizes = [8, 64], strides = [1, 1]} : vector<8x84xf32> to vector<8x64xf32>
    %350 = arith.addf %348, %349 : vector<8x64xf32>
    %351 = vector.broadcast %11 : vector<1x64xf32> to vector<8x64xf32>
    %352 = arith.addf %350, %351 : vector<8x64xf32>
    %353 = vector.extract_strided_slice %352 {offsets = [0, 0], sizes = [8, 48], strides = [1, 1]} : vector<8x64xf32> to vector<8x48xf32>
    %354 = arith.negf %353 : vector<8x48xf32>
    %355 = math.exp %354 : vector<8x48xf32>
    %cst_97 = arith.constant 1.000000e+00 : f32
    %356 = vector.broadcast %cst_97 : f32 to vector<8x48xf32>
    %357 = arith.addf %356, %355 : vector<8x48xf32>
    %358 = arith.divf %356, %357 : vector<8x48xf32>
    %359 = vector.extract_strided_slice %352 {offsets = [0, 48], sizes = [8, 16], strides = [1, 1]} : vector<8x64xf32> to vector<8x16xf32>
    %360 = math.tanh %359 : vector<8x16xf32>
    %361 = vector.extract_strided_slice %358 {offsets = [0, 0], sizes = [8, 16], strides = [1, 1]} : vector<8x48xf32> to vector<8x16xf32>
    %362 = vector.extract_strided_slice %358 {offsets = [0, 16], sizes = [8, 16], strides = [1, 1]} : vector<8x48xf32> to vector<8x16xf32>
    %363 = vector.extract_strided_slice %358 {offsets = [0, 32], sizes = [8, 16], strides = [1, 1]} : vector<8x48xf32> to vector<8x16xf32>
    %364 = arith.mulf %296, %362 : vector<8x16xf32>
    %365 = arith.mulf %361, %360 : vector<8x16xf32>
    %366 = arith.addf %364, %365 : vector<8x16xf32>
    %367 = math.tanh %366 : vector<8x16xf32>
    %368 = arith.mulf %363, %367 : vector<8x16xf32>
    %cst_98 = arith.constant dense<0.000000e+00> : vector<8x8xf32>
    %369 = tpu.matmul %368, %7, %cst_98 {dimension_numbers = #tpu.dot_dimension_numbers<[1], [0], [0], [1], [0, 0, 1, 1], [], []>} : vector<8x16xf32>, vector<16x8xf32>, vector<8x8xf32> -> vector<8x8xf32>
    %370 = vector.broadcast %12 : vector<1x8xf32> to vector<8x8xf32>
    %371 = arith.addf %369, %370 : vector<8x8xf32>
    %c0_99 = arith.constant 0 : index
    %c0_100 = arith.constant 0 : index
    %c24_101 = arith.constant 24 : index
    %372 = vector.load %arg7[%c0_99, %c0_100, %c24_101] : memref<1x8x128xf32, #tpu.memory_space<vmem>>, vector<1x8x8xf32>
    %373 = vector.shape_cast %372 : vector<1x8x8xf32> to vector<8x8xf32>
    %374 = vector.shape_cast %371 : vector<8x8xf32> to vector<1x8x8xf32>
    tpu.vector_store %arg7[%c0_99, %c0_100, %c24_101], %374 {strides = array<i32>} : memref<1x8x128xf32, #tpu.memory_space<vmem>>, vector<1x8x8xf32>,
    %c16_i32_102 = arith.constant 16 : i32
    %375 = arith.muli %arg0, %c16_i32_102 : i32
    %c3_i32_103 = arith.constant 3 : i32
    %376 = arith.addi %375, %c3_i32_103 : i32
    %c20_i32_104 = arith.constant 20 : i32
    %377 = arith.cmpi slt, %376, %c20_i32_104 : i32
    %378 = arith.select %377, %368, %295 : vector<8x16xf32>
    %379 = arith.select %377, %366, %296 : vector<8x16xf32>
    %c4_105 = arith.constant 4 : index
    %c0_106 = arith.constant 0 : index
    %c0_107 = arith.constant 0 : index
    %380 = vector.load %arg1[%c4_105, %c0_106, %c0_107] : memref<16x8x8xf32, #tpu.memory_space<vmem>>, vector<1x8x8xf32>
    %381 = vector.shape_cast %380 : vector<1x8x8xf32> to vector<8x8xf32>
    %cst_108 = arith.constant dense<0.000000e+00> : vector<8x8xf32>
    %382 = tpu.matmul %381, %3, %cst_108 {dimension_numbers = #tpu.dot_dimension_numbers<[1], [0], [0], [1], [0, 0, 1, 1], [], []>} : vector<8x8xf32>, vector<8x8xf32>, vector<8x8xf32> -> vector<8x8xf32>
    %383 = vector.broadcast %8 : vector<1x8xf32> to vector<8x8xf32>
    %384 = arith.addf %382, %383 : vector<8x8xf32>
    %cst_109 = arith.constant 0.000000e+00 : f32
    %385 = vector.broadcast %cst_109 : f32 to vector<8x8xf32>
    %386 = arith.cmpf ogt, %384, %385 : vector<8x8xf32>
    %cst_110 = arith.constant 0.00999999977 : f32
    %387 = vector.broadcast %cst_110 : f32 to vector<8x8xf32>
    %388 = arith.mulf %387, %384 : vector<8x8xf32>
    %389 = arith.select %386, %384, %388 : vector<8x8xi1>, vector<8x8xf32>
    %cst_111 = arith.constant dense<0.000000e+00> : vector<8x84xf32>
    %390 = tpu.matmul %378, %4, %cst_111 {dimension_numbers = #tpu.dot_dimension_numbers<[1], [0], [0], [1], [0, 0, 1, 1], [], []>} : vector<8x16xf32>, vector<16x84xf32>, vector<8x84xf32> -> vector<8x84xf32>
    %cst_112 = arith.constant dense<0.000000e+00> : vector<8x28xf32>
    %391 = tpu.matmul %389, %5, %cst_112 {dimension_numbers = #tpu.dot_dimension_numbers<[1], [0], [0], [1], [0, 0, 1, 1], [], []>} : vector<8x8xf32>, vector<8x28xf32>, vector<8x28xf32> -> vector<8x28xf32>
    %392 = vector.extract_strided_slice %391 {offsets = [0, 0], sizes = [8, 20], strides = [1, 1]} : vector<8x28xf32> to vector<8x20xf32>
    %393 = vector.extract_strided_slice %390 {offsets = [0, 0], sizes = [8, 20], strides = [1, 1]} : vector<8x84xf32> to vector<8x20xf32>
    %394 = arith.addf %392, %393 : vector<8x20xf32>
    %395 = vector.broadcast %9 : vector<1x20xf32> to vector<8x20xf32>
    %396 = arith.addf %394, %395 : vector<8x20xf32>
    %cst_113 = arith.constant dense<0xFF800000> : vector<8xf32>
    %397 = vector.multi_reduction <maximumf>, %396, %cst_113 [1] : vector<8x20xf32> to vector<8xf32>
    %398 = vector.shape_cast %397 : vector<8xf32> to vector<8x1xf32>
    %399 = vector.broadcast %398 : vector<8x1xf32> to vector<8x20xf32>
    %400 = arith.subf %396, %399 : vector<8x20xf32>
    %401 = math.exp %400 : vector<8x20xf32>
    %cst_114 = arith.constant dense<0.000000e+00> : vector<8xf32>
    %402 = vector.multi_reduction <add>, %401, %cst_114 [1] : vector<8x20xf32> to vector<8xf32>
    %403 = vector.shape_cast %402 : vector<8xf32> to vector<8x1xf32>
    %404 = vector.broadcast %403 : vector<8x1xf32> to vector<8x20xf32>
    %405 = arith.divf %401, %404 : vector<8x20xf32>
    %406 = vector.broadcast %17 : vector<8x1xf32> to vector<8x20xf32>
    %407 = arith.mulf %405, %406 : vector<8x20xf32>
    %408 = vector.broadcast %21 : vector<8x1xf32> to vector<8x20xf32>
    %409 = arith.mulf %405, %408 : vector<8x20xf32>
    %410 = vector.broadcast %25 : vector<8x1xf32> to vector<8x20xf32>
    %411 = arith.mulf %405, %410 : vector<8x20xf32>
    %412 = vector.broadcast %29 : vector<8x1xf32> to vector<8x20xf32>
    %413 = arith.mulf %405, %412 : vector<8x20xf32>
    %414 = vector.broadcast %33 : vector<8x1xf32> to vector<8x20xf32>
    %415 = arith.mulf %405, %414 : vector<8x20xf32>
    %416 = vector.broadcast %37 : vector<8x1xf32> to vector<8x20xf32>
    %417 = arith.mulf %405, %416 : vector<8x20xf32>
    %418 = vector.broadcast %41 : vector<8x1xf32> to vector<8x20xf32>
    %419 = arith.mulf %405, %418 : vector<8x20xf32>
    %420 = vector.broadcast %45 : vector<8x1xf32> to vector<8x20xf32>
    %421 = arith.mulf %405, %420 : vector<8x20xf32>
    %422 = tpu.concatenate %407, %409, %411, %413, %415, %417, %419, %421 in 1 : vector<8x20xf32>, vector<8x20xf32>, vector<8x20xf32>, vector<8x20xf32>, vector<8x20xf32>, vector<8x20xf32>, vector<8x20xf32>, vector<8x20xf32> -> vector<8x160xf32>
    %c0_115 = arith.constant 0 : index
    %c0_116 = arith.constant 0 : index
    %423 = vector.load %arg4[%c0_115, %c0_116] : memref<160x8xf32, #tpu.memory_space<vmem>>, vector<160x8xf32>
    %cst_117 = arith.constant dense<0.000000e+00> : vector<8x8xf32>
    %424 = tpu.matmul %422, %423, %cst_117 {dimension_numbers = #tpu.dot_dimension_numbers<[1], [0], [0], [1], [0, 0, 1, 1], [], []>} : vector<8x160xf32>, vector<160x8xf32>, vector<8x8xf32> -> vector<8x8xf32>
    %425 = vector.extract_strided_slice %391 {offsets = [0, 20], sizes = [8, 8], strides = [1, 1]} : vector<8x28xf32> to vector<8x8xf32>
    %426 = arith.addf %424, %425 : vector<8x8xf32>
    %427 = vector.broadcast %10 : vector<1x8xf32> to vector<8x8xf32>
    %428 = arith.addf %426, %427 : vector<8x8xf32>
    %cst_118 = arith.constant 0.000000e+00 : f32
    %429 = vector.broadcast %cst_118 : f32 to vector<8x8xf32>
    %430 = arith.maximumf %428, %429 : vector<8x8xf32>
    %cst_119 = arith.constant dense<0.000000e+00> : vector<8x64xf32>
    %431 = tpu.matmul %430, %6, %cst_119 {dimension_numbers = #tpu.dot_dimension_numbers<[1], [0], [0], [1], [0, 0, 1, 1], [], []>} : vector<8x8xf32>, vector<8x64xf32>, vector<8x64xf32> -> vector<8x64xf32>
    %432 = vector.extract_strided_slice %390 {offsets = [0, 20], sizes = [8, 64], strides = [1, 1]} : vector<8x84xf32> to vector<8x64xf32>
    %433 = arith.addf %431, %432 : vector<8x64xf32>
    %434 = vector.broadcast %11 : vector<1x64xf32> to vector<8x64xf32>
    %435 = arith.addf %433, %434 : vector<8x64xf32>
    %436 = vector.extract_strided_slice %435 {offsets = [0, 0], sizes = [8, 48], strides = [1, 1]} : vector<8x64xf32> to vector<8x48xf32>
    %437 = arith.negf %436 : vector<8x48xf32>
    %438 = math.exp %437 : vector<8x48xf32>
    %cst_120 = arith.constant 1.000000e+00 : f32
    %439 = vector.broadcast %cst_120 : f32 to vector<8x48xf32>
    %440 = arith.addf %439, %438 : vector<8x48xf32>
    %441 = arith.divf %439, %440 : vector<8x48xf32>
    %442 = vector.extract_strided_slice %435 {offsets = [0, 48], sizes = [8, 16], strides = [1, 1]} : vector<8x64xf32> to vector<8x16xf32>
    %443 = math.tanh %442 : vector<8x16xf32>
    %444 = vector.extract_strided_slice %441 {offsets = [0, 0], sizes = [8, 16], strides = [1, 1]} : vector<8x48xf32> to vector<8x16xf32>
    %445 = vector.extract_strided_slice %441 {offsets = [0, 16], sizes = [8, 16], strides = [1, 1]} : vector<8x48xf32> to vector<8x16xf32>
    %446 = vector.extract_strided_slice %441 {offsets = [0, 32], sizes = [8, 16], strides = [1, 1]} : vector<8x48xf32> to vector<8x16xf32>
    %447 = arith.mulf %379, %445 : vector<8x16xf32>
    %448 = arith.mulf %444, %443 : vector<8x16xf32>
    %449 = arith.addf %447, %448 : vector<8x16xf32>
    %450 = math.tanh %449 : vector<8x16xf32>
    %451 = arith.mulf %446, %450 : vector<8x16xf32>
    %cst_121 = arith.constant dense<0.000000e+00> : vector<8x8xf32>
    %452 = tpu.matmul %451, %7, %cst_121 {dimension_numbers = #tpu.dot_dimension_numbers<[1], [0], [0], [1], [0, 0, 1, 1], [], []>} : vector<8x16xf32>, vector<16x8xf32>, vector<8x8xf32> -> vector<8x8xf32>
    %453 = vector.broadcast %12 : vector<1x8xf32> to vector<8x8xf32>
    %454 = arith.addf %452, %453 : vector<8x8xf32>
    %c0_122 = arith.constant 0 : index
    %c0_123 = arith.constant 0 : index
    %c32_124 = arith.constant 32 : index
    %455 = vector.load %arg7[%c0_122, %c0_123, %c32_124] : memref<1x8x128xf32, #tpu.memory_space<vmem>>, vector<1x8x8xf32>
    %456 = vector.shape_cast %455 : vector<1x8x8xf32> to vector<8x8xf32>
    %457 = vector.shape_cast %454 : vector<8x8xf32> to vector<1x8x8xf32>
    tpu.vector_store %arg7[%c0_122, %c0_123, %c32_124], %457 {strides = array<i32>} : memref<1x8x128xf32, #tpu.memory_space<vmem>>, vector<1x8x8xf32>,
    %c16_i32_125 = arith.constant 16 : i32
    %458 = arith.muli %arg0, %c16_i32_125 : i32
    %c4_i32_126 = arith.constant 4 : i32
    %459 = arith.addi %458, %c4_i32_126 : i32
    %c20_i32_127 = arith.constant 20 : i32
    %460 = arith.cmpi slt, %459, %c20_i32_127 : i32
    %461 = arith.select %460, %451, %378 : vector<8x16xf32>
    %462 = arith.select %460, %449, %379 : vector<8x16xf32>
    %c5 = arith.constant 5 : index
    %c0_128 = arith.constant 0 : index
    %c0_129 = arith.constant 0 : index
    %463 = vector.load %arg1[%c5, %c0_128, %c0_129] : memref<16x8x8xf32, #tpu.memory_space<vmem>>, vector<1x8x8xf32>
    %464 = vector.shape_cast %463 : vector<1x8x8xf32> to vector<8x8xf32>
    %cst_130 = arith.constant dense<0.000000e+00> : vector<8x8xf32>
    %465 = tpu.matmul %464, %3, %cst_130 {dimension_numbers = #tpu.dot_dimension_numbers<[1], [0], [0], [1], [0, 0, 1, 1], [], []>} : vector<8x8xf32>, vector<8x8xf32>, vector<8x8xf32> -> vector<8x8xf32>
    %466 = vector.broadcast %8 : vector<1x8xf32> to vector<8x8xf32>
    %467 = arith.addf %465, %466 : vector<8x8xf32>
    %cst_131 = arith.constant 0.000000e+00 : f32
    %468 = vector.broadcast %cst_131 : f32 to vector<8x8xf32>
    %469 = arith.cmpf ogt, %467, %468 : vector<8x8xf32>
    %cst_132 = arith.constant 0.00999999977 : f32
    %470 = vector.broadcast %cst_132 : f32 to vector<8x8xf32>
    %471 = arith.mulf %470, %467 : vector<8x8xf32>
    %472 = arith.select %469, %467, %471 : vector<8x8xi1>, vector<8x8xf32>
    %cst_133 = arith.constant dense<0.000000e+00> : vector<8x84xf32>
    %473 = tpu.matmul %461, %4, %cst_133 {dimension_numbers = #tpu.dot_dimension_numbers<[1], [0], [0], [1], [0, 0, 1, 1], [], []>} : vector<8x16xf32>, vector<16x84xf32>, vector<8x84xf32> -> vector<8x84xf32>
    %cst_134 = arith.constant dense<0.000000e+00> : vector<8x28xf32>
    %474 = tpu.matmul %472, %5, %cst_134 {dimension_numbers = #tpu.dot_dimension_numbers<[1], [0], [0], [1], [0, 0, 1, 1], [], []>} : vector<8x8xf32>, vector<8x28xf32>, vector<8x28xf32> -> vector<8x28xf32>
    %475 = vector.extract_strided_slice %474 {offsets = [0, 0], sizes = [8, 20], strides = [1, 1]} : vector<8x28xf32> to vector<8x20xf32>
    %476 = vector.extract_strided_slice %473 {offsets = [0, 0], sizes = [8, 20], strides = [1, 1]} : vector<8x84xf32> to vector<8x20xf32>
    %477 = arith.addf %475, %476 : vector<8x20xf32>
    %478 = vector.broadcast %9 : vector<1x20xf32> to vector<8x20xf32>
    %479 = arith.addf %477, %478 : vector<8x20xf32>
    %cst_135 = arith.constant dense<0xFF800000> : vector<8xf32>
    %480 = vector.multi_reduction <maximumf>, %479, %cst_135 [1] : vector<8x20xf32> to vector<8xf32>
    %481 = vector.shape_cast %480 : vector<8xf32> to vector<8x1xf32>
    %482 = vector.broadcast %481 : vector<8x1xf32> to vector<8x20xf32>
    %483 = arith.subf %479, %482 : vector<8x20xf32>
    %484 = math.exp %483 : vector<8x20xf32>
    %cst_136 = arith.constant dense<0.000000e+00> : vector<8xf32>
    %485 = vector.multi_reduction <add>, %484, %cst_136 [1] : vector<8x20xf32> to vector<8xf32>
    %486 = vector.shape_cast %485 : vector<8xf32> to vector<8x1xf32>
    %487 = vector.broadcast %486 : vector<8x1xf32> to vector<8x20xf32>
    %488 = arith.divf %484, %487 : vector<8x20xf32>
    %489 = vector.broadcast %17 : vector<8x1xf32> to vector<8x20xf32>
    %490 = arith.mulf %488, %489 : vector<8x20xf32>
    %491 = vector.broadcast %21 : vector<8x1xf32> to vector<8x20xf32>
    %492 = arith.mulf %488, %491 : vector<8x20xf32>
    %493 = vector.broadcast %25 : vector<8x1xf32> to vector<8x20xf32>
    %494 = arith.mulf %488, %493 : vector<8x20xf32>
    %495 = vector.broadcast %29 : vector<8x1xf32> to vector<8x20xf32>
    %496 = arith.mulf %488, %495 : vector<8x20xf32>
    %497 = vector.broadcast %33 : vector<8x1xf32> to vector<8x20xf32>
    %498 = arith.mulf %488, %497 : vector<8x20xf32>
    %499 = vector.broadcast %37 : vector<8x1xf32> to vector<8x20xf32>
    %500 = arith.mulf %488, %499 : vector<8x20xf32>
    %501 = vector.broadcast %41 : vector<8x1xf32> to vector<8x20xf32>
    %502 = arith.mulf %488, %501 : vector<8x20xf32>
    %503 = vector.broadcast %45 : vector<8x1xf32> to vector<8x20xf32>
    %504 = arith.mulf %488, %503 : vector<8x20xf32>
    %505 = tpu.concatenate %490, %492, %494, %496, %498, %500, %502, %504 in 1 : vector<8x20xf32>, vector<8x20xf32>, vector<8x20xf32>, vector<8x20xf32>, vector<8x20xf32>, vector<8x20xf32>, vector<8x20xf32>, vector<8x20xf32> -> vector<8x160xf32>
    %c0_137 = arith.constant 0 : index
    %c0_138 = arith.constant 0 : index
    %506 = vector.load %arg4[%c0_137, %c0_138] : memref<160x8xf32, #tpu.memory_space<vmem>>, vector<160x8xf32>
    %cst_139 = arith.constant dense<0.000000e+00> : vector<8x8xf32>
    %507 = tpu.matmul %505, %506, %cst_139 {dimension_numbers = #tpu.dot_dimension_numbers<[1], [0], [0], [1], [0, 0, 1, 1], [], []>} : vector<8x160xf32>, vector<160x8xf32>, vector<8x8xf32> -> vector<8x8xf32>
    %508 = vector.extract_strided_slice %474 {offsets = [0, 20], sizes = [8, 8], strides = [1, 1]} : vector<8x28xf32> to vector<8x8xf32>
    %509 = arith.addf %507, %508 : vector<8x8xf32>
    %510 = vector.broadcast %10 : vector<1x8xf32> to vector<8x8xf32>
    %511 = arith.addf %509, %510 : vector<8x8xf32>
    %cst_140 = arith.constant 0.000000e+00 : f32
    %512 = vector.broadcast %cst_140 : f32 to vector<8x8xf32>
    %513 = arith.maximumf %511, %512 : vector<8x8xf32>
    %cst_141 = arith.constant dense<0.000000e+00> : vector<8x64xf32>
    %514 = tpu.matmul %513, %6, %cst_141 {dimension_numbers = #tpu.dot_dimension_numbers<[1], [0], [0], [1], [0, 0, 1, 1], [], []>} : vector<8x8xf32>, vector<8x64xf32>, vector<8x64xf32> -> vector<8x64xf32>
    %515 = vector.extract_strided_slice %473 {offsets = [0, 20], sizes = [8, 64], strides = [1, 1]} : vector<8x84xf32> to vector<8x64xf32>
    %516 = arith.addf %514, %515 : vector<8x64xf32>
    %517 = vector.broadcast %11 : vector<1x64xf32> to vector<8x64xf32>
    %518 = arith.addf %516, %517 : vector<8x64xf32>
    %519 = vector.extract_strided_slice %518 {offsets = [0, 0], sizes = [8, 48], strides = [1, 1]} : vector<8x64xf32> to vector<8x48xf32>
    %520 = arith.negf %519 : vector<8x48xf32>
    %521 = math.exp %520 : vector<8x48xf32>
    %cst_142 = arith.constant 1.000000e+00 : f32
    %522 = vector.broadcast %cst_142 : f32 to vector<8x48xf32>
    %523 = arith.addf %522, %521 : vector<8x48xf32>
    %524 = arith.divf %522, %523 : vector<8x48xf32>
    %525 = vector.extract_strided_slice %518 {offsets = [0, 48], sizes = [8, 16], strides = [1, 1]} : vector<8x64xf32> to vector<8x16xf32>
    %526 = math.tanh %525 : vector<8x16xf32>
    %527 = vector.extract_strided_slice %524 {offsets = [0, 0], sizes = [8, 16], strides = [1, 1]} : vector<8x48xf32> to vector<8x16xf32>
    %528 = vector.extract_strided_slice %524 {offsets = [0, 16], sizes = [8, 16], strides = [1, 1]} : vector<8x48xf32> to vector<8x16xf32>
    %529 = vector.extract_strided_slice %524 {offsets = [0, 32], sizes = [8, 16], strides = [1, 1]} : vector<8x48xf32> to vector<8x16xf32>
    %530 = arith.mulf %462, %528 : vector<8x16xf32>
    %531 = arith.mulf %527, %526 : vector<8x16xf32>
    %532 = arith.addf %530, %531 : vector<8x16xf32>
    %533 = math.tanh %532 : vector<8x16xf32>
    %534 = arith.mulf %529, %533 : vector<8x16xf32>
    %cst_143 = arith.constant dense<0.000000e+00> : vector<8x8xf32>
    %535 = tpu.matmul %534, %7, %cst_143 {dimension_numbers = #tpu.dot_dimension_numbers<[1], [0], [0], [1], [0, 0, 1, 1], [], []>} : vector<8x16xf32>, vector<16x8xf32>, vector<8x8xf32> -> vector<8x8xf32>
    %536 = vector.broadcast %12 : vector<1x8xf32> to vector<8x8xf32>
    %537 = arith.addf %535, %536 : vector<8x8xf32>
    %c0_144 = arith.constant 0 : index
    %c0_145 = arith.constant 0 : index
    %c40_146 = arith.constant 40 : index
    %538 = vector.load %arg7[%c0_144, %c0_145, %c40_146] : memref<1x8x128xf32, #tpu.memory_space<vmem>>, vector<1x8x8xf32>
    %539 = vector.shape_cast %538 : vector<1x8x8xf32> to vector<8x8xf32>
    %540 = vector.shape_cast %537 : vector<8x8xf32> to vector<1x8x8xf32>
    tpu.vector_store %arg7[%c0_144, %c0_145, %c40_146], %540 {strides = array<i32>} : memref<1x8x128xf32, #tpu.memory_space<vmem>>, vector<1x8x8xf32>,
    %c16_i32_147 = arith.constant 16 : i32
    %541 = arith.muli %arg0, %c16_i32_147 : i32
    %c5_i32_148 = arith.constant 5 : i32
    %542 = arith.addi %541, %c5_i32_148 : i32
    %c20_i32_149 = arith.constant 20 : i32
    %543 = arith.cmpi slt, %542, %c20_i32_149 : i32
    %544 = arith.select %543, %534, %461 : vector<8x16xf32>
    %545 = arith.select %543, %532, %462 : vector<8x16xf32>
    %c6 = arith.constant 6 : index
    %c0_150 = arith.constant 0 : index
    %c0_151 = arith.constant 0 : index
    %546 = vector.load %arg1[%c6, %c0_150, %c0_151] : memref<16x8x8xf32, #tpu.memory_space<vmem>>, vector<1x8x8xf32>
    %547 = vector.shape_cast %546 : vector<1x8x8xf32> to vector<8x8xf32>
    %cst_152 = arith.constant dense<0.000000e+00> : vector<8x8xf32>
    %548 = tpu.matmul %547, %3, %cst_152 {dimension_numbers = #tpu.dot_dimension_numbers<[1], [0], [0], [1], [0, 0, 1, 1], [], []>} : vector<8x8xf32>, vector<8x8xf32>, vector<8x8xf32> -> vector<8x8xf32>
    %549 = vector.broadcast %8 : vector<1x8xf32> to vector<8x8xf32>
    %550 = arith.addf %548, %549 : vector<8x8xf32>
    %cst_153 = arith.constant 0.000000e+00 : f32
    %551 = vector.broadcast %cst_153 : f32 to vector<8x8xf32>
    %552 = arith.cmpf ogt, %550, %551 : vector<8x8xf32>
    %cst_154 = arith.constant 0.00999999977 : f32
    %553 = vector.broadcast %cst_154 : f32 to vector<8x8xf32>
    %554 = arith.mulf %553, %550 : vector<8x8xf32>
    %555 = arith.select %552, %550, %554 : vector<8x8xi1>, vector<8x8xf32>
    %cst_155 = arith.constant dense<0.000000e+00> : vector<8x84xf32>
    %556 = tpu.matmul %544, %4, %cst_155 {dimension_numbers = #tpu.dot_dimension_numbers<[1], [0], [0], [1], [0, 0, 1, 1], [], []>} : vector<8x16xf32>, vector<16x84xf32>, vector<8x84xf32> -> vector<8x84xf32>
    %cst_156 = arith.constant dense<0.000000e+00> : vector<8x28xf32>
    %557 = tpu.matmul %555, %5, %cst_156 {dimension_numbers = #tpu.dot_dimension_numbers<[1], [0], [0], [1], [0, 0, 1, 1], [], []>} : vector<8x8xf32>, vector<8x28xf32>, vector<8x28xf32> -> vector<8x28xf32>
    %558 = vector.extract_strided_slice %557 {offsets = [0, 0], sizes = [8, 20], strides = [1, 1]} : vector<8x28xf32> to vector<8x20xf32>
    %559 = vector.extract_strided_slice %556 {offsets = [0, 0], sizes = [8, 20], strides = [1, 1]} : vector<8x84xf32> to vector<8x20xf32>
    %560 = arith.addf %558, %559 : vector<8x20xf32>
    %561 = vector.broadcast %9 : vector<1x20xf32> to vector<8x20xf32>
    %562 = arith.addf %560, %561 : vector<8x20xf32>
    %cst_157 = arith.constant dense<0xFF800000> : vector<8xf32>
    %563 = vector.multi_reduction <maximumf>, %562, %cst_157 [1] : vector<8x20xf32> to vector<8xf32>
    %564 = vector.shape_cast %563 : vector<8xf32> to vector<8x1xf32>
    %565 = vector.broadcast %564 : vector<8x1xf32> to vector<8x20xf32>
    %566 = arith.subf %562, %565 : vector<8x20xf32>
    %567 = math.exp %566 : vector<8x20xf32>
    %cst_158 = arith.constant dense<0.000000e+00> : vector<8xf32>
    %568 = vector.multi_reduction <add>, %567, %cst_158 [1] : vector<8x20xf32> to vector<8xf32>
    %569 = vector.shape_cast %568 : vector<8xf32> to vector<8x1xf32>
    %570 = vector.broadcast %569 : vector<8x1xf32> to vector<8x20xf32>
    %571 = arith.divf %567, %570 : vector<8x20xf32>
    %572 = vector.broadcast %17 : vector<8x1xf32> to vector<8x20xf32>
    %573 = arith.mulf %571, %572 : vector<8x20xf32>
    %574 = vector.broadcast %21 : vector<8x1xf32> to vector<8x20xf32>
    %575 = arith.mulf %571, %574 : vector<8x20xf32>
    %576 = vector.broadcast %25 : vector<8x1xf32> to vector<8x20xf32>
    %577 = arith.mulf %571, %576 : vector<8x20xf32>
    %578 = vector.broadcast %29 : vector<8x1xf32> to vector<8x20xf32>
    %579 = arith.mulf %571, %578 : vector<8x20xf32>
    %580 = vector.broadcast %33 : vector<8x1xf32> to vector<8x20xf32>
    %581 = arith.mulf %571, %580 : vector<8x20xf32>
    %582 = vector.broadcast %37 : vector<8x1xf32> to vector<8x20xf32>
    %583 = arith.mulf %571, %582 : vector<8x20xf32>
    %584 = vector.broadcast %41 : vector<8x1xf32> to vector<8x20xf32>
    %585 = arith.mulf %571, %584 : vector<8x20xf32>
    %586 = vector.broadcast %45 : vector<8x1xf32> to vector<8x20xf32>
    %587 = arith.mulf %571, %586 : vector<8x20xf32>
    %588 = tpu.concatenate %573, %575, %577, %579, %581, %583, %585, %587 in 1 : vector<8x20xf32>, vector<8x20xf32>, vector<8x20xf32>, vector<8x20xf32>, vector<8x20xf32>, vector<8x20xf32>, vector<8x20xf32>, vector<8x20xf32> -> vector<8x160xf32>
    %c0_159 = arith.constant 0 : index
    %c0_160 = arith.constant 0 : index
    %589 = vector.load %arg4[%c0_159, %c0_160] : memref<160x8xf32, #tpu.memory_space<vmem>>, vector<160x8xf32>
    %cst_161 = arith.constant dense<0.000000e+00> : vector<8x8xf32>
    %590 = tpu.matmul %588, %589, %cst_161 {dimension_numbers = #tpu.dot_dimension_numbers<[1], [0], [0], [1], [0, 0, 1, 1], [], []>} : vector<8x160xf32>, vector<160x8xf32>, vector<8x8xf32> -> vector<8x8xf32>
    %591 = vector.extract_strided_slice %557 {offsets = [0, 20], sizes = [8, 8], strides = [1, 1]} : vector<8x28xf32> to vector<8x8xf32>
    %592 = arith.addf %590, %591 : vector<8x8xf32>
    %593 = vector.broadcast %10 : vector<1x8xf32> to vector<8x8xf32>
    %594 = arith.addf %592, %593 : vector<8x8xf32>
    %cst_162 = arith.constant 0.000000e+00 : f32
    %595 = vector.broadcast %cst_162 : f32 to vector<8x8xf32>
    %596 = arith.maximumf %594, %595 : vector<8x8xf32>
    %cst_163 = arith.constant dense<0.000000e+00> : vector<8x64xf32>
    %597 = tpu.matmul %596, %6, %cst_163 {dimension_numbers = #tpu.dot_dimension_numbers<[1], [0], [0], [1], [0, 0, 1, 1], [], []>} : vector<8x8xf32>, vector<8x64xf32>, vector<8x64xf32> -> vector<8x64xf32>
    %598 = vector.extract_strided_slice %556 {offsets = [0, 20], sizes = [8, 64], strides = [1, 1]} : vector<8x84xf32> to vector<8x64xf32>
    %599 = arith.addf %597, %598 : vector<8x64xf32>
    %600 = vector.broadcast %11 : vector<1x64xf32> to vector<8x64xf32>
    %601 = arith.addf %599, %600 : vector<8x64xf32>
    %602 = vector.extract_strided_slice %601 {offsets = [0, 0], sizes = [8, 48], strides = [1, 1]} : vector<8x64xf32> to vector<8x48xf32>
    %603 = arith.negf %602 : vector<8x48xf32>
    %604 = math.exp %603 : vector<8x48xf32>
    %cst_164 = arith.constant 1.000000e+00 : f32
    %605 = vector.broadcast %cst_164 : f32 to vector<8x48xf32>
    %606 = arith.addf %605, %604 : vector<8x48xf32>
    %607 = arith.divf %605, %606 : vector<8x48xf32>
    %608 = vector.extract_strided_slice %601 {offsets = [0, 48], sizes = [8, 16], strides = [1, 1]} : vector<8x64xf32> to vector<8x16xf32>
    %609 = math.tanh %608 : vector<8x16xf32>
    %610 = vector.extract_strided_slice %607 {offsets = [0, 0], sizes = [8, 16], strides = [1, 1]} : vector<8x48xf32> to vector<8x16xf32>
    %611 = vector.extract_strided_slice %607 {offsets = [0, 16], sizes = [8, 16], strides = [1, 1]} : vector<8x48xf32> to vector<8x16xf32>
    %612 = vector.extract_strided_slice %607 {offsets = [0, 32], sizes = [8, 16], strides = [1, 1]} : vector<8x48xf32> to vector<8x16xf32>
    %613 = arith.mulf %545, %611 : vector<8x16xf32>
    %614 = arith.mulf %610, %609 : vector<8x16xf32>
    %615 = arith.addf %613, %614 : vector<8x16xf32>
    %616 = math.tanh %615 : vector<8x16xf32>
    %617 = arith.mulf %612, %616 : vector<8x16xf32>
    %cst_165 = arith.constant dense<0.000000e+00> : vector<8x8xf32>
    %618 = tpu.matmul %617, %7, %cst_165 {dimension_numbers = #tpu.dot_dimension_numbers<[1], [0], [0], [1], [0, 0, 1, 1], [], []>} : vector<8x16xf32>, vector<16x8xf32>, vector<8x8xf32> -> vector<8x8xf32>
    %619 = vector.broadcast %12 : vector<1x8xf32> to vector<8x8xf32>
    %620 = arith.addf %618, %619 : vector<8x8xf32>
    %c0_166 = arith.constant 0 : index
    %c0_167 = arith.constant 0 : index
    %c48 = arith.constant 48 : index
    %621 = vector.load %arg7[%c0_166, %c0_167, %c48] : memref<1x8x128xf32, #tpu.memory_space<vmem>>, vector<1x8x8xf32>
    %622 = vector.shape_cast %621 : vector<1x8x8xf32> to vector<8x8xf32>
    %623 = vector.shape_cast %620 : vector<8x8xf32> to vector<1x8x8xf32>
    tpu.vector_store %arg7[%c0_166, %c0_167, %c48], %623 {strides = array<i32>} : memref<1x8x128xf32, #tpu.memory_space<vmem>>, vector<1x8x8xf32>,
    %c16_i32_168 = arith.constant 16 : i32
    %624 = arith.muli %arg0, %c16_i32_168 : i32
    %c6_i32_169 = arith.constant 6 : i32
    %625 = arith.addi %624, %c6_i32_169 : i32
    %c20_i32_170 = arith.constant 20 : i32
    %626 = arith.cmpi slt, %625, %c20_i32_170 : i32
    %627 = arith.select %626, %617, %544 : vector<8x16xf32>
    %628 = arith.select %626, %615, %545 : vector<8x16xf32>
    %c7 = arith.constant 7 : index
    %c0_171 = arith.constant 0 : index
    %c0_172 = arith.constant 0 : index
    %629 = vector.load %arg1[%c7, %c0_171, %c0_172] : memref<16x8x8xf32, #tpu.memory_space<vmem>>, vector<1x8x8xf32>
    %630 = vector.shape_cast %629 : vector<1x8x8xf32> to vector<8x8xf32>
    %cst_173 = arith.constant dense<0.000000e+00> : vector<8x8xf32>
    %631 = tpu.matmul %630, %3, %cst_173 {dimension_numbers = #tpu.dot_dimension_numbers<[1], [0], [0], [1], [0, 0, 1, 1], [], []>} : vector<8x8xf32>, vector<8x8xf32>, vector<8x8xf32> -> vector<8x8xf32>
    %632 = vector.broadcast %8 : vector<1x8xf32> to vector<8x8xf32>
    %633 = arith.addf %631, %632 : vector<8x8xf32>
    %cst_174 = arith.constant 0.000000e+00 : f32
    %634 = vector.broadcast %cst_174 : f32 to vector<8x8xf32>
    %635 = arith.cmpf ogt, %633, %634 : vector<8x8xf32>
    %cst_175 = arith.constant 0.00999999977 : f32
    %636 = vector.broadcast %cst_175 : f32 to vector<8x8xf32>
    %637 = arith.mulf %636, %633 : vector<8x8xf32>
    %638 = arith.select %635, %633, %637 : vector<8x8xi1>, vector<8x8xf32>
    %cst_176 = arith.constant dense<0.000000e+00> : vector<8x84xf32>
    %639 = tpu.matmul %627, %4, %cst_176 {dimension_numbers = #tpu.dot_dimension_numbers<[1], [0], [0], [1], [0, 0, 1, 1], [], []>} : vector<8x16xf32>, vector<16x84xf32>, vector<8x84xf32> -> vector<8x84xf32>
    %cst_177 = arith.constant dense<0.000000e+00> : vector<8x28xf32>
    %640 = tpu.matmul %638, %5, %cst_177 {dimension_numbers = #tpu.dot_dimension_numbers<[1], [0], [0], [1], [0, 0, 1, 1], [], []>} : vector<8x8xf32>, vector<8x28xf32>, vector<8x28xf32> -> vector<8x28xf32>
    %641 = vector.extract_strided_slice %640 {offsets = [0, 0], sizes = [8, 20], strides = [1, 1]} : vector<8x28xf32> to vector<8x20xf32>
    %642 = vector.extract_strided_slice %639 {offsets = [0, 0], sizes = [8, 20], strides = [1, 1]} : vector<8x84xf32> to vector<8x20xf32>
    %643 = arith.addf %641, %642 : vector<8x20xf32>
    %644 = vector.broadcast %9 : vector<1x20xf32> to vector<8x20xf32>
    %645 = arith.addf %643, %644 : vector<8x20xf32>
    %cst_178 = arith.constant dense<0xFF800000> : vector<8xf32>
    %646 = vector.multi_reduction <maximumf>, %645, %cst_178 [1] : vector<8x20xf32> to vector<8xf32>
    %647 = vector.shape_cast %646 : vector<8xf32> to vector<8x1xf32>
    %648 = vector.broadcast %647 : vector<8x1xf32> to vector<8x20xf32>
    %649 = arith.subf %645, %648 : vector<8x20xf32>
    %650 = math.exp %649 : vector<8x20xf32>
    %cst_179 = arith.constant dense<0.000000e+00> : vector<8xf32>
    %651 = vector.multi_reduction <add>, %650, %cst_179 [1] : vector<8x20xf32> to vector<8xf32>
    %652 = vector.shape_cast %651 : vector<8xf32> to vector<8x1xf32>
    %653 = vector.broadcast %652 : vector<8x1xf32> to vector<8x20xf32>
    %654 = arith.divf %650, %653 : vector<8x20xf32>
    %655 = vector.broadcast %17 : vector<8x1xf32> to vector<8x20xf32>
    %656 = arith.mulf %654, %655 : vector<8x20xf32>
    %657 = vector.broadcast %21 : vector<8x1xf32> to vector<8x20xf32>
    %658 = arith.mulf %654, %657 : vector<8x20xf32>
    %659 = vector.broadcast %25 : vector<8x1xf32> to vector<8x20xf32>
    %660 = arith.mulf %654, %659 : vector<8x20xf32>
    %661 = vector.broadcast %29 : vector<8x1xf32> to vector<8x20xf32>
    %662 = arith.mulf %654, %661 : vector<8x20xf32>
    %663 = vector.broadcast %33 : vector<8x1xf32> to vector<8x20xf32>
    %664 = arith.mulf %654, %663 : vector<8x20xf32>
    %665 = vector.broadcast %37 : vector<8x1xf32> to vector<8x20xf32>
    %666 = arith.mulf %654, %665 : vector<8x20xf32>
    %667 = vector.broadcast %41 : vector<8x1xf32> to vector<8x20xf32>
    %668 = arith.mulf %654, %667 : vector<8x20xf32>
    %669 = vector.broadcast %45 : vector<8x1xf32> to vector<8x20xf32>
    %670 = arith.mulf %654, %669 : vector<8x20xf32>
    %671 = tpu.concatenate %656, %658, %660, %662, %664, %666, %668, %670 in 1 : vector<8x20xf32>, vector<8x20xf32>, vector<8x20xf32>, vector<8x20xf32>, vector<8x20xf32>, vector<8x20xf32>, vector<8x20xf32>, vector<8x20xf32> -> vector<8x160xf32>
    %c0_180 = arith.constant 0 : index
    %c0_181 = arith.constant 0 : index
    %672 = vector.load %arg4[%c0_180, %c0_181] : memref<160x8xf32, #tpu.memory_space<vmem>>, vector<160x8xf32>
    %cst_182 = arith.constant dense<0.000000e+00> : vector<8x8xf32>
    %673 = tpu.matmul %671, %672, %cst_182 {dimension_numbers = #tpu.dot_dimension_numbers<[1], [0], [0], [1], [0, 0, 1, 1], [], []>} : vector<8x160xf32>, vector<160x8xf32>, vector<8x8xf32> -> vector<8x8xf32>
    %674 = vector.extract_strided_slice %640 {offsets = [0, 20], sizes = [8, 8], strides = [1, 1]} : vector<8x28xf32> to vector<8x8xf32>
    %675 = arith.addf %673, %674 : vector<8x8xf32>
    %676 = vector.broadcast %10 : vector<1x8xf32> to vector<8x8xf32>
    %677 = arith.addf %675, %676 : vector<8x8xf32>
    %cst_183 = arith.constant 0.000000e+00 : f32
    %678 = vector.broadcast %cst_183 : f32 to vector<8x8xf32>
    %679 = arith.maximumf %677, %678 : vector<8x8xf32>
    %cst_184 = arith.constant dense<0.000000e+00> : vector<8x64xf32>
    %680 = tpu.matmul %679, %6, %cst_184 {dimension_numbers = #tpu.dot_dimension_numbers<[1], [0], [0], [1], [0, 0, 1, 1], [], []>} : vector<8x8xf32>, vector<8x64xf32>, vector<8x64xf32> -> vector<8x64xf32>
    %681 = vector.extract_strided_slice %639 {offsets = [0, 20], sizes = [8, 64], strides = [1, 1]} : vector<8x84xf32> to vector<8x64xf32>
    %682 = arith.addf %680, %681 : vector<8x64xf32>
    %683 = vector.broadcast %11 : vector<1x64xf32> to vector<8x64xf32>
    %684 = arith.addf %682, %683 : vector<8x64xf32>
    %685 = vector.extract_strided_slice %684 {offsets = [0, 0], sizes = [8, 48], strides = [1, 1]} : vector<8x64xf32> to vector<8x48xf32>
    %686 = arith.negf %685 : vector<8x48xf32>
    %687 = math.exp %686 : vector<8x48xf32>
    %cst_185 = arith.constant 1.000000e+00 : f32
    %688 = vector.broadcast %cst_185 : f32 to vector<8x48xf32>
    %689 = arith.addf %688, %687 : vector<8x48xf32>
    %690 = arith.divf %688, %689 : vector<8x48xf32>
    %691 = vector.extract_strided_slice %684 {offsets = [0, 48], sizes = [8, 16], strides = [1, 1]} : vector<8x64xf32> to vector<8x16xf32>
    %692 = math.tanh %691 : vector<8x16xf32>
    %693 = vector.extract_strided_slice %690 {offsets = [0, 0], sizes = [8, 16], strides = [1, 1]} : vector<8x48xf32> to vector<8x16xf32>
    %694 = vector.extract_strided_slice %690 {offsets = [0, 16], sizes = [8, 16], strides = [1, 1]} : vector<8x48xf32> to vector<8x16xf32>
    %695 = vector.extract_strided_slice %690 {offsets = [0, 32], sizes = [8, 16], strides = [1, 1]} : vector<8x48xf32> to vector<8x16xf32>
    %696 = arith.mulf %628, %694 : vector<8x16xf32>
    %697 = arith.mulf %693, %692 : vector<8x16xf32>
    %698 = arith.addf %696, %697 : vector<8x16xf32>
    %699 = math.tanh %698 : vector<8x16xf32>
    %700 = arith.mulf %695, %699 : vector<8x16xf32>
    %cst_186 = arith.constant dense<0.000000e+00> : vector<8x8xf32>
    %701 = tpu.matmul %700, %7, %cst_186 {dimension_numbers = #tpu.dot_dimension_numbers<[1], [0], [0], [1], [0, 0, 1, 1], [], []>} : vector<8x16xf32>, vector<16x8xf32>, vector<8x8xf32> -> vector<8x8xf32>
    %702 = vector.broadcast %12 : vector<1x8xf32> to vector<8x8xf32>
    %703 = arith.addf %701, %702 : vector<8x8xf32>
    %c0_187 = arith.constant 0 : index
    %c0_188 = arith.constant 0 : index
    %c56 = arith.constant 56 : index
    %704 = vector.load %arg7[%c0_187, %c0_188, %c56] : memref<1x8x128xf32, #tpu.memory_space<vmem>>, vector<1x8x8xf32>
    %705 = vector.shape_cast %704 : vector<1x8x8xf32> to vector<8x8xf32>
    %706 = vector.shape_cast %703 : vector<8x8xf32> to vector<1x8x8xf32>
    tpu.vector_store %arg7[%c0_187, %c0_188, %c56], %706 {strides = array<i32>} : memref<1x8x128xf32, #tpu.memory_space<vmem>>, vector<1x8x8xf32>,
    %c16_i32_189 = arith.constant 16 : i32
    %707 = arith.muli %arg0, %c16_i32_189 : i32
    %c7_i32_190 = arith.constant 7 : i32
    %708 = arith.addi %707, %c7_i32_190 : i32
    %c20_i32_191 = arith.constant 20 : i32
    %709 = arith.cmpi slt, %708, %c20_i32_191 : i32
    %710 = arith.select %709, %700, %627 : vector<8x16xf32>
    %711 = arith.select %709, %698, %628 : vector<8x16xf32>
    %c8_192 = arith.constant 8 : index
    %c0_193 = arith.constant 0 : index
    %c0_194 = arith.constant 0 : index
    %712 = vector.load %arg1[%c8_192, %c0_193, %c0_194] : memref<16x8x8xf32, #tpu.memory_space<vmem>>, vector<1x8x8xf32>
    %713 = vector.shape_cast %712 : vector<1x8x8xf32> to vector<8x8xf32>
    %cst_195 = arith.constant dense<0.000000e+00> : vector<8x8xf32>
    %714 = tpu.matmul %713, %3, %cst_195 {dimension_numbers = #tpu.dot_dimension_numbers<[1], [0], [0], [1], [0, 0, 1, 1], [], []>} : vector<8x8xf32>, vector<8x8xf32>, vector<8x8xf32> -> vector<8x8xf32>
    %715 = vector.broadcast %8 : vector<1x8xf32> to vector<8x8xf32>
    %716 = arith.addf %714, %715 : vector<8x8xf32>
    %cst_196 = arith.constant 0.000000e+00 : f32
    %717 = vector.broadcast %cst_196 : f32 to vector<8x8xf32>
    %718 = arith.cmpf ogt, %716, %717 : vector<8x8xf32>
    %cst_197 = arith.constant 0.00999999977 : f32
    %719 = vector.broadcast %cst_197 : f32 to vector<8x8xf32>
    %720 = arith.mulf %719, %716 : vector<8x8xf32>
    %721 = arith.select %718, %716, %720 : vector<8x8xi1>, vector<8x8xf32>
    %cst_198 = arith.constant dense<0.000000e+00> : vector<8x84xf32>
    %722 = tpu.matmul %710, %4, %cst_198 {dimension_numbers = #tpu.dot_dimension_numbers<[1], [0], [0], [1], [0, 0, 1, 1], [], []>} : vector<8x16xf32>, vector<16x84xf32>, vector<8x84xf32> -> vector<8x84xf32>
    %cst_199 = arith.constant dense<0.000000e+00> : vector<8x28xf32>
    %723 = tpu.matmul %721, %5, %cst_199 {dimension_numbers = #tpu.dot_dimension_numbers<[1], [0], [0], [1], [0, 0, 1, 1], [], []>} : vector<8x8xf32>, vector<8x28xf32>, vector<8x28xf32> -> vector<8x28xf32>
    %724 = vector.extract_strided_slice %723 {offsets = [0, 0], sizes = [8, 20], strides = [1, 1]} : vector<8x28xf32> to vector<8x20xf32>
    %725 = vector.extract_strided_slice %722 {offsets = [0, 0], sizes = [8, 20], strides = [1, 1]} : vector<8x84xf32> to vector<8x20xf32>
    %726 = arith.addf %724, %725 : vector<8x20xf32>
    %727 = vector.broadcast %9 : vector<1x20xf32> to vector<8x20xf32>
    %728 = arith.addf %726, %727 : vector<8x20xf32>
    %cst_200 = arith.constant dense<0xFF800000> : vector<8xf32>
    %729 = vector.multi_reduction <maximumf>, %728, %cst_200 [1] : vector<8x20xf32> to vector<8xf32>
    %730 = vector.shape_cast %729 : vector<8xf32> to vector<8x1xf32>
    %731 = vector.broadcast %730 : vector<8x1xf32> to vector<8x20xf32>
    %732 = arith.subf %728, %731 : vector<8x20xf32>
    %733 = math.exp %732 : vector<8x20xf32>
    %cst_201 = arith.constant dense<0.000000e+00> : vector<8xf32>
    %734 = vector.multi_reduction <add>, %733, %cst_201 [1] : vector<8x20xf32> to vector<8xf32>
    %735 = vector.shape_cast %734 : vector<8xf32> to vector<8x1xf32>
    %736 = vector.broadcast %735 : vector<8x1xf32> to vector<8x20xf32>
    %737 = arith.divf %733, %736 : vector<8x20xf32>
    %738 = vector.broadcast %17 : vector<8x1xf32> to vector<8x20xf32>
    %739 = arith.mulf %737, %738 : vector<8x20xf32>
    %740 = vector.broadcast %21 : vector<8x1xf32> to vector<8x20xf32>
    %741 = arith.mulf %737, %740 : vector<8x20xf32>
    %742 = vector.broadcast %25 : vector<8x1xf32> to vector<8x20xf32>
    %743 = arith.mulf %737, %742 : vector<8x20xf32>
    %744 = vector.broadcast %29 : vector<8x1xf32> to vector<8x20xf32>
    %745 = arith.mulf %737, %744 : vector<8x20xf32>
    %746 = vector.broadcast %33 : vector<8x1xf32> to vector<8x20xf32>
    %747 = arith.mulf %737, %746 : vector<8x20xf32>
    %748 = vector.broadcast %37 : vector<8x1xf32> to vector<8x20xf32>
    %749 = arith.mulf %737, %748 : vector<8x20xf32>
    %750 = vector.broadcast %41 : vector<8x1xf32> to vector<8x20xf32>
    %751 = arith.mulf %737, %750 : vector<8x20xf32>
    %752 = vector.broadcast %45 : vector<8x1xf32> to vector<8x20xf32>
    %753 = arith.mulf %737, %752 : vector<8x20xf32>
    %754 = tpu.concatenate %739, %741, %743, %745, %747, %749, %751, %753 in 1 : vector<8x20xf32>, vector<8x20xf32>, vector<8x20xf32>, vector<8x20xf32>, vector<8x20xf32>, vector<8x20xf32>, vector<8x20xf32>, vector<8x20xf32> -> vector<8x160xf32>
    %c0_202 = arith.constant 0 : index
    %c0_203 = arith.constant 0 : index
    %755 = vector.load %arg4[%c0_202, %c0_203] : memref<160x8xf32, #tpu.memory_space<vmem>>, vector<160x8xf32>
    %cst_204 = arith.constant dense<0.000000e+00> : vector<8x8xf32>
    %756 = tpu.matmul %754, %755, %cst_204 {dimension_numbers = #tpu.dot_dimension_numbers<[1], [0], [0], [1], [0, 0, 1, 1], [], []>} : vector<8x160xf32>, vector<160x8xf32>, vector<8x8xf32> -> vector<8x8xf32>
    %757 = vector.extract_strided_slice %723 {offsets = [0, 20], sizes = [8, 8], strides = [1, 1]} : vector<8x28xf32> to vector<8x8xf32>
    %758 = arith.addf %756, %757 : vector<8x8xf32>
    %759 = vector.broadcast %10 : vector<1x8xf32> to vector<8x8xf32>
    %760 = arith.addf %758, %759 : vector<8x8xf32>
    %cst_205 = arith.constant 0.000000e+00 : f32
    %761 = vector.broadcast %cst_205 : f32 to vector<8x8xf32>
    %762 = arith.maximumf %760, %761 : vector<8x8xf32>
    %cst_206 = arith.constant dense<0.000000e+00> : vector<8x64xf32>
    %763 = tpu.matmul %762, %6, %cst_206 {dimension_numbers = #tpu.dot_dimension_numbers<[1], [0], [0], [1], [0, 0, 1, 1], [], []>} : vector<8x8xf32>, vector<8x64xf32>, vector<8x64xf32> -> vector<8x64xf32>
    %764 = vector.extract_strided_slice %722 {offsets = [0, 20], sizes = [8, 64], strides = [1, 1]} : vector<8x84xf32> to vector<8x64xf32>
    %765 = arith.addf %763, %764 : vector<8x64xf32>
    %766 = vector.broadcast %11 : vector<1x64xf32> to vector<8x64xf32>
    %767 = arith.addf %765, %766 : vector<8x64xf32>
    %768 = vector.extract_strided_slice %767 {offsets = [0, 0], sizes = [8, 48], strides = [1, 1]} : vector<8x64xf32> to vector<8x48xf32>
    %769 = arith.negf %768 : vector<8x48xf32>
    %770 = math.exp %769 : vector<8x48xf32>
    %cst_207 = arith.constant 1.000000e+00 : f32
    %771 = vector.broadcast %cst_207 : f32 to vector<8x48xf32>
    %772 = arith.addf %771, %770 : vector<8x48xf32>
    %773 = arith.divf %771, %772 : vector<8x48xf32>
    %774 = vector.extract_strided_slice %767 {offsets = [0, 48], sizes = [8, 16], strides = [1, 1]} : vector<8x64xf32> to vector<8x16xf32>
    %775 = math.tanh %774 : vector<8x16xf32>
    %776 = vector.extract_strided_slice %773 {offsets = [0, 0], sizes = [8, 16], strides = [1, 1]} : vector<8x48xf32> to vector<8x16xf32>
    %777 = vector.extract_strided_slice %773 {offsets = [0, 16], sizes = [8, 16], strides = [1, 1]} : vector<8x48xf32> to vector<8x16xf32>
    %778 = vector.extract_strided_slice %773 {offsets = [0, 32], sizes = [8, 16], strides = [1, 1]} : vector<8x48xf32> to vector<8x16xf32>
    %779 = arith.mulf %711, %777 : vector<8x16xf32>
    %780 = arith.mulf %776, %775 : vector<8x16xf32>
    %781 = arith.addf %779, %780 : vector<8x16xf32>
    %782 = math.tanh %781 : vector<8x16xf32>
    %783 = arith.mulf %778, %782 : vector<8x16xf32>
    %cst_208 = arith.constant dense<0.000000e+00> : vector<8x8xf32>
    %784 = tpu.matmul %783, %7, %cst_208 {dimension_numbers = #tpu.dot_dimension_numbers<[1], [0], [0], [1], [0, 0, 1, 1], [], []>} : vector<8x16xf32>, vector<16x8xf32>, vector<8x8xf32> -> vector<8x8xf32>
    %785 = vector.broadcast %12 : vector<1x8xf32> to vector<8x8xf32>
    %786 = arith.addf %784, %785 : vector<8x8xf32>
    %c0_209 = arith.constant 0 : index
    %c0_210 = arith.constant 0 : index
    %c64 = arith.constant 64 : index
    %787 = vector.load %arg7[%c0_209, %c0_210, %c64] : memref<1x8x128xf32, #tpu.memory_space<vmem>>, vector<1x8x8xf32>
    %788 = vector.shape_cast %787 : vector<1x8x8xf32> to vector<8x8xf32>
    %789 = vector.shape_cast %786 : vector<8x8xf32> to vector<1x8x8xf32>
    tpu.vector_store %arg7[%c0_209, %c0_210, %c64], %789 {strides = array<i32>} : memref<1x8x128xf32, #tpu.memory_space<vmem>>, vector<1x8x8xf32>,
    %c16_i32_211 = arith.constant 16 : i32
    %790 = arith.muli %arg0, %c16_i32_211 : i32
    %c8_i32 = arith.constant 8 : i32
    %791 = arith.addi %790, %c8_i32 : i32
    %c20_i32_212 = arith.constant 20 : i32
    %792 = arith.cmpi slt, %791, %c20_i32_212 : i32
    %793 = arith.select %792, %783, %710 : vector<8x16xf32>
    %794 = arith.select %792, %781, %711 : vector<8x16xf32>
    %c9 = arith.constant 9 : index
    %c0_213 = arith.constant 0 : index
    %c0_214 = arith.constant 0 : index
    %795 = vector.load %arg1[%c9, %c0_213, %c0_214] : memref<16x8x8xf32, #tpu.memory_space<vmem>>, vector<1x8x8xf32>
    %796 = vector.shape_cast %795 : vector<1x8x8xf32> to vector<8x8xf32>
    %cst_215 = arith.constant dense<0.000000e+00> : vector<8x8xf32>
    %797 = tpu.matmul %796, %3, %cst_215 {dimension_numbers = #tpu.dot_dimension_numbers<[1], [0], [0], [1], [0, 0, 1, 1], [], []>} : vector<8x8xf32>, vector<8x8xf32>, vector<8x8xf32> -> vector<8x8xf32>
    %798 = vector.broadcast %8 : vector<1x8xf32> to vector<8x8xf32>
    %799 = arith.addf %797, %798 : vector<8x8xf32>
    %cst_216 = arith.constant 0.000000e+00 : f32
    %800 = vector.broadcast %cst_216 : f32 to vector<8x8xf32>
    %801 = arith.cmpf ogt, %799, %800 : vector<8x8xf32>
    %cst_217 = arith.constant 0.00999999977 : f32
    %802 = vector.broadcast %cst_217 : f32 to vector<8x8xf32>
    %803 = arith.mulf %802, %799 : vector<8x8xf32>
    %804 = arith.select %801, %799, %803 : vector<8x8xi1>, vector<8x8xf32>
    %cst_218 = arith.constant dense<0.000000e+00> : vector<8x84xf32>
    %805 = tpu.matmul %793, %4, %cst_218 {dimension_numbers = #tpu.dot_dimension_numbers<[1], [0], [0], [1], [0, 0, 1, 1], [], []>} : vector<8x16xf32>, vector<16x84xf32>, vector<8x84xf32> -> vector<8x84xf32>
    %cst_219 = arith.constant dense<0.000000e+00> : vector<8x28xf32>
    %806 = tpu.matmul %804, %5, %cst_219 {dimension_numbers = #tpu.dot_dimension_numbers<[1], [0], [0], [1], [0, 0, 1, 1], [], []>} : vector<8x8xf32>, vector<8x28xf32>, vector<8x28xf32> -> vector<8x28xf32>
    %807 = vector.extract_strided_slice %806 {offsets = [0, 0], sizes = [8, 20], strides = [1, 1]} : vector<8x28xf32> to vector<8x20xf32>
    %808 = vector.extract_strided_slice %805 {offsets = [0, 0], sizes = [8, 20], strides = [1, 1]} : vector<8x84xf32> to vector<8x20xf32>
    %809 = arith.addf %807, %808 : vector<8x20xf32>
    %810 = vector.broadcast %9 : vector<1x20xf32> to vector<8x20xf32>
    %811 = arith.addf %809, %810 : vector<8x20xf32>
    %cst_220 = arith.constant dense<0xFF800000> : vector<8xf32>
    %812 = vector.multi_reduction <maximumf>, %811, %cst_220 [1] : vector<8x20xf32> to vector<8xf32>
    %813 = vector.shape_cast %812 : vector<8xf32> to vector<8x1xf32>
    %814 = vector.broadcast %813 : vector<8x1xf32> to vector<8x20xf32>
    %815 = arith.subf %811, %814 : vector<8x20xf32>
    %816 = math.exp %815 : vector<8x20xf32>
    %cst_221 = arith.constant dense<0.000000e+00> : vector<8xf32>
    %817 = vector.multi_reduction <add>, %816, %cst_221 [1] : vector<8x20xf32> to vector<8xf32>
    %818 = vector.shape_cast %817 : vector<8xf32> to vector<8x1xf32>
    %819 = vector.broadcast %818 : vector<8x1xf32> to vector<8x20xf32>
    %820 = arith.divf %816, %819 : vector<8x20xf32>
    %821 = vector.broadcast %17 : vector<8x1xf32> to vector<8x20xf32>
    %822 = arith.mulf %820, %821 : vector<8x20xf32>
    %823 = vector.broadcast %21 : vector<8x1xf32> to vector<8x20xf32>
    %824 = arith.mulf %820, %823 : vector<8x20xf32>
    %825 = vector.broadcast %25 : vector<8x1xf32> to vector<8x20xf32>
    %826 = arith.mulf %820, %825 : vector<8x20xf32>
    %827 = vector.broadcast %29 : vector<8x1xf32> to vector<8x20xf32>
    %828 = arith.mulf %820, %827 : vector<8x20xf32>
    %829 = vector.broadcast %33 : vector<8x1xf32> to vector<8x20xf32>
    %830 = arith.mulf %820, %829 : vector<8x20xf32>
    %831 = vector.broadcast %37 : vector<8x1xf32> to vector<8x20xf32>
    %832 = arith.mulf %820, %831 : vector<8x20xf32>
    %833 = vector.broadcast %41 : vector<8x1xf32> to vector<8x20xf32>
    %834 = arith.mulf %820, %833 : vector<8x20xf32>
    %835 = vector.broadcast %45 : vector<8x1xf32> to vector<8x20xf32>
    %836 = arith.mulf %820, %835 : vector<8x20xf32>
    %837 = tpu.concatenate %822, %824, %826, %828, %830, %832, %834, %836 in 1 : vector<8x20xf32>, vector<8x20xf32>, vector<8x20xf32>, vector<8x20xf32>, vector<8x20xf32>, vector<8x20xf32>, vector<8x20xf32>, vector<8x20xf32> -> vector<8x160xf32>
    %c0_222 = arith.constant 0 : index
    %c0_223 = arith.constant 0 : index
    %838 = vector.load %arg4[%c0_222, %c0_223] : memref<160x8xf32, #tpu.memory_space<vmem>>, vector<160x8xf32>
    %cst_224 = arith.constant dense<0.000000e+00> : vector<8x8xf32>
    %839 = tpu.matmul %837, %838, %cst_224 {dimension_numbers = #tpu.dot_dimension_numbers<[1], [0], [0], [1], [0, 0, 1, 1], [], []>} : vector<8x160xf32>, vector<160x8xf32>, vector<8x8xf32> -> vector<8x8xf32>
    %840 = vector.extract_strided_slice %806 {offsets = [0, 20], sizes = [8, 8], strides = [1, 1]} : vector<8x28xf32> to vector<8x8xf32>
    %841 = arith.addf %839, %840 : vector<8x8xf32>
    %842 = vector.broadcast %10 : vector<1x8xf32> to vector<8x8xf32>
    %843 = arith.addf %841, %842 : vector<8x8xf32>
    %cst_225 = arith.constant 0.000000e+00 : f32
    %844 = vector.broadcast %cst_225 : f32 to vector<8x8xf32>
    %845 = arith.maximumf %843, %844 : vector<8x8xf32>
    %cst_226 = arith.constant dense<0.000000e+00> : vector<8x64xf32>
    %846 = tpu.matmul %845, %6, %cst_226 {dimension_numbers = #tpu.dot_dimension_numbers<[1], [0], [0], [1], [0, 0, 1, 1], [], []>} : vector<8x8xf32>, vector<8x64xf32>, vector<8x64xf32> -> vector<8x64xf32>
    %847 = vector.extract_strided_slice %805 {offsets = [0, 20], sizes = [8, 64], strides = [1, 1]} : vector<8x84xf32> to vector<8x64xf32>
    %848 = arith.addf %846, %847 : vector<8x64xf32>
    %849 = vector.broadcast %11 : vector<1x64xf32> to vector<8x64xf32>
    %850 = arith.addf %848, %849 : vector<8x64xf32>
    %851 = vector.extract_strided_slice %850 {offsets = [0, 0], sizes = [8, 48], strides = [1, 1]} : vector<8x64xf32> to vector<8x48xf32>
    %852 = arith.negf %851 : vector<8x48xf32>
    %853 = math.exp %852 : vector<8x48xf32>
    %cst_227 = arith.constant 1.000000e+00 : f32
    %854 = vector.broadcast %cst_227 : f32 to vector<8x48xf32>
    %855 = arith.addf %854, %853 : vector<8x48xf32>
    %856 = arith.divf %854, %855 : vector<8x48xf32>
    %857 = vector.extract_strided_slice %850 {offsets = [0, 48], sizes = [8, 16], strides = [1, 1]} : vector<8x64xf32> to vector<8x16xf32>
    %858 = math.tanh %857 : vector<8x16xf32>
    %859 = vector.extract_strided_slice %856 {offsets = [0, 0], sizes = [8, 16], strides = [1, 1]} : vector<8x48xf32> to vector<8x16xf32>
    %860 = vector.extract_strided_slice %856 {offsets = [0, 16], sizes = [8, 16], strides = [1, 1]} : vector<8x48xf32> to vector<8x16xf32>
    %861 = vector.extract_strided_slice %856 {offsets = [0, 32], sizes = [8, 16], strides = [1, 1]} : vector<8x48xf32> to vector<8x16xf32>
    %862 = arith.mulf %794, %860 : vector<8x16xf32>
    %863 = arith.mulf %859, %858 : vector<8x16xf32>
    %864 = arith.addf %862, %863 : vector<8x16xf32>
    %865 = math.tanh %864 : vector<8x16xf32>
    %866 = arith.mulf %861, %865 : vector<8x16xf32>
    %cst_228 = arith.constant dense<0.000000e+00> : vector<8x8xf32>
    %867 = tpu.matmul %866, %7, %cst_228 {dimension_numbers = #tpu.dot_dimension_numbers<[1], [0], [0], [1], [0, 0, 1, 1], [], []>} : vector<8x16xf32>, vector<16x8xf32>, vector<8x8xf32> -> vector<8x8xf32>
    %868 = vector.broadcast %12 : vector<1x8xf32> to vector<8x8xf32>
    %869 = arith.addf %867, %868 : vector<8x8xf32>
    %c0_229 = arith.constant 0 : index
    %c0_230 = arith.constant 0 : index
    %c72 = arith.constant 72 : index
    %870 = vector.load %arg7[%c0_229, %c0_230, %c72] : memref<1x8x128xf32, #tpu.memory_space<vmem>>, vector<1x8x8xf32>
    %871 = vector.shape_cast %870 : vector<1x8x8xf32> to vector<8x8xf32>
    %872 = vector.shape_cast %869 : vector<8x8xf32> to vector<1x8x8xf32>
    tpu.vector_store %arg7[%c0_229, %c0_230, %c72], %872 {strides = array<i32>} : memref<1x8x128xf32, #tpu.memory_space<vmem>>, vector<1x8x8xf32>,
    %c16_i32_231 = arith.constant 16 : i32
    %873 = arith.muli %arg0, %c16_i32_231 : i32
    %c9_i32 = arith.constant 9 : i32
    %874 = arith.addi %873, %c9_i32 : i32
    %c20_i32_232 = arith.constant 20 : i32
    %875 = arith.cmpi slt, %874, %c20_i32_232 : i32
    %876 = arith.select %875, %866, %793 : vector<8x16xf32>
    %877 = arith.select %875, %864, %794 : vector<8x16xf32>
    %c10 = arith.constant 10 : index
    %c0_233 = arith.constant 0 : index
    %c0_234 = arith.constant 0 : index
    %878 = vector.load %arg1[%c10, %c0_233, %c0_234] : memref<16x8x8xf32, #tpu.memory_space<vmem>>, vector<1x8x8xf32>
    %879 = vector.shape_cast %878 : vector<1x8x8xf32> to vector<8x8xf32>
    %cst_235 = arith.constant dense<0.000000e+00> : vector<8x8xf32>
    %880 = tpu.matmul %879, %3, %cst_235 {dimension_numbers = #tpu.dot_dimension_numbers<[1], [0], [0], [1], [0, 0, 1, 1], [], []>} : vector<8x8xf32>, vector<8x8xf32>, vector<8x8xf32> -> vector<8x8xf32>
    %881 = vector.broadcast %8 : vector<1x8xf32> to vector<8x8xf32>
    %882 = arith.addf %880, %881 : vector<8x8xf32>
    %cst_236 = arith.constant 0.000000e+00 : f32
    %883 = vector.broadcast %cst_236 : f32 to vector<8x8xf32>
    %884 = arith.cmpf ogt, %882, %883 : vector<8x8xf32>
    %cst_237 = arith.constant 0.00999999977 : f32
    %885 = vector.broadcast %cst_237 : f32 to vector<8x8xf32>
    %886 = arith.mulf %885, %882 : vector<8x8xf32>
    %887 = arith.select %884, %882, %886 : vector<8x8xi1>, vector<8x8xf32>
    %cst_238 = arith.constant dense<0.000000e+00> : vector<8x84xf32>
    %888 = tpu.matmul %876, %4, %cst_238 {dimension_numbers = #tpu.dot_dimension_numbers<[1], [0], [0], [1], [0, 0, 1, 1], [], []>} : vector<8x16xf32>, vector<16x84xf32>, vector<8x84xf32> -> vector<8x84xf32>
    %cst_239 = arith.constant dense<0.000000e+00> : vector<8x28xf32>
    %889 = tpu.matmul %887, %5, %cst_239 {dimension_numbers = #tpu.dot_dimension_numbers<[1], [0], [0], [1], [0, 0, 1, 1], [], []>} : vector<8x8xf32>, vector<8x28xf32>, vector<8x28xf32> -> vector<8x28xf32>
    %890 = vector.extract_strided_slice %889 {offsets = [0, 0], sizes = [8, 20], strides = [1, 1]} : vector<8x28xf32> to vector<8x20xf32>
    %891 = vector.extract_strided_slice %888 {offsets = [0, 0], sizes = [8, 20], strides = [1, 1]} : vector<8x84xf32> to vector<8x20xf32>
    %892 = arith.addf %890, %891 : vector<8x20xf32>
    %893 = vector.broadcast %9 : vector<1x20xf32> to vector<8x20xf32>
    %894 = arith.addf %892, %893 : vector<8x20xf32>
    %cst_240 = arith.constant dense<0xFF800000> : vector<8xf32>
    %895 = vector.multi_reduction <maximumf>, %894, %cst_240 [1] : vector<8x20xf32> to vector<8xf32>
    %896 = vector.shape_cast %895 : vector<8xf32> to vector<8x1xf32>
    %897 = vector.broadcast %896 : vector<8x1xf32> to vector<8x20xf32>
    %898 = arith.subf %894, %897 : vector<8x20xf32>
    %899 = math.exp %898 : vector<8x20xf32>
    %cst_241 = arith.constant dense<0.000000e+00> : vector<8xf32>
    %900 = vector.multi_reduction <add>, %899, %cst_241 [1] : vector<8x20xf32> to vector<8xf32>
    %901 = vector.shape_cast %900 : vector<8xf32> to vector<8x1xf32>
    %902 = vector.broadcast %901 : vector<8x1xf32> to vector<8x20xf32>
    %903 = arith.divf %899, %902 : vector<8x20xf32>
    %904 = vector.broadcast %17 : vector<8x1xf32> to vector<8x20xf32>
    %905 = arith.mulf %903, %904 : vector<8x20xf32>
    %906 = vector.broadcast %21 : vector<8x1xf32> to vector<8x20xf32>
    %907 = arith.mulf %903, %906 : vector<8x20xf32>
    %908 = vector.broadcast %25 : vector<8x1xf32> to vector<8x20xf32>
    %909 = arith.mulf %903, %908 : vector<8x20xf32>
    %910 = vector.broadcast %29 : vector<8x1xf32> to vector<8x20xf32>
    %911 = arith.mulf %903, %910 : vector<8x20xf32>
    %912 = vector.broadcast %33 : vector<8x1xf32> to vector<8x20xf32>
    %913 = arith.mulf %903, %912 : vector<8x20xf32>
    %914 = vector.broadcast %37 : vector<8x1xf32> to vector<8x20xf32>
    %915 = arith.mulf %903, %914 : vector<8x20xf32>
    %916 = vector.broadcast %41 : vector<8x1xf32> to vector<8x20xf32>
    %917 = arith.mulf %903, %916 : vector<8x20xf32>
    %918 = vector.broadcast %45 : vector<8x1xf32> to vector<8x20xf32>
    %919 = arith.mulf %903, %918 : vector<8x20xf32>
    %920 = tpu.concatenate %905, %907, %909, %911, %913, %915, %917, %919 in 1 : vector<8x20xf32>, vector<8x20xf32>, vector<8x20xf32>, vector<8x20xf32>, vector<8x20xf32>, vector<8x20xf32>, vector<8x20xf32>, vector<8x20xf32> -> vector<8x160xf32>
    %c0_242 = arith.constant 0 : index
    %c0_243 = arith.constant 0 : index
    %921 = vector.load %arg4[%c0_242, %c0_243] : memref<160x8xf32, #tpu.memory_space<vmem>>, vector<160x8xf32>
    %cst_244 = arith.constant dense<0.000000e+00> : vector<8x8xf32>
    %922 = tpu.matmul %920, %921, %cst_244 {dimension_numbers = #tpu.dot_dimension_numbers<[1], [0], [0], [1], [0, 0, 1, 1], [], []>} : vector<8x160xf32>, vector<160x8xf32>, vector<8x8xf32> -> vector<8x8xf32>
    %923 = vector.extract_strided_slice %889 {offsets = [0, 20], sizes = [8, 8], strides = [1, 1]} : vector<8x28xf32> to vector<8x8xf32>
    %924 = arith.addf %922, %923 : vector<8x8xf32>
    %925 = vector.broadcast %10 : vector<1x8xf32> to vector<8x8xf32>
    %926 = arith.addf %924, %925 : vector<8x8xf32>
    %cst_245 = arith.constant 0.000000e+00 : f32
    %927 = vector.broadcast %cst_245 : f32 to vector<8x8xf32>
    %928 = arith.maximumf %926, %927 : vector<8x8xf32>
    %cst_246 = arith.constant dense<0.000000e+00> : vector<8x64xf32>
    %929 = tpu.matmul %928, %6, %cst_246 {dimension_numbers = #tpu.dot_dimension_numbers<[1], [0], [0], [1], [0, 0, 1, 1], [], []>} : vector<8x8xf32>, vector<8x64xf32>, vector<8x64xf32> -> vector<8x64xf32>
    %930 = vector.extract_strided_slice %888 {offsets = [0, 20], sizes = [8, 64], strides = [1, 1]} : vector<8x84xf32> to vector<8x64xf32>
    %931 = arith.addf %929, %930 : vector<8x64xf32>
    %932 = vector.broadcast %11 : vector<1x64xf32> to vector<8x64xf32>
    %933 = arith.addf %931, %932 : vector<8x64xf32>
    %934 = vector.extract_strided_slice %933 {offsets = [0, 0], sizes = [8, 48], strides = [1, 1]} : vector<8x64xf32> to vector<8x48xf32>
    %935 = arith.negf %934 : vector<8x48xf32>
    %936 = math.exp %935 : vector<8x48xf32>
    %cst_247 = arith.constant 1.000000e+00 : f32
    %937 = vector.broadcast %cst_247 : f32 to vector<8x48xf32>
    %938 = arith.addf %937, %936 : vector<8x48xf32>
    %939 = arith.divf %937, %938 : vector<8x48xf32>
    %940 = vector.extract_strided_slice %933 {offsets = [0, 48], sizes = [8, 16], strides = [1, 1]} : vector<8x64xf32> to vector<8x16xf32>
    %941 = math.tanh %940 : vector<8x16xf32>
    %942 = vector.extract_strided_slice %939 {offsets = [0, 0], sizes = [8, 16], strides = [1, 1]} : vector<8x48xf32> to vector<8x16xf32>
    %943 = vector.extract_strided_slice %939 {offsets = [0, 16], sizes = [8, 16], strides = [1, 1]} : vector<8x48xf32> to vector<8x16xf32>
    %944 = vector.extract_strided_slice %939 {offsets = [0, 32], sizes = [8, 16], strides = [1, 1]} : vector<8x48xf32> to vector<8x16xf32>
    %945 = arith.mulf %877, %943 : vector<8x16xf32>
    %946 = arith.mulf %942, %941 : vector<8x16xf32>
    %947 = arith.addf %945, %946 : vector<8x16xf32>
    %948 = math.tanh %947 : vector<8x16xf32>
    %949 = arith.mulf %944, %948 : vector<8x16xf32>
    %cst_248 = arith.constant dense<0.000000e+00> : vector<8x8xf32>
    %950 = tpu.matmul %949, %7, %cst_248 {dimension_numbers = #tpu.dot_dimension_numbers<[1], [0], [0], [1], [0, 0, 1, 1], [], []>} : vector<8x16xf32>, vector<16x8xf32>, vector<8x8xf32> -> vector<8x8xf32>
    %951 = vector.broadcast %12 : vector<1x8xf32> to vector<8x8xf32>
    %952 = arith.addf %950, %951 : vector<8x8xf32>
    %c0_249 = arith.constant 0 : index
    %c0_250 = arith.constant 0 : index
    %c80 = arith.constant 80 : index
    %953 = vector.load %arg7[%c0_249, %c0_250, %c80] : memref<1x8x128xf32, #tpu.memory_space<vmem>>, vector<1x8x8xf32>
    %954 = vector.shape_cast %953 : vector<1x8x8xf32> to vector<8x8xf32>
    %955 = vector.shape_cast %952 : vector<8x8xf32> to vector<1x8x8xf32>
    tpu.vector_store %arg7[%c0_249, %c0_250, %c80], %955 {strides = array<i32>} : memref<1x8x128xf32, #tpu.memory_space<vmem>>, vector<1x8x8xf32>,
    %c16_i32_251 = arith.constant 16 : i32
    %956 = arith.muli %arg0, %c16_i32_251 : i32
    %c10_i32 = arith.constant 10 : i32
    %957 = arith.addi %956, %c10_i32 : i32
    %c20_i32_252 = arith.constant 20 : i32
    %958 = arith.cmpi slt, %957, %c20_i32_252 : i32
    %959 = arith.select %958, %949, %876 : vector<8x16xf32>
    %960 = arith.select %958, %947, %877 : vector<8x16xf32>
    %c11 = arith.constant 11 : index
    %c0_253 = arith.constant 0 : index
    %c0_254 = arith.constant 0 : index
    %961 = vector.load %arg1[%c11, %c0_253, %c0_254] : memref<16x8x8xf32, #tpu.memory_space<vmem>>, vector<1x8x8xf32>
    %962 = vector.shape_cast %961 : vector<1x8x8xf32> to vector<8x8xf32>
    %cst_255 = arith.constant dense<0.000000e+00> : vector<8x8xf32>
    %963 = tpu.matmul %962, %3, %cst_255 {dimension_numbers = #tpu.dot_dimension_numbers<[1], [0], [0], [1], [0, 0, 1, 1], [], []>} : vector<8x8xf32>, vector<8x8xf32>, vector<8x8xf32> -> vector<8x8xf32>
    %964 = vector.broadcast %8 : vector<1x8xf32> to vector<8x8xf32>
    %965 = arith.addf %963, %964 : vector<8x8xf32>
    %cst_256 = arith.constant 0.000000e+00 : f32
    %966 = vector.broadcast %cst_256 : f32 to vector<8x8xf32>
    %967 = arith.cmpf ogt, %965, %966 : vector<8x8xf32>
    %cst_257 = arith.constant 0.00999999977 : f32
    %968 = vector.broadcast %cst_257 : f32 to vector<8x8xf32>
    %969 = arith.mulf %968, %965 : vector<8x8xf32>
    %970 = arith.select %967, %965, %969 : vector<8x8xi1>, vector<8x8xf32>
    %cst_258 = arith.constant dense<0.000000e+00> : vector<8x84xf32>
    %971 = tpu.matmul %959, %4, %cst_258 {dimension_numbers = #tpu.dot_dimension_numbers<[1], [0], [0], [1], [0, 0, 1, 1], [], []>} : vector<8x16xf32>, vector<16x84xf32>, vector<8x84xf32> -> vector<8x84xf32>
    %cst_259 = arith.constant dense<0.000000e+00> : vector<8x28xf32>
    %972 = tpu.matmul %970, %5, %cst_259 {dimension_numbers = #tpu.dot_dimension_numbers<[1], [0], [0], [1], [0, 0, 1, 1], [], []>} : vector<8x8xf32>, vector<8x28xf32>, vector<8x28xf32> -> vector<8x28xf32>
    %973 = vector.extract_strided_slice %972 {offsets = [0, 0], sizes = [8, 20], strides = [1, 1]} : vector<8x28xf32> to vector<8x20xf32>
    %974 = vector.extract_strided_slice %971 {offsets = [0, 0], sizes = [8, 20], strides = [1, 1]} : vector<8x84xf32> to vector<8x20xf32>
    %975 = arith.addf %973, %974 : vector<8x20xf32>
    %976 = vector.broadcast %9 : vector<1x20xf32> to vector<8x20xf32>
    %977 = arith.addf %975, %976 : vector<8x20xf32>
    %cst_260 = arith.constant dense<0xFF800000> : vector<8xf32>
    %978 = vector.multi_reduction <maximumf>, %977, %cst_260 [1] : vector<8x20xf32> to vector<8xf32>
    %979 = vector.shape_cast %978 : vector<8xf32> to vector<8x1xf32>
    %980 = vector.broadcast %979 : vector<8x1xf32> to vector<8x20xf32>
    %981 = arith.subf %977, %980 : vector<8x20xf32>
    %982 = math.exp %981 : vector<8x20xf32>
    %cst_261 = arith.constant dense<0.000000e+00> : vector<8xf32>
    %983 = vector.multi_reduction <add>, %982, %cst_261 [1] : vector<8x20xf32> to vector<8xf32>
    %984 = vector.shape_cast %983 : vector<8xf32> to vector<8x1xf32>
    %985 = vector.broadcast %984 : vector<8x1xf32> to vector<8x20xf32>
    %986 = arith.divf %982, %985 : vector<8x20xf32>
    %987 = vector.broadcast %17 : vector<8x1xf32> to vector<8x20xf32>
    %988 = arith.mulf %986, %987 : vector<8x20xf32>
    %989 = vector.broadcast %21 : vector<8x1xf32> to vector<8x20xf32>
    %990 = arith.mulf %986, %989 : vector<8x20xf32>
    %991 = vector.broadcast %25 : vector<8x1xf32> to vector<8x20xf32>
    %992 = arith.mulf %986, %991 : vector<8x20xf32>
    %993 = vector.broadcast %29 : vector<8x1xf32> to vector<8x20xf32>
    %994 = arith.mulf %986, %993 : vector<8x20xf32>
    %995 = vector.broadcast %33 : vector<8x1xf32> to vector<8x20xf32>
    %996 = arith.mulf %986, %995 : vector<8x20xf32>
    %997 = vector.broadcast %37 : vector<8x1xf32> to vector<8x20xf32>
    %998 = arith.mulf %986, %997 : vector<8x20xf32>
    %999 = vector.broadcast %41 : vector<8x1xf32> to vector<8x20xf32>
    %1000 = arith.mulf %986, %999 : vector<8x20xf32>
    %1001 = vector.broadcast %45 : vector<8x1xf32> to vector<8x20xf32>
    %1002 = arith.mulf %986, %1001 : vector<8x20xf32>
    %1003 = tpu.concatenate %988, %990, %992, %994, %996, %998, %1000, %1002 in 1 : vector<8x20xf32>, vector<8x20xf32>, vector<8x20xf32>, vector<8x20xf32>, vector<8x20xf32>, vector<8x20xf32>, vector<8x20xf32>, vector<8x20xf32> -> vector<8x160xf32>
    %c0_262 = arith.constant 0 : index
    %c0_263 = arith.constant 0 : index
    %1004 = vector.load %arg4[%c0_262, %c0_263] : memref<160x8xf32, #tpu.memory_space<vmem>>, vector<160x8xf32>
    %cst_264 = arith.constant dense<0.000000e+00> : vector<8x8xf32>
    %1005 = tpu.matmul %1003, %1004, %cst_264 {dimension_numbers = #tpu.dot_dimension_numbers<[1], [0], [0], [1], [0, 0, 1, 1], [], []>} : vector<8x160xf32>, vector<160x8xf32>, vector<8x8xf32> -> vector<8x8xf32>
    %1006 = vector.extract_strided_slice %972 {offsets = [0, 20], sizes = [8, 8], strides = [1, 1]} : vector<8x28xf32> to vector<8x8xf32>
    %1007 = arith.addf %1005, %1006 : vector<8x8xf32>
    %1008 = vector.broadcast %10 : vector<1x8xf32> to vector<8x8xf32>
    %1009 = arith.addf %1007, %1008 : vector<8x8xf32>
    %cst_265 = arith.constant 0.000000e+00 : f32
    %1010 = vector.broadcast %cst_265 : f32 to vector<8x8xf32>
    %1011 = arith.maximumf %1009, %1010 : vector<8x8xf32>
    %cst_266 = arith.constant dense<0.000000e+00> : vector<8x64xf32>
    %1012 = tpu.matmul %1011, %6, %cst_266 {dimension_numbers = #tpu.dot_dimension_numbers<[1], [0], [0], [1], [0, 0, 1, 1], [], []>} : vector<8x8xf32>, vector<8x64xf32>, vector<8x64xf32> -> vector<8x64xf32>
    %1013 = vector.extract_strided_slice %971 {offsets = [0, 20], sizes = [8, 64], strides = [1, 1]} : vector<8x84xf32> to vector<8x64xf32>
    %1014 = arith.addf %1012, %1013 : vector<8x64xf32>
    %1015 = vector.broadcast %11 : vector<1x64xf32> to vector<8x64xf32>
    %1016 = arith.addf %1014, %1015 : vector<8x64xf32>
    %1017 = vector.extract_strided_slice %1016 {offsets = [0, 0], sizes = [8, 48], strides = [1, 1]} : vector<8x64xf32> to vector<8x48xf32>
    %1018 = arith.negf %1017 : vector<8x48xf32>
    %1019 = math.exp %1018 : vector<8x48xf32>
    %cst_267 = arith.constant 1.000000e+00 : f32
    %1020 = vector.broadcast %cst_267 : f32 to vector<8x48xf32>
    %1021 = arith.addf %1020, %1019 : vector<8x48xf32>
    %1022 = arith.divf %1020, %1021 : vector<8x48xf32>
    %1023 = vector.extract_strided_slice %1016 {offsets = [0, 48], sizes = [8, 16], strides = [1, 1]} : vector<8x64xf32> to vector<8x16xf32>
    %1024 = math.tanh %1023 : vector<8x16xf32>
    %1025 = vector.extract_strided_slice %1022 {offsets = [0, 0], sizes = [8, 16], strides = [1, 1]} : vector<8x48xf32> to vector<8x16xf32>
    %1026 = vector.extract_strided_slice %1022 {offsets = [0, 16], sizes = [8, 16], strides = [1, 1]} : vector<8x48xf32> to vector<8x16xf32>
    %1027 = vector.extract_strided_slice %1022 {offsets = [0, 32], sizes = [8, 16], strides = [1, 1]} : vector<8x48xf32> to vector<8x16xf32>
    %1028 = arith.mulf %960, %1026 : vector<8x16xf32>
    %1029 = arith.mulf %1025, %1024 : vector<8x16xf32>
    %1030 = arith.addf %1028, %1029 : vector<8x16xf32>
    %1031 = math.tanh %1030 : vector<8x16xf32>
    %1032 = arith.mulf %1027, %1031 : vector<8x16xf32>
    %cst_268 = arith.constant dense<0.000000e+00> : vector<8x8xf32>
    %1033 = tpu.matmul %1032, %7, %cst_268 {dimension_numbers = #tpu.dot_dimension_numbers<[1], [0], [0], [1], [0, 0, 1, 1], [], []>} : vector<8x16xf32>, vector<16x8xf32>, vector<8x8xf32> -> vector<8x8xf32>
    %1034 = vector.broadcast %12 : vector<1x8xf32> to vector<8x8xf32>
    %1035 = arith.addf %1033, %1034 : vector<8x8xf32>
    %c0_269 = arith.constant 0 : index
    %c0_270 = arith.constant 0 : index
    %c88 = arith.constant 88 : index
    %1036 = vector.load %arg7[%c0_269, %c0_270, %c88] : memref<1x8x128xf32, #tpu.memory_space<vmem>>, vector<1x8x8xf32>
    %1037 = vector.shape_cast %1036 : vector<1x8x8xf32> to vector<8x8xf32>
    %1038 = vector.shape_cast %1035 : vector<8x8xf32> to vector<1x8x8xf32>
    tpu.vector_store %arg7[%c0_269, %c0_270, %c88], %1038 {strides = array<i32>} : memref<1x8x128xf32, #tpu.memory_space<vmem>>, vector<1x8x8xf32>,
    %c16_i32_271 = arith.constant 16 : i32
    %1039 = arith.muli %arg0, %c16_i32_271 : i32
    %c11_i32 = arith.constant 11 : i32
    %1040 = arith.addi %1039, %c11_i32 : i32
    %c20_i32_272 = arith.constant 20 : i32
    %1041 = arith.cmpi slt, %1040, %c20_i32_272 : i32
    %1042 = arith.select %1041, %1032, %959 : vector<8x16xf32>
    %1043 = arith.select %1041, %1030, %960 : vector<8x16xf32>
    %c12 = arith.constant 12 : index
    %c0_273 = arith.constant 0 : index
    %c0_274 = arith.constant 0 : index
    %1044 = vector.load %arg1[%c12, %c0_273, %c0_274] : memref<16x8x8xf32, #tpu.memory_space<vmem>>, vector<1x8x8xf32>
    %1045 = vector.shape_cast %1044 : vector<1x8x8xf32> to vector<8x8xf32>
    %cst_275 = arith.constant dense<0.000000e+00> : vector<8x8xf32>
    %1046 = tpu.matmul %1045, %3, %cst_275 {dimension_numbers = #tpu.dot_dimension_numbers<[1], [0], [0], [1], [0, 0, 1, 1], [], []>} : vector<8x8xf32>, vector<8x8xf32>, vector<8x8xf32> -> vector<8x8xf32>
    %1047 = vector.broadcast %8 : vector<1x8xf32> to vector<8x8xf32>
    %1048 = arith.addf %1046, %1047 : vector<8x8xf32>
    %cst_276 = arith.constant 0.000000e+00 : f32
    %1049 = vector.broadcast %cst_276 : f32 to vector<8x8xf32>
    %1050 = arith.cmpf ogt, %1048, %1049 : vector<8x8xf32>
    %cst_277 = arith.constant 0.00999999977 : f32
    %1051 = vector.broadcast %cst_277 : f32 to vector<8x8xf32>
    %1052 = arith.mulf %1051, %1048 : vector<8x8xf32>
    %1053 = arith.select %1050, %1048, %1052 : vector<8x8xi1>, vector<8x8xf32>
    %cst_278 = arith.constant dense<0.000000e+00> : vector<8x84xf32>
    %1054 = tpu.matmul %1042, %4, %cst_278 {dimension_numbers = #tpu.dot_dimension_numbers<[1], [0], [0], [1], [0, 0, 1, 1], [], []>} : vector<8x16xf32>, vector<16x84xf32>, vector<8x84xf32> -> vector<8x84xf32>
    %cst_279 = arith.constant dense<0.000000e+00> : vector<8x28xf32>
    %1055 = tpu.matmul %1053, %5, %cst_279 {dimension_numbers = #tpu.dot_dimension_numbers<[1], [0], [0], [1], [0, 0, 1, 1], [], []>} : vector<8x8xf32>, vector<8x28xf32>, vector<8x28xf32> -> vector<8x28xf32>
    %1056 = vector.extract_strided_slice %1055 {offsets = [0, 0], sizes = [8, 20], strides = [1, 1]} : vector<8x28xf32> to vector<8x20xf32>
    %1057 = vector.extract_strided_slice %1054 {offsets = [0, 0], sizes = [8, 20], strides = [1, 1]} : vector<8x84xf32> to vector<8x20xf32>
    %1058 = arith.addf %1056, %1057 : vector<8x20xf32>
    %1059 = vector.broadcast %9 : vector<1x20xf32> to vector<8x20xf32>
    %1060 = arith.addf %1058, %1059 : vector<8x20xf32>
    %cst_280 = arith.constant dense<0xFF800000> : vector<8xf32>
    %1061 = vector.multi_reduction <maximumf>, %1060, %cst_280 [1] : vector<8x20xf32> to vector<8xf32>
    %1062 = vector.shape_cast %1061 : vector<8xf32> to vector<8x1xf32>
    %1063 = vector.broadcast %1062 : vector<8x1xf32> to vector<8x20xf32>
    %1064 = arith.subf %1060, %1063 : vector<8x20xf32>
    %1065 = math.exp %1064 : vector<8x20xf32>
    %cst_281 = arith.constant dense<0.000000e+00> : vector<8xf32>
    %1066 = vector.multi_reduction <add>, %1065, %cst_281 [1] : vector<8x20xf32> to vector<8xf32>
    %1067 = vector.shape_cast %1066 : vector<8xf32> to vector<8x1xf32>
    %1068 = vector.broadcast %1067 : vector<8x1xf32> to vector<8x20xf32>
    %1069 = arith.divf %1065, %1068 : vector<8x20xf32>
    %1070 = vector.broadcast %17 : vector<8x1xf32> to vector<8x20xf32>
    %1071 = arith.mulf %1069, %1070 : vector<8x20xf32>
    %1072 = vector.broadcast %21 : vector<8x1xf32> to vector<8x20xf32>
    %1073 = arith.mulf %1069, %1072 : vector<8x20xf32>
    %1074 = vector.broadcast %25 : vector<8x1xf32> to vector<8x20xf32>
    %1075 = arith.mulf %1069, %1074 : vector<8x20xf32>
    %1076 = vector.broadcast %29 : vector<8x1xf32> to vector<8x20xf32>
    %1077 = arith.mulf %1069, %1076 : vector<8x20xf32>
    %1078 = vector.broadcast %33 : vector<8x1xf32> to vector<8x20xf32>
    %1079 = arith.mulf %1069, %1078 : vector<8x20xf32>
    %1080 = vector.broadcast %37 : vector<8x1xf32> to vector<8x20xf32>
    %1081 = arith.mulf %1069, %1080 : vector<8x20xf32>
    %1082 = vector.broadcast %41 : vector<8x1xf32> to vector<8x20xf32>
    %1083 = arith.mulf %1069, %1082 : vector<8x20xf32>
    %1084 = vector.broadcast %45 : vector<8x1xf32> to vector<8x20xf32>
    %1085 = arith.mulf %1069, %1084 : vector<8x20xf32>
    %1086 = tpu.concatenate %1071, %1073, %1075, %1077, %1079, %1081, %1083, %1085 in 1 : vector<8x20xf32>, vector<8x20xf32>, vector<8x20xf32>, vector<8x20xf32>, vector<8x20xf32>, vector<8x20xf32>, vector<8x20xf32>, vector<8x20xf32> -> vector<8x160xf32>
    %c0_282 = arith.constant 0 : index
    %c0_283 = arith.constant 0 : index
    %1087 = vector.load %arg4[%c0_282, %c0_283] : memref<160x8xf32, #tpu.memory_space<vmem>>, vector<160x8xf32>
    %cst_284 = arith.constant dense<0.000000e+00> : vector<8x8xf32>
    %1088 = tpu.matmul %1086, %1087, %cst_284 {dimension_numbers = #tpu.dot_dimension_numbers<[1], [0], [0], [1], [0, 0, 1, 1], [], []>} : vector<8x160xf32>, vector<160x8xf32>, vector<8x8xf32> -> vector<8x8xf32>
    %1089 = vector.extract_strided_slice %1055 {offsets = [0, 20], sizes = [8, 8], strides = [1, 1]} : vector<8x28xf32> to vector<8x8xf32>
    %1090 = arith.addf %1088, %1089 : vector<8x8xf32>
    %1091 = vector.broadcast %10 : vector<1x8xf32> to vector<8x8xf32>
    %1092 = arith.addf %1090, %1091 : vector<8x8xf32>
    %cst_285 = arith.constant 0.000000e+00 : f32
    %1093 = vector.broadcast %cst_285 : f32 to vector<8x8xf32>
    %1094 = arith.maximumf %1092, %1093 : vector<8x8xf32>
    %cst_286 = arith.constant dense<0.000000e+00> : vector<8x64xf32>
    %1095 = tpu.matmul %1094, %6, %cst_286 {dimension_numbers = #tpu.dot_dimension_numbers<[1], [0], [0], [1], [0, 0, 1, 1], [], []>} : vector<8x8xf32>, vector<8x64xf32>, vector<8x64xf32> -> vector<8x64xf32>
    %1096 = vector.extract_strided_slice %1054 {offsets = [0, 20], sizes = [8, 64], strides = [1, 1]} : vector<8x84xf32> to vector<8x64xf32>
    %1097 = arith.addf %1095, %1096 : vector<8x64xf32>
    %1098 = vector.broadcast %11 : vector<1x64xf32> to vector<8x64xf32>
    %1099 = arith.addf %1097, %1098 : vector<8x64xf32>
    %1100 = vector.extract_strided_slice %1099 {offsets = [0, 0], sizes = [8, 48], strides = [1, 1]} : vector<8x64xf32> to vector<8x48xf32>
    %1101 = arith.negf %1100 : vector<8x48xf32>
    %1102 = math.exp %1101 : vector<8x48xf32>
    %cst_287 = arith.constant 1.000000e+00 : f32
    %1103 = vector.broadcast %cst_287 : f32 to vector<8x48xf32>
    %1104 = arith.addf %1103, %1102 : vector<8x48xf32>
    %1105 = arith.divf %1103, %1104 : vector<8x48xf32>
    %1106 = vector.extract_strided_slice %1099 {offsets = [0, 48], sizes = [8, 16], strides = [1, 1]} : vector<8x64xf32> to vector<8x16xf32>
    %1107 = math.tanh %1106 : vector<8x16xf32>
    %1108 = vector.extract_strided_slice %1105 {offsets = [0, 0], sizes = [8, 16], strides = [1, 1]} : vector<8x48xf32> to vector<8x16xf32>
    %1109 = vector.extract_strided_slice %1105 {offsets = [0, 16], sizes = [8, 16], strides = [1, 1]} : vector<8x48xf32> to vector<8x16xf32>
    %1110 = vector.extract_strided_slice %1105 {offsets = [0, 32], sizes = [8, 16], strides = [1, 1]} : vector<8x48xf32> to vector<8x16xf32>
    %1111 = arith.mulf %1043, %1109 : vector<8x16xf32>
    %1112 = arith.mulf %1108, %1107 : vector<8x16xf32>
    %1113 = arith.addf %1111, %1112 : vector<8x16xf32>
    %1114 = math.tanh %1113 : vector<8x16xf32>
    %1115 = arith.mulf %1110, %1114 : vector<8x16xf32>
    %cst_288 = arith.constant dense<0.000000e+00> : vector<8x8xf32>
    %1116 = tpu.matmul %1115, %7, %cst_288 {dimension_numbers = #tpu.dot_dimension_numbers<[1], [0], [0], [1], [0, 0, 1, 1], [], []>} : vector<8x16xf32>, vector<16x8xf32>, vector<8x8xf32> -> vector<8x8xf32>
    %1117 = vector.broadcast %12 : vector<1x8xf32> to vector<8x8xf32>
    %1118 = arith.addf %1116, %1117 : vector<8x8xf32>
    %c0_289 = arith.constant 0 : index
    %c0_290 = arith.constant 0 : index
    %c96 = arith.constant 96 : index
    %1119 = vector.load %arg7[%c0_289, %c0_290, %c96] : memref<1x8x128xf32, #tpu.memory_space<vmem>>, vector<1x8x8xf32>
    %1120 = vector.shape_cast %1119 : vector<1x8x8xf32> to vector<8x8xf32>
    %1121 = vector.shape_cast %1118 : vector<8x8xf32> to vector<1x8x8xf32>
    tpu.vector_store %arg7[%c0_289, %c0_290, %c96], %1121 {strides = array<i32>} : memref<1x8x128xf32, #tpu.memory_space<vmem>>, vector<1x8x8xf32>,
    %c16_i32_291 = arith.constant 16 : i32
    %1122 = arith.muli %arg0, %c16_i32_291 : i32
    %c12_i32 = arith.constant 12 : i32
    %1123 = arith.addi %1122, %c12_i32 : i32
    %c20_i32_292 = arith.constant 20 : i32
    %1124 = arith.cmpi slt, %1123, %c20_i32_292 : i32
    %1125 = arith.select %1124, %1115, %1042 : vector<8x16xf32>
    %1126 = arith.select %1124, %1113, %1043 : vector<8x16xf32>
    %c13 = arith.constant 13 : index
    %c0_293 = arith.constant 0 : index
    %c0_294 = arith.constant 0 : index
    %1127 = vector.load %arg1[%c13, %c0_293, %c0_294] : memref<16x8x8xf32, #tpu.memory_space<vmem>>, vector<1x8x8xf32>
    %1128 = vector.shape_cast %1127 : vector<1x8x8xf32> to vector<8x8xf32>
    %cst_295 = arith.constant dense<0.000000e+00> : vector<8x8xf32>
    %1129 = tpu.matmul %1128, %3, %cst_295 {dimension_numbers = #tpu.dot_dimension_numbers<[1], [0], [0], [1], [0, 0, 1, 1], [], []>} : vector<8x8xf32>, vector<8x8xf32>, vector<8x8xf32> -> vector<8x8xf32>
    %1130 = vector.broadcast %8 : vector<1x8xf32> to vector<8x8xf32>
    %1131 = arith.addf %1129, %1130 : vector<8x8xf32>
    %cst_296 = arith.constant 0.000000e+00 : f32
    %1132 = vector.broadcast %cst_296 : f32 to vector<8x8xf32>
    %1133 = arith.cmpf ogt, %1131, %1132 : vector<8x8xf32>
    %cst_297 = arith.constant 0.00999999977 : f32
    %1134 = vector.broadcast %cst_297 : f32 to vector<8x8xf32>
    %1135 = arith.mulf %1134, %1131 : vector<8x8xf32>
    %1136 = arith.select %1133, %1131, %1135 : vector<8x8xi1>, vector<8x8xf32>
    %cst_298 = arith.constant dense<0.000000e+00> : vector<8x84xf32>
    %1137 = tpu.matmul %1125, %4, %cst_298 {dimension_numbers = #tpu.dot_dimension_numbers<[1], [0], [0], [1], [0, 0, 1, 1], [], []>} : vector<8x16xf32>, vector<16x84xf32>, vector<8x84xf32> -> vector<8x84xf32>
    %cst_299 = arith.constant dense<0.000000e+00> : vector<8x28xf32>
    %1138 = tpu.matmul %1136, %5, %cst_299 {dimension_numbers = #tpu.dot_dimension_numbers<[1], [0], [0], [1], [0, 0, 1, 1], [], []>} : vector<8x8xf32>, vector<8x28xf32>, vector<8x28xf32> -> vector<8x28xf32>
    %1139 = vector.extract_strided_slice %1138 {offsets = [0, 0], sizes = [8, 20], strides = [1, 1]} : vector<8x28xf32> to vector<8x20xf32>
    %1140 = vector.extract_strided_slice %1137 {offsets = [0, 0], sizes = [8, 20], strides = [1, 1]} : vector<8x84xf32> to vector<8x20xf32>
    %1141 = arith.addf %1139, %1140 : vector<8x20xf32>
    %1142 = vector.broadcast %9 : vector<1x20xf32> to vector<8x20xf32>
    %1143 = arith.addf %1141, %1142 : vector<8x20xf32>
    %cst_300 = arith.constant dense<0xFF800000> : vector<8xf32>
    %1144 = vector.multi_reduction <maximumf>, %1143, %cst_300 [1] : vector<8x20xf32> to vector<8xf32>
    %1145 = vector.shape_cast %1144 : vector<8xf32> to vector<8x1xf32>
    %1146 = vector.broadcast %1145 : vector<8x1xf32> to vector<8x20xf32>
    %1147 = arith.subf %1143, %1146 : vector<8x20xf32>
    %1148 = math.exp %1147 : vector<8x20xf32>
    %cst_301 = arith.constant dense<0.000000e+00> : vector<8xf32>
    %1149 = vector.multi_reduction <add>, %1148, %cst_301 [1] : vector<8x20xf32> to vector<8xf32>
    %1150 = vector.shape_cast %1149 : vector<8xf32> to vector<8x1xf32>
    %1151 = vector.broadcast %1150 : vector<8x1xf32> to vector<8x20xf32>
    %1152 = arith.divf %1148, %1151 : vector<8x20xf32>
    %1153 = vector.broadcast %17 : vector<8x1xf32> to vector<8x20xf32>
    %1154 = arith.mulf %1152, %1153 : vector<8x20xf32>
    %1155 = vector.broadcast %21 : vector<8x1xf32> to vector<8x20xf32>
    %1156 = arith.mulf %1152, %1155 : vector<8x20xf32>
    %1157 = vector.broadcast %25 : vector<8x1xf32> to vector<8x20xf32>
    %1158 = arith.mulf %1152, %1157 : vector<8x20xf32>
    %1159 = vector.broadcast %29 : vector<8x1xf32> to vector<8x20xf32>
    %1160 = arith.mulf %1152, %1159 : vector<8x20xf32>
    %1161 = vector.broadcast %33 : vector<8x1xf32> to vector<8x20xf32>
    %1162 = arith.mulf %1152, %1161 : vector<8x20xf32>
    %1163 = vector.broadcast %37 : vector<8x1xf32> to vector<8x20xf32>
    %1164 = arith.mulf %1152, %1163 : vector<8x20xf32>
    %1165 = vector.broadcast %41 : vector<8x1xf32> to vector<8x20xf32>
    %1166 = arith.mulf %1152, %1165 : vector<8x20xf32>
    %1167 = vector.broadcast %45 : vector<8x1xf32> to vector<8x20xf32>
    %1168 = arith.mulf %1152, %1167 : vector<8x20xf32>
    %1169 = tpu.concatenate %1154, %1156, %1158, %1160, %1162, %1164, %1166, %1168 in 1 : vector<8x20xf32>, vector<8x20xf32>, vector<8x20xf32>, vector<8x20xf32>, vector<8x20xf32>, vector<8x20xf32>, vector<8x20xf32>, vector<8x20xf32> -> vector<8x160xf32>
    %c0_302 = arith.constant 0 : index
    %c0_303 = arith.constant 0 : index
    %1170 = vector.load %arg4[%c0_302, %c0_303] : memref<160x8xf32, #tpu.memory_space<vmem>>, vector<160x8xf32>
    %cst_304 = arith.constant dense<0.000000e+00> : vector<8x8xf32>
    %1171 = tpu.matmul %1169, %1170, %cst_304 {dimension_numbers = #tpu.dot_dimension_numbers<[1], [0], [0], [1], [0, 0, 1, 1], [], []>} : vector<8x160xf32>, vector<160x8xf32>, vector<8x8xf32> -> vector<8x8xf32>
    %1172 = vector.extract_strided_slice %1138 {offsets = [0, 20], sizes = [8, 8], strides = [1, 1]} : vector<8x28xf32> to vector<8x8xf32>
    %1173 = arith.addf %1171, %1172 : vector<8x8xf32>
    %1174 = vector.broadcast %10 : vector<1x8xf32> to vector<8x8xf32>
    %1175 = arith.addf %1173, %1174 : vector<8x8xf32>
    %cst_305 = arith.constant 0.000000e+00 : f32
    %1176 = vector.broadcast %cst_305 : f32 to vector<8x8xf32>
    %1177 = arith.maximumf %1175, %1176 : vector<8x8xf32>
    %cst_306 = arith.constant dense<0.000000e+00> : vector<8x64xf32>
    %1178 = tpu.matmul %1177, %6, %cst_306 {dimension_numbers = #tpu.dot_dimension_numbers<[1], [0], [0], [1], [0, 0, 1, 1], [], []>} : vector<8x8xf32>, vector<8x64xf32>, vector<8x64xf32> -> vector<8x64xf32>
    %1179 = vector.extract_strided_slice %1137 {offsets = [0, 20], sizes = [8, 64], strides = [1, 1]} : vector<8x84xf32> to vector<8x64xf32>
    %1180 = arith.addf %1178, %1179 : vector<8x64xf32>
    %1181 = vector.broadcast %11 : vector<1x64xf32> to vector<8x64xf32>
    %1182 = arith.addf %1180, %1181 : vector<8x64xf32>
    %1183 = vector.extract_strided_slice %1182 {offsets = [0, 0], sizes = [8, 48], strides = [1, 1]} : vector<8x64xf32> to vector<8x48xf32>
    %1184 = arith.negf %1183 : vector<8x48xf32>
    %1185 = math.exp %1184 : vector<8x48xf32>
    %cst_307 = arith.constant 1.000000e+00 : f32
    %1186 = vector.broadcast %cst_307 : f32 to vector<8x48xf32>
    %1187 = arith.addf %1186, %1185 : vector<8x48xf32>
    %1188 = arith.divf %1186, %1187 : vector<8x48xf32>
    %1189 = vector.extract_strided_slice %1182 {offsets = [0, 48], sizes = [8, 16], strides = [1, 1]} : vector<8x64xf32> to vector<8x16xf32>
    %1190 = math.tanh %1189 : vector<8x16xf32>
    %1191 = vector.extract_strided_slice %1188 {offsets = [0, 0], sizes = [8, 16], strides = [1, 1]} : vector<8x48xf32> to vector<8x16xf32>
    %1192 = vector.extract_strided_slice %1188 {offsets = [0, 16], sizes = [8, 16], strides = [1, 1]} : vector<8x48xf32> to vector<8x16xf32>
    %1193 = vector.extract_strided_slice %1188 {offsets = [0, 32], sizes = [8, 16], strides = [1, 1]} : vector<8x48xf32> to vector<8x16xf32>
    %1194 = arith.mulf %1126, %1192 : vector<8x16xf32>
    %1195 = arith.mulf %1191, %1190 : vector<8x16xf32>
    %1196 = arith.addf %1194, %1195 : vector<8x16xf32>
    %1197 = math.tanh %1196 : vector<8x16xf32>
    %1198 = arith.mulf %1193, %1197 : vector<8x16xf32>
    %cst_308 = arith.constant dense<0.000000e+00> : vector<8x8xf32>
    %1199 = tpu.matmul %1198, %7, %cst_308 {dimension_numbers = #tpu.dot_dimension_numbers<[1], [0], [0], [1], [0, 0, 1, 1], [], []>} : vector<8x16xf32>, vector<16x8xf32>, vector<8x8xf32> -> vector<8x8xf32>
    %1200 = vector.broadcast %12 : vector<1x8xf32> to vector<8x8xf32>
    %1201 = arith.addf %1199, %1200 : vector<8x8xf32>
    %c0_309 = arith.constant 0 : index
    %c0_310 = arith.constant 0 : index
    %c104 = arith.constant 104 : index
    %1202 = vector.load %arg7[%c0_309, %c0_310, %c104] : memref<1x8x128xf32, #tpu.memory_space<vmem>>, vector<1x8x8xf32>
    %1203 = vector.shape_cast %1202 : vector<1x8x8xf32> to vector<8x8xf32>
    %1204 = vector.shape_cast %1201 : vector<8x8xf32> to vector<1x8x8xf32>
    tpu.vector_store %arg7[%c0_309, %c0_310, %c104], %1204 {strides = array<i32>} : memref<1x8x128xf32, #tpu.memory_space<vmem>>, vector<1x8x8xf32>,
    %c16_i32_311 = arith.constant 16 : i32
    %1205 = arith.muli %arg0, %c16_i32_311 : i32
    %c13_i32 = arith.constant 13 : i32
    %1206 = arith.addi %1205, %c13_i32 : i32
    %c20_i32_312 = arith.constant 20 : i32
    %1207 = arith.cmpi slt, %1206, %c20_i32_312 : i32
    %1208 = arith.select %1207, %1198, %1125 : vector<8x16xf32>
    %1209 = arith.select %1207, %1196, %1126 : vector<8x16xf32>
    %c14 = arith.constant 14 : index
    %c0_313 = arith.constant 0 : index
    %c0_314 = arith.constant 0 : index
    %1210 = vector.load %arg1[%c14, %c0_313, %c0_314] : memref<16x8x8xf32, #tpu.memory_space<vmem>>, vector<1x8x8xf32>
    %1211 = vector.shape_cast %1210 : vector<1x8x8xf32> to vector<8x8xf32>
    %cst_315 = arith.constant dense<0.000000e+00> : vector<8x8xf32>
    %1212 = tpu.matmul %1211, %3, %cst_315 {dimension_numbers = #tpu.dot_dimension_numbers<[1], [0], [0], [1], [0, 0, 1, 1], [], []>} : vector<8x8xf32>, vector<8x8xf32>, vector<8x8xf32> -> vector<8x8xf32>
    %1213 = vector.broadcast %8 : vector<1x8xf32> to vector<8x8xf32>
    %1214 = arith.addf %1212, %1213 : vector<8x8xf32>
    %cst_316 = arith.constant 0.000000e+00 : f32
    %1215 = vector.broadcast %cst_316 : f32 to vector<8x8xf32>
    %1216 = arith.cmpf ogt, %1214, %1215 : vector<8x8xf32>
    %cst_317 = arith.constant 0.00999999977 : f32
    %1217 = vector.broadcast %cst_317 : f32 to vector<8x8xf32>
    %1218 = arith.mulf %1217, %1214 : vector<8x8xf32>
    %1219 = arith.select %1216, %1214, %1218 : vector<8x8xi1>, vector<8x8xf32>
    %cst_318 = arith.constant dense<0.000000e+00> : vector<8x84xf32>
    %1220 = tpu.matmul %1208, %4, %cst_318 {dimension_numbers = #tpu.dot_dimension_numbers<[1], [0], [0], [1], [0, 0, 1, 1], [], []>} : vector<8x16xf32>, vector<16x84xf32>, vector<8x84xf32> -> vector<8x84xf32>
    %cst_319 = arith.constant dense<0.000000e+00> : vector<8x28xf32>
    %1221 = tpu.matmul %1219, %5, %cst_319 {dimension_numbers = #tpu.dot_dimension_numbers<[1], [0], [0], [1], [0, 0, 1, 1], [], []>} : vector<8x8xf32>, vector<8x28xf32>, vector<8x28xf32> -> vector<8x28xf32>
    %1222 = vector.extract_strided_slice %1221 {offsets = [0, 0], sizes = [8, 20], strides = [1, 1]} : vector<8x28xf32> to vector<8x20xf32>
    %1223 = vector.extract_strided_slice %1220 {offsets = [0, 0], sizes = [8, 20], strides = [1, 1]} : vector<8x84xf32> to vector<8x20xf32>
    %1224 = arith.addf %1222, %1223 : vector<8x20xf32>
    %1225 = vector.broadcast %9 : vector<1x20xf32> to vector<8x20xf32>
    %1226 = arith.addf %1224, %1225 : vector<8x20xf32>
    %cst_320 = arith.constant dense<0xFF800000> : vector<8xf32>
    %1227 = vector.multi_reduction <maximumf>, %1226, %cst_320 [1] : vector<8x20xf32> to vector<8xf32>
    %1228 = vector.shape_cast %1227 : vector<8xf32> to vector<8x1xf32>
    %1229 = vector.broadcast %1228 : vector<8x1xf32> to vector<8x20xf32>
    %1230 = arith.subf %1226, %1229 : vector<8x20xf32>
    %1231 = math.exp %1230 : vector<8x20xf32>
    %cst_321 = arith.constant dense<0.000000e+00> : vector<8xf32>
    %1232 = vector.multi_reduction <add>, %1231, %cst_321 [1] : vector<8x20xf32> to vector<8xf32>
    %1233 = vector.shape_cast %1232 : vector<8xf32> to vector<8x1xf32>
    %1234 = vector.broadcast %1233 : vector<8x1xf32> to vector<8x20xf32>
    %1235 = arith.divf %1231, %1234 : vector<8x20xf32>
    %1236 = vector.broadcast %17 : vector<8x1xf32> to vector<8x20xf32>
    %1237 = arith.mulf %1235, %1236 : vector<8x20xf32>
    %1238 = vector.broadcast %21 : vector<8x1xf32> to vector<8x20xf32>
    %1239 = arith.mulf %1235, %1238 : vector<8x20xf32>
    %1240 = vector.broadcast %25 : vector<8x1xf32> to vector<8x20xf32>
    %1241 = arith.mulf %1235, %1240 : vector<8x20xf32>
    %1242 = vector.broadcast %29 : vector<8x1xf32> to vector<8x20xf32>
    %1243 = arith.mulf %1235, %1242 : vector<8x20xf32>
    %1244 = vector.broadcast %33 : vector<8x1xf32> to vector<8x20xf32>
    %1245 = arith.mulf %1235, %1244 : vector<8x20xf32>
    %1246 = vector.broadcast %37 : vector<8x1xf32> to vector<8x20xf32>
    %1247 = arith.mulf %1235, %1246 : vector<8x20xf32>
    %1248 = vector.broadcast %41 : vector<8x1xf32> to vector<8x20xf32>
    %1249 = arith.mulf %1235, %1248 : vector<8x20xf32>
    %1250 = vector.broadcast %45 : vector<8x1xf32> to vector<8x20xf32>
    %1251 = arith.mulf %1235, %1250 : vector<8x20xf32>
    %1252 = tpu.concatenate %1237, %1239, %1241, %1243, %1245, %1247, %1249, %1251 in 1 : vector<8x20xf32>, vector<8x20xf32>, vector<8x20xf32>, vector<8x20xf32>, vector<8x20xf32>, vector<8x20xf32>, vector<8x20xf32>, vector<8x20xf32> -> vector<8x160xf32>
    %c0_322 = arith.constant 0 : index
    %c0_323 = arith.constant 0 : index
    %1253 = vector.load %arg4[%c0_322, %c0_323] : memref<160x8xf32, #tpu.memory_space<vmem>>, vector<160x8xf32>
    %cst_324 = arith.constant dense<0.000000e+00> : vector<8x8xf32>
    %1254 = tpu.matmul %1252, %1253, %cst_324 {dimension_numbers = #tpu.dot_dimension_numbers<[1], [0], [0], [1], [0, 0, 1, 1], [], []>} : vector<8x160xf32>, vector<160x8xf32>, vector<8x8xf32> -> vector<8x8xf32>
    %1255 = vector.extract_strided_slice %1221 {offsets = [0, 20], sizes = [8, 8], strides = [1, 1]} : vector<8x28xf32> to vector<8x8xf32>
    %1256 = arith.addf %1254, %1255 : vector<8x8xf32>
    %1257 = vector.broadcast %10 : vector<1x8xf32> to vector<8x8xf32>
    %1258 = arith.addf %1256, %1257 : vector<8x8xf32>
    %cst_325 = arith.constant 0.000000e+00 : f32
    %1259 = vector.broadcast %cst_325 : f32 to vector<8x8xf32>
    %1260 = arith.maximumf %1258, %1259 : vector<8x8xf32>
    %cst_326 = arith.constant dense<0.000000e+00> : vector<8x64xf32>
    %1261 = tpu.matmul %1260, %6, %cst_326 {dimension_numbers = #tpu.dot_dimension_numbers<[1], [0], [0], [1], [0, 0, 1, 1], [], []>} : vector<8x8xf32>, vector<8x64xf32>, vector<8x64xf32> -> vector<8x64xf32>
    %1262 = vector.extract_strided_slice %1220 {offsets = [0, 20], sizes = [8, 64], strides = [1, 1]} : vector<8x84xf32> to vector<8x64xf32>
    %1263 = arith.addf %1261, %1262 : vector<8x64xf32>
    %1264 = vector.broadcast %11 : vector<1x64xf32> to vector<8x64xf32>
    %1265 = arith.addf %1263, %1264 : vector<8x64xf32>
    %1266 = vector.extract_strided_slice %1265 {offsets = [0, 0], sizes = [8, 48], strides = [1, 1]} : vector<8x64xf32> to vector<8x48xf32>
    %1267 = arith.negf %1266 : vector<8x48xf32>
    %1268 = math.exp %1267 : vector<8x48xf32>
    %cst_327 = arith.constant 1.000000e+00 : f32
    %1269 = vector.broadcast %cst_327 : f32 to vector<8x48xf32>
    %1270 = arith.addf %1269, %1268 : vector<8x48xf32>
    %1271 = arith.divf %1269, %1270 : vector<8x48xf32>
    %1272 = vector.extract_strided_slice %1265 {offsets = [0, 48], sizes = [8, 16], strides = [1, 1]} : vector<8x64xf32> to vector<8x16xf32>
    %1273 = math.tanh %1272 : vector<8x16xf32>
    %1274 = vector.extract_strided_slice %1271 {offsets = [0, 0], sizes = [8, 16], strides = [1, 1]} : vector<8x48xf32> to vector<8x16xf32>
    %1275 = vector.extract_strided_slice %1271 {offsets = [0, 16], sizes = [8, 16], strides = [1, 1]} : vector<8x48xf32> to vector<8x16xf32>
    %1276 = vector.extract_strided_slice %1271 {offsets = [0, 32], sizes = [8, 16], strides = [1, 1]} : vector<8x48xf32> to vector<8x16xf32>
    %1277 = arith.mulf %1209, %1275 : vector<8x16xf32>
    %1278 = arith.mulf %1274, %1273 : vector<8x16xf32>
    %1279 = arith.addf %1277, %1278 : vector<8x16xf32>
    %1280 = math.tanh %1279 : vector<8x16xf32>
    %1281 = arith.mulf %1276, %1280 : vector<8x16xf32>
    %cst_328 = arith.constant dense<0.000000e+00> : vector<8x8xf32>
    %1282 = tpu.matmul %1281, %7, %cst_328 {dimension_numbers = #tpu.dot_dimension_numbers<[1], [0], [0], [1], [0, 0, 1, 1], [], []>} : vector<8x16xf32>, vector<16x8xf32>, vector<8x8xf32> -> vector<8x8xf32>
    %1283 = vector.broadcast %12 : vector<1x8xf32> to vector<8x8xf32>
    %1284 = arith.addf %1282, %1283 : vector<8x8xf32>
    %c0_329 = arith.constant 0 : index
    %c0_330 = arith.constant 0 : index
    %c112 = arith.constant 112 : index
    %1285 = vector.load %arg7[%c0_329, %c0_330, %c112] : memref<1x8x128xf32, #tpu.memory_space<vmem>>, vector<1x8x8xf32>
    %1286 = vector.shape_cast %1285 : vector<1x8x8xf32> to vector<8x8xf32>
    %1287 = vector.shape_cast %1284 : vector<8x8xf32> to vector<1x8x8xf32>
    tpu.vector_store %arg7[%c0_329, %c0_330, %c112], %1287 {strides = array<i32>} : memref<1x8x128xf32, #tpu.memory_space<vmem>>, vector<1x8x8xf32>,
    %c16_i32_331 = arith.constant 16 : i32
    %1288 = arith.muli %arg0, %c16_i32_331 : i32
    %c14_i32 = arith.constant 14 : i32
    %1289 = arith.addi %1288, %c14_i32 : i32
    %c20_i32_332 = arith.constant 20 : i32
    %1290 = arith.cmpi slt, %1289, %c20_i32_332 : i32
    %1291 = arith.select %1290, %1281, %1208 : vector<8x16xf32>
    %1292 = arith.select %1290, %1279, %1209 : vector<8x16xf32>
    %c15 = arith.constant 15 : index
    %c0_333 = arith.constant 0 : index
    %c0_334 = arith.constant 0 : index
    %1293 = vector.load %arg1[%c15, %c0_333, %c0_334] : memref<16x8x8xf32, #tpu.memory_space<vmem>>, vector<1x8x8xf32>
    %1294 = vector.shape_cast %1293 : vector<1x8x8xf32> to vector<8x8xf32>
    %cst_335 = arith.constant dense<0.000000e+00> : vector<8x8xf32>
    %1295 = tpu.matmul %1294, %3, %cst_335 {dimension_numbers = #tpu.dot_dimension_numbers<[1], [0], [0], [1], [0, 0, 1, 1], [], []>} : vector<8x8xf32>, vector<8x8xf32>, vector<8x8xf32> -> vector<8x8xf32>
    %1296 = vector.broadcast %8 : vector<1x8xf32> to vector<8x8xf32>
    %1297 = arith.addf %1295, %1296 : vector<8x8xf32>
    %cst_336 = arith.constant 0.000000e+00 : f32
    %1298 = vector.broadcast %cst_336 : f32 to vector<8x8xf32>
    %1299 = arith.cmpf ogt, %1297, %1298 : vector<8x8xf32>
    %cst_337 = arith.constant 0.00999999977 : f32
    %1300 = vector.broadcast %cst_337 : f32 to vector<8x8xf32>
    %1301 = arith.mulf %1300, %1297 : vector<8x8xf32>
    %1302 = arith.select %1299, %1297, %1301 : vector<8x8xi1>, vector<8x8xf32>
    %cst_338 = arith.constant dense<0.000000e+00> : vector<8x84xf32>
    %1303 = tpu.matmul %1291, %4, %cst_338 {dimension_numbers = #tpu.dot_dimension_numbers<[1], [0], [0], [1], [0, 0, 1, 1], [], []>} : vector<8x16xf32>, vector<16x84xf32>, vector<8x84xf32> -> vector<8x84xf32>
    %cst_339 = arith.constant dense<0.000000e+00> : vector<8x28xf32>
    %1304 = tpu.matmul %1302, %5, %cst_339 {dimension_numbers = #tpu.dot_dimension_numbers<[1], [0], [0], [1], [0, 0, 1, 1], [], []>} : vector<8x8xf32>, vector<8x28xf32>, vector<8x28xf32> -> vector<8x28xf32>
    %1305 = vector.extract_strided_slice %1304 {offsets = [0, 0], sizes = [8, 20], strides = [1, 1]} : vector<8x28xf32> to vector<8x20xf32>
    %1306 = vector.extract_strided_slice %1303 {offsets = [0, 0], sizes = [8, 20], strides = [1, 1]} : vector<8x84xf32> to vector<8x20xf32>
    %1307 = arith.addf %1305, %1306 : vector<8x20xf32>
    %1308 = vector.broadcast %9 : vector<1x20xf32> to vector<8x20xf32>
    %1309 = arith.addf %1307, %1308 : vector<8x20xf32>
    %cst_340 = arith.constant dense<0xFF800000> : vector<8xf32>
    %1310 = vector.multi_reduction <maximumf>, %1309, %cst_340 [1] : vector<8x20xf32> to vector<8xf32>
    %1311 = vector.shape_cast %1310 : vector<8xf32> to vector<8x1xf32>
    %1312 = vector.broadcast %1311 : vector<8x1xf32> to vector<8x20xf32>
    %1313 = arith.subf %1309, %1312 : vector<8x20xf32>
    %1314 = math.exp %1313 : vector<8x20xf32>
    %cst_341 = arith.constant dense<0.000000e+00> : vector<8xf32>
    %1315 = vector.multi_reduction <add>, %1314, %cst_341 [1] : vector<8x20xf32> to vector<8xf32>
    %1316 = vector.shape_cast %1315 : vector<8xf32> to vector<8x1xf32>
    %1317 = vector.broadcast %1316 : vector<8x1xf32> to vector<8x20xf32>
    %1318 = arith.divf %1314, %1317 : vector<8x20xf32>
    %1319 = vector.broadcast %17 : vector<8x1xf32> to vector<8x20xf32>
    %1320 = arith.mulf %1318, %1319 : vector<8x20xf32>
    %1321 = vector.broadcast %21 : vector<8x1xf32> to vector<8x20xf32>
    %1322 = arith.mulf %1318, %1321 : vector<8x20xf32>
    %1323 = vector.broadcast %25 : vector<8x1xf32> to vector<8x20xf32>
    %1324 = arith.mulf %1318, %1323 : vector<8x20xf32>
    %1325 = vector.broadcast %29 : vector<8x1xf32> to vector<8x20xf32>
    %1326 = arith.mulf %1318, %1325 : vector<8x20xf32>
    %1327 = vector.broadcast %33 : vector<8x1xf32> to vector<8x20xf32>
    %1328 = arith.mulf %1318, %1327 : vector<8x20xf32>
    %1329 = vector.broadcast %37 : vector<8x1xf32> to vector<8x20xf32>
    %1330 = arith.mulf %1318, %1329 : vector<8x20xf32>
    %1331 = vector.broadcast %41 : vector<8x1xf32> to vector<8x20xf32>
    %1332 = arith.mulf %1318, %1331 : vector<8x20xf32>
    %1333 = vector.broadcast %45 : vector<8x1xf32> to vector<8x20xf32>
    %1334 = arith.mulf %1318, %1333 : vector<8x20xf32>
    %1335 = tpu.concatenate %1320, %1322, %1324, %1326, %1328, %1330, %1332, %1334 in 1 : vector<8x20xf32>, vector<8x20xf32>, vector<8x20xf32>, vector<8x20xf32>, vector<8x20xf32>, vector<8x20xf32>, vector<8x20xf32>, vector<8x20xf32> -> vector<8x160xf32>
    %c0_342 = arith.constant 0 : index
    %c0_343 = arith.constant 0 : index
    %1336 = vector.load %arg4[%c0_342, %c0_343] : memref<160x8xf32, #tpu.memory_space<vmem>>, vector<160x8xf32>
    %cst_344 = arith.constant dense<0.000000e+00> : vector<8x8xf32>
    %1337 = tpu.matmul %1335, %1336, %cst_344 {dimension_numbers = #tpu.dot_dimension_numbers<[1], [0], [0], [1], [0, 0, 1, 1], [], []>} : vector<8x160xf32>, vector<160x8xf32>, vector<8x8xf32> -> vector<8x8xf32>
    %1338 = vector.extract_strided_slice %1304 {offsets = [0, 20], sizes = [8, 8], strides = [1, 1]} : vector<8x28xf32> to vector<8x8xf32>
    %1339 = arith.addf %1337, %1338 : vector<8x8xf32>
    %1340 = vector.broadcast %10 : vector<1x8xf32> to vector<8x8xf32>
    %1341 = arith.addf %1339, %1340 : vector<8x8xf32>
    %cst_345 = arith.constant 0.000000e+00 : f32
    %1342 = vector.broadcast %cst_345 : f32 to vector<8x8xf32>
    %1343 = arith.maximumf %1341, %1342 : vector<8x8xf32>
    %cst_346 = arith.constant dense<0.000000e+00> : vector<8x64xf32>
    %1344 = tpu.matmul %1343, %6, %cst_346 {dimension_numbers = #tpu.dot_dimension_numbers<[1], [0], [0], [1], [0, 0, 1, 1], [], []>} : vector<8x8xf32>, vector<8x64xf32>, vector<8x64xf32> -> vector<8x64xf32>
    %1345 = vector.extract_strided_slice %1303 {offsets = [0, 20], sizes = [8, 64], strides = [1, 1]} : vector<8x84xf32> to vector<8x64xf32>
    %1346 = arith.addf %1344, %1345 : vector<8x64xf32>
    %1347 = vector.broadcast %11 : vector<1x64xf32> to vector<8x64xf32>
    %1348 = arith.addf %1346, %1347 : vector<8x64xf32>
    %1349 = vector.extract_strided_slice %1348 {offsets = [0, 0], sizes = [8, 48], strides = [1, 1]} : vector<8x64xf32> to vector<8x48xf32>
    %1350 = arith.negf %1349 : vector<8x48xf32>
    %1351 = math.exp %1350 : vector<8x48xf32>
    %cst_347 = arith.constant 1.000000e+00 : f32
    %1352 = vector.broadcast %cst_347 : f32 to vector<8x48xf32>
    %1353 = arith.addf %1352, %1351 : vector<8x48xf32>
    %1354 = arith.divf %1352, %1353 : vector<8x48xf32>
    %1355 = vector.extract_strided_slice %1348 {offsets = [0, 48], sizes = [8, 16], strides = [1, 1]} : vector<8x64xf32> to vector<8x16xf32>
    %1356 = math.tanh %1355 : vector<8x16xf32>
    %1357 = vector.extract_strided_slice %1354 {offsets = [0, 0], sizes = [8, 16], strides = [1, 1]} : vector<8x48xf32> to vector<8x16xf32>
    %1358 = vector.extract_strided_slice %1354 {offsets = [0, 16], sizes = [8, 16], strides = [1, 1]} : vector<8x48xf32> to vector<8x16xf32>
    %1359 = vector.extract_strided_slice %1354 {offsets = [0, 32], sizes = [8, 16], strides = [1, 1]} : vector<8x48xf32> to vector<8x16xf32>
    %1360 = arith.mulf %1292, %1358 : vector<8x16xf32>
    %1361 = arith.mulf %1357, %1356 : vector<8x16xf32>
    %1362 = arith.addf %1360, %1361 : vector<8x16xf32>
    %1363 = math.tanh %1362 : vector<8x16xf32>
    %1364 = arith.mulf %1359, %1363 : vector<8x16xf32>
    %cst_348 = arith.constant dense<0.000000e+00> : vector<8x8xf32>
    %1365 = tpu.matmul %1364, %7, %cst_348 {dimension_numbers = #tpu.dot_dimension_numbers<[1], [0], [0], [1], [0, 0, 1, 1], [], []>} : vector<8x16xf32>, vector<16x8xf32>, vector<8x8xf32> -> vector<8x8xf32>
    %1366 = vector.broadcast %12 : vector<1x8xf32> to vector<8x8xf32>
    %1367 = arith.addf %1365, %1366 : vector<8x8xf32>
    %c0_349 = arith.constant 0 : index
    %c0_350 = arith.constant 0 : index
    %c120 = arith.constant 120 : index
    %1368 = vector.load %arg7[%c0_349, %c0_350, %c120] : memref<1x8x128xf32, #tpu.memory_space<vmem>>, vector<1x8x8xf32>
    %1369 = vector.shape_cast %1368 : vector<1x8x8xf32> to vector<8x8xf32>
    %1370 = vector.shape_cast %1367 : vector<8x8xf32> to vector<1x8x8xf32>
    tpu.vector_store %arg7[%c0_349, %c0_350, %c120], %1370 {strides = array<i32>} : memref<1x8x128xf32, #tpu.memory_space<vmem>>, vector<1x8x8xf32>,
    %c16_i32_351 = arith.constant 16 : i32
    %1371 = arith.muli %arg0, %c16_i32_351 : i32
    %c15_i32 = arith.constant 15 : i32
    %1372 = arith.addi %1371, %c15_i32 : i32
    %c20_i32_352 = arith.constant 20 : i32
    %1373 = arith.cmpi slt, %1372, %c20_i32_352 : i32
    %1374 = arith.select %1373, %1364, %1291 : vector<8x16xf32>
    %1375 = arith.select %1373, %1362, %1292 : vector<8x16xf32>
    %c0_353 = arith.constant 0 : index
    %c0_354 = arith.constant 0 : index
    %1376 = vector.load %arg10[%c0_353, %c0_354] : memref<8x16xf32, #tpu.memory_space<vmem>>, vector<8x16xf32>
    tpu.vector_store %arg10[%c0_353, %c0_354], %1374 {strides = array<i32>} : memref<8x16xf32, #tpu.memory_space<vmem>>, vector<8x16xf32>,
    %c0_355 = arith.constant 0 : index
    %c0_356 = arith.constant 0 : index
    %1377 = vector.load %arg11[%c0_355, %c0_356] : memref<8x16xf32, #tpu.memory_space<vmem>>, vector<8x16xf32>
    tpu.vector_store %arg11[%c0_355, %c0_356], %1375 {strides = array<i32>} : memref<8x16xf32, #tpu.memory_space<vmem>>, vector<8x16xf32>,
    %c1_i32_357 = arith.constant 1 : i32
    %1378 = arith.cmpi eq, %arg0, %c1_i32_357 : i32
    %1379 = arith.extui %1378 : i1 to i32
    %c0_i32_358 = arith.constant 0 : i32
    %1380 = arith.cmpi ne, %1379, %c0_i32_358 : i32
    scf.if %1380 {
      %c0_359 = arith.constant 0 : index
      %c0_360 = arith.constant 0 : index
      %1381 = vector.load %arg8[%c0_359, %c0_360] : memref<8x16xf32, #tpu.memory_space<vmem>>, vector<8x16xf32>
      tpu.vector_store %arg8[%c0_359, %c0_360], %1374 {strides = array<i32>} : memref<8x16xf32, #tpu.memory_space<vmem>>, vector<8x16xf32>,
      %c0_361 = arith.constant 0 : index
      %c0_362 = arith.constant 0 : index
      %1382 = vector.load %arg9[%c0_361, %c0_362] : memref<8x16xf32, #tpu.memory_space<vmem>>, vector<8x16xf32>
      tpu.vector_store %arg9[%c0_361, %c0_362], %1375 {strides = array<i32>} : memref<8x16xf32, #tpu.memory_space<vmem>>, vector<8x16xf32>,
    } else {
    }
    return
  }
  func.func @transform_0(%arg0: i32) -> (i32, i32, i32) {
    %c0_i32 = arith.constant 0 : i32
    %c0_i32_0 = arith.constant 0 : i32
    %c0_i32_1 = arith.constant 0 : i32
    return %arg0, %c0_i32, %c0_i32_0 : i32, i32, i32
  }
  func.func @transform_1(%arg0: i32) -> (i32, i32) {
    %c0_i32 = arith.constant 0 : i32
    %c0_i32_0 = arith.constant 0 : i32
    %c0_i32_1 = arith.constant 0 : i32
    return %c0_i32, %c0_i32_0 : i32, i32
  }
  func.func @transform_2(%arg0: i32) -> (i32, i32) {
    %c0_i32 = arith.constant 0 : i32
    %c0_i32_0 = arith.constant 0 : i32
    %c0_i32_1 = arith.constant 0 : i32
    return %c0_i32, %c0_i32_0 : i32, i32
  }
  func.func @transform_3(%arg0: i32) -> (i32, i32) {
    %c0_i32 = arith.constant 0 : i32
    %c0_i32_0 = arith.constant 0 : i32
    %c0_i32_1 = arith.constant 0 : i32
    return %c0_i32, %c0_i32_0 : i32, i32
  }
  func.func @transform_4(%arg0: i32) -> (i32, i32) {
    %c0_i32 = arith.constant 0 : i32
    %c0_i32_0 = arith.constant 0 : i32
    %c0_i32_1 = arith.constant 0 : i32
    return %c0_i32, %c0_i32_0 : i32, i32
  }
  func.func @transform_5(%arg0: i32) -> (i32, i32) {
    %c0_i32 = arith.constant 0 : i32
    %c0_i32_0 = arith.constant 0 : i32
    %c0_i32_1 = arith.constant 0 : i32
    return %c0_i32, %c0_i32_0 : i32, i32
  }
  func.func @transform_6(%arg0: i32) -> (i32, i32, i32) {
    %c0_i32 = arith.constant 0 : i32
    %c0_i32_0 = arith.constant 0 : i32
    %c0_i32_1 = arith.constant 0 : i32
    return %arg0, %c0_i32, %c0_i32_0 : i32, i32, i32
  }
  func.func @transform_7(%arg0: i32) -> (i32, i32) {
    %c0_i32 = arith.constant 0 : i32
    %c0_i32_0 = arith.constant 0 : i32
    %c0_i32_1 = arith.constant 0 : i32
    return %c0_i32, %c0_i32_0 : i32, i32
  }
  func.func @transform_8(%arg0: i32) -> (i32, i32) {
    %c0_i32 = arith.constant 0 : i32
    %c0_i32_0 = arith.constant 0 : i32
    %c0_i32_1 = arith.constant 0 : i32
    return %c0_i32, %c0_i32_0 : i32, i32
  }
}

</mosaic_0001>

<bundles_post_ra>
// kernel: meta_att_decoder_forward.1
= control target key start
LH: loop header
LB: loop body
LE: loop exit
PB: predicated region body
PF: predicated region fallthrough
CT: control target
= control target key end

     0   :  { %s11297_s27 = smov 0   ;;  %s13510_s0 = inlined_call_operand.vmem [shape: f32[32,8,8], index: 0, kind: input, shape index: {}]   ;;  %s13511_s1 = inlined_call_operand.vmem [shape: f32[8,16], index: 1, kind: input, shape index: {}]   ;;  %s13512_s2 = inlined_call_operand.vmem [shape: f32[8,16], index: 2, kind: input, shape index: {}]   ;;  %s13513_s3 = inlined_call_operand.vmem [shape: f32[160,8], index: 3, kind: input, shape index: {}]   ;;  %s13514_s4 = inlined_call_operand.vmem [shape: f32[56,128], index: 4, kind: input, shape index: {}]   ;;  %s13515_s5 = inlined_call_operand.vmem [shape: f32[8,128], index: 5, kind: input, shape index: {}]   ;;  %s13516_s6 = inlined_call_operand.vmem [shape: f32[2,8,128], index: 6, kind: output, shape index: {0}]   ;;  %s13517_s7 = inlined_call_operand.vmem [shape: f32[8,16], index: 7, kind: output, shape index: {1}]   ;;  %s13518_s8 = inlined_call_operand.vmem [shape: f32[8,16], index: 8, kind: output, shape index: {2}]  }
   0x1 LB: > { %s11303_s28 = sadd.s32 4294967295, %s11227_s27   ;;  %p9592_p0 = scmp.ge.s32.totalorder %s11227_s27, 1  ;;  %s11227_s27 = sphi %s11297_s27, %s19_s27  }
   0x2   : > { %p258_p1 = scmp.lt.s32.totalorder %s11227_s27, 3 }
   0x4   : > { %p259_p2 = pnand %p9592_p0, %p258_p1 }
   0x5   : > { %s11308_s29 = sshll.u32 (!%p259_p2), %s11303_s28, 4  ;;  %p297_p3 = scmp.lt.s32.totalorder (!%p259_p2), %s11303_s28, 1 }
   0x6   : > { %262 = sbr.rel (%p259_p2) target bundleno = 27623 (0x6be7), region = 44  ;;  %p292_p4 = scmp.lt.s32.totalorder (!%p259_p2), %s11308_s29, 31 }
   0x7   : > { %p9596_p5 = scmp.ne.s32.totalorder (!%p259_p2), %s11303_s28, 0 }
   0xd   : > { %s298_s30 = scalar_select %p297_p3, %s11303_s28, 1 }
   0xe   : > { %s293_s9 = scalar_select %p292_p4, %s11308_s29, 31 }
   0xf   : > { %s9595_s10 = sshll.u32 %s298_s30, 3  ;;  %304 = sbr.rel (%p9596_p5) target bundleno = 22 (0x16), region = 48  ;;  %v305_v0 = vld [vmem:[%s13511_s1] sm:$0xff] (!%p9596_p5)  ;;  %vm306_vm0 = vcmask (!%p9596_p5), 130048  }
  0x10   : > { %s9594_s11 = sshll.u32 %s293_s9, 3  ;;  %s11317_s14 = scalar_lea.vmem %s13516_s6, %s9595_s10  ;;  %v308_v1 = vld [vmem:[%s13512_s2] sm:$0xff] (!%p9596_p5)  ;;  %307 = vst.msk [vmem:[#allocation2] sm:$0xff] (!%p9596_p5), %vm306_vm0, %v305_v0 }
  0x11   : > { %s11322_s17 = scalar_lea.vmem %s13510_s0, %s9594_s11  ;;  %309 = vst.msk [vmem:[#allocation3] sm:$0xff] (!%p9596_p5), %vm306_vm0, %v308_v1 }
  0x16 PF: > { %v11334_v2 = vld [vmem:[%s13514_s4] sm:$0xff]  ;;  %vm355_vm1 = vcmask 64512   ;;  %v11229_v4 = vmov 0.0   ;;  %vm11230_vm2 = vmmov 0   ;;  %v311_v5 = vld [vmem:[%s13514_s4 + $0x8] sm:$0xff]  ;;  %v312_v6 = vld [vmem:[%s13514_s4 + $0x10] sm:$0xff]  ;;  %v322_v46 = vlaneseq }
  0x17   : > { %v350_v3 = vld [vmem:[%s11322_s17] sm:$0xff]  ;;  %9933 = vmatprep.subr.mxu1 %v11229_v4  ;;  %9935 = vmatprep.mubr.msk.f32.mxu1 %vm11230_vm2, %v11229_v4  ;;  %v11347_v7 = vpack.c.bf16 %v312_v6, %v311_v5  ;;  %v11231_v8 = vmov 0.0|0.0   ;;  %vm432_vm3 = vcmask 130048   ;;  %v11367_v10 = vld [vmem:[%s13514_s4 + $0x18] sm:$0xff]  ;;  %vm585_vm5 = vcmask 162816   ;;  %v647_v31 = vld [vmem:[%s13513_s3 + $0x8] sm:$0xff] }
  0x18   : > { %9934 = vmatpush3.msra.mxu1 %v11334_v2  ;;  %9950 = vmatprep.subr.mxu0 %v11229_v4  ;;  %v11358_v9 = vld [vmem:[#allocation2] sm:$0xff]  ;;  %v648_v32 = vld [vmem:[%s13513_s3 + $0x10] sm:$0xff]  ;;  %v649_v34 = vld [vmem:[%s13513_s3 + $0x18] sm:$0xff]  ;;  %v11448_v49 = vshrl.u32 %v322_v46, 7  ;;  %s13533_s19 = smov 60   ;;  %s11233_s20 = smov 20  }
  0x19   : > { %9936 = vmatmul.mubr.msk.f32.vlgmr.msra.gmra.mrb[0].mxu1 %vm355_vm1, %v350_v3  ;;  %10397 = vmatprep.subr.bf16.mxu1 %v11231_v8  ;;  %v11374_v11 = vld [vmem:[%s13515_s5] ss:$0 sm:$0xff]  ;;  %v11385_v20 = vld [vmem:[%s13515_s5 + $0x1] ss:$0 sm:$0xff]  ;;  %v11407_v35 = vpack.c.bf16 %v649_v34, %v648_v32  ;;  %v651_v37 = vld [vmem:[%s13513_s3 + $0x28] sm:$0xff]  ;;  %s11234_s25 = smov 40  }
  0x1a   : > { %10399 = vmatpush3.bf16.msra.mxu1 %v11347_v7  ;;  %9942 = vmatprep.mubr.msk.f32.mxu1 %vm11230_vm2, %v11229_v4  ;;  %v646_v30 = vld [vmem:[%s13513_s3] sm:$0xff]  ;;  %v652_v39 = vld [vmem:[%s13513_s3 + $0x30] sm:$0xff]  ;;  %v653_v40 = vld [vmem:[%s13513_s3 + $0x38] sm:$0xff]  ;;  %vm333_vm6 = vcmp.eq.s32.totalorder %v11448_v49, 3  ;;  %vm327_vm7 = vcmp.eq.s32.totalorder %v11448_v49, 1  ;;  %vm330_vm8 = vcmp.eq.s32.totalorder %v11448_v49, 2 }
  0x1b   : > { %9945 = vmatprep.subr.mxu1 %v11229_v4  ;;  %9952 = vmatprep.mubr.msk.f32.mxu0 %vm11230_vm2, %v11229_v4  ;;  %v11401_v33 = vpack.c.bf16 %v647_v31, %v646_v30  ;;  %v650_v36 = vld [vmem:[%s13513_s3 + $0x20] sm:$0xff]  ;;  %v11427_v41 = vpack.c.bf16 %v653_v40, %v652_v39  ;;  %v655_v43 = vld [vmem:[%s13513_s3 + $0x48] sm:$0xff]  ;;  %v656_v47 = vld [vmem:[%s13513_s3 + $0x50] sm:$0xff]  ;;  %v11466_v55 = vsel %vm333_vm6, 1.0, %v11229_v4  ;;  %v11469_v56 = vsel %vm327_vm7, 1.0, %v11229_v4  ;;  %s11235_s26 = smov 80  }
  0x1c   : > { %v11417_v38 = vpack.c.bf16 %v651_v37, %v650_v36  ;;  %v654_v42 = vld [vmem:[%s13513_s3 + $0x40] sm:$0xff]  ;;  %v657_v48 = vld [vmem:[%s13513_s3 + $0x58] sm:$0xff]  ;;  %v659_v52 = vld [vmem:[%s13513_s3 + $0x68] sm:$0xff]  ;;  %v11485_v63 = vsel %vm330_vm8, 1.0, %v11229_v4  ;;  %vm336_vm9 = vcmp.eq.s32.totalorder %v11448_v49, 4  ;;  %vm339_vm10 = vcmp.eq.s32.totalorder %v11448_v49, 5 }
  0x1d   : > { %9943 = vmatmul.mubr.msk.f32.vlgmr.msra.gmra.mrb[2].mxu1 %vm432_vm3, %v11358_v9  ;;  %v11437_v44 = vpack.c.bf16 %v655_v43, %v654_v42  ;;  %v11450_v50 = vpack.c.bf16 %v657_v48, %v656_v47  ;;  %v658_v51 = vld [vmem:[%s13513_s3 + $0x60] sm:$0xff]  ;;  %v660_v57 = vld [vmem:[%s13513_s3 + $0x70] sm:$0xff]  ;;  %v661_v58 = vld [vmem:[%s13513_s3 + $0x78] sm:$0xff]  ;;  %vm342_vm11 = vcmp.eq.s32.totalorder %v11448_v49, 6  ;;  %s13529_s30 = smov 100   ;;  %vm345_vm12 = vcmp.eq.s32.totalorder %v11448_v49, 7 }
  0x1e   : > { %9947 = vmatprep.mubr.msk.f32.mxu1 %vm11230_vm2, %v11229_v4  ;;  %9946 = vmatpush3.msra.mxu1 %v11367_v10  ;;  %v11462_v53 = vpack.c.bf16 %v659_v52, %v658_v51  ;;  %v11479_v60 = vpack.c.bf16 %v661_v58, %v660_v57  ;;  %v662_v0 = vld [vmem:[%s13513_s3 + $0x80] sm:$0xff]  ;;  %v663_v1 = vld [vmem:[%s13513_s3 + $0x88] sm:$0xff]  ;;  %v664_v6 = vld [vmem:[%s13513_s3 + $0x90] sm:$0xff]  ;;  %s13531_s9 = smov 120   ;;  %s13525_s10 = smov 12   ;;  %vm324_vm13 = vcmp.eq.s32.totalorder %v11448_v49, 0 }
  0x1f   : > { %10400 = vmatprep.subr.bf16.mxu1 %v11231_v8  ;;  %v11497_v3 = vpack.c.bf16 %v663_v1, %v662_v0  ;;  %s13527_s11 = smov 108   ;;  %vm634_vm14 = vcmask 326656   ;;  %vm636_vm15 = vcmask 490496   ;;  %vm638_vm0 = vcmask 654336   ;;  %v11558_v43 = vld [vmem:[%s13514_s4 + $0x20] sm:$0xff]  ;;  %s13523_s22 = smov 112  }
  0x20   : > { %vm644_vm6 = vcmask 97280   ;;  %vm670_vm7 = vcmask 261120   ;;  %vm642_vm8 = vcmask 982016   ;;  %9951 = vmatpush3.msra.mxu0 %v11558_v43  ;;  %v11567_v46 = vld [vmem:[%s13515_s5 + $0x2] ss:$0 sm:$0xff]  ;;  %s13521_s15 = smov 32  }
  0x21   : > { %10430 = vmatprep.subr.bf16.mxu0 %v11231_v8  ;;  %v11576_v57 = vld [vmem:[%s13515_s5 + $0x3] ss:$0 sm:$0xff]  ;;  %p937_p6 = scmp.lt.s32.totalorder %s11308_s29, 20  ;;  %s13519_s18 = smov 96  }
  0x22   : > { %s1510_s24 = sadd.s32 1, %s11308_s29  ;;  %s2081_s13 = sadd.s32 2, %s11308_s29 }
  0x23   : > { %s938_s16 = scalar_select %p937_p6, 1, 0 }
  0x24   : > { %p1511_p7 = scmp.lt.s32.totalorder %s1510_s24, 20  ;;  %p2082_p8 = scmp.lt.s32.totalorder %s2081_s13, 20 }
  0x25   : > { %s2652_s21 = sadd.s32 3, %s11308_s29  ;;  %s13536_s24 = smov 32  }
  0x26   : > { %s1512_s12 = scalar_select %p1511_p7, 1, 0 }
  0x27   : > { %p2653_p9 = scmp.lt.s32.totalorder %s2652_s21, 20  ;;  %s3223_s13 = sadd.s32 4, %s11308_s29 }
  0x28   : > { %p3224_p10 = scmp.lt.s32.totalorder %s3223_s13, 20  ;;  %s3794_s21 = sadd.s32 5, %s11308_s29 }
  0x29   : > { %s2654_s23 = scalar_select %p2653_p9, 1, 0 }
  0x2a   : > { %p3795_p11 = scmp.lt.s32.totalorder %s3794_s21, 20  ;;  %s13538_s13 = smov 12  }
  0x2b   : > { %s4936_s21 = sadd.s32 7, %s11308_s29 }
  0x2c   : > { %p4937_p13 = scmp.lt.s32.totalorder %s4936_s21, 20  ;;  %s6078_s21 = sadd.s32 9, %s11308_s29 }
  0x2d   : > { %p6079_p1 = scmp.lt.s32.totalorder %s6078_s21, 20  ;;  %s7220_s21 = sadd.s32 11, %s11308_s29 }
  0x2e   : > { %p7221_p3 = scmp.lt.s32.totalorder %s7220_s21, 20  ;;  %s8362_s21 = sadd.s32 13, %s11308_s29 }
  0x2f   : > { %p8363_p5 = scmp.lt.s32.totalorder %s8362_s21, 20  ;;  %s13542_s21 = smov 60  }
  0xec   : > { %v425_v12 = vpop.f32.mrb[0].mxu1 }
  0xed   : > { %v426_v13 = vadd.f32 %v11374_v11, %v425_v12  ;;  %v9937_v14 = vpop.f32.mrb[1].mxu1  ;;  %v665_v12 = vld [vmem:[%s13513_s3 + $0x98] sm:$0xff] }
  0xee   : > { %v11511_v14 = vpack.c.bf16 %v665_v12, %v664_v6 }
  0xef   : > { %vm429_vm4 = vcmp.gt.f32.partialorder %v426_v13, 0.0  ;;  %v430_v15 = vmul.f32 0.01, %v426_v13 }
  0xf0   : > { %v11378_v17 = vpop.f32.mrb[2].mxu1 }
  0xf1   : > { %v431_v16 = vsel %vm429_vm4, %v426_v13, %v430_v15  ;;  %v9944_v18 = vpop.f32.mrb[3].mxu1  ;;  %v11508_v13 = vsel %vm336_vm9, 1.0, %v11229_v4  ;;  %vm640_vm4 = vcmask 818176  }
  0xf2   : > { %9948 = vmatmul.mubr.msk.f32.vlgmr.msra.gmra.mrb[4].mxu1 %vm355_vm1, %v431_v16  ;;  %v11518_v16 = vsel %vm339_vm10, 1.0, %v11229_v4 }
  0xf3   : > { %10402 = vmatpush1.bf16.msra.mxu1 %v11401_v33 }
  0xf4   : > { %10403 = vmatprep.subr.bf16.mxu1 %v11231_v8 }
  0xf7   : > { %10405 = vmatpush1.bf16.msra.mxu1 %v11407_v35 }
  0xf8   : > { %10406 = vmatprep.subr.bf16.mxu1 %v11231_v8 }
  0xfb   : > { %10408 = vmatpush1.bf16.msra.mxu1 %v11417_v38 }
  0xfc   : > { %10409 = vmatprep.subr.bf16.mxu1 %v11231_v8 }
  0xff   : > { %10411 = vmatpush1.bf16.msra.mxu1 %v11427_v41 }
 0x100   : > { %10412 = vmatprep.subr.bf16.mxu1 %v11231_v8 }
 0x103   : > { %10414 = vmatpush1.bf16.msra.mxu1 %v11437_v44 }
 0x104   : > { %10415 = vmatprep.subr.bf16.mxu1 %v11231_v8 }
 0x107   : > { %10417 = vmatpush1.bf16.msra.mxu1 %v11450_v50 }
 0x108   : > { %10418 = vmatprep.subr.bf16.mxu1 %v11231_v8 }
 0x10b   : > { %10420 = vmatpush1.bf16.msra.mxu1 %v11462_v53 }
 0x10c   : > { %10421 = vmatprep.subr.bf16.mxu1 %v11231_v8 }
 0x10f   : > { %10423 = vmatpush1.bf16.msra.mxu1 %v11479_v60 }
 0x110   : > { %10424 = vmatprep.subr.bf16.mxu1 %v11231_v8 }
 0x113   : > { %10426 = vmatpush1.bf16.msra.mxu1 %v11497_v3 }
 0x114   : > { %10427 = vmatprep.subr.bf16.mxu1 %v11231_v8 }
 0x117   : > { %10429 = vmatpush1.bf16.msra.mxu1 %v11511_v14 }
 0x118   : > { %9979 = vmatprep.subr.mxu1 %v11229_v4 }
 0x1c5   : > { %v11380_v19 = vpop.f32.mrb[4].mxu1 }
 0x1c6   : > { %v579_v21 = vadd.f32 %v11380_v19, %v11378_v17  ;;  %v9949_v22 = vpop.f32.mrb[5].mxu1 }
 0x1c8   : > { %v584_v23 = vadd.f32 %v11385_v20, %v579_v21  ;;  %v11525_v21 = vsel %vm342_vm11, 1.0, %v11229_v4 }
 0x1ca   : > { %v586_v24 = vsel %vm585_vm5, %v584_v23, -inf }
 0x1cb   : > { %587 = vmax.xlane.f32.xlu0 %v586_v24 }
 0x258   : > { %v588_v25 = vpop.xlane.xlu0 %587 }
 0x259   : > { %v589_v26 = vsub.f32 %v584_v23, %v588_v25  ;;  %v11531_v23 = vsel %vm345_vm12, 1.0, %v11229_v4 }
 0x25b   : > { %v590_v27 = vmul.f32 1.442695, %v589_v26 }
 0x25d   : > { %11004 = vpow2.f32 %v590_v27 }
 0x267   : > { %v11005_v28 = vpop.eup %11004 }
 0x268   : > { %v592_v29 = vsel %vm585_vm5, %v11005_v28, 0.0 }
 0x269   : > { %593 = vadd.xlane.f32.xlu0 %v592_v29 }
 0x2f6   : > { %v594_v45 = vpop.xlane.xlu0 %593 }
 0x2f7   : > { %11006 = vrcp.f32 %v594_v45 }
 0x301   : > { %v11007_v54 = vpop.eup %11006 }
 0x302   : > { %v596_v59 = vmul.f32 %v11007_v54, %v11005_v28  ;;  %v11542_v28 = vsel %vm324_vm13, 1.0, %v11229_v4 }
 0x304   : > { %v600_v61 = vmul.f32 %v11466_v55, %v596_v59  ;;  %v598_v62 = vmul.f32 %v11469_v56, %v596_v59  ;;  %v599_v5 = vmul.f32 %v11485_v63, %v596_v59  ;;  %v601_v15 = vmul.f32 %v11508_v13, %v596_v59 }
 0x305   : > { %v602_v18 = vmul.f32 %v11518_v16, %v596_v59  ;;  %v603_v22 = vmul.f32 %v11525_v21, %v596_v59  ;;  %v604_v24 = vmul.f32 %v11531_v23, %v596_v59  ;;  %v597_v30 = vmul.f32 %v11542_v28, %v596_v59 }
 0x306   : > { %614 = vrot.lane.b32.xlu0 %v600_v61, %s13533_s19  ;;  %606 = vrot.lane.b32.xlu1 %v598_v62, %s11233_s20 }
 0x30a   : > { %610 = vrot.lane.b32.xlu1 %v599_v5, %s11234_s25 }
 0x30e   : > { %618 = vrot.lane.b32.xlu1 %v601_v15, %s11235_s26 }
 0x312   : > { %622 = vrot.lane.b32.xlu1 %v602_v18, %s13529_s30  ;;  %v11581_v18 = vld [vmem:[#allocation3] sm:$0xff] }
 0x316   : > { %626 = vrot.lane.b32.xlu1 %v603_v22, %s13531_s9 }
 0x31a   : > { %630 = vrot.lane.b32.xlu1 %v604_v24, %s13525_s10 }
 0x31e   : > { %667 = vrot.lane.b32.xlu1 %v11380_v19, %s13527_s11 }
 0x322   : > { %751 = vrot.lane.b32.xlu1 %v11378_v17, %s13527_s11 }
 0x378   : > { %v607_v25 = vpop.permute.xlu1 %606  ;;  %v615_v17 = vpop.permute.xlu0 %614 }
 0x379   : > { %v633_v31 = vsel %vm585_vm5, %v597_v30, %v607_v25 }
 0x37c   : > { %v611_v26 = vpop.permute.xlu1 %610 }
 0x37d   : > { %v635_v32 = vsel %vm634_vm14, %v633_v31, %v611_v26 }
 0x37e   : > { %v637_v34 = vsel %vm636_vm15, %v635_v32, %v615_v17  ;;  %v939_v17 = vstv %s938_s16  ;;  %s2083_s16 = scalar_select %p2082_p8, 1, 0 }
 0x37f   : > { %vm11602_vm9 = vcmp.eq.s32.totalorder %v939_v17, 1  ;;  %p9738_p8 = scmp.ne.s32.totalorder %s11303_s28, 1 }
 0x380   : > { %v619_v27 = vpop.permute.xlu1 %618 }
 0x381   : > { %v639_v36 = vsel %vm638_vm0, %v637_v34, %v619_v27  ;;  %v315_v27 = vld [vmem:[%s13514_s4 + $0x28] sm:$0xff] }
 0x384   : > { %v623_v29 = vpop.permute.xlu1 %622 }
 0x385   : > { %v641_v39 = vsel %vm640_vm4, %v639_v36, %v623_v29  ;;  %v316_v29 = vld [vmem:[%s13514_s4 + $0x30] sm:$0xff] }
 0x386   : > { %v11593_v30 = vpack.c.bf16 %v316_v29, %v315_v27 }
 0x388   : > { %v627_v19 = vpop.permute.xlu1 %626 }
 0x389   : > { %v643_v42 = vsel %vm642_vm8, %v641_v39, %v627_v19  ;;  %v9618_v39 = vld [vmem:[%s11322_s17 + $0x8] sm:$0xff] }
 0x38c   : > { %v631_v37 = vpop.permute.xlu1 %630 }
 0x38d   : > { %v645_v40 = vsel %vm644_vm6, %v627_v19, %v631_v37 }
 0x38e   : > { %9610 = vmatprep.mubr.msk.f32.mxu1 %vm670_vm7, %v645_v40 }
 0x38f   : > { %739 = vmatmul.mubr.f32.vlgmr.msra.gmra.mrb[6].mxu1 %v643_v42  ;;  %v9615_v42 = vld [vmem:[%s13515_s5 + $0x4] ss:$0 sm:$0xff] }
 0x390   : > { %9981 = vmatprep.mubr.msk.f32.mxu1 %vm11230_vm2, %v11229_v4  ;;  %9980 = vmatpush3.msra.mxu1 %v11558_v43  ;;  %v668_v45 = vpop.permute.xlu1 %667 }
 0x391   : > { %10466 = vmatprep.subr.bf16.mxu1 %v11231_v8 }
 0x394   : > { %v752_v54 = vpop.permute.xlu1 %751 }
 0x462   : > { %v740_v47 = vpop.f32.mrb[6].mxu1 }
 0x463   : > { %v741_v48 = vadd.f32 %v740_v47, %v668_v45  ;;  %v742_v49 = vpop.f32.mrb[7].mxu1 }
 0x465   : > { %v748_v51 = vadd.f32 %v11567_v46, %v741_v48 }
 0x467   : > { %v749_v52 = vmax.f32 %v748_v51, 0.0 }
 0x469   : > { %9953 = vmatmul.mubr.msk.f32.vlgmr.msra.gmra.mrb[0].mxu0 %vm355_vm1, %v749_v52 }
 0x46a   : > { %9959 = vmatprep.mubr.msk.f32.mxu0 %vm11230_vm2, %v11229_v4  ;;  %10432 = vmatpush3.bf16.msra.mxu0 %v11593_v30 }
 0x46b   : > { %9962 = vmatprep.subr.mxu0 %v11229_v4 }
 0x53c   : > { %v823_v58 = vpop.f32.mrb[0].mxu0 }
 0x53d   : > { %v824_v59 = vadd.f32 %v823_v58, %v752_v54  ;;  %v9954_v61 = vpop.f32.mrb[1].mxu0 }
 0x53f   : > { %v831_v62 = vadd.f32 %v11576_v57, %v824_v59 }
 0x541   : > { %v9614_v0 = vmul.f32 -1.442695, %v831_v62  ;;  %11008 = vtanh.f32 %v831_v62 }
 0x543   : > { %11010 = vpow2.f32 %v9614_v0 }
 0x54b   : > { %v11009_v1 = vpop.eup %11008 }
 0x54c   : > { %845 = vrot.lane.b32.xlu1 %v11009_v1, %s11235_s26 }
 0x54d   : > { %v11011_v5 = vpop.eup %11010 }
 0x54e   : > { %v835_v6 = vadd.f32 1.0, %v11011_v5 }
 0x550   : > { %11012 = vrcp.f32 %v835_v6 }
 0x55a   : > { %v11013_v12 = vpop.eup %11012 }
 0x55b   : > { %840 = vrot.lane.b32.xlu0 %v11013_v12, %s13523_s22 }
 0x5be   : > { %v846_v15 = vpop.permute.xlu1 %845 }
 0x5bf   : > { %v848_v24 = vmul.f32 %v11013_v12, %v846_v15 }
 0x5cd   : > { %v841_v22 = vpop.permute.xlu0 %840 }
 0x5ce   : > { %v843_v25 = vmul.f32 %v841_v22, %v11581_v18 }
 0x5d0   : > { %v11584_v26 = vadd.f32 %v848_v24, %v843_v25 }
 0x5d2   : > { %11014 = vtanh.f32 %v11584_v26 }
 0x5dc   : > { %v11015_v31 = vpop.eup %11014 }
 0x5dd   : > { %852 = vrot.lane.b32.xlu0 %v11015_v31, %s13521_s15 }
 0x5e1   : > { %941 = vrot.lane.b32.xlu0 %v11358_v9, %s13521_s15 }
 0x64f   : > { %v853_v32 = vpop.permute.xlu0 %852 }
 0x650   : > { %v855_v19 = vmul.f32 %v11013_v12, %v853_v32 }
 0x652   : > { %861 = vrot.lane.b32.xlu1 %v855_v19, %s13519_s18 }
 0x653   : > { %v942_v34 = vpop.permute.xlu0 %941 }
 0x654   : > { %v11608_v37 = vsel %vm11602_vm9, %v855_v19, %v942_v34 }
 0x656   : > { %1025 = vrot.lane.b32.xlu1 %v11608_v37, %s13519_s18 }
 0x6c4   : > { %v862_v9 = vpop.permute.xlu1 %861 }
 0x6c5   : > { %9960 = vmatmul.mubr.msk.f32.vlgmr.msra.gmra.mrb[2].mxu0 %vm432_vm3, %v862_v9 }
 0x6c6   : > { %9963 = vmatpush3.msra.mxu0 %v11334_v2  ;;  %9964 = vmatprep.mubr.msk.f32.mxu0 %vm11230_vm2, %v11229_v4 }
 0x6c7   : > { %10433 = vmatprep.subr.bf16.mxu0 %v11231_v8 }
 0x6c8   : > { %v1026_v40 = vpop.permute.xlu1 %1025 }
 0x6c9   : > { %9965 = vmatmul.mubr.msk.f32.vlgmr.msra.gmra.mrb[4].mxu0 %vm355_vm1, %v9618_v39 }
 0x6ca   : > { %10435 = vmatpush3.bf16.msra.mxu0 %v11347_v7  ;;  %9971 = vmatprep.mubr.msk.f32.mxu0 %vm11230_vm2, %v11229_v4 }
 0x6cb   : > { %9974 = vmatprep.subr.mxu0 %v11229_v4 }
 0x6cd   : > { %9972 = vmatmul.mubr.msk.f32.vlgmr.msra.gmra.mrb[6].mxu0 %vm432_vm3, %v1026_v40 }
 0x6ce   : > { %9975 = vmatpush3.msra.mxu0 %v11367_v10  ;;  %9976 = vmatprep.mubr.msk.f32.mxu0 %vm11230_vm2, %v11229_v4 }
 0x6cf   : > { %10436 = vmatprep.subr.bf16.mxu0 %v11231_v8 }
 0x798   : > { %v931_v45 = vpop.f32.mrb[2].mxu0 }
 0x799   : > { %v932_v47 = vadd.f32 %v9615_v42, %v931_v45  ;;  %v9961_v48 = vpop.f32.mrb[3].mxu0 }
 0x79b   : > { %935 = vst.msk [vmem:[%s11317_s14] sm:$0xff] %vm355_vm1, %v932_v47 }
 0x79c   : > { %v1017_v49 = vpop.f32.mrb[4].mxu0 }
 0x79d   : > { %v1018_v51 = vadd.f32 %v11374_v11, %v1017_v49  ;;  %v9966_v52 = vpop.f32.mrb[5].mxu0 }
 0x79f   : > { %vm1021_vm10 = vcmp.gt.f32.partialorder %v1018_v51, 0.0  ;;  %v1022_v54 = vmul.f32 0.01, %v1018_v51 }
 0x7a0   : > { %v1095_v58 = vpop.f32.mrb[6].mxu0 }
 0x7a1   : > { %v1023_v59 = vsel %vm1021_vm10, %v1018_v51, %v1022_v54  ;;  %v9973_v61 = vpop.f32.mrb[7].mxu0 }
 0x7a2   : > { %9977 = vmatmul.mubr.msk.f32.vlgmr.msra.gmra.mrb[8].mxu0 %vm355_vm1, %v1023_v59 }
 0x7a3   : > { %10438 = vmatpush1.bf16.msra.mxu0 %v11401_v33 }
 0x7a4   : > { %10439 = vmatprep.subr.bf16.mxu0 %v11231_v8 }
 0x7a7   : > { %10441 = vmatpush1.bf16.msra.mxu0 %v11407_v35 }
 0x7a8   : > { %10442 = vmatprep.subr.bf16.mxu0 %v11231_v8 }
 0x7ab   : > { %10444 = vmatpush1.bf16.msra.mxu0 %v11417_v38 }
 0x7ac   : > { %10445 = vmatprep.subr.bf16.mxu0 %v11231_v8 }
 0x7af   : > { %10447 = vmatpush1.bf16.msra.mxu0 %v11427_v41 }
 0x7b0   : > { %10448 = vmatprep.subr.bf16.mxu0 %v11231_v8 }
 0x7b3   : > { %10450 = vmatpush1.bf16.msra.mxu0 %v11437_v44 }
 0x7b4   : > { %10451 = vmatprep.subr.bf16.mxu0 %v11231_v8 }
 0x7b7   : > { %10453 = vmatpush1.bf16.msra.mxu0 %v11450_v50 }
 0x7b8   : > { %10454 = vmatprep.subr.bf16.mxu0 %v11231_v8 }
 0x7bb   : > { %10456 = vmatpush1.bf16.msra.mxu0 %v11462_v53 }
 0x7bc   : > { %10457 = vmatprep.subr.bf16.mxu0 %v11231_v8 }
 0x7bf   : > { %10459 = vmatpush1.bf16.msra.mxu0 %v11479_v60 }
 0x7c0   : > { %10460 = vmatprep.subr.bf16.mxu0 %v11231_v8 }
 0x7c3   : > { %10462 = vmatpush1.bf16.msra.mxu0 %v11497_v3 }
 0x7c4   : > { %10463 = vmatprep.subr.bf16.mxu0 %v11231_v8 }
 0x7c7   : > { %10465 = vmatpush1.bf16.msra.mxu0 %v11511_v14 }
 0x7c8   : > { %10008 = vmatprep.subr.mxu0 %v11229_v4 }
 0x875   : > { %v1168_v62 = vpop.f32.mrb[8].mxu0 }
 0x876   : > { %v1172_v0 = vadd.f32 %v1168_v62, %v1095_v58  ;;  %v9978_v1 = vpop.f32.mrb[9].mxu0 }
 0x878   : > { %v1173_v5 = vadd.f32 %v11385_v20, %v1172_v0 }
 0x87a   : > { %v1174_v6 = vsel %vm585_vm5, %v1173_v5, -inf }
 0x87b   : > { %1175 = vmax.xlane.f32.xlu0 %v1174_v6 }
 0x908   : > { %v1176_v12 = vpop.xlane.xlu0 %1175 }
 0x909   : > { %v1177_v15 = vsub.f32 %v1173_v5, %v1176_v12 }
 0x90b   : > { %v1178_v22 = vmul.f32 1.442695, %v1177_v15 }
 0x90d   : > { %11016 = vpow2.f32 %v1178_v22 }
 0x917   : > { %v11017_v24 = vpop.eup %11016 }
 0x918   : > { %v1180_v25 = vsel %vm585_vm5, %v11017_v24, 0.0 }
 0x919   : > { %1181 = vadd.xlane.f32.xlu1 %v1180_v25 }
 0x9a6   : > { %v1182_v27 = vpop.xlane.xlu1 %1181 }
 0x9a7   : > { %11018 = vrcp.f32 %v1182_v27 }
 0x9b1   : > { %v11019_v29 = vpop.eup %11018 }
 0x9b2   : > { %v1184_v31 = vmul.f32 %v11019_v29, %v11017_v24 }
 0x9b4   : > { %v1187_v32 = vmul.f32 %v11485_v63, %v1184_v31  ;;  %v1186_v19 = vmul.f32 %v11469_v56, %v1184_v31  ;;  %v1189_v17 = vmul.f32 %v11508_v13, %v1184_v31  ;;  %v1188_v34 = vmul.f32 %v11466_v55, %v1184_v31 }
 0x9b5   : > { %v1191_v9 = vmul.f32 %v11525_v21, %v1184_v31  ;;  %v1190_v39 = vmul.f32 %v11518_v16, %v1184_v31  ;;  %v1192_v40 = vmul.f32 %v11531_v23, %v1184_v31  ;;  %v1185_v47 = vmul.f32 %v11542_v28, %v1184_v31 }
 0x9b6   : > { %1198 = vrot.lane.b32.xlu1 %v1187_v32, %s11234_s25  ;;  %1194 = vrot.lane.b32.xlu0 %v1186_v19, %s11233_s20 }
 0x9ba   : > { %1206 = vrot.lane.b32.xlu1 %v1189_v17, %s11235_s26  ;;  %1202 = vrot.lane.b32.xlu0 %v1188_v34, %s13533_s19 }
 0x9be   : > { %1214 = vrot.lane.b32.xlu1 %v1191_v9, %s13531_s9  ;;  %1210 = vrot.lane.b32.xlu0 %v1190_v39, %s13529_s30 }
 0x9c2   : > { %1249 = vrot.lane.b32.xlu1 %v1168_v62, %s13527_s11  ;;  %1218 = vrot.lane.b32.xlu0 %v1192_v40, %s13525_s10 }
 0x9c6   : > { %1328 = vrot.lane.b32.xlu0 %v1095_v58, %s13527_s11 }
 0xa28   : > { %v1199_v42 = vpop.permute.xlu1 %1198  ;;  %v1195_v45 = vpop.permute.xlu0 %1194 }
 0xa29   : > { %v1221_v48 = vsel %vm585_vm5, %v1185_v47, %v1195_v45  ;;  %v1513_v45 = vstv %s1512_s12  ;;  %v945_v47 = vsel %vm11602_vm9, %v11584_v26, %v11581_v18  ;;  %v9626_v26 = vld [vmem:[%s11322_s17 + $0x10] sm:$0xff]  ;;  %s13537_s12 = smov 96  }
 0xa2a   : > { %v1222_v52 = vsel %vm634_vm14, %v1221_v48, %v1199_v42  ;;  %vm1514_vm11 = vcmp.eq.s32.totalorder %v1513_v45, 1 }
 0xa2c   : > { %v1203_v49 = vpop.permute.xlu0 %1202  ;;  %v1207_v51 = vpop.permute.xlu1 %1206 }
 0xa2d   : > { %v1223_v54 = vsel %vm636_vm15, %v1222_v52, %v1203_v49 }
 0xa2e   : > { %v1224_v61 = vsel %vm638_vm0, %v1223_v54, %v1207_v51 }
 0xa30   : > { %v1211_v59 = vpop.permute.xlu0 %1210  ;;  %v1215_v62 = vpop.permute.xlu1 %1214 }
 0xa31   : > { %v1225_v0 = vsel %vm640_vm4, %v1224_v61, %v1211_v59 }
 0xa32   : > { %v1226_v5 = vsel %vm642_vm8, %v1225_v0, %v1215_v62 }
 0xa34   : > { %v1219_v1 = vpop.permute.xlu0 %1218  ;;  %v1250_v6 = vpop.permute.xlu1 %1249 }
 0xa35   : > { %v1227_v58 = vsel %vm644_vm6, %v1215_v62, %v1219_v1 }
 0xa36   : > { %9622 = vmatprep.mubr.msk.f32.mxu0 %vm670_vm7, %v1227_v58 }
 0xa37   : > { %1320 = vmatmul.mubr.f32.vlgmr.msra.gmra.mrb[10].mxu0 %v1226_v5 }
 0xa38   : > { %10009 = vmatpush3.msra.mxu0 %v11558_v43  ;;  %10010 = vmatprep.mubr.msk.f32.mxu0 %vm11230_vm2, %v11229_v4  ;;  %v1329_v27 = vpop.permute.xlu0 %1328 }
 0xa39   : > { %10502 = vmatprep.subr.bf16.mxu0 %v11231_v8 }
 0xb0a   : > { %v1321_v12 = vpop.f32.mrb[10].mxu0 }
 0xb0b   : > { %v1322_v15 = vadd.f32 %v1321_v12, %v1250_v6  ;;  %v1323_v22 = vpop.f32.mrb[11].mxu0 }
 0xb0d   : > { %v1325_v24 = vadd.f32 %v11567_v46, %v1322_v15 }
 0xb0f   : > { %v1326_v25 = vmax.f32 %v1325_v24, 0.0 }
 0xb11   : > { %9982 = vmatmul.mubr.msk.f32.vlgmr.msra.gmra.mrb[8].mxu1 %vm355_vm1, %v1326_v25 }
 0xb12   : > { %10468 = vmatpush3.bf16.msra.mxu1 %v11593_v30  ;;  %9988 = vmatprep.mubr.msk.f32.mxu1 %vm11230_vm2, %v11229_v4 }
 0xb13   : > { %9991 = vmatprep.subr.mxu1 %v11229_v4 }
 0xbe4   : > { %v1400_v29 = vpop.f32.mrb[8].mxu1 }
 0xbe5   : > { %v1401_v31 = vadd.f32 %v1400_v29, %v1329_v27  ;;  %v9983_v32 = vpop.f32.mrb[9].mxu1 }
 0xbe7   : > { %v1404_v19 = vadd.f32 %v11576_v57, %v1401_v31 }
 0xbe9   : > { %v9624_v17 = vmul.f32 -1.442695, %v1404_v19  ;;  %11020 = vtanh.f32 %v1404_v19 }
 0xbeb   : > { %11022 = vpow2.f32 %v9624_v17 }
 0xbf3   : > { %v11021_v34 = vpop.eup %11020 }
 0xbf4   : > { %1418 = vrot.lane.b32.xlu0 %v11021_v34, %s11235_s26 }
 0xbf5   : > { %v11023_v9 = vpop.eup %11022 }
 0xbf6   : > { %v1408_v39 = vadd.f32 1.0, %v11023_v9 }
 0xbf8   : > { %11024 = vrcp.f32 %v1408_v39 }
 0xc02   : > { %v11025_v40 = vpop.eup %11024 }
 0xc03   : > { %1413 = vrot.lane.b32.xlu1 %v11025_v40, %s13523_s22 }
 0xc66   : > { %v1419_v42 = vpop.permute.xlu0 %1418 }
 0xc67   : > { %v1421_v49 = vmul.f32 %v11025_v40, %v1419_v42 }
 0xc75   : > { %v1414_v48 = vpop.permute.xlu1 %1413 }
 0xc76   : > { %v1416_v51 = vmul.f32 %v1414_v48, %v945_v47 }
 0xc78   : > { %v1422_v52 = vadd.f32 %v1421_v49, %v1416_v51 }
 0xc7a   : > { %11026 = vtanh.f32 %v1422_v52  ;;  %v11701_v54 = vsel %vm1514_vm11, %v1422_v52, %v945_v47 }
 0xc84   : > { %v11027_v59 = vpop.eup %11026 }
 0xc85   : > { %1425 = vrot.lane.b32.xlu1 %v11027_v59, %s13521_s15 }
 0xcf7   : > { %v1426_v61 = vpop.permute.xlu1 %1425 }
 0xcf8   : > { %v1428_v62 = vmul.f32 %v11025_v40, %v1426_v61 }
 0xcfa   : > { %1430 = vrot.lane.b32.xlu0 %v1428_v62, %s13519_s18  ;;  %v11706_v0 = vsel %vm1514_vm11, %v1428_v62, %v11608_v37 }
 0xcfb   : > { %1596 = vrot.lane.b32.xlu1 %v11706_v0, %s13519_s18 }
 0xd6c   : > { %v1431_v18 = vpop.permute.xlu0 %1430 }
 0xd6d   : > { %9989 = vmatmul.mubr.msk.f32.vlgmr.msra.gmra.mrb[10].mxu1 %vm432_vm3, %v1431_v18  ;;  %v1597_v36 = vpop.permute.xlu1 %1596 }
 0xd6e   : > { %9992 = vmatpush3.msra.mxu1 %v11334_v2  ;;  %9993 = vmatprep.mubr.msk.f32.mxu1 %vm11230_vm2, %v11229_v4 }
 0xd6f   : > { %10469 = vmatprep.subr.bf16.mxu1 %v11231_v8 }
 0xd71   : > { %9994 = vmatmul.mubr.msk.f32.vlgmr.msra.gmra.mrb[12].mxu1 %vm355_vm1, %v9626_v26 }
 0xd72   : > { %10471 = vmatpush3.bf16.msra.mxu1 %v11347_v7  ;;  %10000 = vmatprep.mubr.msk.f32.mxu1 %vm11230_vm2, %v11229_v4 }
 0xd73   : > { %10003 = vmatprep.subr.mxu1 %v11229_v4 }
 0xd75   : > { %10001 = vmatmul.mubr.msk.f32.vlgmr.msra.gmra.mrb[14].mxu1 %vm432_vm3, %v1597_v36 }
 0xd76   : > { %10004 = vmatpush3.msra.mxu1 %v11367_v10  ;;  %10005 = vmatprep.mubr.msk.f32.mxu1 %vm11230_vm2, %v11229_v4 }
 0xd77   : > { %10472 = vmatprep.subr.bf16.mxu1 %v11231_v8 }
 0xe40   : > { %v11726_v2 = vpop.f32.mrb[10].mxu1 }
 0xe41   : > { %v9990_v37 = vpop.f32.mrb[11].mxu1 }
 0xe44   : > { %v1588_v1 = vpop.f32.mrb[12].mxu1 }
 0xe45   : > { %v1589_v58 = vadd.f32 %v11374_v11, %v1588_v1  ;;  %v9995_v5 = vpop.f32.mrb[13].mxu1 }
 0xe47   : > { %vm1592_vm12 = vcmp.gt.f32.partialorder %v1589_v58, 0.0  ;;  %v1593_v6 = vmul.f32 0.01, %v1589_v58 }
 0xe48   : > { %v1666_v12 = vpop.f32.mrb[14].mxu1 }
 0xe49   : > { %v1594_v15 = vsel %vm1592_vm12, %v1589_v58, %v1593_v6  ;;  %v10002_v22 = vpop.f32.mrb[15].mxu1 }
 0xe4a   : > { %10006 = vmatmul.mubr.msk.f32.vlgmr.msra.gmra.mrb[16].mxu1 %vm355_vm1, %v1594_v15 }
 0xe4b   : > { %10474 = vmatpush1.bf16.msra.mxu1 %v11401_v33 }
 0xe4c   : > { %10475 = vmatprep.subr.bf16.mxu1 %v11231_v8 }
 0xe4f   : > { %10477 = vmatpush1.bf16.msra.mxu1 %v11407_v35 }
 0xe50   : > { %10478 = vmatprep.subr.bf16.mxu1 %v11231_v8 }
 0xe53   : > { %10480 = vmatpush1.bf16.msra.mxu1 %v11417_v38 }
 0xe54   : > { %10481 = vmatprep.subr.bf16.mxu1 %v11231_v8 }
 0xe57   : > { %10483 = vmatpush1.bf16.msra.mxu1 %v11427_v41 }
 0xe58   : > { %10484 = vmatprep.subr.bf16.mxu1 %v11231_v8 }
 0xe5b   : > { %10486 = vmatpush1.bf16.msra.mxu1 %v11437_v44 }
 0xe5c   : > { %10487 = vmatprep.subr.bf16.mxu1 %v11231_v8 }
 0xe5f   : > { %10489 = vmatpush1.bf16.msra.mxu1 %v11450_v50 }
 0xe60   : > { %10490 = vmatprep.subr.bf16.mxu1 %v11231_v8 }
 0xe63   : > { %10492 = vmatpush1.bf16.msra.mxu1 %v11462_v53 }
 0xe64   : > { %10493 = vmatprep.subr.bf16.mxu1 %v11231_v8 }
 0xe67   : > { %10495 = vmatpush1.bf16.msra.mxu1 %v11479_v60 }
 0xe68   : > { %10496 = vmatprep.subr.bf16.mxu1 %v11231_v8 }
 0xe6b   : > { %10498 = vmatpush1.bf16.msra.mxu1 %v11497_v3 }
 0xe6c   : > { %10499 = vmatprep.subr.bf16.mxu1 %v11231_v8 }
 0xe6f   : > { %10501 = vmatpush1.bf16.msra.mxu1 %v11511_v14 }
 0xe70   : > { %10037 = vmatprep.subr.mxu1 %v11229_v4 }
 0xf1d   : > { %v1739_v11 = vpop.f32.mrb[16].mxu1 }
 0xf1e   : > { %v1743_v33 = vadd.f32 %v1739_v11, %v1666_v12  ;;  %v10007_v35 = vpop.f32.mrb[17].mxu1 }
 0xf20   : > { %v1744_v38 = vadd.f32 %v11385_v20, %v1743_v33 }
 0xf22   : > { %v1745_v41 = vsel %vm585_vm5, %v1744_v38, -inf }
 0xf23   : > { %1746 = vmax.xlane.f32.xlu0 %v1745_v41 }
 0xfb0   : > { %v1747_v44 = vpop.xlane.xlu0 %1746 }
 0xfb1   : > { %v1748_v50 = vsub.f32 %v1744_v38, %v1747_v44 }
 0xfb3   : > { %v1749_v53 = vmul.f32 1.442695, %v1748_v50 }
 0xfb5   : > { %11028 = vpow2.f32 %v1749_v53  ;;  %v2084_v53 = vstv %s2083_s16  ;;  %s3225_s16 = scalar_select %p3224_p10, 1, 0 }
 0xfb6   : > { %vm2085_vm13 = vcmp.eq.s32.totalorder %v2084_v53, 1  ;;  %v2379_v53 = vld [vmem:[%s13513_s3 + $0x48] sm:$0xff] }
 0xfbf   : > { %v11029_v60 = vpop.eup %11028 }
 0xfc0   : > { %v1751_v3 = vsel %vm585_vm5, %v11029_v60, 0.0 }
 0xfc1   : > { %1752 = vadd.xlane.f32.xlu1 %v1751_v3 }
0x104e   : > { %v1753_v24 = vpop.xlane.xlu1 %1752 }
0x104f   : > { %11030 = vrcp.f32 %v1753_v24 }
0x1059   : > { %v11031_v14 = vpop.eup %11030 }
0x105a   : > { %v1755_v25 = vmul.f32 %v11031_v14, %v11029_v60 }
0x105c   : > { %v1758_v27 = vmul.f32 %v11485_v63, %v1755_v25  ;;  %v1757_v29 = vmul.f32 %v11469_v56, %v1755_v25  ;;  %v1760_v20 = vmul.f32 %v11508_v13, %v1755_v25  ;;  %v1759_v31 = vmul.f32 %v11466_v55, %v1755_v25 }
0x105d   : > { %v1762_v32 = vmul.f32 %v11525_v21, %v1755_v25  ;;  %v1761_v19 = vmul.f32 %v11518_v16, %v1755_v25  ;;  %v1763_v17 = vmul.f32 %v11531_v23, %v1755_v25  ;;  %v1756_v39 = vmul.f32 %v11542_v28, %v1755_v25 }
0x105e   : > { %1769 = vrot.lane.b32.xlu1 %v1758_v27, %s11234_s25  ;;  %1765 = vrot.lane.b32.xlu0 %v1757_v29, %s11233_s20 }
0x1062   : > { %1777 = vrot.lane.b32.xlu1 %v1760_v20, %s11235_s26  ;;  %1773 = vrot.lane.b32.xlu0 %v1759_v31, %s13533_s19 }
0x1066   : > { %1785 = vrot.lane.b32.xlu1 %v1762_v32, %s13531_s9  ;;  %1781 = vrot.lane.b32.xlu0 %v1761_v19, %s13529_s30  ;;  %v9634_v19 = vld [vmem:[%s11322_s17 + $0x18] sm:$0xff] }
0x106a   : > { %1820 = vrot.lane.b32.xlu1 %v1739_v11, %s13527_s11  ;;  %1789 = vrot.lane.b32.xlu0 %v1763_v17, %s13525_s10 }
0x106e   : > { %1899 = vrot.lane.b32.xlu0 %v1666_v12, %s13527_s11 }
0x10d0   : > { %v1770_v34 = vpop.permute.xlu1 %1769  ;;  %v1766_v9 = vpop.permute.xlu0 %1765 }
0x10d1   : > { %v1792_v40 = vsel %vm585_vm5, %v1756_v39, %v1766_v9  ;;  %v11829_v39 = vld [vmem:[%s13515_s5] ss:$0 sm:$0xff] }
0x10d2   : > { %v1793_v47 = vsel %vm634_vm14, %v1792_v40, %v1770_v34 }
0x10d4   : > { %v1774_v42 = vpop.permute.xlu0 %1773  ;;  %v1778_v45 = vpop.permute.xlu1 %1777 }
0x10d5   : > { %v1794_v48 = vsel %vm636_vm15, %v1793_v47, %v1774_v42 }
0x10d6   : > { %v1795_v51 = vsel %vm638_vm0, %v1794_v48, %v1778_v45 }
0x10d8   : > { %v1782_v49 = vpop.permute.xlu0 %1781  ;;  %v1786_v52 = vpop.permute.xlu1 %1785 }
0x10d9   : > { %v1796_v59 = vsel %vm640_vm4, %v1795_v51, %v1782_v49 }
0x10da   : > { %v1797_v18 = vsel %vm642_vm8, %v1796_v59, %v1786_v52  ;;  %v11842_v59 = vld [vmem:[%s13515_s5 + $0x1] ss:$0 sm:$0xff] }
0x10dc   : > { %v1790_v61 = vpop.permute.xlu0 %1789  ;;  %v1821_v26 = vpop.permute.xlu1 %1820 }
0x10dd   : > { %v1798_v62 = vsel %vm644_vm6, %v1786_v52, %v1790_v61 }
0x10de   : > { %9630 = vmatprep.mubr.msk.f32.mxu1 %vm670_vm7, %v1798_v62 }
0x10df   : > { %1891 = vmatmul.mubr.f32.vlgmr.msra.gmra.mrb[18].mxu1 %v1797_v18 }
0x10e0   : > { %10038 = vmatpush3.msra.mxu1 %v11558_v43  ;;  %10039 = vmatprep.mubr.msk.f32.mxu1 %vm11230_vm2, %v11229_v4  ;;  %v1900_v6 = vpop.permute.xlu0 %1899 }
0x10e1   : > { %10538 = vmatprep.subr.bf16.mxu1 %v11231_v8 }
0x11b2   : > { %v1892_v36 = vpop.f32.mrb[18].mxu1 }
0x11b3   : > { %v1893_v37 = vadd.f32 %v1892_v36, %v1821_v26  ;;  %v1894_v1 = vpop.f32.mrb[19].mxu1 }
0x11b5   : > { %v1896_v58 = vadd.f32 %v11567_v46, %v1893_v37 }
0x11b7   : > { %v1897_v5 = vmax.f32 %v1896_v58, 0.0  ;;  %v2370_v58 = vld [vmem:[%s13513_s3] sm:$0xff] }
0x11b9   : > { %10011 = vmatmul.mubr.msk.f32.vlgmr.msra.gmra.mrb[12].mxu0 %vm355_vm1, %v1897_v5  ;;  %v2371_v5 = vld [vmem:[%s13513_s3 + $0x8] sm:$0xff] }
0x11ba   : > { %10504 = vmatpush3.bf16.msra.mxu0 %v11593_v30  ;;  %10017 = vmatprep.mubr.msk.f32.mxu0 %vm11230_vm2, %v11229_v4 }
0x11bb   : > { %10020 = vmatprep.subr.mxu0 %v11229_v4 }
0x128c   : > { %v1971_v12 = vpop.f32.mrb[12].mxu0 }
0x128d   : > { %v1972_v15 = vadd.f32 %v1971_v12, %v1900_v6  ;;  %v10012_v22 = vpop.f32.mrb[13].mxu0  ;;  %v2372_v6 = vld [vmem:[%s13513_s3 + $0x10] sm:$0xff]  ;;  %v11856_v12 = vpack.c.bf16 %v2371_v5, %v2370_v58 }
0x128f   : > { %v1975_v11 = vadd.f32 %v11576_v57, %v1972_v15  ;;  %v2373_v15 = vld [vmem:[%s13513_s3 + $0x18] sm:$0xff] }
0x1290   : > { %v11862_v22 = vpack.c.bf16 %v2373_v15, %v2372_v6 }
0x1291   : > { %v9632_v33 = vmul.f32 -1.442695, %v1975_v11  ;;  %11032 = vtanh.f32 %v1975_v11  ;;  %v2374_v11 = vld [vmem:[%s13513_s3 + $0x20] sm:$0xff] }
0x1293   : > { %11034 = vpow2.f32 %v9632_v33  ;;  %v2375_v33 = vld [vmem:[%s13513_s3 + $0x28] sm:$0xff] }
0x129b   : > { %v11033_v35 = vpop.eup %11032 }
0x129c   : > { %1989 = vrot.lane.b32.xlu0 %v11033_v35, %s11235_s26  ;;  %v11872_v35 = vpack.c.bf16 %v2375_v33, %v2374_v11 }
0x129d   : > { %v11035_v38 = vpop.eup %11034 }
0x129e   : > { %v1979_v41 = vadd.f32 1.0, %v11035_v38  ;;  %v2376_v38 = vld [vmem:[%s13513_s3 + $0x30] sm:$0xff] }
0x12a0   : > { %11036 = vrcp.f32 %v1979_v41  ;;  %v2377_v41 = vld [vmem:[%s13513_s3 + $0x38] sm:$0xff] }
0x12aa   : > { %v11037_v44 = vpop.eup %11036 }
0x12ab   : > { %1984 = vrot.lane.b32.xlu1 %v11037_v44, %s13523_s22 }
0x130e   : > { %v1990_v50 = vpop.permute.xlu0 %1989 }
0x130f   : > { %v1992_v3 = vmul.f32 %v11037_v44, %v1990_v50  ;;  %v2378_v50 = vld [vmem:[%s13513_s3 + $0x40] sm:$0xff] }
0x131d   : > { %v1985_v60 = vpop.permute.xlu1 %1984 }
0x131e   : > { %v1987_v24 = vmul.f32 %v1985_v60, %v11701_v54  ;;  %v11892_v60 = vpack.c.bf16 %v2379_v53, %v2378_v50 }
0x1320   : > { %v1993_v14 = vadd.f32 %v1992_v3, %v1987_v24  ;;  %v2380_v3 = vld [vmem:[%s13513_s3 + $0x50] sm:$0xff]  ;;  %v2381_v24 = vld [vmem:[%s13513_s3 + $0x58] sm:$0xff] }
0x1322   : > { %11038 = vtanh.f32 %v1993_v14  ;;  %v11794_v25 = vsel %vm2085_vm13, %v1993_v14, %v11701_v54  ;;  %v11807_v54 = vld [vmem:[%s13514_s4] sm:$0xff]  ;;  %v11902_v14 = vpack.c.bf16 %v2381_v24, %v2380_v3 }
0x132c   : > { %v11039_v27 = vpop.eup %11038 }
0x132d   : > { %1996 = vrot.lane.b32.xlu1 %v11039_v27, %s13521_s15  ;;  %v2382_v27 = vld [vmem:[%s13513_s3 + $0x60] sm:$0xff]  ;;  %s4365_s15 = sadd.s32 6, %s11308_s29 }
0x132e   : > { %p4366_p12 = scmp.lt.s32.totalorder %s4365_s15, 20  ;;  %s5507_s15 = sadd.s32 8, %s11308_s29 }
0x132f   : > { %p5508_p0 = scmp.lt.s32.totalorder %s5507_s15, 20  ;;  %s13540_s15 = smov 100  }
0x139f   : > { %v1997_v29 = vpop.permute.xlu1 %1996 }
0x13a0   : > { %v1999_v20 = vmul.f32 %v11037_v44, %v1997_v29  ;;  %v11882_v44 = vpack.c.bf16 %v2377_v41, %v2376_v38  ;;  %v2383_v29 = vld [vmem:[%s13513_s3 + $0x68] sm:$0xff] }
0x13a2   : > { %2001 = vrot.lane.b32.xlu0 %v1999_v20, %s13519_s18  ;;  %v11799_v31 = vsel %vm2085_vm13, %v1999_v20, %v11706_v0  ;;  %v11912_v20 = vpack.c.bf16 %v2383_v29, %v2382_v27 }
0x13a3   : > { %2167 = vrot.lane.b32.xlu1 %v11799_v31, %s13519_s18  ;;  %s4367_s18 = scalar_select %p4366_p12, 1, 0 }
0x1414   : > { %v2002_v32 = vpop.permute.xlu0 %2001 }
0x1415   : > { %10018 = vmatmul.mubr.msk.f32.vlgmr.msra.gmra.mrb[14].mxu0 %vm432_vm3, %v2002_v32  ;;  %v2168_v0 = vpop.permute.xlu1 %2167 }
0x1416   : > { %10021 = vmatpush3.msra.mxu0 %v11807_v54  ;;  %10022 = vmatprep.mubr.msk.f32.mxu0 %vm11230_vm2, %v11229_v4 }
0x1417   : > { %10505 = vmatprep.subr.bf16.mxu0 %v11231_v8 }
0x1419   : > { %10023 = vmatmul.mubr.msk.f32.vlgmr.msra.gmra.mrb[16].mxu0 %vm355_vm1, %v9634_v19  ;;  %v2384_v19 = vld [vmem:[%s13513_s3 + $0x70] sm:$0xff] }
0x141a   : > { %10507 = vmatpush3.bf16.msra.mxu0 %v11347_v7  ;;  %10029 = vmatprep.mubr.msk.f32.mxu0 %vm11230_vm2, %v11229_v4 }
0x141b   : > { %10032 = vmatprep.subr.mxu0 %v11229_v4 }
0x141d   : > { %10030 = vmatmul.mubr.msk.f32.vlgmr.msra.gmra.mrb[18].mxu0 %vm432_vm3, %v2168_v0  ;;  %v2385_v0 = vld [vmem:[%s13513_s3 + $0x78] sm:$0xff] }
0x141e   : > { %10033 = vmatpush3.msra.mxu0 %v11367_v10  ;;  %10034 = vmatprep.mubr.msk.f32.mxu0 %vm11230_vm2, %v11229_v4 }
0x141f   : > { %10508 = vmatprep.subr.bf16.mxu0 %v11231_v8 }
0x14e8   : > { %v11824_v17 = vpop.f32.mrb[14].mxu0 }
0x14e9   : > { %v10019_v34 = vpop.f32.mrb[15].mxu0 }
0x14ea   : > { %v11923_v34 = vpack.c.bf16 %v2385_v0, %v2384_v19 }
0x14ec   : > { %v2159_v9 = vpop.f32.mrb[16].mxu0 }
0x14ed   : > { %v2160_v40 = vadd.f32 %v11829_v39, %v2159_v9  ;;  %v10024_v42 = vpop.f32.mrb[17].mxu0  ;;  %v2386_v9 = vld [vmem:[%s13513_s3 + $0x80] sm:$0xff] }
0x14ef   : > { %vm2163_vm9 = vcmp.gt.f32.partialorder %v2160_v40, 0.0  ;;  %v2164_v45 = vmul.f32 0.01, %v2160_v40 }
0x14f0   : > { %v11832_v10 = vpop.f32.mrb[18].mxu0 }
0x14f1   : > { %v2165_v47 = vsel %vm2163_vm9, %v2160_v40, %v2164_v45  ;;  %v10031_v48 = vpop.f32.mrb[19].mxu0  ;;  %v2387_v40 = vld [vmem:[%s13513_s3 + $0x88] sm:$0xff] }
0x14f2   : > { %10035 = vmatmul.mubr.msk.f32.vlgmr.msra.gmra.mrb[20].mxu0 %vm355_vm1, %v2165_v47  ;;  %v11933_v42 = vpack.c.bf16 %v2387_v40, %v2386_v9  ;;  %v2388_v47 = vld [vmem:[%s13513_s3 + $0x90] sm:$0xff]  ;;  %v2389_v48 = vld [vmem:[%s13513_s3 + $0x98] sm:$0xff] }
0x14f3   : > { %10510 = vmatpush1.bf16.msra.mxu0 %v11856_v12 }
0x14f4   : > { %10511 = vmatprep.subr.bf16.mxu0 %v11231_v8 }
0x14f7   : > { %10513 = vmatpush1.bf16.msra.mxu0 %v11862_v22 }
0x14f8   : > { %10514 = vmatprep.subr.bf16.mxu0 %v11231_v8 }
0x14fb   : > { %10516 = vmatpush1.bf16.msra.mxu0 %v11872_v35 }
0x14fc   : > { %10517 = vmatprep.subr.bf16.mxu0 %v11231_v8 }
0x14ff   : > { %10519 = vmatpush1.bf16.msra.mxu0 %v11882_v44 }
0x1500   : > { %10520 = vmatprep.subr.bf16.mxu0 %v11231_v8 }
0x1503   : > { %10522 = vmatpush1.bf16.msra.mxu0 %v11892_v60 }
0x1504   : > { %10523 = vmatprep.subr.bf16.mxu0 %v11231_v8 }
0x1507   : > { %10525 = vmatpush1.bf16.msra.mxu0 %v11902_v14 }
0x1508   : > { %10526 = vmatprep.subr.bf16.mxu0 %v11231_v8 }
0x150b   : > { %10528 = vmatpush1.bf16.msra.mxu0 %v11912_v20 }
0x150c   : > { %10529 = vmatprep.subr.bf16.mxu0 %v11231_v8 }
0x150f   : > { %10531 = vmatpush1.bf16.msra.mxu0 %v11923_v34 }
0x1510   : > { %10532 = vmatprep.subr.bf16.mxu0 %v11231_v8 }
0x1513   : > { %10534 = vmatpush1.bf16.msra.mxu0 %v11933_v42 }
0x1514   : > { %10535 = vmatprep.subr.bf16.mxu0 %v11231_v8 }
0x15c5   : > { %v11835_v49 = vpop.f32.mrb[20].mxu0 }
0x15c6   : > { %v2314_v51 = vadd.f32 %v11835_v49, %v11832_v10  ;;  %v10036_v52 = vpop.f32.mrb[21].mxu0 }
0x15c7   : > { %v11943_v52 = vpack.c.bf16 %v2389_v48, %v2388_v47 }
0x15c8   : > { %v2315_v61 = vadd.f32 %v11842_v59, %v2314_v51 }
0x15c9   : > { %10537 = vmatpush1.bf16.msra.mxu0 %v11943_v52 }
0x15ca   : > { %v2316_v62 = vsel %vm585_vm5, %v2315_v61, -inf  ;;  %10066 = vmatprep.subr.mxu0 %v11229_v4 }
0x15cb   : > { %2317 = vmax.xlane.f32.xlu0 %v2316_v62 }
0x1658   : > { %v2318_v18 = vpop.xlane.xlu0 %2317 }
0x1659   : > { %v2319_v26 = vsub.f32 %v2315_v61, %v2318_v18 }
0x165b   : > { %v2320_v36 = vmul.f32 1.442695, %v2319_v26 }
0x165d   : > { %11040 = vpow2.f32 %v2320_v36 }
0x1667   : > { %v11041_v37 = vpop.eup %11040 }
0x1668   : > { %v2322_v1 = vsel %vm585_vm5, %v11041_v37, 0.0 }
0x1669   : > { %2323 = vadd.xlane.f32.xlu1 %v2322_v1 }
0x16f6   : > { %v2324_v32 = vpop.xlane.xlu1 %2323 }
0x16f7   : > { %11042 = vrcp.f32 %v2324_v32 }
0x1701   : > { %v11043_v45 = vpop.eup %11042 }
0x1702   : > { %v2326_v51 = vmul.f32 %v11043_v45, %v11041_v37 }
0x1704   : > { %v2329_v61 = vmul.f32 %v11485_v63, %v2326_v51  ;;  %v2328_v62 = vmul.f32 %v11469_v56, %v2326_v51  ;;  %v2331_v18 = vmul.f32 %v11508_v13, %v2326_v51  ;;  %v2330_v26 = vmul.f32 %v11466_v55, %v2326_v51 }
0x1705   : > { %v2333_v36 = vmul.f32 %v11525_v21, %v2326_v51  ;;  %v2332_v37 = vmul.f32 %v11518_v16, %v2326_v51  ;;  %v2334_v1 = vmul.f32 %v11531_v23, %v2326_v51  ;;  %v2327_v6 = vmul.f32 %v11542_v28, %v2326_v51 }
0x1706   : > { %2340 = vrot.lane.b32.xlu1 %v2329_v61, %s11234_s25  ;;  %2336 = vrot.lane.b32.xlu0 %v2328_v62, %s11233_s20 }
0x170a   : > { %2348 = vrot.lane.b32.xlu1 %v2331_v18, %s11235_s26  ;;  %2344 = vrot.lane.b32.xlu0 %v2330_v26, %s13533_s19 }
0x170e   : > { %2356 = vrot.lane.b32.xlu1 %v2333_v36, %s13531_s9  ;;  %2352 = vrot.lane.b32.xlu0 %v2332_v37, %s13529_s30  ;;  %v2655_v37 = vstv %s2654_s23  ;;  %s3796_s23 = scalar_select %p3795_p11, 1, 0 }
0x170f   : > { %vm2656_vm10 = vcmp.eq.s32.totalorder %v2655_v37, 1 }
0x1712   : > { %2391 = vrot.lane.b32.xlu1 %v11835_v49, %s13527_s11  ;;  %2360 = vrot.lane.b32.xlu0 %v2334_v1, %s13525_s10 }
0x1716   : > { %2470 = vrot.lane.b32.xlu0 %v11832_v10, %s13527_s11 }
0x1778   : > { %v2341_v58 = vpop.permute.xlu1 %2340  ;;  %v2337_v5 = vpop.permute.xlu0 %2336 }
0x1779   : > { %v2363_v15 = vsel %vm585_vm5, %v2327_v6, %v2337_v5 }
0x177a   : > { %v2364_v38 = vsel %vm634_vm14, %v2363_v15, %v2341_v58 }
0x177c   : > { %v2345_v11 = vpop.permute.xlu0 %2344  ;;  %v2349_v33 = vpop.permute.xlu1 %2348 }
0x177d   : > { %v2365_v41 = vsel %vm636_vm15, %v2364_v38, %v2345_v11 }
0x177e   : > { %v2366_v49 = vsel %vm638_vm0, %v2365_v41, %v2349_v33 }
0x1780   : > { %v2353_v50 = vpop.permute.xlu0 %2352  ;;  %v2357_v53 = vpop.permute.xlu1 %2356 }
0x1781   : > { %v2367_v3 = vsel %vm640_vm4, %v2366_v49, %v2353_v50  ;;  %v12014_v50 = vld [vmem:[%s13514_s4 + $0x18] sm:$0xff] }
0x1782   : > { %v2368_v27 = vsel %vm642_vm8, %v2367_v3, %v2357_v53 }
0x1784   : > { %v2361_v24 = vpop.permute.xlu0 %2360  ;;  %v2392_v29 = vpop.permute.xlu1 %2391 }
0x1785   : > { %v2369_v10 = vsel %vm644_vm6, %v2357_v53, %v2361_v24 }
0x1786   : > { %9638 = vmatprep.mubr.msk.f32.mxu0 %vm670_vm7, %v2369_v10 }
0x1787   : > { %2462 = vmatmul.mubr.f32.vlgmr.msra.gmra.mrb[22].mxu0 %v2368_v27 }
0x1788   : > { %10067 = vmatpush3.msra.mxu0 %v11558_v43  ;;  %10068 = vmatprep.mubr.msk.f32.mxu0 %vm11230_vm2, %v11229_v4  ;;  %v2471_v43 = vpop.permute.xlu0 %2470 }
0x1789   : > { %10574 = vmatprep.subr.bf16.mxu0 %v11231_v8 }
0x185a   : > { %v2463_v32 = vpop.f32.mrb[22].mxu0 }
0x185b   : > { %v2464_v19 = vadd.f32 %v2463_v32, %v2392_v29  ;;  %v2465_v0 = vpop.f32.mrb[23].mxu0 }
0x185d   : > { %v2467_v9 = vadd.f32 %v11567_v46, %v2464_v19 }
0x185f   : > { %v2468_v40 = vmax.f32 %v2467_v9, 0.0 }
0x1861   : > { %10040 = vmatmul.mubr.msk.f32.vlgmr.msra.gmra.mrb[20].mxu1 %vm355_vm1, %v2468_v40 }
0x1862   : > { %10540 = vmatpush3.bf16.msra.mxu1 %v11593_v30  ;;  %10046 = vmatprep.mubr.msk.f32.mxu1 %vm11230_vm2, %v11229_v4 }
0x1863   : > { %10049 = vmatprep.subr.mxu1 %v11229_v4 }
0x1934   : > { %v2542_v45 = vpop.f32.mrb[20].mxu1 }
0x1935   : > { %v2543_v47 = vadd.f32 %v2542_v45, %v2471_v43  ;;  %v10041_v48 = vpop.f32.mrb[21].mxu1 }
0x1937   : > { %v2546_v51 = vadd.f32 %v11576_v57, %v2543_v47 }
0x1939   : > { %v9640_v61 = vmul.f32 -1.442695, %v2546_v51  ;;  %11044 = vtanh.f32 %v2546_v51 }
0x193b   : > { %11046 = vpow2.f32 %v9640_v61 }
0x1943   : > { %v11045_v46 = vpop.eup %11044 }
0x1944   : > { %2560 = vrot.lane.b32.xlu0 %v11045_v46, %s11235_s26 }
0x1945   : > { %v11047_v62 = vpop.eup %11046 }
0x1946   : > { %v2550_v18 = vadd.f32 1.0, %v11047_v62 }
0x1948   : > { %11048 = vrcp.f32 %v2550_v18 }
0x1952   : > { %v11049_v26 = vpop.eup %11048 }
0x1953   : > { %2555 = vrot.lane.b32.xlu1 %v11049_v26, %s13523_s22 }
0x19b6   : > { %v2561_v36 = vpop.permute.xlu0 %2560 }
0x19b7   : > { %v2563_v58 = vmul.f32 %v11049_v26, %v2561_v36 }
0x19c5   : > { %v2556_v1 = vpop.permute.xlu1 %2555 }
0x19c6   : > { %v2558_v57 = vmul.f32 %v2556_v1, %v11794_v25 }
0x19c8   : > { %v2564_v5 = vadd.f32 %v2563_v58, %v2558_v57 }
0x19ca   : > { %11050 = vtanh.f32 %v2564_v5  ;;  %v11990_v6 = vsel %vm2656_vm10, %v2564_v5, %v11794_v25  ;;  %v9642_v25 = vld [vmem:[%s11322_s17 + $0x20] sm:$0xff] }
0x19d4   : > { %v11051_v15 = vpop.eup %11050 }
0x19d5   : > { %2567 = vrot.lane.b32.xlu1 %v11051_v15, %s13536_s24 }
0x1a47   : > { %v2568_v11 = vpop.permute.xlu1 %2567 }
0x1a48   : > { %v2570_v33 = vmul.f32 %v11049_v26, %v2568_v11 }
0x1a4a   : > { %2572 = vrot.lane.b32.xlu0 %v2570_v33, %s13537_s12  ;;  %v11995_v38 = vsel %vm2656_vm10, %v2570_v33, %v11799_v31 }
0x1a4b   : > { %2738 = vrot.lane.b32.xlu1 %v11995_v38, %s13537_s12 }
0x1abc   : > { %v2573_v41 = vpop.permute.xlu0 %2572 }
0x1abd   : > { %10047 = vmatmul.mubr.msk.f32.vlgmr.msra.gmra.mrb[22].mxu1 %vm432_vm3, %v2573_v41  ;;  %v2739_v31 = vpop.permute.xlu1 %2738 }
0x1abe   : > { %10050 = vmatpush3.msra.mxu1 %v11807_v54  ;;  %10051 = vmatprep.mubr.msk.f32.mxu1 %vm11230_vm2, %v11229_v4 }
0x1abf   : > { %10541 = vmatprep.subr.bf16.mxu1 %v11231_v8 }
0x1ac1   : > { %10052 = vmatmul.mubr.msk.f32.vlgmr.msra.gmra.mrb[24].mxu1 %vm355_vm1, %v9642_v25 }
0x1ac2   : > { %10543 = vmatpush3.bf16.msra.mxu1 %v11347_v7  ;;  %10058 = vmatprep.mubr.msk.f32.mxu1 %vm11230_vm2, %v11229_v4 }
0x1ac3   : > { %10061 = vmatprep.subr.mxu1 %v11229_v4 }
0x1ac5   : > { %10059 = vmatmul.mubr.msk.f32.vlgmr.msra.gmra.mrb[26].mxu1 %vm432_vm3, %v2739_v31 }
0x1ac6   : > { %10062 = vmatpush3.msra.mxu1 %v12014_v50  ;;  %10063 = vmatprep.mubr.msk.f32.mxu1 %vm11230_vm2, %v11229_v4 }
0x1ac7   : > { %10544 = vmatprep.subr.bf16.mxu1 %v11231_v8 }
0x1b90   : > { %v12020_v49 = vpop.f32.mrb[22].mxu1 }
0x1b91   : > { %v10048_v53 = vpop.f32.mrb[23].mxu1 }
0x1b94   : > { %v2730_v3 = vpop.f32.mrb[24].mxu1 }
0x1b95   : > { %v2731_v24 = vadd.f32 %v11829_v39, %v2730_v3  ;;  %v10053_v10 = vpop.f32.mrb[25].mxu1 }
0x1b97   : > { %vm2734_vm11 = vcmp.gt.f32.partialorder %v2731_v24, 0.0  ;;  %v2735_v27 = vmul.f32 0.01, %v2731_v24 }
0x1b98   : > { %v2808_v29 = vpop.f32.mrb[26].mxu1 }
0x1b99   : > { %v2736_v32 = vsel %vm2734_vm11, %v2731_v24, %v2735_v27  ;;  %v10060_v19 = vpop.f32.mrb[27].mxu1 }
0x1b9a   : > { %10064 = vmatmul.mubr.msk.f32.vlgmr.msra.gmra.mrb[28].mxu1 %vm355_vm1, %v2736_v32 }
0x1b9b   : > { %10546 = vmatpush1.bf16.msra.mxu1 %v11856_v12 }
0x1b9c   : > { %10547 = vmatprep.subr.bf16.mxu1 %v11231_v8 }
0x1b9f   : > { %10549 = vmatpush1.bf16.msra.mxu1 %v11862_v22 }
0x1ba0   : > { %10550 = vmatprep.subr.bf16.mxu1 %v11231_v8 }
0x1ba3   : > { %10552 = vmatpush1.bf16.msra.mxu1 %v11872_v35 }
0x1ba4   : > { %10553 = vmatprep.subr.bf16.mxu1 %v11231_v8 }
0x1ba7   : > { %10555 = vmatpush1.bf16.msra.mxu1 %v11882_v44 }
0x1ba8   : > { %10556 = vmatprep.subr.bf16.mxu1 %v11231_v8 }
0x1bab   : > { %10558 = vmatpush1.bf16.msra.mxu1 %v11892_v60 }
0x1bac   : > { %10559 = vmatprep.subr.bf16.mxu1 %v11231_v8 }
0x1baf   : > { %10561 = vmatpush1.bf16.msra.mxu1 %v11902_v14 }
0x1bb0   : > { %10562 = vmatprep.subr.bf16.mxu1 %v11231_v8 }
0x1bb3   : > { %10564 = vmatpush1.bf16.msra.mxu1 %v11912_v20 }
0x1bb4   : > { %10565 = vmatprep.subr.bf16.mxu1 %v11231_v8 }
0x1bb7   : > { %10567 = vmatpush1.bf16.msra.mxu1 %v11923_v34 }
0x1bb8   : > { %10568 = vmatprep.subr.bf16.mxu1 %v11231_v8 }
0x1bbb   : > { %10570 = vmatpush1.bf16.msra.mxu1 %v11933_v42 }
0x1bbc   : > { %10571 = vmatprep.subr.bf16.mxu1 %v11231_v8 }
0x1bbf   : > { %10573 = vmatpush1.bf16.msra.mxu1 %v11943_v52 }
0x1bc0   : > { %10095 = vmatprep.subr.mxu1 %v11229_v4 }
0x1c6d   : > { %v2881_v0 = vpop.f32.mrb[28].mxu1 }
0x1c6e   : > { %v2885_v9 = vadd.f32 %v2881_v0, %v2808_v29  ;;  %v10065_v40 = vpop.f32.mrb[29].mxu1 }
0x1c6f   : > { %v12075_v40 = vld [vmem:[%s13514_s4 + $0x20] sm:$0xff] }
0x1c70   : > { %v2886_v43 = vadd.f32 %v11842_v59, %v2885_v9 }
0x1c72   : > { %v2887_v45 = vsel %vm585_vm5, %v2886_v43, -inf }
0x1c73   : > { %2888 = vmax.xlane.f32.xlu0 %v2887_v45 }
0x1d00   : > { %v2889_v47 = vpop.xlane.xlu0 %2888 }
0x1d01   : > { %v2890_v48 = vsub.f32 %v2886_v43, %v2889_v47 }
0x1d03   : > { %v2891_v51 = vmul.f32 1.442695, %v2890_v48 }
0x1d05   : > { %11052 = vpow2.f32 %v2891_v51  ;;  %v12084_v51 = vld [vmem:[%s13515_s5 + $0x2] ss:$0 sm:$0xff] }
0x1d0f   : > { %v11053_v61 = vpop.eup %11052 }
0x1d10   : > { %v2893_v46 = vsel %vm585_vm5, %v11053_v61, 0.0 }
0x1d11   : > { %2894 = vadd.xlane.f32.xlu1 %v2893_v46 }
0x1d9e   : > { %v2895_v62 = vpop.xlane.xlu1 %2894 }
0x1d9f   : > { %11054 = vrcp.f32 %v2895_v62 }
0x1da9   : > { %v11055_v18 = vpop.eup %11054 }
0x1daa   : > { %v2897_v26 = vmul.f32 %v11055_v18, %v11053_v61 }
0x1dac   : > { %v2900_v36 = vmul.f32 %v11485_v63, %v2897_v26  ;;  %v2899_v37 = vmul.f32 %v11469_v56, %v2897_v26  ;;  %v2902_v1 = vmul.f32 %v11508_v13, %v2897_v26  ;;  %v2901_v58 = vmul.f32 %v11466_v55, %v2897_v26 }
0x1dad   : > { %v2904_v57 = vmul.f32 %v11525_v21, %v2897_v26  ;;  %v2903_v5 = vmul.f32 %v11518_v16, %v2897_v26  ;;  %v2905_v15 = vmul.f32 %v11531_v23, %v2897_v26  ;;  %v2898_v41 = vmul.f32 %v11542_v28, %v2897_v26 }
0x1dae   : > { %2911 = vrot.lane.b32.xlu1 %v2900_v36, %s11234_s25  ;;  %2907 = vrot.lane.b32.xlu0 %v2899_v37, %s11233_s20  ;;  %v12095_v37 = vld [vmem:[%s13515_s5 + $0x3] ss:$0 sm:$0xff] }
0x1db2   : > { %2919 = vrot.lane.b32.xlu1 %v2902_v1, %s11235_s26  ;;  %2915 = vrot.lane.b32.xlu0 %v2901_v58, %s13533_s19 }
0x1db6   : > { %2927 = vrot.lane.b32.xlu1 %v2904_v57, %s13531_s9  ;;  %2923 = vrot.lane.b32.xlu0 %v2903_v5, %s13529_s30 }
0x1dba   : > { %2962 = vrot.lane.b32.xlu1 %v2881_v0, %s13527_s11  ;;  %2931 = vrot.lane.b32.xlu0 %v2905_v15, %s13525_s10 }
0x1dbe   : > { %3041 = vrot.lane.b32.xlu0 %v2808_v29, %s13527_s11 }
0x1e20   : > { %v2912_v11 = vpop.permute.xlu1 %2911  ;;  %v2908_v33 = vpop.permute.xlu0 %2907 }
0x1e21   : > { %v2934_v25 = vsel %vm585_vm5, %v2898_v41, %v2908_v33  ;;  %v3226_v41 = vstv %s3225_s16  ;;  %s13539_s16 = smov 112  }
0x1e22   : > { %v2935_v3 = vsel %vm634_vm14, %v2934_v25, %v2912_v11  ;;  %vm3227_vm12 = vcmp.eq.s32.totalorder %v3226_v41, 1 }
0x1e24   : > { %v2916_v31 = vpop.permute.xlu0 %2915  ;;  %v2920_v53 = vpop.permute.xlu1 %2919 }
0x1e25   : > { %v2936_v24 = vsel %vm636_vm15, %v2935_v3, %v2916_v31 }
0x1e26   : > { %v2937_v27 = vsel %vm638_vm0, %v2936_v24, %v2920_v53 }
0x1e28   : > { %v2924_v10 = vpop.permute.xlu0 %2923  ;;  %v2928_v32 = vpop.permute.xlu1 %2927 }
0x1e29   : > { %v2938_v19 = vsel %vm640_vm4, %v2937_v27, %v2924_v10 }
0x1e2a   : > { %v2939_v9 = vsel %vm642_vm8, %v2938_v19, %v2928_v32 }
0x1e2c   : > { %v2932_v0 = vpop.permute.xlu0 %2931  ;;  %v2963_v43 = vpop.permute.xlu1 %2962 }
0x1e2d   : > { %v2940_v29 = vsel %vm644_vm6, %v2928_v32, %v2932_v0 }
0x1e2e   : > { %9646 = vmatprep.mubr.msk.f32.mxu1 %vm670_vm7, %v2940_v29 }
0x1e2f   : > { %3033 = vmatmul.mubr.f32.vlgmr.msra.gmra.mrb[30].mxu1 %v2939_v9 }
0x1e30   : > { %10096 = vmatpush3.msra.mxu1 %v12075_v40  ;;  %10097 = vmatprep.mubr.msk.f32.mxu1 %vm11230_vm2, %v11229_v4  ;;  %v3042_v62 = vpop.permute.xlu0 %3041 }
0x1e31   : > { %10610 = vmatprep.subr.bf16.mxu1 %v11231_v8 }
0x1f02   : > { %v3034_v45 = vpop.f32.mrb[30].mxu1 }
0x1f03   : > { %v3035_v47 = vadd.f32 %v3034_v45, %v2963_v43  ;;  %v3036_v48 = vpop.f32.mrb[31].mxu1 }
0x1f05   : > { %v3038_v61 = vadd.f32 %v12084_v51, %v3035_v47 }
0x1f07   : > { %v3039_v46 = vmax.f32 %v3038_v61, 0.0 }
0x1f09   : > { %10069 = vmatmul.mubr.msk.f32.vlgmr.msra.gmra.mrb[24].mxu0 %vm355_vm1, %v3039_v46 }
0x1f0a   : > { %10576 = vmatpush3.bf16.msra.mxu0 %v11593_v30  ;;  %10075 = vmatprep.mubr.msk.f32.mxu0 %vm11230_vm2, %v11229_v4 }
0x1f0b   : > { %10078 = vmatprep.subr.mxu0 %v11229_v4 }
0x1fdc   : > { %v3113_v18 = vpop.f32.mrb[24].mxu0 }
0x1fdd   : > { %v3114_v26 = vadd.f32 %v3113_v18, %v3042_v62  ;;  %v10070_v36 = vpop.f32.mrb[25].mxu0 }
0x1fdf   : > { %v3117_v1 = vadd.f32 %v12095_v37, %v3114_v26 }
0x1fe1   : > { %v9648_v58 = vmul.f32 -1.442695, %v3117_v1  ;;  %11056 = vtanh.f32 %v3117_v1 }
0x1fe3   : > { %11058 = vpow2.f32 %v9648_v58 }
0x1feb   : > { %v11057_v57 = vpop.eup %11056 }
0x1fec   : > { %3131 = vrot.lane.b32.xlu0 %v11057_v57, %s11235_s26 }
0x1fed   : > { %v11059_v5 = vpop.eup %11058 }
0x1fee   : > { %v3121_v15 = vadd.f32 1.0, %v11059_v5 }
0x1ff0   : > { %11060 = vrcp.f32 %v3121_v15 }
0x1ffa   : > { %v11061_v11 = vpop.eup %11060 }
0x1ffb   : > { %3126 = vrot.lane.b32.xlu1 %v11061_v11, %s13523_s22 }
0x205e   : > { %v3132_v33 = vpop.permute.xlu0 %3131 }
0x205f   : > { %v3134_v31 = vmul.f32 %v11061_v11, %v3132_v33 }
0x206d   : > { %v3127_v25 = vpop.permute.xlu1 %3126 }
0x206e   : > { %v3129_v53 = vmul.f32 %v3127_v25, %v11990_v6 }
0x2070   : > { %v3135_v3 = vadd.f32 %v3134_v31, %v3129_v53 }
0x2072   : > { %11062 = vtanh.f32 %v3135_v3  ;;  %v12103_v24 = vsel %vm3227_vm12, %v3135_v3, %v11990_v6  ;;  %v9650_v6 = vld [vmem:[%s11322_s17 + $0x28] sm:$0xff] }
0x207c   : > { %v11063_v10 = vpop.eup %11062 }
0x207d   : > { %3138 = vrot.lane.b32.xlu1 %v11063_v10, %s13536_s24 }
0x20ef   : > { %v3139_v27 = vpop.permute.xlu1 %3138 }
0x20f0   : > { %v3141_v32 = vmul.f32 %v11061_v11, %v3139_v27 }
0x20f2   : > { %3143 = vrot.lane.b32.xlu0 %v3141_v32, %s13537_s12  ;;  %v12108_v19 = vsel %vm3227_vm12, %v3141_v32, %v11995_v38 }
0x20f3   : > { %3309 = vrot.lane.b32.xlu1 %v12108_v19, %s13537_s12 }
0x2164   : > { %v3144_v0 = vpop.permute.xlu0 %3143 }
0x2165   : > { %10076 = vmatmul.mubr.msk.f32.vlgmr.msra.gmra.mrb[26].mxu0 %vm432_vm3, %v3144_v0  ;;  %v3310_v38 = vpop.permute.xlu1 %3309 }
0x2166   : > { %10079 = vmatpush3.msra.mxu0 %v11807_v54  ;;  %10080 = vmatprep.mubr.msk.f32.mxu0 %vm11230_vm2, %v11229_v4 }
0x2167   : > { %10577 = vmatprep.subr.bf16.mxu0 %v11231_v8 }
0x2169   : > { %10081 = vmatmul.mubr.msk.f32.vlgmr.msra.gmra.mrb[28].mxu0 %vm355_vm1, %v9650_v6 }
0x216a   : > { %10579 = vmatpush3.bf16.msra.mxu0 %v11347_v7  ;;  %10087 = vmatprep.mubr.msk.f32.mxu0 %vm11230_vm2, %v11229_v4 }
0x216b   : > { %10090 = vmatprep.subr.mxu0 %v11229_v4 }
0x216d   : > { %10088 = vmatmul.mubr.msk.f32.vlgmr.msra.gmra.mrb[30].mxu0 %vm432_vm3, %v3310_v38 }
0x216e   : > { %10091 = vmatpush3.msra.mxu0 %v12014_v50  ;;  %10092 = vmatprep.mubr.msk.f32.mxu0 %vm11230_vm2, %v11229_v4 }
0x216f   : > { %10580 = vmatprep.subr.bf16.mxu0 %v11231_v8 }
0x2238   : > { %v12128_v29 = vpop.f32.mrb[26].mxu0 }
0x2239   : > { %v10077_v9 = vpop.f32.mrb[27].mxu0 }
0x223c   : > { %v3301_v43 = vpop.f32.mrb[28].mxu0 }
0x223d   : > { %v3302_v45 = vadd.f32 %v11829_v39, %v3301_v43  ;;  %v10082_v47 = vpop.f32.mrb[29].mxu0 }
0x223f   : > { %vm3305_vm13 = vcmp.gt.f32.partialorder %v3302_v45, 0.0  ;;  %v3306_v48 = vmul.f32 0.01, %v3302_v45 }
0x2240   : > { %v3379_v61 = vpop.f32.mrb[30].mxu0 }
0x2241   : > { %v3307_v46 = vsel %vm3305_vm13, %v3302_v45, %v3306_v48  ;;  %v10089_v62 = vpop.f32.mrb[31].mxu0 }
0x2242   : > { %10093 = vmatmul.mubr.msk.f32.vlgmr.msra.gmra.mrb[32].mxu0 %vm355_vm1, %v3307_v46 }
0x2243   : > { %10582 = vmatpush1.bf16.msra.mxu0 %v11856_v12 }
0x2244   : > { %10583 = vmatprep.subr.bf16.mxu0 %v11231_v8 }
0x2247   : > { %10585 = vmatpush1.bf16.msra.mxu0 %v11862_v22 }
0x2248   : > { %10586 = vmatprep.subr.bf16.mxu0 %v11231_v8 }
0x224b   : > { %10588 = vmatpush1.bf16.msra.mxu0 %v11872_v35 }
0x224c   : > { %10589 = vmatprep.subr.bf16.mxu0 %v11231_v8 }
0x224f   : > { %10591 = vmatpush1.bf16.msra.mxu0 %v11882_v44 }
0x2250   : > { %10592 = vmatprep.subr.bf16.mxu0 %v11231_v8 }
0x2253   : > { %10594 = vmatpush1.bf16.msra.mxu0 %v11892_v60 }
0x2254   : > { %10595 = vmatprep.subr.bf16.mxu0 %v11231_v8 }
0x2257   : > { %10597 = vmatpush1.bf16.msra.mxu0 %v11902_v14 }
0x2258   : > { %10598 = vmatprep.subr.bf16.mxu0 %v11231_v8 }
0x225b   : > { %10600 = vmatpush1.bf16.msra.mxu0 %v11912_v20 }
0x225c   : > { %10601 = vmatprep.subr.bf16.mxu0 %v11231_v8 }
0x225f   : > { %10603 = vmatpush1.bf16.msra.mxu0 %v11923_v34 }
0x2260   : > { %10604 = vmatprep.subr.bf16.mxu0 %v11231_v8 }
0x2263   : > { %10606 = vmatpush1.bf16.msra.mxu0 %v11933_v42 }
0x2264   : > { %10607 = vmatprep.subr.bf16.mxu0 %v11231_v8 }
0x2267   : > { %10609 = vmatpush1.bf16.msra.mxu0 %v11943_v52 }
0x2268   : > { %10124 = vmatprep.subr.mxu0 %v11229_v4 }
0x2315   : > { %v3452_v18 = vpop.f32.mrb[32].mxu0 }
0x2316   : > { %v3456_v26 = vadd.f32 %v3452_v18, %v3379_v61  ;;  %v10094_v36 = vpop.f32.mrb[33].mxu0 }
0x2318   : > { %v3457_v1 = vadd.f32 %v11842_v59, %v3456_v26 }
0x231a   : > { %v3458_v58 = vsel %vm585_vm5, %v3457_v1, -inf }
0x231b   : > { %3459 = vmax.xlane.f32.xlu0 %v3458_v58 }
0x23a8   : > { %v3460_v57 = vpop.xlane.xlu0 %3459 }
0x23a9   : > { %v3461_v5 = vsub.f32 %v3457_v1, %v3460_v57 }
0x23ab   : > { %v3462_v15 = vmul.f32 1.442695, %v3461_v5 }
0x23ad   : > { %11064 = vpow2.f32 %v3462_v15 }
0x23b7   : > { %v11065_v11 = vpop.eup %11064 }
0x23b8   : > { %v3464_v33 = vsel %vm585_vm5, %v11065_v11, 0.0 }
0x23b9   : > { %3465 = vadd.xlane.f32.xlu1 %v3464_v33 }
0x2446   : > { %v3466_v41 = vpop.xlane.xlu1 %3465 }
0x2447   : > { %11066 = vrcp.f32 %v3466_v41 }
0x2451   : > { %v11067_v25 = vpop.eup %11066 }
0x2452   : > { %v3468_v31 = vmul.f32 %v11067_v25, %v11065_v11 }
0x2454   : > { %v3471_v53 = vmul.f32 %v11485_v63, %v3468_v31  ;;  %v3470_v3 = vmul.f32 %v11469_v56, %v3468_v31  ;;  %v3473_v10 = vmul.f32 %v11508_v13, %v3468_v31  ;;  %v3472_v27 = vmul.f32 %v11466_v55, %v3468_v31 }
0x2455   : > { %v3475_v32 = vmul.f32 %v11525_v21, %v3468_v31  ;;  %v3474_v0 = vmul.f32 %v11518_v16, %v3468_v31  ;;  %v3476_v6 = vmul.f32 %v11531_v23, %v3468_v31  ;;  %v3469_v43 = vmul.f32 %v11542_v28, %v3468_v31 }
0x2456   : > { %3482 = vrot.lane.b32.xlu1 %v3471_v53, %s11234_s25  ;;  %3478 = vrot.lane.b32.xlu0 %v3470_v3, %s11233_s20 }
0x245a   : > { %3490 = vrot.lane.b32.xlu1 %v3473_v10, %s11235_s26  ;;  %3486 = vrot.lane.b32.xlu0 %v3472_v27, %s13533_s19 }
0x245e   : > { %3498 = vrot.lane.b32.xlu1 %v3475_v32, %s13531_s9  ;;  %3494 = vrot.lane.b32.xlu0 %v3474_v0, %s13529_s30 }
0x2462   : > { %3533 = vrot.lane.b32.xlu1 %v3452_v18, %s13527_s11  ;;  %3502 = vrot.lane.b32.xlu0 %v3476_v6, %s13525_s10 }
0x2466   : > { %3612 = vrot.lane.b32.xlu0 %v3379_v61, %s13527_s11 }
0x24c8   : > { %v3483_v38 = vpop.permute.xlu1 %3482  ;;  %v3479_v9 = vpop.permute.xlu0 %3478 }
0x24c9   : > { %v3505_v45 = vsel %vm585_vm5, %v3469_v43, %v3479_v9 }
0x24ca   : > { %v3506_v46 = vsel %vm634_vm14, %v3505_v45, %v3483_v38  ;;  %v3797_v45 = vstv %s3796_s23  ;;  %s4938_s23 = scalar_select %p4937_p13, 1, 0 }
0x24cb   : > { %vm3798_vm9 = vcmp.eq.s32.totalorder %v3797_v45, 1 }
0x24cc   : > { %v3487_v47 = vpop.permute.xlu0 %3486  ;;  %v3491_v48 = vpop.permute.xlu1 %3490 }
0x24cd   : > { %v3507_v62 = vsel %vm636_vm15, %v3506_v46, %v3487_v47 }
0x24ce   : > { %v3508_v36 = vsel %vm638_vm0, %v3507_v62, %v3491_v48 }
0x24d0   : > { %v3495_v26 = vpop.permute.xlu0 %3494  ;;  %v3499_v18 = vpop.permute.xlu1 %3498 }
0x24d1   : > { %v3509_v1 = vsel %vm640_vm4, %v3508_v36, %v3495_v26 }
0x24d2   : > { %v3510_v57 = vsel %vm642_vm8, %v3509_v1, %v3499_v18 }
0x24d4   : > { %v3503_v58 = vpop.permute.xlu0 %3502  ;;  %v3534_v5 = vpop.permute.xlu1 %3533 }
0x24d5   : > { %v3511_v61 = vsel %vm644_vm6, %v3499_v18, %v3503_v58 }
0x24d6   : > { %9654 = vmatprep.mubr.msk.f32.mxu0 %vm670_vm7, %v3511_v61 }
0x24d7   : > { %3604 = vmatmul.mubr.f32.vlgmr.msra.gmra.mrb[34].mxu0 %v3510_v57 }
0x24d8   : > { %10125 = vmatpush3.msra.mxu0 %v12075_v40  ;;  %10126 = vmatprep.mubr.msk.f32.mxu0 %vm11230_vm2, %v11229_v4  ;;  %v3613_v31 = vpop.permute.xlu0 %3612 }
0x24d9   : > { %10646 = vmatprep.subr.bf16.mxu0 %v11231_v8 }
0x25aa   : > { %v3605_v15 = vpop.f32.mrb[34].mxu0 }
0x25ab   : > { %v3606_v11 = vadd.f32 %v3605_v15, %v3534_v5  ;;  %v3607_v33 = vpop.f32.mrb[35].mxu0 }
0x25ad   : > { %v3609_v41 = vadd.f32 %v12084_v51, %v3606_v11 }
0x25af   : > { %v3610_v25 = vmax.f32 %v3609_v41, 0.0 }
0x25b1   : > { %10098 = vmatmul.mubr.msk.f32.vlgmr.msra.gmra.mrb[32].mxu1 %vm355_vm1, %v3610_v25 }
0x25b2   : > { %10612 = vmatpush3.bf16.msra.mxu1 %v11593_v30  ;;  %10104 = vmatprep.mubr.msk.f32.mxu1 %vm11230_vm2, %v11229_v4 }
0x25b3   : > { %10107 = vmatprep.subr.mxu1 %v11229_v4 }
0x2684   : > { %v3684_v53 = vpop.f32.mrb[32].mxu1 }
0x2685   : > { %v3685_v3 = vadd.f32 %v3684_v53, %v3613_v31  ;;  %v10099_v10 = vpop.f32.mrb[33].mxu1 }
0x2687   : > { %v3688_v27 = vadd.f32 %v12095_v37, %v3685_v3 }
0x2689   : > { %v9656_v32 = vmul.f32 -1.442695, %v3688_v27  ;;  %11068 = vtanh.f32 %v3688_v27 }
0x268b   : > { %11070 = vpow2.f32 %v9656_v32 }
0x2693   : > { %v11069_v0 = vpop.eup %11068 }
0x2694   : > { %3702 = vrot.lane.b32.xlu0 %v11069_v0, %s11235_s26 }
0x2695   : > { %v11071_v6 = vpop.eup %11070 }
0x2696   : > { %v3692_v38 = vadd.f32 1.0, %v11071_v6 }
0x2698   : > { %11072 = vrcp.f32 %v3692_v38 }
0x26a2   : > { %v11073_v9 = vpop.eup %11072 }
0x26a3   : > { %3697 = vrot.lane.b32.xlu1 %v11073_v9, %s13523_s22 }
0x2706   : > { %v3703_v43 = vpop.permute.xlu0 %3702 }
0x2707   : > { %v3705_v48 = vmul.f32 %v11073_v9, %v3703_v43 }
0x2715   : > { %v3698_v47 = vpop.permute.xlu1 %3697 }
0x2716   : > { %v3700_v46 = vmul.f32 %v3698_v47, %v12103_v24 }
0x2718   : > { %v3706_v62 = vadd.f32 %v3705_v48, %v3700_v46 }
0x271a   : > { %11074 = vtanh.f32 %v3706_v62  ;;  %v12196_v26 = vsel %vm3798_vm9, %v3706_v62, %v12103_v24  ;;  %v9658_v24 = vld [vmem:[%s11322_s17 + $0x30] sm:$0xff] }
0x2724   : > { %v11075_v36 = vpop.eup %11074 }
0x2725   : > { %3709 = vrot.lane.b32.xlu1 %v11075_v36, %s13536_s24 }
0x2797   : > { %v3710_v18 = vpop.permute.xlu1 %3709 }
0x2798   : > { %v3712_v1 = vmul.f32 %v11073_v9, %v3710_v18 }
0x279a   : > { %3714 = vrot.lane.b32.xlu0 %v3712_v1, %s13537_s12  ;;  %v12201_v58 = vsel %vm3798_vm9, %v3712_v1, %v12108_v19 }
0x279b   : > { %3880 = vrot.lane.b32.xlu1 %v12201_v58, %s13537_s12 }
0x280c   : > { %v3715_v61 = vpop.permute.xlu0 %3714 }
0x280d   : > { %10105 = vmatmul.mubr.msk.f32.vlgmr.msra.gmra.mrb[34].mxu1 %vm432_vm3, %v3715_v61  ;;  %v3881_v19 = vpop.permute.xlu1 %3880 }
0x280e   : > { %10108 = vmatpush3.msra.mxu1 %v11807_v54  ;;  %10109 = vmatprep.mubr.msk.f32.mxu1 %vm11230_vm2, %v11229_v4 }
0x280f   : > { %10613 = vmatprep.subr.bf16.mxu1 %v11231_v8 }
0x2811   : > { %10110 = vmatmul.mubr.msk.f32.vlgmr.msra.gmra.mrb[36].mxu1 %vm355_vm1, %v9658_v24 }
0x2812   : > { %10615 = vmatpush3.bf16.msra.mxu1 %v11347_v7  ;;  %10116 = vmatprep.mubr.msk.f32.mxu1 %vm11230_vm2, %v11229_v4 }
0x2813   : > { %10119 = vmatprep.subr.mxu1 %v11229_v4 }
0x2815   : > { %10117 = vmatmul.mubr.msk.f32.vlgmr.msra.gmra.mrb[38].mxu1 %vm432_vm3, %v3881_v19 }
0x2816   : > { %10120 = vmatpush3.msra.mxu1 %v12014_v50  ;;  %10121 = vmatprep.mubr.msk.f32.mxu1 %vm11230_vm2, %v11229_v4 }
0x2817   : > { %10616 = vmatprep.subr.bf16.mxu1 %v11231_v8 }
0x28e0   : > { %v12221_v54 = vpop.f32.mrb[34].mxu1 }
0x28e1   : > { %v10106_v57 = vpop.f32.mrb[35].mxu1 }
0x28e4   : > { %v3872_v5 = vpop.f32.mrb[36].mxu1 }
0x28e5   : > { %v3873_v15 = vadd.f32 %v11829_v39, %v3872_v5  ;;  %v10111_v11 = vpop.f32.mrb[37].mxu1 }
0x28e7   : > { %vm3876_vm10 = vcmp.gt.f32.partialorder %v3873_v15, 0.0  ;;  %v3877_v33 = vmul.f32 0.01, %v3873_v15 }
0x28e8   : > { %v3950_v41 = vpop.f32.mrb[38].mxu1 }
0x28e9   : > { %v3878_v25 = vsel %vm3876_vm10, %v3873_v15, %v3877_v33  ;;  %v10118_v31 = vpop.f32.mrb[39].mxu1 }
0x28ea   : > { %10122 = vmatmul.mubr.msk.f32.vlgmr.msra.gmra.mrb[40].mxu1 %vm355_vm1, %v3878_v25 }
0x28eb   : > { %10618 = vmatpush1.bf16.msra.mxu1 %v11856_v12 }
0x28ec   : > { %10619 = vmatprep.subr.bf16.mxu1 %v11231_v8 }
0x28ef   : > { %10621 = vmatpush1.bf16.msra.mxu1 %v11862_v22 }
0x28f0   : > { %10622 = vmatprep.subr.bf16.mxu1 %v11231_v8 }
0x28f3   : > { %10624 = vmatpush1.bf16.msra.mxu1 %v11872_v35 }
0x28f4   : > { %10625 = vmatprep.subr.bf16.mxu1 %v11231_v8 }
0x28f7   : > { %10627 = vmatpush1.bf16.msra.mxu1 %v11882_v44 }
0x28f8   : > { %10628 = vmatprep.subr.bf16.mxu1 %v11231_v8 }
0x28fb   : > { %10630 = vmatpush1.bf16.msra.mxu1 %v11892_v60 }
0x28fc   : > { %10631 = vmatprep.subr.bf16.mxu1 %v11231_v8 }
0x28ff   : > { %10633 = vmatpush1.bf16.msra.mxu1 %v11902_v14 }
0x2900   : > { %10634 = vmatprep.subr.bf16.mxu1 %v11231_v8 }
0x2903   : > { %10636 = vmatpush1.bf16.msra.mxu1 %v11912_v20 }
0x2904   : > { %10637 = vmatprep.subr.bf16.mxu1 %v11231_v8 }
0x2907   : > { %10639 = vmatpush1.bf16.msra.mxu1 %v11923_v34 }
0x2908   : > { %10640 = vmatprep.subr.bf16.mxu1 %v11231_v8 }
0x290b   : > { %10642 = vmatpush1.bf16.msra.mxu1 %v11933_v42 }
0x290c   : > { %10643 = vmatprep.subr.bf16.mxu1 %v11231_v8 }
0x290f   : > { %10645 = vmatpush1.bf16.msra.mxu1 %v11943_v52 }
0x2910   : > { %10153 = vmatprep.subr.mxu1 %v11229_v4 }
0x29bd   : > { %v4023_v39 = vpop.f32.mrb[40].mxu1 }
0x29be   : > { %v4027_v12 = vadd.f32 %v4023_v39, %v3950_v41  ;;  %v10123_v22 = vpop.f32.mrb[41].mxu1 }
0x29c0   : > { %v4028_v35 = vadd.f32 %v11842_v59, %v4027_v12 }
0x29c2   : > { %v4029_v44 = vsel %vm585_vm5, %v4028_v35, -inf }
0x29c3   : > { %4030 = vmax.xlane.f32.xlu0 %v4029_v44 }
0x2a50   : > { %v4031_v60 = vpop.xlane.xlu0 %4030 }
0x2a51   : > { %v4032_v14 = vsub.f32 %v4028_v35, %v4031_v60 }
0x2a53   : > { %v4033_v20 = vmul.f32 1.442695, %v4032_v14 }
0x2a55   : > { %11076 = vpow2.f32 %v4033_v20 }
0x2a5f   : > { %v11077_v34 = vpop.eup %11076 }
0x2a60   : > { %v4035_v42 = vsel %vm585_vm5, %v11077_v34, 0.0 }
0x2a61   : > { %4036 = vadd.xlane.f32.xlu1 %v4035_v42 }
0x2aee   : > { %v4037_v53 = vpop.xlane.xlu1 %4036 }
0x2aef   : > { %11078 = vrcp.f32 %v4037_v53 }
0x2af9   : > { %v11079_v52 = vpop.eup %11078 }
0x2afa   : > { %v4039_v3 = vmul.f32 %v11079_v52, %v11077_v34  ;;  %v4368_v52 = vstv %s4367_s18  ;;  %s5509_s18 = scalar_select %p5508_p0, 1, 0 }
0x2afb   : > { %vm4369_vm11 = vcmp.eq.s32.totalorder %v4368_v52, 1  ;;  %v4660_v52 = vld [vmem:[%s13513_s3 + $0x30] sm:$0xff] }
0x2afc   : > { %v4042_v10 = vmul.f32 %v11485_v63, %v4039_v3  ;;  %v4041_v27 = vmul.f32 %v11469_v56, %v4039_v3  ;;  %v4044_v59 = vmul.f32 %v11508_v13, %v4039_v3  ;;  %v4043_v32 = vmul.f32 %v11466_v55, %v4039_v3 }
0x2afd   : > { %v4046_v0 = vmul.f32 %v11525_v21, %v4039_v3  ;;  %v4045_v6 = vmul.f32 %v11518_v16, %v4039_v3  ;;  %v4047_v38 = vmul.f32 %v11531_v23, %v4039_v3  ;;  %v4040_v45 = vmul.f32 %v11542_v28, %v4039_v3 }
0x2afe   : > { %4053 = vrot.lane.b32.xlu1 %v4042_v10, %s11234_s25  ;;  %4049 = vrot.lane.b32.xlu0 %v4041_v27, %s11233_s20 }
0x2b02   : > { %4061 = vrot.lane.b32.xlu1 %v4044_v59, %s11235_s26  ;;  %4057 = vrot.lane.b32.xlu0 %v4043_v32, %s13533_s19 }
0x2b06   : > { %4069 = vrot.lane.b32.xlu1 %v4046_v0, %s13531_s9  ;;  %4065 = vrot.lane.b32.xlu0 %v4045_v6, %s13529_s30 }
0x2b0a   : > { %4104 = vrot.lane.b32.xlu1 %v4023_v39, %s13527_s11  ;;  %4073 = vrot.lane.b32.xlu0 %v4047_v38, %s13525_s10  ;;  %s6649_s10 = sadd.s32 10, %s11308_s29 }
0x2b0b   : > { %p6650_p2 = scmp.lt.s32.totalorder %s6649_s10, 20  ;;  %s7791_s10 = sadd.s32 12, %s11308_s29 }
0x2b0c   : > { %p7792_p4 = scmp.lt.s32.totalorder %s7791_s10, 20  ;;  %s11249_s10 = smov 16  }
0x2b0e   : > { %4183 = vrot.lane.b32.xlu0 %v3950_v41, %s13527_s11 }
0x2b70   : > { %v4054_v9 = vpop.permute.xlu1 %4053  ;;  %v4050_v43 = vpop.permute.xlu0 %4049 }
0x2b71   : > { %v4076_v47 = vsel %vm585_vm5, %v4040_v45, %v4050_v43  ;;  %v9666_v45 = vld [vmem:[%s11322_s17 + $0x38] sm:$0xff] }
0x2b72   : > { %v4077_v62 = vsel %vm634_vm14, %v4076_v47, %v4054_v9 }
0x2b74   : > { %v4058_v48 = vpop.permute.xlu0 %4057  ;;  %v4062_v46 = vpop.permute.xlu1 %4061 }
0x2b75   : > { %v4078_v36 = vsel %vm636_vm15, %v4077_v62, %v4058_v48  ;;  %v12324_v62 = vld [vmem:[%s13515_s5] ss:$0 sm:$0xff] }
0x2b76   : > { %v4079_v1 = vsel %vm638_vm0, %v4078_v36, %v4062_v46 }
0x2b78   : > { %v4066_v18 = vpop.permute.xlu0 %4065  ;;  %v4070_v61 = vpop.permute.xlu1 %4069 }
0x2b79   : > { %v4080_v24 = vsel %vm640_vm4, %v4079_v1, %v4066_v18 }
0x2b7a   : > { %v4081_v5 = vsel %vm642_vm8, %v4080_v24, %v4070_v61 }
0x2b7c   : > { %v4074_v19 = vpop.permute.xlu0 %4073  ;;  %v4105_v15 = vpop.permute.xlu1 %4104 }
0x2b7d   : > { %v4082_v57 = vsel %vm644_vm6, %v4070_v61, %v4074_v19 }
0x2b7e   : > { %9662 = vmatprep.mubr.msk.f32.mxu1 %vm670_vm7, %v4082_v57 }
0x2b7f   : > { %4175 = vmatmul.mubr.f32.vlgmr.msra.gmra.mrb[42].mxu1 %v4081_v5 }
0x2b80   : > { %10154 = vmatpush3.msra.mxu1 %v12075_v40  ;;  %10155 = vmatprep.mubr.msk.f32.mxu1 %vm11230_vm2, %v11229_v4  ;;  %v4184_v39 = vpop.permute.xlu0 %4183 }
0x2b81   : > { %10682 = vmatprep.subr.bf16.mxu1 %v11231_v8 }
0x2c52   : > { %v4176_v11 = vpop.f32.mrb[42].mxu1 }
0x2c53   : > { %v4177_v33 = vadd.f32 %v4176_v11, %v4105_v15  ;;  %v4178_v41 = vpop.f32.mrb[43].mxu1  ;;  %v12337_v15 = vld [vmem:[%s13515_s5 + $0x1] ss:$0 sm:$0xff] }
0x2c55   : > { %v4180_v25 = vadd.f32 %v12084_v51, %v4177_v33 }
0x2c57   : > { %v4181_v31 = vmax.f32 %v4180_v25, 0.0 }
0x2c59   : > { %10127 = vmatmul.mubr.msk.f32.vlgmr.msra.gmra.mrb[36].mxu0 %vm355_vm1, %v4181_v31 }
0x2c5a   : > { %10648 = vmatpush3.bf16.msra.mxu0 %v11593_v30  ;;  %10133 = vmatprep.mubr.msk.f32.mxu0 %vm11230_vm2, %v11229_v4 }
0x2c5b   : > { %10136 = vmatprep.subr.mxu0 %v11229_v4 }
0x2d2c   : > { %v4255_v12 = vpop.f32.mrb[36].mxu0 }
0x2d2d   : > { %v4256_v22 = vadd.f32 %v4255_v12, %v4184_v39  ;;  %v10128_v35 = vpop.f32.mrb[37].mxu0 }
0x2d2e   : > { %v4655_v35 = vld [vmem:[%s13513_s3 + $0x8] sm:$0xff] }
0x2d2f   : > { %v4259_v44 = vadd.f32 %v12095_v37, %v4256_v22  ;;  %v4654_v22 = vld [vmem:[%s13513_s3] sm:$0xff] }
0x2d31   : > { %v9664_v60 = vmul.f32 -1.442695, %v4259_v44  ;;  %11080 = vtanh.f32 %v4259_v44  ;;  %v4656_v44 = vld [vmem:[%s13513_s3 + $0x10] sm:$0xff] }
0x2d33   : > { %11082 = vpow2.f32 %v9664_v60  ;;  %v12351_v60 = vpack.c.bf16 %v4655_v35, %v4654_v22 }
0x2d3b   : > { %v11081_v14 = vpop.eup %11080 }
0x2d3c   : > { %4273 = vrot.lane.b32.xlu0 %v11081_v14, %s11235_s26  ;;  %v4657_v14 = vld [vmem:[%s13513_s3 + $0x18] sm:$0xff] }
0x2d3d   : > { %v11083_v20 = vpop.eup %11082 }
0x2d3e   : > { %v4263_v34 = vadd.f32 1.0, %v11083_v20  ;;  %v12357_v20 = vpack.c.bf16 %v4657_v14, %v4656_v44 }
0x2d40   : > { %11084 = vrcp.f32 %v4263_v34  ;;  %v4658_v34 = vld [vmem:[%s13513_s3 + $0x20] sm:$0xff] }
0x2d4a   : > { %v11085_v42 = vpop.eup %11084 }
0x2d4b   : > { %4268 = vrot.lane.b32.xlu1 %v11085_v42, %s13523_s22  ;;  %s6651_s22 = scalar_select %p6650_p2, 1, 0 }
0x2dae   : > { %v4274_v53 = vpop.permute.xlu0 %4273 }
0x2daf   : > { %v4276_v10 = vmul.f32 %v11085_v42, %v4274_v53 }
0x2dbd   : > { %v4269_v3 = vpop.permute.xlu1 %4268 }
0x2dbe   : > { %v4271_v27 = vmul.f32 %v4269_v3, %v12196_v26  ;;  %v4661_v3 = vld [vmem:[%s13513_s3 + $0x38] sm:$0xff] }
0x2dc0   : > { %v4277_v59 = vadd.f32 %v4276_v10, %v4271_v27  ;;  %v12377_v10 = vpack.c.bf16 %v4661_v3, %v4660_v52  ;;  %v4662_v27 = vld [vmem:[%s13513_s3 + $0x40] sm:$0xff] }
0x2dc2   : > { %11086 = vtanh.f32 %v4277_v59  ;;  %v12289_v32 = vsel %vm4369_vm11, %v4277_v59, %v12196_v26  ;;  %v12302_v26 = vld [vmem:[%s13514_s4] sm:$0xff]  ;;  %v4663_v59 = vld [vmem:[%s13513_s3 + $0x48] sm:$0xff] }
0x2dcc   : > { %v11087_v0 = vpop.eup %11086 }
0x2dcd   : > { %4280 = vrot.lane.b32.xlu1 %v11087_v0, %s13536_s24  ;;  %v12387_v0 = vpack.c.bf16 %v4663_v59, %v4662_v27 }
0x2e3f   : > { %v4281_v6 = vpop.permute.xlu1 %4280 }
0x2e40   : > { %v4283_v38 = vmul.f32 %v11085_v42, %v4281_v6  ;;  %v4659_v42 = vld [vmem:[%s13513_s3 + $0x28] sm:$0xff]  ;;  %v4664_v6 = vld [vmem:[%s13513_s3 + $0x50] sm:$0xff] }
0x2e41   : > { %v12367_v53 = vpack.c.bf16 %v4659_v42, %v4658_v34 }
0x2e42   : > { %4285 = vrot.lane.b32.xlu0 %v4283_v38, %s13537_s12  ;;  %v12294_v9 = vsel %vm4369_vm11, %v4283_v38, %v12201_v58  ;;  %v4665_v38 = vld [vmem:[%s13513_s3 + $0x58] sm:$0xff] }
0x2e43   : > { %4451 = vrot.lane.b32.xlu1 %v12294_v9, %s13537_s12 }
0x2eb4   : > { %v4286_v43 = vpop.permute.xlu0 %4285 }
0x2eb5   : > { %10134 = vmatmul.mubr.msk.f32.vlgmr.msra.gmra.mrb[38].mxu0 %vm432_vm3, %v4286_v43  ;;  %v4452_v58 = vpop.permute.xlu1 %4451  ;;  %v12397_v43 = vpack.c.bf16 %v4665_v38, %v4664_v6 }
0x2eb6   : > { %10137 = vmatpush3.msra.mxu0 %v12302_v26  ;;  %10138 = vmatprep.mubr.msk.f32.mxu0 %vm11230_vm2, %v11229_v4 }
0x2eb7   : > { %10649 = vmatprep.subr.bf16.mxu0 %v11231_v8 }
0x2eb9   : > { %10139 = vmatmul.mubr.msk.f32.vlgmr.msra.gmra.mrb[40].mxu0 %vm355_vm1, %v9666_v45  ;;  %v4666_v45 = vld [vmem:[%s13513_s3 + $0x60] sm:$0xff] }
0x2eba   : > { %10651 = vmatpush3.bf16.msra.mxu0 %v11347_v7  ;;  %10145 = vmatprep.mubr.msk.f32.mxu0 %vm11230_vm2, %v11229_v4 }
0x2ebb   : > { %10148 = vmatprep.subr.mxu0 %v11229_v4 }
0x2ebd   : > { %10146 = vmatmul.mubr.msk.f32.vlgmr.msra.gmra.mrb[42].mxu0 %vm432_vm3, %v4452_v58  ;;  %v4667_v58 = vld [vmem:[%s13513_s3 + $0x68] sm:$0xff] }
0x2ebe   : > { %10149 = vmatpush3.msra.mxu0 %v12014_v50  ;;  %10150 = vmatprep.mubr.msk.f32.mxu0 %vm11230_vm2, %v11229_v4 }
0x2ebf   : > { %10652 = vmatprep.subr.bf16.mxu0 %v11231_v8 }
0x2f88   : > { %v12319_v47 = vpop.f32.mrb[38].mxu0 }
0x2f89   : > { %v10135_v48 = vpop.f32.mrb[39].mxu0 }
0x2f8a   : > { %v12407_v48 = vpack.c.bf16 %v4667_v58, %v4666_v45 }
0x2f8c   : > { %v4443_v46 = vpop.f32.mrb[40].mxu0 }
0x2f8d   : > { %v4444_v36 = vadd.f32 %v12324_v62, %v4443_v46  ;;  %v10140_v18 = vpop.f32.mrb[41].mxu0 }
0x2f8e   : > { %v4669_v18 = vld [vmem:[%s13513_s3 + $0x78] sm:$0xff] }
0x2f8f   : > { %vm4447_vm12 = vcmp.gt.f32.partialorder %v4444_v36, 0.0  ;;  %v4448_v1 = vmul.f32 0.01, %v4444_v36 }
0x2f90   : > { %v12327_v50 = vpop.f32.mrb[42].mxu0 }
0x2f91   : > { %v4449_v61 = vsel %vm4447_vm12, %v4444_v36, %v4448_v1  ;;  %v10147_v24 = vpop.f32.mrb[43].mxu0  ;;  %v4668_v36 = vld [vmem:[%s13513_s3 + $0x70] sm:$0xff] }
0x2f92   : > { %10151 = vmatmul.mubr.msk.f32.vlgmr.msra.gmra.mrb[44].mxu0 %vm355_vm1, %v4449_v61  ;;  %v12418_v1 = vpack.c.bf16 %v4669_v18, %v4668_v36  ;;  %v4670_v61 = vld [vmem:[%s13513_s3 + $0x80] sm:$0xff]  ;;  %v4671_v24 = vld [vmem:[%s13513_s3 + $0x88] sm:$0xff] }
0x2f93   : > { %10654 = vmatpush1.bf16.msra.mxu0 %v12351_v60 }
0x2f94   : > { %10655 = vmatprep.subr.bf16.mxu0 %v11231_v8 }
0x2f97   : > { %10657 = vmatpush1.bf16.msra.mxu0 %v12357_v20 }
0x2f98   : > { %10658 = vmatprep.subr.bf16.mxu0 %v11231_v8 }
0x2f9b   : > { %10660 = vmatpush1.bf16.msra.mxu0 %v12367_v53 }
0x2f9c   : > { %10661 = vmatprep.subr.bf16.mxu0 %v11231_v8 }
0x2f9f   : > { %10663 = vmatpush1.bf16.msra.mxu0 %v12377_v10 }
0x2fa0   : > { %10664 = vmatprep.subr.bf16.mxu0 %v11231_v8 }
0x2fa3   : > { %10666 = vmatpush1.bf16.msra.mxu0 %v12387_v0 }
0x2fa4   : > { %10667 = vmatprep.subr.bf16.mxu0 %v11231_v8 }
0x2fa7   : > { %10669 = vmatpush1.bf16.msra.mxu0 %v12397_v43 }
0x2fa8   : > { %10670 = vmatprep.subr.bf16.mxu0 %v11231_v8 }
0x2fab   : > { %10672 = vmatpush1.bf16.msra.mxu0 %v12407_v48 }
0x2fac   : > { %10673 = vmatprep.subr.bf16.mxu0 %v11231_v8 }
0x2faf   : > { %10675 = vmatpush1.bf16.msra.mxu0 %v12418_v1 }
0x2fb0   : > { %10676 = vmatprep.subr.bf16.mxu0 %v11231_v8 }
0x3065   : > { %v12330_v19 = vpop.f32.mrb[44].mxu0 }
0x3066   : > { %v4598_v57 = vadd.f32 %v12330_v19, %v12327_v50  ;;  %v10152_v5 = vpop.f32.mrb[45].mxu0 }
0x3068   : > { %v4599_v11 = vadd.f32 %v12337_v15, %v4598_v57  ;;  %v12428_v57 = vpack.c.bf16 %v4671_v24, %v4670_v61 }
0x306a   : > { %v4600_v33 = vsel %vm585_vm5, %v4599_v11, -inf  ;;  %10678 = vmatpush1.bf16.msra.mxu0 %v12428_v57 }
0x306b   : > { %4601 = vmax.xlane.f32.xlu0 %v4600_v33  ;;  %10679 = vmatprep.subr.bf16.mxu0 %v11231_v8  ;;  %v4673_v33 = vld [vmem:[%s13513_s3 + $0x98] sm:$0xff] }
0x30f8   : > { %v4602_v41 = vpop.xlane.xlu0 %4601 }
0x30f9   : > { %v4603_v25 = vsub.f32 %v4599_v11, %v4602_v41  ;;  %v4672_v11 = vld [vmem:[%s13513_s3 + $0x90] sm:$0xff] }
0x30fb   : > { %v4604_v31 = vmul.f32 1.442695, %v4603_v25  ;;  %v12438_v25 = vpack.c.bf16 %v4673_v33, %v4672_v11 }
0x30fd   : > { %11088 = vpow2.f32 %v4604_v31  ;;  %10681 = vmatpush1.bf16.msra.mxu0 %v12438_v25 }
0x30fe   : > { %10182 = vmatprep.subr.mxu0 %v11229_v4 }
0x3107   : > { %v11089_v39 = vpop.eup %11088 }
0x3108   : > { %v4606_v12 = vsel %vm585_vm5, %v11089_v39, 0.0 }
0x3109   : > { %4607 = vadd.xlane.f32.xlu1 %v4606_v12 }
0x3196   : > { %v4608_v46 = vpop.xlane.xlu1 %4607 }
0x3197   : > { %11090 = vrcp.f32 %v4608_v46 }
0x31a1   : > { %v11091_v5 = vpop.eup %11090 }
0x31a2   : > { %v4610_v41 = vmul.f32 %v11091_v5, %v11089_v39 }
0x31a4   : > { %v4613_v31 = vmul.f32 %v11485_v63, %v4610_v41  ;;  %v4612_v12 = vmul.f32 %v11469_v56, %v4610_v41  ;;  %v4615_v22 = vmul.f32 %v11508_v13, %v4610_v41  ;;  %v4614_v35 = vmul.f32 %v11466_v55, %v4610_v41 }
0x31a5   : > { %v4617_v39 = vmul.f32 %v11525_v21, %v4610_v41  ;;  %v4616_v44 = vmul.f32 %v11518_v16, %v4610_v41  ;;  %v4618_v14 = vmul.f32 %v11531_v23, %v4610_v41  ;;  %v4611_v52 = vmul.f32 %v11542_v28, %v4610_v41 }
0x31a6   : > { %4624 = vrot.lane.b32.xlu1 %v4613_v31, %s11234_s25  ;;  %4620 = vrot.lane.b32.xlu0 %v4612_v12, %s11233_s20 }
0x31aa   : > { %4632 = vrot.lane.b32.xlu1 %v4615_v22, %s11235_s26  ;;  %4628 = vrot.lane.b32.xlu0 %v4614_v35, %s13533_s19 }
0x31ae   : > { %4640 = vrot.lane.b32.xlu1 %v4617_v39, %s13531_s9  ;;  %4636 = vrot.lane.b32.xlu0 %v4616_v44, %s13529_s30 }
0x31b2   : > { %4675 = vrot.lane.b32.xlu1 %v12330_v19, %s13527_s11  ;;  %4644 = vrot.lane.b32.xlu0 %v4618_v14, %s13538_s13 }
0x31b6   : > { %4754 = vrot.lane.b32.xlu0 %v12327_v50, %s13527_s11 }
0x3218   : > { %v4625_v34 = vpop.permute.xlu1 %4624  ;;  %v4621_v42 = vpop.permute.xlu0 %4620 }
0x3219   : > { %v4647_v3 = vsel %vm585_vm5, %v4611_v52, %v4621_v42  ;;  %v4939_v52 = vstv %s4938_s23  ;;  %s6080_s23 = scalar_select %p6079_p1, 1, 0 }
0x321a   : > { %v4648_v6 = vsel %vm634_vm14, %v4647_v3, %v4625_v34  ;;  %vm4940_vm13 = vcmp.eq.s32.totalorder %v4939_v52, 1 }
0x321c   : > { %v4629_v27 = vpop.permute.xlu0 %4628  ;;  %v4633_v59 = vpop.permute.xlu1 %4632 }
0x321d   : > { %v4649_v38 = vsel %vm636_vm15, %v4648_v6, %v4629_v27 }
0x321e   : > { %v4650_v19 = vsel %vm638_vm0, %v4649_v38, %v4633_v59 }
0x3220   : > { %v4637_v45 = vpop.permute.xlu0 %4636  ;;  %v4641_v58 = vpop.permute.xlu1 %4640 }
0x3221   : > { %v4651_v46 = vsel %vm640_vm4, %v4650_v19, %v4637_v45 }
0x3222   : > { %v4652_v18 = vsel %vm642_vm8, %v4651_v46, %v4641_v58 }
0x3224   : > { %v4645_v36 = vpop.permute.xlu0 %4644  ;;  %v4676_v61 = vpop.permute.xlu1 %4675 }
0x3225   : > { %v4653_v50 = vsel %vm644_vm6, %v4641_v58, %v4645_v36  ;;  %v12509_v36 = vld [vmem:[%s13514_s4 + $0x18] sm:$0xff] }
0x3226   : > { %9670 = vmatprep.mubr.msk.f32.mxu0 %vm670_vm7, %v4653_v50 }
0x3227   : > { %4746 = vmatmul.mubr.f32.vlgmr.msra.gmra.mrb[46].mxu0 %v4652_v18 }
0x3228   : > { %10183 = vmatpush3.msra.mxu0 %v12075_v40  ;;  %10184 = vmatprep.mubr.msk.f32.mxu0 %vm11230_vm2, %v11229_v4  ;;  %v4755_v40 = vpop.permute.xlu0 %4754 }
0x3229   : > { %10718 = vmatprep.subr.bf16.mxu0 %v11231_v8 }
0x32fa   : > { %v4747_v24 = vpop.f32.mrb[46].mxu0 }
0x32fb   : > { %v4748_v5 = vadd.f32 %v4747_v24, %v4676_v61  ;;  %v4749_v11 = vpop.f32.mrb[47].mxu0 }
0x32fd   : > { %v4751_v33 = vadd.f32 %v12084_v51, %v4748_v5 }
0x32ff   : > { %v4752_v41 = vmax.f32 %v4751_v33, 0.0 }
0x3301   : > { %10156 = vmatmul.mubr.msk.f32.vlgmr.msra.gmra.mrb[44].mxu1 %vm355_vm1, %v4752_v41 }
0x3302   : > { %10684 = vmatpush3.bf16.msra.mxu1 %v11593_v30  ;;  %10162 = vmatprep.mubr.msk.f32.mxu1 %vm11230_vm2, %v11229_v4 }
0x3303   : > { %10165 = vmatprep.subr.mxu1 %v11229_v4 }
0x33d4   : > { %v4826_v31 = vpop.f32.mrb[44].mxu1 }
0x33d5   : > { %v4827_v12 = vadd.f32 %v4826_v31, %v4755_v40  ;;  %v10157_v22 = vpop.f32.mrb[45].mxu1 }
0x33d7   : > { %v4830_v35 = vadd.f32 %v12095_v37, %v4827_v12 }
0x33d9   : > { %v9672_v39 = vmul.f32 -1.442695, %v4830_v35  ;;  %11092 = vtanh.f32 %v4830_v35 }
0x33db   : > { %11094 = vpow2.f32 %v9672_v39 }
0x33e3   : > { %v11093_v51 = vpop.eup %11092 }
0x33e4   : > { %4844 = vrot.lane.b32.xlu0 %v11093_v51, %s11235_s26 }
0x33e5   : > { %v11095_v44 = vpop.eup %11094 }
0x33e6   : > { %v4834_v14 = vadd.f32 1.0, %v11095_v44 }
0x33e8   : > { %11096 = vrcp.f32 %v4834_v14 }
0x33f2   : > { %v11097_v34 = vpop.eup %11096 }
0x33f3   : > { %4839 = vrot.lane.b32.xlu1 %v11097_v34, %s13539_s16 }
0x3456   : > { %v4845_v42 = vpop.permute.xlu0 %4844 }
0x3457   : > { %v4847_v27 = vmul.f32 %v11097_v34, %v4845_v42 }
0x3465   : > { %v4840_v3 = vpop.permute.xlu1 %4839 }
0x3466   : > { %v4842_v37 = vmul.f32 %v4840_v3, %v12289_v32 }
0x3468   : > { %v4848_v59 = vadd.f32 %v4847_v27, %v4842_v37 }
0x346a   : > { %11098 = vtanh.f32 %v4848_v59  ;;  %v12485_v6 = vsel %vm4940_vm13, %v4848_v59, %v12289_v32  ;;  %v9674_v32 = vld [vmem:[%s11322_s17 + $0x40] sm:$0xff] }
0x3474   : > { %v11099_v38 = vpop.eup %11098 }
0x3475   : > { %4851 = vrot.lane.b32.xlu1 %v11099_v38, %s13536_s24 }
0x34e7   : > { %v4852_v45 = vpop.permute.xlu1 %4851 }
0x34e8   : > { %v4854_v19 = vmul.f32 %v11097_v34, %v4852_v45 }
0x34ea   : > { %4856 = vrot.lane.b32.xlu0 %v4854_v19, %s13537_s12  ;;  %v12490_v58 = vsel %vm4940_vm13, %v4854_v19, %v12294_v9 }
0x34eb   : > { %5022 = vrot.lane.b32.xlu1 %v12490_v58, %s13537_s12 }
0x355c   : > { %v4857_v46 = vpop.permute.xlu0 %4856 }
0x355d   : > { %10163 = vmatmul.mubr.msk.f32.vlgmr.msra.gmra.mrb[46].mxu1 %vm432_vm3, %v4857_v46  ;;  %v5023_v9 = vpop.permute.xlu1 %5022 }
0x355e   : > { %10166 = vmatpush3.msra.mxu1 %v12302_v26  ;;  %10167 = vmatprep.mubr.msk.f32.mxu1 %vm11230_vm2, %v11229_v4 }
0x355f   : > { %10685 = vmatprep.subr.bf16.mxu1 %v11231_v8 }
0x3561   : > { %10168 = vmatmul.mubr.msk.f32.vlgmr.msra.gmra.mrb[48].mxu1 %vm355_vm1, %v9674_v32 }
0x3562   : > { %10687 = vmatpush3.bf16.msra.mxu1 %v11347_v7  ;;  %10174 = vmatprep.mubr.msk.f32.mxu1 %vm11230_vm2, %v11229_v4 }
0x3563   : > { %10177 = vmatprep.subr.mxu1 %v11229_v4 }
0x3565   : > { %10175 = vmatmul.mubr.msk.f32.vlgmr.msra.gmra.mrb[50].mxu1 %vm432_vm3, %v5023_v9 }
0x3566   : > { %10178 = vmatpush3.msra.mxu1 %v12509_v36  ;;  %10179 = vmatprep.mubr.msk.f32.mxu1 %vm11230_vm2, %v11229_v4 }
0x3567   : > { %10688 = vmatprep.subr.bf16.mxu1 %v11231_v8 }
0x3630   : > { %v12515_v50 = vpop.f32.mrb[46].mxu1 }
0x3631   : > { %v10164_v18 = vpop.f32.mrb[47].mxu1 }
0x3634   : > { %v5014_v61 = vpop.f32.mrb[48].mxu1 }
0x3635   : > { %v5015_v24 = vadd.f32 %v12324_v62, %v5014_v61  ;;  %v10169_v5 = vpop.f32.mrb[49].mxu1 }
0x3637   : > { %vm5018_vm9 = vcmp.gt.f32.partialorder %v5015_v24, 0.0  ;;  %v5019_v11 = vmul.f32 0.01, %v5015_v24 }
0x3638   : > { %v5092_v33 = vpop.f32.mrb[50].mxu1 }
0x3639   : > { %v5020_v41 = vsel %vm5018_vm9, %v5015_v24, %v5019_v11  ;;  %v10176_v40 = vpop.f32.mrb[51].mxu1 }
0x363a   : > { %10180 = vmatmul.mubr.msk.f32.vlgmr.msra.gmra.mrb[52].mxu1 %vm355_vm1, %v5020_v41 }
0x363b   : > { %10690 = vmatpush1.bf16.msra.mxu1 %v12351_v60 }
0x363c   : > { %10691 = vmatprep.subr.bf16.mxu1 %v11231_v8 }
0x363f   : > { %10693 = vmatpush1.bf16.msra.mxu1 %v12357_v20 }
0x3640   : > { %10694 = vmatprep.subr.bf16.mxu1 %v11231_v8 }
0x3643   : > { %10696 = vmatpush1.bf16.msra.mxu1 %v12367_v53 }
0x3644   : > { %10697 = vmatprep.subr.bf16.mxu1 %v11231_v8 }
0x3647   : > { %10699 = vmatpush1.bf16.msra.mxu1 %v12377_v10 }
0x3648   : > { %10700 = vmatprep.subr.bf16.mxu1 %v11231_v8 }
0x364b   : > { %10702 = vmatpush1.bf16.msra.mxu1 %v12387_v0 }
0x364c   : > { %10703 = vmatprep.subr.bf16.mxu1 %v11231_v8 }
0x364f   : > { %10705 = vmatpush1.bf16.msra.mxu1 %v12397_v43 }
0x3650   : > { %10706 = vmatprep.subr.bf16.mxu1 %v11231_v8 }
0x3653   : > { %10708 = vmatpush1.bf16.msra.mxu1 %v12407_v48 }
0x3654   : > { %10709 = vmatprep.subr.bf16.mxu1 %v11231_v8 }
0x3657   : > { %10711 = vmatpush1.bf16.msra.mxu1 %v12418_v1 }
0x3658   : > { %10712 = vmatprep.subr.bf16.mxu1 %v11231_v8 }
0x365b   : > { %10714 = vmatpush1.bf16.msra.mxu1 %v12428_v57 }
0x365c   : > { %10715 = vmatprep.subr.bf16.mxu1 %v11231_v8 }
0x365f   : > { %10717 = vmatpush1.bf16.msra.mxu1 %v12438_v25 }
0x3660   : > { %10211 = vmatprep.subr.mxu1 %v11229_v4 }
0x370d   : > { %v5165_v31 = vpop.f32.mrb[52].mxu1 }
0x370e   : > { %v5169_v12 = vadd.f32 %v5165_v31, %v5092_v33  ;;  %v10181_v22 = vpop.f32.mrb[53].mxu1 }
0x3710   : > { %v5170_v35 = vadd.f32 %v12337_v15, %v5169_v12 }
0x3712   : > { %v5171_v39 = vsel %vm585_vm5, %v5170_v35, -inf }
0x3713   : > { %5172 = vmax.xlane.f32.xlu0 %v5171_v39 }
0x37a0   : > { %v5173_v51 = vpop.xlane.xlu0 %5172 }
0x37a1   : > { %v5174_v44 = vsub.f32 %v5170_v35, %v5173_v51 }
0x37a3   : > { %v5175_v14 = vmul.f32 1.442695, %v5174_v44  ;;  %v12570_v44 = vld [vmem:[%s13514_s4 + $0x20] sm:$0xff] }
0x37a5   : > { %11100 = vpow2.f32 %v5175_v14 }
0x37af   : > { %v11101_v34 = vpop.eup %11100 }
0x37b0   : > { %v5177_v42 = vsel %vm585_vm5, %v11101_v34, 0.0 }
0x37b1   : > { %5178 = vadd.xlane.f32.xlu1 %v5177_v42 }
0x383e   : > { %v5179_v52 = vpop.xlane.xlu1 %5178 }
0x383f   : > { %11102 = vrcp.f32 %v5179_v52 }
0x3849   : > { %v11103_v3 = vpop.eup %11102 }
0x384a   : > { %v5181_v27 = vmul.f32 %v11103_v3, %v11101_v34  ;;  %v12579_v3 = vld [vmem:[%s13515_s5 + $0x2] ss:$0 sm:$0xff] }
0x384c   : > { %v5184_v37 = vmul.f32 %v11485_v63, %v5181_v27  ;;  %v5183_v59 = vmul.f32 %v11469_v56, %v5181_v27  ;;  %v5186_v38 = vmul.f32 %v11508_v13, %v5181_v27  ;;  %v5185_v45 = vmul.f32 %v11466_v55, %v5181_v27 }
0x384d   : > { %v5188_v19 = vmul.f32 %v11525_v21, %v5181_v27  ;;  %v5187_v46 = vmul.f32 %v11518_v16, %v5181_v27  ;;  %v5189_v32 = vmul.f32 %v11531_v23, %v5181_v27  ;;  %v5182_v61 = vmul.f32 %v11542_v28, %v5181_v27 }
0x384e   : > { %5195 = vrot.lane.b32.xlu1 %v5184_v37, %s11234_s25  ;;  %5191 = vrot.lane.b32.xlu0 %v5183_v59, %s11233_s20 }
0x3852   : > { %5203 = vrot.lane.b32.xlu1 %v5186_v38, %s11235_s26  ;;  %5199 = vrot.lane.b32.xlu0 %v5185_v45, %s13533_s19 }
0x3856   : > { %5211 = vrot.lane.b32.xlu1 %v5188_v19, %s13531_s9  ;;  %5207 = vrot.lane.b32.xlu0 %v5187_v46, %s13529_s30  ;;  %v12590_v46 = vld [vmem:[%s13515_s5 + $0x3] ss:$0 sm:$0xff] }
0x385a   : > { %5246 = vrot.lane.b32.xlu1 %v5165_v31, %s13527_s11  ;;  %5215 = vrot.lane.b32.xlu0 %v5189_v32, %s13538_s13 }
0x385e   : > { %5325 = vrot.lane.b32.xlu0 %v5092_v33, %s13527_s11 }
0x38c0   : > { %v5196_v9 = vpop.permute.xlu1 %5195  ;;  %v5192_v18 = vpop.permute.xlu0 %5191 }
0x38c1   : > { %v5218_v24 = vsel %vm585_vm5, %v5182_v61, %v5192_v18 }
0x38c2   : > { %v5219_v41 = vsel %vm634_vm14, %v5218_v24, %v5196_v9 }
0x38c4   : > { %v5200_v5 = vpop.permute.xlu0 %5199  ;;  %v5204_v11 = vpop.permute.xlu1 %5203 }
0x38c5   : > { %v5220_v40 = vsel %vm636_vm15, %v5219_v41, %v5200_v5  ;;  %v5510_v41 = vstv %s5509_s18  ;;  %s13541_s18 = smov 108  }
0x38c6   : > { %v5221_v22 = vsel %vm638_vm0, %v5220_v40, %v5204_v11  ;;  %vm5511_vm10 = vcmp.eq.s32.totalorder %v5510_v41, 1 }
0x38c8   : > { %v5208_v12 = vpop.permute.xlu0 %5207  ;;  %v5212_v31 = vpop.permute.xlu1 %5211 }
0x38c9   : > { %v5222_v35 = vsel %vm640_vm4, %v5221_v22, %v5208_v12 }
0x38ca   : > { %v5223_v51 = vsel %vm642_vm8, %v5222_v35, %v5212_v31 }
0x38cc   : > { %v5216_v39 = vpop.permute.xlu0 %5215  ;;  %v5247_v14 = vpop.permute.xlu1 %5246 }
0x38cd   : > { %v5224_v33 = vsel %vm644_vm6, %v5212_v31, %v5216_v39 }
0x38ce   : > { %9678 = vmatprep.mubr.msk.f32.mxu1 %vm670_vm7, %v5224_v33 }
0x38cf   : > { %5317 = vmatmul.mubr.f32.vlgmr.msra.gmra.mrb[54].mxu1 %v5223_v51 }
0x38d0   : > { %10212 = vmatpush3.msra.mxu1 %v12570_v44  ;;  %10213 = vmatprep.mubr.msk.f32.mxu1 %vm11230_vm2, %v11229_v4  ;;  %v5326_v59 = vpop.permute.xlu0 %5325 }
0x38d1   : > { %10754 = vmatprep.subr.bf16.mxu1 %v11231_v8 }
0x39a2   : > { %v5318_v34 = vpop.f32.mrb[54].mxu1 }
0x39a3   : > { %v5319_v42 = vadd.f32 %v5318_v34, %v5247_v14  ;;  %v5320_v52 = vpop.f32.mrb[55].mxu1 }
0x39a5   : > { %v5322_v27 = vadd.f32 %v12579_v3, %v5319_v42 }
0x39a7   : > { %v5323_v37 = vmax.f32 %v5322_v27, 0.0 }
0x39a9   : > { %10185 = vmatmul.mubr.msk.f32.vlgmr.msra.gmra.mrb[48].mxu0 %vm355_vm1, %v5323_v37 }
0x39aa   : > { %10720 = vmatpush3.bf16.msra.mxu0 %v11593_v30  ;;  %10191 = vmatprep.mubr.msk.f32.mxu0 %vm11230_vm2, %v11229_v4 }
0x39ab   : > { %10194 = vmatprep.subr.mxu0 %v11229_v4 }
0x3a7c   : > { %v5397_v38 = vpop.f32.mrb[48].mxu0 }
0x3a7d   : > { %v5398_v45 = vadd.f32 %v5397_v38, %v5326_v59  ;;  %v10186_v19 = vpop.f32.mrb[49].mxu0 }
0x3a7f   : > { %v5401_v32 = vadd.f32 %v12590_v46, %v5398_v45 }
0x3a81   : > { %v9680_v9 = vmul.f32 -1.442695, %v5401_v32  ;;  %11104 = vtanh.f32 %v5401_v32 }
0x3a83   : > { %11106 = vpow2.f32 %v9680_v9 }
0x3a8b   : > { %v11105_v18 = vpop.eup %11104 }
0x3a8c   : > { %5415 = vrot.lane.b32.xlu0 %v11105_v18, %s11235_s26 }
0x3a8d   : > { %v11107_v61 = vpop.eup %11106 }
0x3a8e   : > { %v5405_v24 = vadd.f32 1.0, %v11107_v61 }
0x3a90   : > { %11108 = vrcp.f32 %v5405_v24 }
0x3a9a   : > { %v11109_v5 = vpop.eup %11108 }
0x3a9b   : > { %5410 = vrot.lane.b32.xlu1 %v11109_v5, %s13539_s16 }
0x3afe   : > { %v5416_v11 = vpop.permute.xlu0 %5415 }
0x3aff   : > { %v5418_v12 = vmul.f32 %v11109_v5, %v5416_v11 }
0x3b0d   : > { %v5411_v40 = vpop.permute.xlu1 %5410 }
0x3b0e   : > { %v5413_v22 = vmul.f32 %v5411_v40, %v12485_v6 }
0x3b10   : > { %v5419_v31 = vadd.f32 %v5418_v12, %v5413_v22 }
0x3b12   : > { %11110 = vtanh.f32 %v5419_v31  ;;  %v12598_v35 = vsel %vm5511_vm10, %v5419_v31, %v12485_v6  ;;  %v9682_v6 = vld [vmem:[%s11322_s17 + $0x48] sm:$0xff] }
0x3b1c   : > { %v11111_v39 = vpop.eup %11110 }
0x3b1d   : > { %5422 = vrot.lane.b32.xlu1 %v11111_v39, %s13536_s24 }
0x3b8f   : > { %v5423_v33 = vpop.permute.xlu1 %5422 }
0x3b90   : > { %v5425_v51 = vmul.f32 %v11109_v5, %v5423_v33 }
0x3b92   : > { %5427 = vrot.lane.b32.xlu0 %v5425_v51, %s13537_s12  ;;  %v12603_v14 = vsel %vm5511_vm10, %v5425_v51, %v12490_v58 }
0x3b93   : > { %5593 = vrot.lane.b32.xlu1 %v12603_v14, %s13537_s12 }
0x3c04   : > { %v5428_v34 = vpop.permute.xlu0 %5427 }
0x3c05   : > { %10192 = vmatmul.mubr.msk.f32.vlgmr.msra.gmra.mrb[50].mxu0 %vm432_vm3, %v5428_v34  ;;  %v5594_v58 = vpop.permute.xlu1 %5593 }
0x3c06   : > { %10195 = vmatpush3.msra.mxu0 %v12302_v26  ;;  %10196 = vmatprep.mubr.msk.f32.mxu0 %vm11230_vm2, %v11229_v4 }
0x3c07   : > { %10721 = vmatprep.subr.bf16.mxu0 %v11231_v8 }
0x3c09   : > { %10197 = vmatmul.mubr.msk.f32.vlgmr.msra.gmra.mrb[52].mxu0 %vm355_vm1, %v9682_v6 }
0x3c0a   : > { %10723 = vmatpush3.bf16.msra.mxu0 %v11347_v7  ;;  %10203 = vmatprep.mubr.msk.f32.mxu0 %vm11230_vm2, %v11229_v4 }
0x3c0b   : > { %10206 = vmatprep.subr.mxu0 %v11229_v4 }
0x3c0d   : > { %10204 = vmatmul.mubr.msk.f32.vlgmr.msra.gmra.mrb[54].mxu0 %vm432_vm3, %v5594_v58 }
0x3c0e   : > { %10207 = vmatpush3.msra.mxu0 %v12509_v36  ;;  %10208 = vmatprep.mubr.msk.f32.mxu0 %vm11230_vm2, %v11229_v4 }
0x3c0f   : > { %10724 = vmatprep.subr.bf16.mxu0 %v11231_v8 }
0x3cd8   : > { %v12623_v42 = vpop.f32.mrb[50].mxu0 }
0x3cd9   : > { %v10193_v52 = vpop.f32.mrb[51].mxu0 }
0x3cdc   : > { %v5585_v27 = vpop.f32.mrb[52].mxu0 }
0x3cdd   : > { %v5586_v37 = vadd.f32 %v12324_v62, %v5585_v27  ;;  %v10198_v59 = vpop.f32.mrb[53].mxu0 }
0x3cdf   : > { %vm5589_vm11 = vcmp.gt.f32.partialorder %v5586_v37, 0.0  ;;  %v5590_v38 = vmul.f32 0.01, %v5586_v37 }
0x3ce0   : > { %v5663_v45 = vpop.f32.mrb[54].mxu0 }
0x3ce1   : > { %v5591_v19 = vsel %vm5589_vm11, %v5586_v37, %v5590_v38  ;;  %v10205_v32 = vpop.f32.mrb[55].mxu0 }
0x3ce2   : > { %10209 = vmatmul.mubr.msk.f32.vlgmr.msra.gmra.mrb[56].mxu0 %vm355_vm1, %v5591_v19 }
0x3ce3   : > { %10726 = vmatpush1.bf16.msra.mxu0 %v12351_v60 }
0x3ce4   : > { %10727 = vmatprep.subr.bf16.mxu0 %v11231_v8 }
0x3ce7   : > { %10729 = vmatpush1.bf16.msra.mxu0 %v12357_v20 }
0x3ce8   : > { %10730 = vmatprep.subr.bf16.mxu0 %v11231_v8 }
0x3ceb   : > { %10732 = vmatpush1.bf16.msra.mxu0 %v12367_v53 }
0x3cec   : > { %10733 = vmatprep.subr.bf16.mxu0 %v11231_v8 }
0x3cef   : > { %10735 = vmatpush1.bf16.msra.mxu0 %v12377_v10 }
0x3cf0   : > { %10736 = vmatprep.subr.bf16.mxu0 %v11231_v8 }
0x3cf3   : > { %10738 = vmatpush1.bf16.msra.mxu0 %v12387_v0 }
0x3cf4   : > { %10739 = vmatprep.subr.bf16.mxu0 %v11231_v8 }
0x3cf7   : > { %10741 = vmatpush1.bf16.msra.mxu0 %v12397_v43 }
0x3cf8   : > { %10742 = vmatprep.subr.bf16.mxu0 %v11231_v8 }
0x3cfb   : > { %10744 = vmatpush1.bf16.msra.mxu0 %v12407_v48 }
0x3cfc   : > { %10745 = vmatprep.subr.bf16.mxu0 %v11231_v8 }
0x3cff   : > { %10747 = vmatpush1.bf16.msra.mxu0 %v12418_v1 }
0x3d00   : > { %10748 = vmatprep.subr.bf16.mxu0 %v11231_v8 }
0x3d03   : > { %10750 = vmatpush1.bf16.msra.mxu0 %v12428_v57 }
0x3d04   : > { %10751 = vmatprep.subr.bf16.mxu0 %v11231_v8 }
0x3d07   : > { %10753 = vmatpush1.bf16.msra.mxu0 %v12438_v25 }
0x3d08   : > { %10240 = vmatprep.subr.mxu0 %v11229_v4 }
0x3db5   : > { %v5736_v9 = vpop.f32.mrb[56].mxu0 }
0x3db6   : > { %v5740_v18 = vadd.f32 %v5736_v9, %v5663_v45  ;;  %v10210_v61 = vpop.f32.mrb[57].mxu0 }
0x3db8   : > { %v5741_v24 = vadd.f32 %v12337_v15, %v5740_v18 }
0x3dba   : > { %v5742_v5 = vsel %vm585_vm5, %v5741_v24, -inf }
0x3dbb   : > { %5743 = vmax.xlane.f32.xlu0 %v5742_v5 }
0x3e48   : > { %v5744_v11 = vpop.xlane.xlu0 %5743 }
0x3e49   : > { %v5745_v41 = vsub.f32 %v5741_v24, %v5744_v11 }
0x3e4b   : > { %v5746_v40 = vmul.f32 1.442695, %v5745_v41 }
0x3e4d   : > { %11112 = vpow2.f32 %v5746_v40 }
0x3e57   : > { %v11113_v12 = vpop.eup %11112 }
0x3e58   : > { %v5748_v22 = vsel %vm585_vm5, %v11113_v12, 0.0 }
0x3e59   : > { %5749 = vadd.xlane.f32.xlu1 %v5748_v22 }
0x3ee6   : > { %v5750_v31 = vpop.xlane.xlu1 %5749 }
0x3ee7   : > { %11114 = vrcp.f32 %v5750_v31 }
0x3ef1   : > { %v11115_v39 = vpop.eup %11114 }
0x3ef2   : > { %v5752_v33 = vmul.f32 %v11115_v39, %v11113_v12 }
0x3ef4   : > { %v5755_v51 = vmul.f32 %v11485_v63, %v5752_v33  ;;  %v5754_v34 = vmul.f32 %v11469_v56, %v5752_v33  ;;  %v5757_v6 = vmul.f32 %v11508_v13, %v5752_v33  ;;  %v5756_v58 = vmul.f32 %v11466_v55, %v5752_v33 }
0x3ef5   : > { %v5759_v52 = vmul.f32 %v11525_v21, %v5752_v33  ;;  %v5758_v27 = vmul.f32 %v11518_v16, %v5752_v33  ;;  %v5760_v37 = vmul.f32 %v11531_v23, %v5752_v33  ;;  %v5753_v19 = vmul.f32 %v11542_v28, %v5752_v33 }
0x3ef6   : > { %5766 = vrot.lane.b32.xlu1 %v5755_v51, %s11234_s25  ;;  %5762 = vrot.lane.b32.xlu0 %v5754_v34, %s11233_s20 }
0x3efa   : > { %5774 = vrot.lane.b32.xlu1 %v5757_v6, %s11235_s26  ;;  %5770 = vrot.lane.b32.xlu0 %v5756_v58, %s13533_s19 }
0x3efe   : > { %5782 = vrot.lane.b32.xlu1 %v5759_v52, %s13531_s9  ;;  %5778 = vrot.lane.b32.xlu0 %v5758_v27, %s13529_s30 }
0x3f02   : > { %5817 = vrot.lane.b32.xlu1 %v5736_v9, %s13527_s11  ;;  %5786 = vrot.lane.b32.xlu0 %v5760_v37, %s13538_s13 }
0x3f06   : > { %5896 = vrot.lane.b32.xlu0 %v5663_v45, %s13527_s11 }
0x3f68   : > { %v5767_v59 = vpop.permute.xlu1 %5766  ;;  %v5763_v38 = vpop.permute.xlu0 %5762 }
0x3f69   : > { %v5789_v32 = vsel %vm585_vm5, %v5753_v19, %v5763_v38 }
0x3f6a   : > { %v5790_v24 = vsel %vm634_vm14, %v5789_v32, %v5767_v59 }
0x3f6c   : > { %v5771_v18 = vpop.permute.xlu0 %5770  ;;  %v5775_v61 = vpop.permute.xlu1 %5774 }
0x3f6d   : > { %v5791_v5 = vsel %vm636_vm15, %v5790_v24, %v5771_v18 }
0x3f6e   : > { %v5792_v41 = vsel %vm638_vm0, %v5791_v5, %v5775_v61  ;;  %v6081_v5 = vstv %s6080_s23  ;;  %s7222_s23 = scalar_select %p7221_p3, 1, 0 }
0x3f6f   : > { %vm6082_vm12 = vcmp.eq.s32.totalorder %v6081_v5, 1 }
0x3f70   : > { %v5779_v11 = vpop.permute.xlu0 %5778  ;;  %v5783_v9 = vpop.permute.xlu1 %5782 }
0x3f71   : > { %v5793_v40 = vsel %vm640_vm4, %v5792_v41, %v5779_v11 }
0x3f72   : > { %v5794_v22 = vsel %vm642_vm8, %v5793_v40, %v5783_v9 }
0x3f74   : > { %v5787_v12 = vpop.permute.xlu0 %5786  ;;  %v5818_v31 = vpop.permute.xlu1 %5817 }
0x3f75   : > { %v5795_v45 = vsel %vm644_vm6, %v5783_v9, %v5787_v12 }
0x3f76   : > { %9686 = vmatprep.mubr.msk.f32.mxu0 %vm670_vm7, %v5795_v45 }
0x3f77   : > { %5888 = vmatmul.mubr.f32.vlgmr.msra.gmra.mrb[58].mxu0 %v5794_v22 }
0x3f78   : > { %10241 = vmatpush3.msra.mxu0 %v12570_v44  ;;  %10242 = vmatprep.mubr.msk.f32.mxu0 %vm11230_vm2, %v11229_v4  ;;  %v5897_v58 = vpop.permute.xlu0 %5896 }
0x3f79   : > { %10790 = vmatprep.subr.bf16.mxu0 %v11231_v8 }
0x404a   : > { %v5889_v39 = vpop.f32.mrb[58].mxu0 }
0x404b   : > { %v5890_v33 = vadd.f32 %v5889_v39, %v5818_v31  ;;  %v5891_v51 = vpop.f32.mrb[59].mxu0 }
0x404d   : > { %v5893_v34 = vadd.f32 %v12579_v3, %v5890_v33 }
0x404f   : > { %v5894_v6 = vmax.f32 %v5893_v34, 0.0 }
0x4051   : > { %10214 = vmatmul.mubr.msk.f32.vlgmr.msra.gmra.mrb[56].mxu1 %vm355_vm1, %v5894_v6 }
0x4052   : > { %10756 = vmatpush3.bf16.msra.mxu1 %v11593_v30  ;;  %10220 = vmatprep.mubr.msk.f32.mxu1 %vm11230_vm2, %v11229_v4 }
0x4053   : > { %10223 = vmatprep.subr.mxu1 %v11229_v4 }
0x4124   : > { %v5968_v52 = vpop.f32.mrb[56].mxu1 }
0x4125   : > { %v5969_v27 = vadd.f32 %v5968_v52, %v5897_v58  ;;  %v10215_v37 = vpop.f32.mrb[57].mxu1 }
0x4127   : > { %v5972_v59 = vadd.f32 %v12590_v46, %v5969_v27 }
0x4129   : > { %v9688_v38 = vmul.f32 -1.442695, %v5972_v59  ;;  %11116 = vtanh.f32 %v5972_v59 }
0x412b   : > { %11118 = vpow2.f32 %v9688_v38 }
0x4133   : > { %v11117_v19 = vpop.eup %11116 }
0x4134   : > { %5986 = vrot.lane.b32.xlu0 %v11117_v19, %s11235_s26 }
0x4135   : > { %v11119_v32 = vpop.eup %11118 }
0x4136   : > { %v5976_v18 = vadd.f32 1.0, %v11119_v32 }
0x4138   : > { %11120 = vrcp.f32 %v5976_v18 }
0x4142   : > { %v11121_v61 = vpop.eup %11120 }
0x4143   : > { %5981 = vrot.lane.b32.xlu1 %v11121_v61, %s13539_s16 }
0x41a6   : > { %v5987_v24 = vpop.permute.xlu0 %5986 }
0x41a7   : > { %v5989_v41 = vmul.f32 %v11121_v61, %v5987_v24 }
0x41b5   : > { %v5982_v11 = vpop.permute.xlu1 %5981 }
0x41b6   : > { %v5984_v9 = vmul.f32 %v5982_v11, %v12598_v35 }
0x41b8   : > { %v5990_v40 = vadd.f32 %v5989_v41, %v5984_v9 }
0x41ba   : > { %11122 = vtanh.f32 %v5990_v40  ;;  %v12691_v12 = vsel %vm6082_vm12, %v5990_v40, %v12598_v35  ;;  %v9690_v35 = vld [vmem:[%s11322_s17 + $0x50] sm:$0xff] }
0x41c4   : > { %v11123_v45 = vpop.eup %11122 }
0x41c5   : > { %5993 = vrot.lane.b32.xlu1 %v11123_v45, %s13536_s24 }
0x4237   : > { %v5994_v22 = vpop.permute.xlu1 %5993 }
0x4238   : > { %v5996_v31 = vmul.f32 %v11121_v61, %v5994_v22 }
0x423a   : > { %5998 = vrot.lane.b32.xlu0 %v5996_v31, %s13537_s12  ;;  %v12696_v39 = vsel %vm6082_vm12, %v5996_v31, %v12603_v14 }
0x423b   : > { %6164 = vrot.lane.b32.xlu1 %v12696_v39, %s13537_s12 }
0x42ac   : > { %v5999_v33 = vpop.permute.xlu0 %5998 }
0x42ad   : > { %10221 = vmatmul.mubr.msk.f32.vlgmr.msra.gmra.mrb[58].mxu1 %vm432_vm3, %v5999_v33  ;;  %v6165_v14 = vpop.permute.xlu1 %6164 }
0x42ae   : > { %10224 = vmatpush3.msra.mxu1 %v12302_v26  ;;  %10225 = vmatprep.mubr.msk.f32.mxu1 %vm11230_vm2, %v11229_v4 }
0x42af   : > { %10757 = vmatprep.subr.bf16.mxu1 %v11231_v8 }
0x42b1   : > { %10226 = vmatmul.mubr.msk.f32.vlgmr.msra.gmra.mrb[60].mxu1 %vm355_vm1, %v9690_v35 }
0x42b2   : > { %10759 = vmatpush3.bf16.msra.mxu1 %v11347_v7  ;;  %10232 = vmatprep.mubr.msk.f32.mxu1 %vm11230_vm2, %v11229_v4 }
0x42b3   : > { %10235 = vmatprep.subr.mxu1 %v11229_v4 }
0x42b5   : > { %10233 = vmatmul.mubr.msk.f32.vlgmr.msra.gmra.mrb[62].mxu1 %vm432_vm3, %v6165_v14 }
0x42b6   : > { %10236 = vmatpush3.msra.mxu1 %v12509_v36  ;;  %10237 = vmatprep.mubr.msk.f32.mxu1 %vm11230_vm2, %v11229_v4 }
0x42b7   : > { %10760 = vmatprep.subr.bf16.mxu1 %v11231_v8 }
0x4380   : > { %v12716_v26 = vpop.f32.mrb[58].mxu1 }
0x4381   : > { %v10222_v51 = vpop.f32.mrb[59].mxu1 }
0x4384   : > { %v6156_v34 = vpop.f32.mrb[60].mxu1 }
0x4385   : > { %v6157_v6 = vadd.f32 %v12324_v62, %v6156_v34  ;;  %v10227_v58 = vpop.f32.mrb[61].mxu1 }
0x4387   : > { %vm6160_vm13 = vcmp.gt.f32.partialorder %v6157_v6, 0.0  ;;  %v6161_v52 = vmul.f32 0.01, %v6157_v6 }
0x4388   : > { %v6234_v27 = vpop.f32.mrb[62].mxu1 }
0x4389   : > { %v6162_v37 = vsel %vm6160_vm13, %v6157_v6, %v6161_v52  ;;  %v10234_v59 = vpop.f32.mrb[63].mxu1 }
0x438a   : > { %10238 = vmatmul.mubr.msk.f32.vlgmr.msra.gmra.mrb[64].mxu1 %vm355_vm1, %v6162_v37 }
0x438b   : > { %10762 = vmatpush1.bf16.msra.mxu1 %v12351_v60 }
0x438c   : > { %10763 = vmatprep.subr.bf16.mxu1 %v11231_v8 }
0x438f   : > { %10765 = vmatpush1.bf16.msra.mxu1 %v12357_v20 }
0x4390   : > { %10766 = vmatprep.subr.bf16.mxu1 %v11231_v8 }
0x4393   : > { %10768 = vmatpush1.bf16.msra.mxu1 %v12367_v53 }
0x4394   : > { %10769 = vmatprep.subr.bf16.mxu1 %v11231_v8 }
0x4397   : > { %10771 = vmatpush1.bf16.msra.mxu1 %v12377_v10 }
0x4398   : > { %10772 = vmatprep.subr.bf16.mxu1 %v11231_v8 }
0x439b   : > { %10774 = vmatpush1.bf16.msra.mxu1 %v12387_v0 }
0x439c   : > { %10775 = vmatprep.subr.bf16.mxu1 %v11231_v8 }
0x439f   : > { %10777 = vmatpush1.bf16.msra.mxu1 %v12397_v43 }
0x43a0   : > { %10778 = vmatprep.subr.bf16.mxu1 %v11231_v8 }
0x43a3   : > { %10780 = vmatpush1.bf16.msra.mxu1 %v12407_v48 }
0x43a4   : > { %10781 = vmatprep.subr.bf16.mxu1 %v11231_v8 }
0x43a7   : > { %10783 = vmatpush1.bf16.msra.mxu1 %v12418_v1 }
0x43a8   : > { %10784 = vmatprep.subr.bf16.mxu1 %v11231_v8 }
0x43ab   : > { %10786 = vmatpush1.bf16.msra.mxu1 %v12428_v57 }
0x43ac   : > { %10787 = vmatprep.subr.bf16.mxu1 %v11231_v8 }
0x43af   : > { %10789 = vmatpush1.bf16.msra.mxu1 %v12438_v25 }
0x43b0   : > { %10269 = vmatprep.subr.mxu1 %v11229_v4 }
0x445d   : > { %v6307_v62 = vpop.f32.mrb[64].mxu1 }
0x445e   : > { %v6311_v60 = vadd.f32 %v6307_v62, %v6234_v27  ;;  %v10239_v20 = vpop.f32.mrb[65].mxu1 }
0x4460   : > { %v6312_v53 = vadd.f32 %v12337_v15, %v6311_v60 }
0x4462   : > { %v6313_v10 = vsel %vm585_vm5, %v6312_v53, -inf }
0x4463   : > { %6314 = vmax.xlane.f32.xlu0 %v6313_v10 }
0x44f0   : > { %v6315_v0 = vpop.xlane.xlu0 %6314 }
0x44f1   : > { %v6316_v43 = vsub.f32 %v6312_v53, %v6315_v0 }
0x44f3   : > { %v6317_v48 = vmul.f32 1.442695, %v6316_v43 }
0x44f5   : > { %11124 = vpow2.f32 %v6317_v48 }
0x44ff   : > { %v11125_v1 = vpop.eup %11124 }
0x4500   : > { %v6319_v57 = vsel %vm585_vm5, %v11125_v1, 0.0 }
0x4501   : > { %6320 = vadd.xlane.f32.xlu1 %v6319_v57 }
0x458e   : > { %v6321_v38 = vpop.xlane.xlu1 %6320 }
0x458f   : > { %11126 = vrcp.f32 %v6321_v38 }
0x4599   : > { %v11127_v25 = vpop.eup %11126 }
0x459a   : > { %v6323_v19 = vmul.f32 %v11127_v25, %v11125_v1 }
0x459c   : > { %v6326_v32 = vmul.f32 %v11485_v63, %v6323_v19  ;;  %v6325_v18 = vmul.f32 %v11469_v56, %v6323_v19  ;;  %v6328_v15 = vmul.f32 %v11508_v13, %v6323_v19  ;;  %v6327_v61 = vmul.f32 %v11466_v55, %v6323_v19 }
0x459d   : > { %v6330_v24 = vmul.f32 %v11525_v21, %v6323_v19  ;;  %v6329_v5 = vmul.f32 %v11518_v16, %v6323_v19  ;;  %v6331_v11 = vmul.f32 %v11531_v23, %v6323_v19  ;;  %v6324_v40 = vmul.f32 %v11542_v28, %v6323_v19 }
0x459e   : > { %6337 = vrot.lane.b32.xlu1 %v6326_v32, %s11234_s25  ;;  %6333 = vrot.lane.b32.xlu0 %v6325_v18, %s11233_s20 }
0x45a2   : > { %6345 = vrot.lane.b32.xlu1 %v6328_v15, %s11235_s26  ;;  %6341 = vrot.lane.b32.xlu0 %v6327_v61, %s13533_s19  ;;  %v6652_v15 = vstv %s6651_s22  ;;  %s7793_s22 = scalar_select %p7792_p4, 1, 0 }
0x45a3   : > { %vm6653_vm9 = vcmp.eq.s32.totalorder %v6652_v15, 1 }
0x45a6   : > { %6353 = vrot.lane.b32.xlu1 %v6330_v24, %s13531_s9  ;;  %6349 = vrot.lane.b32.xlu0 %v6329_v5, %s13529_s30  ;;  %s8933_s30 = sadd.s32 14, %s11308_s29 }
0x45a7   : > { %p8934_p6 = scmp.lt.s32.totalorder %s8933_s30, 20  ;;  %s11246_s30 = smov 72  }
0x45aa   : > { %6388 = vrot.lane.b32.xlu1 %v6307_v62, %s13527_s11  ;;  %6357 = vrot.lane.b32.xlu0 %v6331_v11, %s13538_s13 }
0x45ae   : > { %6467 = vrot.lane.b32.xlu0 %v6234_v27, %s13527_s11  ;;  %s8935_s11 = scalar_select %p8934_p6, 1, 0 }
0x4610   : > { %v6338_v41 = vpop.permute.xlu1 %6337  ;;  %v6334_v9 = vpop.permute.xlu0 %6333 }
0x4611   : > { %v6360_v45 = vsel %vm585_vm5, %v6324_v40, %v6334_v9 }
0x4612   : > { %v6361_v33 = vsel %vm634_vm14, %v6360_v45, %v6338_v41 }
0x4614   : > { %v6342_v22 = vpop.permute.xlu0 %6341  ;;  %v6346_v31 = vpop.permute.xlu1 %6345 }
0x4615   : > { %v6362_v35 = vsel %vm636_vm15, %v6361_v33, %v6342_v22  ;;  %v9698_v33 = vld [vmem:[%s11322_s17 + $0x58] sm:$0xff] }
0x4616   : > { %v6363_v51 = vsel %vm638_vm0, %v6362_v35, %v6346_v31 }
0x4618   : > { %v6350_v14 = vpop.permute.xlu0 %6349  ;;  %v6354_v34 = vpop.permute.xlu1 %6353 }
0x4619   : > { %v6364_v6 = vsel %vm640_vm4, %v6363_v51, %v6350_v14 }
0x461a   : > { %v6365_v27 = vsel %vm642_vm8, %v6364_v6, %v6354_v34 }
0x461c   : > { %v6358_v58 = vpop.permute.xlu0 %6357  ;;  %v6389_v37 = vpop.permute.xlu1 %6388 }
0x461d   : > { %v6366_v52 = vsel %vm644_vm6, %v6354_v34, %v6358_v58  ;;  %v12819_v34 = vld [vmem:[%s13515_s5] ss:$0 sm:$0xff] }
0x461e   : > { %9694 = vmatprep.mubr.msk.f32.mxu1 %vm670_vm7, %v6366_v52 }
0x461f   : > { %6459 = vmatmul.mubr.f32.vlgmr.msra.gmra.mrb[66].mxu1 %v6365_v27 }
0x4620   : > { %10270 = vmatpush3.msra.mxu1 %v12570_v44  ;;  %10271 = vmatprep.mubr.msk.f32.mxu1 %vm11230_vm2, %v11229_v4  ;;  %v6468_v10 = vpop.permute.xlu0 %6467 }
0x4621   : > { %10826 = vmatprep.subr.bf16.mxu1 %v11231_v8 }
0x46f2   : > { %v6460_v59 = vpop.f32.mrb[66].mxu1 }
0x46f3   : > { %v6461_v62 = vadd.f32 %v6460_v59, %v6389_v37  ;;  %v6462_v60 = vpop.f32.mrb[67].mxu1 }
0x46f5   : > { %v6464_v20 = vadd.f32 %v12579_v3, %v6461_v62 }
0x46f7   : > { %v6465_v53 = vmax.f32 %v6464_v20, 0.0  ;;  %v12832_v20 = vld [vmem:[%s13515_s5 + $0x1] ss:$0 sm:$0xff] }
0x46f9   : > { %10243 = vmatmul.mubr.msk.f32.vlgmr.msra.gmra.mrb[60].mxu0 %vm355_vm1, %v6465_v53 }
0x46fa   : > { %10792 = vmatpush3.bf16.msra.mxu0 %v11593_v30  ;;  %10249 = vmatprep.mubr.msk.f32.mxu0 %vm11230_vm2, %v11229_v4 }
0x46fb   : > { %10252 = vmatprep.subr.mxu0 %v11229_v4 }
0x47cc   : > { %v6539_v0 = vpop.f32.mrb[60].mxu0 }
0x47cd   : > { %v6540_v43 = vadd.f32 %v6539_v0, %v6468_v10  ;;  %v10244_v48 = vpop.f32.mrb[61].mxu0 }
0x47cf   : > { %v6543_v1 = vadd.f32 %v12590_v46, %v6540_v43 }
0x47d1   : > { %v9696_v57 = vmul.f32 -1.442695, %v6543_v1  ;;  %11128 = vtanh.f32 %v6543_v1 }
0x47d3   : > { %11130 = vpow2.f32 %v9696_v57 }
0x47db   : > { %v11129_v38 = vpop.eup %11128 }
0x47dc   : > { %6557 = vrot.lane.b32.xlu0 %v11129_v38, %s11235_s26  ;;  %v6938_v38 = vld [vmem:[%s13513_s3] sm:$0xff] }
0x47dd   : > { %v11131_v25 = vpop.eup %11130 }
0x47de   : > { %v6547_v19 = vadd.f32 1.0, %v11131_v25  ;;  %v6939_v25 = vld [vmem:[%s13513_s3 + $0x8] sm:$0xff] }
0x47e0   : > { %11132 = vrcp.f32 %v6547_v19  ;;  %v6940_v19 = vld [vmem:[%s13513_s3 + $0x10] sm:$0xff] }
0x47ea   : > { %v11133_v32 = vpop.eup %11132 }
0x47eb   : > { %6552 = vrot.lane.b32.xlu1 %v11133_v32, %s13539_s16 }
0x484e   : > { %v6558_v18 = vpop.permute.xlu0 %6557 }
0x484f   : > { %v6560_v24 = vmul.f32 %v11133_v32, %v6558_v18  ;;  %v6941_v18 = vld [vmem:[%s13513_s3 + $0x18] sm:$0xff] }
0x4850   : > { %v12852_v15 = vpack.c.bf16 %v6941_v18, %v6940_v19 }
0x485d   : > { %v6553_v61 = vpop.permute.xlu1 %6552 }
0x485e   : > { %v6555_v5 = vmul.f32 %v6553_v61, %v12691_v12  ;;  %v6942_v61 = vld [vmem:[%s13513_s3 + $0x20] sm:$0xff] }
0x4860   : > { %v6561_v11 = vadd.f32 %v6560_v24, %v6555_v5  ;;  %v6943_v24 = vld [vmem:[%s13513_s3 + $0x28] sm:$0xff] }
0x4861   : > { %v12862_v5 = vpack.c.bf16 %v6943_v24, %v6942_v61 }
0x4862   : > { %11134 = vtanh.f32 %v6561_v11  ;;  %v12784_v41 = vsel %vm6653_vm9, %v6561_v11, %v12691_v12  ;;  %v12797_v12 = vld [vmem:[%s13514_s4] sm:$0xff]  ;;  %v6944_v11 = vld [vmem:[%s13513_s3 + $0x30] sm:$0xff] }
0x486c   : > { %v11135_v9 = vpop.eup %11134 }
0x486d   : > { %6564 = vrot.lane.b32.xlu1 %v11135_v9, %s13536_s24  ;;  %v6945_v9 = vld [vmem:[%s13513_s3 + $0x38] sm:$0xff] }
0x48df   : > { %v6565_v40 = vpop.permute.xlu1 %6564 }
0x48e0   : > { %v6567_v45 = vmul.f32 %v11133_v32, %v6565_v40  ;;  %v12846_v32 = vpack.c.bf16 %v6939_v25, %v6938_v38  ;;  %v12872_v40 = vpack.c.bf16 %v6945_v9, %v6944_v11 }
0x48e2   : > { %6569 = vrot.lane.b32.xlu0 %v6567_v45, %s13537_s12  ;;  %v12789_v22 = vsel %vm6653_vm9, %v6567_v45, %v12696_v39  ;;  %v6946_v45 = vld [vmem:[%s13513_s3 + $0x40] sm:$0xff] }
0x48e3   : > { %6735 = vrot.lane.b32.xlu1 %v12789_v22, %s13537_s12 }
0x4954   : > { %v6570_v31 = vpop.permute.xlu0 %6569 }
0x4955   : > { %10250 = vmatmul.mubr.msk.f32.vlgmr.msra.gmra.mrb[62].mxu0 %vm432_vm3, %v6570_v31  ;;  %v6736_v39 = vpop.permute.xlu1 %6735  ;;  %v6947_v31 = vld [vmem:[%s13513_s3 + $0x48] sm:$0xff] }
0x4956   : > { %10253 = vmatpush3.msra.mxu0 %v12797_v12  ;;  %10254 = vmatprep.mubr.msk.f32.mxu0 %vm11230_vm2, %v11229_v4 }
0x4957   : > { %10793 = vmatprep.subr.bf16.mxu0 %v11231_v8 }
0x4959   : > { %10255 = vmatmul.mubr.msk.f32.vlgmr.msra.gmra.mrb[64].mxu0 %vm355_vm1, %v9698_v33  ;;  %v12882_v33 = vpack.c.bf16 %v6947_v31, %v6946_v45 }
0x495a   : > { %10795 = vmatpush3.bf16.msra.mxu0 %v11347_v7  ;;  %10261 = vmatprep.mubr.msk.f32.mxu0 %vm11230_vm2, %v11229_v4 }
0x495b   : > { %10264 = vmatprep.subr.mxu0 %v11229_v4 }
0x495d   : > { %10262 = vmatmul.mubr.msk.f32.vlgmr.msra.gmra.mrb[66].mxu0 %vm432_vm3, %v6736_v39  ;;  %v6948_v39 = vld [vmem:[%s13513_s3 + $0x50] sm:$0xff] }
0x495e   : > { %10265 = vmatpush3.msra.mxu0 %v12509_v36  ;;  %10266 = vmatprep.mubr.msk.f32.mxu0 %vm11230_vm2, %v11229_v4 }
0x495f   : > { %10796 = vmatprep.subr.bf16.mxu0 %v11231_v8 }
0x4a28   : > { %v12814_v35 = vpop.f32.mrb[62].mxu0 }
0x4a29   : > { %v10251_v14 = vpop.f32.mrb[63].mxu0 }
0x4a2a   : > { %v6949_v14 = vld [vmem:[%s13513_s3 + $0x58] sm:$0xff] }
0x4a2c   : > { %v6727_v51 = vpop.f32.mrb[64].mxu0 }
0x4a2d   : > { %v6728_v6 = vadd.f32 %v12819_v34, %v6727_v51  ;;  %v10256_v58 = vpop.f32.mrb[65].mxu0  ;;  %v12892_v51 = vpack.c.bf16 %v6949_v14, %v6948_v39 }
0x4a2e   : > { %v6951_v58 = vld [vmem:[%s13513_s3 + $0x68] sm:$0xff] }
0x4a2f   : > { %vm6731_vm10 = vcmp.gt.f32.partialorder %v6728_v6, 0.0  ;;  %v6732_v52 = vmul.f32 0.01, %v6728_v6 }
0x4a30   : > { %v12822_v36 = vpop.f32.mrb[66].mxu0 }
0x4a31   : > { %v6733_v27 = vsel %vm6731_vm10, %v6728_v6, %v6732_v52  ;;  %v10263_v37 = vpop.f32.mrb[67].mxu0  ;;  %v6950_v6 = vld [vmem:[%s13513_s3 + $0x60] sm:$0xff] }
0x4a32   : > { %10267 = vmatmul.mubr.msk.f32.vlgmr.msra.gmra.mrb[68].mxu0 %vm355_vm1, %v6733_v27  ;;  %v12902_v52 = vpack.c.bf16 %v6951_v58, %v6950_v6  ;;  %v6952_v37 = vld [vmem:[%s13513_s3 + $0x70] sm:$0xff] }
0x4a33   : > { %10798 = vmatpush1.bf16.msra.mxu0 %v12846_v32 }
0x4a34   : > { %10799 = vmatprep.subr.bf16.mxu0 %v11231_v8 }
0x4a37   : > { %10801 = vmatpush1.bf16.msra.mxu0 %v12852_v15 }
0x4a38   : > { %10802 = vmatprep.subr.bf16.mxu0 %v11231_v8 }
0x4a3b   : > { %10804 = vmatpush1.bf16.msra.mxu0 %v12862_v5 }
0x4a3c   : > { %10805 = vmatprep.subr.bf16.mxu0 %v11231_v8 }
0x4a3f   : > { %10807 = vmatpush1.bf16.msra.mxu0 %v12872_v40 }
0x4a40   : > { %10808 = vmatprep.subr.bf16.mxu0 %v11231_v8 }
0x4a43   : > { %10810 = vmatpush1.bf16.msra.mxu0 %v12882_v33 }
0x4a44   : > { %10811 = vmatprep.subr.bf16.mxu0 %v11231_v8 }
0x4a47   : > { %10813 = vmatpush1.bf16.msra.mxu0 %v12892_v51 }
0x4a48   : > { %10814 = vmatprep.subr.bf16.mxu0 %v11231_v8 }
0x4a4b   : > { %10816 = vmatpush1.bf16.msra.mxu0 %v12902_v52 }
0x4a4c   : > { %10817 = vmatprep.subr.bf16.mxu0 %v11231_v8 }
0x4b05   : > { %v12825_v59 = vpop.f32.mrb[68].mxu0 }
0x4b06   : > { %v6882_v62 = vadd.f32 %v12825_v59, %v12822_v36  ;;  %v10268_v60 = vpop.f32.mrb[69].mxu0 }
0x4b08   : > { %v6883_v53 = vadd.f32 %v12832_v20, %v6882_v62  ;;  %v6953_v62 = vld [vmem:[%s13513_s3 + $0x78] sm:$0xff] }
0x4b09   : > { %v12913_v60 = vpack.c.bf16 %v6953_v62, %v6952_v37 }
0x4b0a   : > { %v6884_v10 = vsel %vm585_vm5, %v6883_v53, -inf }
0x4b0b   : > { %6885 = vmax.xlane.f32.xlu0 %v6884_v10  ;;  %10819 = vmatpush1.bf16.msra.mxu0 %v12913_v60  ;;  %v6955_v10 = vld [vmem:[%s13513_s3 + $0x88] sm:$0xff] }
0x4b0c   : > { %10820 = vmatprep.subr.bf16.mxu0 %v11231_v8 }
0x4b98   : > { %v6886_v0 = vpop.xlane.xlu0 %6885 }
0x4b99   : > { %v6887_v43 = vsub.f32 %v6883_v53, %v6886_v0  ;;  %v6954_v53 = vld [vmem:[%s13513_s3 + $0x80] sm:$0xff] }
0x4b9a   : > { %v12923_v0 = vpack.c.bf16 %v6955_v10, %v6954_v53 }
0x4b9b   : > { %v6888_v48 = vmul.f32 1.442695, %v6887_v43 }
0x4b9c   : > { %10822 = vmatpush1.bf16.msra.mxu0 %v12923_v0 }
0x4b9d   : > { %11136 = vpow2.f32 %v6888_v48  ;;  %10823 = vmatprep.subr.bf16.mxu0 %v11231_v8  ;;  %v6956_v48 = vld [vmem:[%s13513_s3 + $0x90] sm:$0xff] }
0x4ba7   : > { %v11137_v1 = vpop.eup %11136 }
0x4ba8   : > { %v6890_v57 = vsel %vm585_vm5, %v11137_v1, 0.0 }
0x4ba9   : > { %6891 = vadd.xlane.f32.xlu1 %v6890_v57  ;;  %v6957_v57 = vld [vmem:[%s13513_s3 + $0x98] sm:$0xff] }
0x4baa   : > { %v12933_v25 = vpack.c.bf16 %v6957_v57, %v6956_v48 }
0x4bac   : > { %10825 = vmatpush1.bf16.msra.mxu0 %v12933_v25 }
0x4bad   : > { %10298 = vmatprep.subr.mxu0 %v11229_v4 }
0x4c36   : > { %v6892_v27 = vpop.xlane.xlu1 %6891 }
0x4c37   : > { %11138 = vrcp.f32 %v6892_v27 }
0x4c41   : > { %v11139_v43 = vpop.eup %11138 }
0x4c42   : > { %v6894_v38 = vmul.f32 %v11139_v43, %v11137_v1 }
0x4c44   : > { %v6897_v19 = vmul.f32 %v11485_v63, %v6894_v38  ;;  %v6896_v18 = vmul.f32 %v11469_v56, %v6894_v38  ;;  %v6899_v61 = vmul.f32 %v11508_v13, %v6894_v38  ;;  %v6898_v24 = vmul.f32 %v11466_v55, %v6894_v38 }
0x4c45   : > { %v6901_v1 = vmul.f32 %v11525_v21, %v6894_v38  ;;  %v6900_v11 = vmul.f32 %v11518_v16, %v6894_v38  ;;  %v6902_v9 = vmul.f32 %v11531_v23, %v6894_v38  ;;  %v6895_v39 = vmul.f32 %v11542_v28, %v6894_v38 }
0x4c46   : > { %6908 = vrot.lane.b32.xlu1 %v6897_v19, %s11234_s25  ;;  %6904 = vrot.lane.b32.xlu0 %v6896_v18, %s11233_s20 }
0x4c4a   : > { %6916 = vrot.lane.b32.xlu1 %v6899_v61, %s11235_s26  ;;  %6912 = vrot.lane.b32.xlu0 %v6898_v24, %s13533_s19 }
0x4c4e   : > { %6924 = vrot.lane.b32.xlu1 %v6901_v1, %s13531_s9  ;;  %6920 = vrot.lane.b32.xlu0 %v6900_v11, %s13540_s15 }
0x4c52   : > { %6959 = vrot.lane.b32.xlu1 %v12825_v59, %s13541_s18  ;;  %6928 = vrot.lane.b32.xlu0 %v6902_v9, %s13538_s13 }
0x4c56   : > { %7038 = vrot.lane.b32.xlu0 %v12822_v36, %s13541_s18 }
0x4cb8   : > { %v6909_v45 = vpop.permute.xlu1 %6908  ;;  %v6905_v31 = vpop.permute.xlu0 %6904 }
0x4cb9   : > { %v6931_v14 = vsel %vm585_vm5, %v6895_v39, %v6905_v31 }
0x4cba   : > { %v6932_v27 = vsel %vm634_vm14, %v6931_v14, %v6909_v45 }
0x4cbc   : > { %v6913_v6 = vpop.permute.xlu0 %6912  ;;  %v6917_v58 = vpop.permute.xlu1 %6916 }
0x4cbd   : > { %v6933_v37 = vsel %vm636_vm15, %v6932_v27, %v6913_v6  ;;  %v7223_v27 = vstv %s7222_s23  ;;  %s8364_s23 = scalar_select %p8363_p5, 1, 0 }
0x4cbe   : > { %v6934_v59 = vsel %vm638_vm0, %v6933_v37, %v6917_v58  ;;  %vm7224_vm11 = vcmp.eq.s32.totalorder %v7223_v27, 1 }
0x4cc0   : > { %v6921_v62 = vpop.permute.xlu0 %6920  ;;  %v6925_v53 = vpop.permute.xlu1 %6924 }
0x4cc1   : > { %v6935_v10 = vsel %vm640_vm4, %v6934_v59, %v6921_v62 }
0x4cc2   : > { %v6936_v48 = vsel %vm642_vm8, %v6935_v10, %v6925_v53 }
0x4cc4   : > { %v6929_v43 = vpop.permute.xlu0 %6928  ;;  %v6960_v57 = vpop.permute.xlu1 %6959 }
0x4cc5   : > { %v6937_v36 = vsel %vm644_vm6, %v6925_v53, %v6929_v43 }
0x4cc6   : > { %9702 = vmatprep.mubr.msk.f32.mxu0 %vm670_vm7, %v6937_v36 }
0x4cc7   : > { %7030 = vmatmul.mubr.f32.vlgmr.msra.gmra.mrb[70].mxu0 %v6936_v48 }
0x4cc8   : > { %10299 = vmatpush3.msra.mxu0 %v12570_v44  ;;  %10300 = vmatprep.mubr.msk.f32.mxu0 %vm11230_vm2, %v11229_v4  ;;  %v7039_v44 = vpop.permute.xlu0 %7038 }
0x4cc9   : > { %10862 = vmatprep.subr.bf16.mxu0 %v11231_v8 }
0x4d9a   : > { %v7031_v38 = vpop.f32.mrb[70].mxu0 }
0x4d9b   : > { %v7032_v19 = vadd.f32 %v7031_v38, %v6960_v57  ;;  %v7033_v18 = vpop.f32.mrb[71].mxu0  ;;  %v13004_v38 = vld [vmem:[%s13514_s4 + $0x18] sm:$0xff] }
0x4d9d   : > { %v7035_v61 = vadd.f32 %v12579_v3, %v7032_v19 }
0x4d9f   : > { %v7036_v24 = vmax.f32 %v7035_v61, 0.0 }
0x4da1   : > { %10272 = vmatmul.mubr.msk.f32.vlgmr.msra.gmra.mrb[68].mxu1 %vm355_vm1, %v7036_v24 }
0x4da2   : > { %10828 = vmatpush3.bf16.msra.mxu1 %v11593_v30  ;;  %10278 = vmatprep.mubr.msk.f32.mxu1 %vm11230_vm2, %v11229_v4 }
0x4da3   : > { %10281 = vmatprep.subr.mxu1 %v11229_v4 }
0x4e74   : > { %v7110_v1 = vpop.f32.mrb[68].mxu1 }
0x4e75   : > { %v7111_v11 = vadd.f32 %v7110_v1, %v7039_v44  ;;  %v10273_v9 = vpop.f32.mrb[69].mxu1 }
0x4e77   : > { %v7114_v45 = vadd.f32 %v12590_v46, %v7111_v11 }
0x4e79   : > { %v9704_v31 = vmul.f32 -1.442695, %v7114_v45  ;;  %11140 = vtanh.f32 %v7114_v45 }
0x4e7b   : > { %11142 = vpow2.f32 %v9704_v31 }
0x4e83   : > { %v11141_v3 = vpop.eup %11140 }
0x4e84   : > { %7128 = vrot.lane.b32.xlu0 %v11141_v3, %s11235_s26 }
0x4e85   : > { %v11143_v39 = vpop.eup %11142 }
0x4e86   : > { %v7118_v14 = vadd.f32 1.0, %v11143_v39 }
0x4e88   : > { %11144 = vrcp.f32 %v7118_v14 }
0x4e92   : > { %v11145_v6 = vpop.eup %11144 }
0x4e93   : > { %7123 = vrot.lane.b32.xlu1 %v11145_v6, %s13539_s16 }
0x4ef6   : > { %v7129_v58 = vpop.permute.xlu0 %7128 }
0x4ef7   : > { %v7131_v62 = vmul.f32 %v11145_v6, %v7129_v58 }
0x4f05   : > { %v7124_v37 = vpop.permute.xlu1 %7123 }
0x4f06   : > { %v7126_v46 = vmul.f32 %v7124_v37, %v12784_v41 }
0x4f08   : > { %v7132_v59 = vadd.f32 %v7131_v62, %v7126_v46 }
0x4f0a   : > { %11146 = vtanh.f32 %v7132_v59  ;;  %v12980_v53 = vsel %vm7224_vm11, %v7132_v59, %v12784_v41  ;;  %v9706_v41 = vld [vmem:[%s11322_s17 + $0x60] sm:$0xff] }
0x4f14   : > { %v11147_v10 = vpop.eup %11146 }
0x4f15   : > { %7135 = vrot.lane.b32.xlu1 %v11147_v10, %s13536_s24 }
0x4f87   : > { %v7136_v43 = vpop.permute.xlu1 %7135 }
0x4f88   : > { %v7138_v36 = vmul.f32 %v11145_v6, %v7136_v43 }
0x4f8a   : > { %7140 = vrot.lane.b32.xlu0 %v7138_v36, %s13537_s12  ;;  %v12985_v48 = vsel %vm7224_vm11, %v7138_v36, %v12789_v22 }
0x4f8b   : > { %7306 = vrot.lane.b32.xlu1 %v12985_v48, %s13537_s12 }
0x4ffc   : > { %v7141_v57 = vpop.permute.xlu0 %7140 }
0x4ffd   : > { %10279 = vmatmul.mubr.msk.f32.vlgmr.msra.gmra.mrb[70].mxu1 %vm432_vm3, %v7141_v57  ;;  %v7307_v22 = vpop.permute.xlu1 %7306 }
0x4ffe   : > { %10282 = vmatpush3.msra.mxu1 %v12797_v12  ;;  %10283 = vmatprep.mubr.msk.f32.mxu1 %vm11230_vm2, %v11229_v4 }
0x4fff   : > { %10829 = vmatprep.subr.bf16.mxu1 %v11231_v8 }
0x5001   : > { %10284 = vmatmul.mubr.msk.f32.vlgmr.msra.gmra.mrb[72].mxu1 %vm355_vm1, %v9706_v41 }
0x5002   : > { %10831 = vmatpush3.bf16.msra.mxu1 %v11347_v7  ;;  %10290 = vmatprep.mubr.msk.f32.mxu1 %vm11230_vm2, %v11229_v4 }
0x5003   : > { %10293 = vmatprep.subr.mxu1 %v11229_v4 }
0x5005   : > { %10291 = vmatmul.mubr.msk.f32.vlgmr.msra.gmra.mrb[74].mxu1 %vm432_vm3, %v7307_v22 }
0x5006   : > { %10294 = vmatpush3.msra.mxu1 %v13004_v38  ;;  %10295 = vmatprep.mubr.msk.f32.mxu1 %vm11230_vm2, %v11229_v4 }
0x5007   : > { %10832 = vmatprep.subr.bf16.mxu1 %v11231_v8 }
0x50d0   : > { %v13010_v19 = vpop.f32.mrb[70].mxu1 }
0x50d1   : > { %v10280_v18 = vpop.f32.mrb[71].mxu1 }
0x50d4   : > { %v7298_v61 = vpop.f32.mrb[72].mxu1 }
0x50d5   : > { %v7299_v24 = vadd.f32 %v12819_v34, %v7298_v61  ;;  %v10285_v44 = vpop.f32.mrb[73].mxu1 }
0x50d7   : > { %vm7302_vm12 = vcmp.gt.f32.partialorder %v7299_v24, 0.0  ;;  %v7303_v1 = vmul.f32 0.01, %v7299_v24 }
0x50d8   : > { %v7376_v11 = vpop.f32.mrb[74].mxu1 }
0x50d9   : > { %v7304_v9 = vsel %vm7302_vm12, %v7299_v24, %v7303_v1  ;;  %v10292_v45 = vpop.f32.mrb[75].mxu1 }
0x50da   : > { %10296 = vmatmul.mubr.msk.f32.vlgmr.msra.gmra.mrb[76].mxu1 %vm355_vm1, %v7304_v9 }
0x50db   : > { %10834 = vmatpush1.bf16.msra.mxu1 %v12846_v32 }
0x50dc   : > { %10835 = vmatprep.subr.bf16.mxu1 %v11231_v8 }
0x50df   : > { %10837 = vmatpush1.bf16.msra.mxu1 %v12852_v15 }
0x50e0   : > { %10838 = vmatprep.subr.bf16.mxu1 %v11231_v8 }
0x50e3   : > { %10840 = vmatpush1.bf16.msra.mxu1 %v12862_v5 }
0x50e4   : > { %10841 = vmatprep.subr.bf16.mxu1 %v11231_v8 }
0x50e7   : > { %10843 = vmatpush1.bf16.msra.mxu1 %v12872_v40 }
0x50e8   : > { %10844 = vmatprep.subr.bf16.mxu1 %v11231_v8 }
0x50eb   : > { %10846 = vmatpush1.bf16.msra.mxu1 %v12882_v33 }
0x50ec   : > { %10847 = vmatprep.subr.bf16.mxu1 %v11231_v8 }
0x50ef   : > { %10849 = vmatpush1.bf16.msra.mxu1 %v12892_v51 }
0x50f0   : > { %10850 = vmatprep.subr.bf16.mxu1 %v11231_v8 }
0x50f3   : > { %10852 = vmatpush1.bf16.msra.mxu1 %v12902_v52 }
0x50f4   : > { %10853 = vmatprep.subr.bf16.mxu1 %v11231_v8 }
0x50f7   : > { %10855 = vmatpush1.bf16.msra.mxu1 %v12913_v60 }
0x50f8   : > { %10856 = vmatprep.subr.bf16.mxu1 %v11231_v8 }
0x50fb   : > { %10858 = vmatpush1.bf16.msra.mxu1 %v12923_v0 }
0x50fc   : > { %10859 = vmatprep.subr.bf16.mxu1 %v11231_v8 }
0x50ff   : > { %10861 = vmatpush1.bf16.msra.mxu1 %v12933_v25 }
0x5100   : > { %10327 = vmatprep.subr.mxu1 %v11229_v4 }
0x51ad   : > { %v7449_v31 = vpop.f32.mrb[76].mxu1 }
0x51ae   : > { %v7453_v3 = vadd.f32 %v7449_v31, %v7376_v11  ;;  %v10297_v39 = vpop.f32.mrb[77].mxu1 }
0x51b0   : > { %v7454_v14 = vadd.f32 %v12832_v20, %v7453_v3 }
0x51b2   : > { %v7455_v6 = vsel %vm585_vm5, %v7454_v14, -inf }
0x51b3   : > { %7456 = vmax.xlane.f32.xlu0 %v7455_v6 }
0x5240   : > { %v7457_v58 = vpop.xlane.xlu0 %7456 }
0x5241   : > { %v7458_v27 = vsub.f32 %v7454_v14, %v7457_v58 }
0x5243   : > { %v7459_v37 = vmul.f32 1.442695, %v7458_v27 }
0x5245   : > { %11148 = vpow2.f32 %v7459_v37 }
0x524f   : > { %v11149_v62 = vpop.eup %11148 }
0x5250   : > { %v7461_v46 = vsel %vm585_vm5, %v11149_v62, 0.0 }
0x5251   : > { %7462 = vadd.xlane.f32.xlu1 %v7461_v46 }
0x52de   : > { %v7463_v59 = vpop.xlane.xlu1 %7462 }
0x52df   : > { %11150 = vrcp.f32 %v7463_v59  ;;  %v13065_v59 = vld [vmem:[%s13514_s4 + $0x20] sm:$0xff] }
0x52e9   : > { %v11151_v10 = vpop.eup %11150 }
0x52ea   : > { %v7465_v43 = vmul.f32 %v11151_v10, %v11149_v62 }
0x52ec   : > { %v7468_v36 = vmul.f32 %v11485_v63, %v7465_v43  ;;  %v7467_v57 = vmul.f32 %v11469_v56, %v7465_v43  ;;  %v7470_v41 = vmul.f32 %v11508_v13, %v7465_v43  ;;  %v7469_v22 = vmul.f32 %v11466_v55, %v7465_v43 }
0x52ed   : > { %v7472_v18 = vmul.f32 %v11525_v21, %v7465_v43  ;;  %v7471_v61 = vmul.f32 %v11518_v16, %v7465_v43  ;;  %v7473_v24 = vmul.f32 %v11531_v23, %v7465_v43  ;;  %v7466_v9 = vmul.f32 %v11542_v28, %v7465_v43 }
0x52ee   : > { %7479 = vrot.lane.b32.xlu1 %v7468_v36, %s11234_s25  ;;  %7475 = vrot.lane.b32.xlu0 %v7467_v57, %s11233_s20 }
0x52f2   : > { %7487 = vrot.lane.b32.xlu1 %v7470_v41, %s11235_s26  ;;  %7483 = vrot.lane.b32.xlu0 %v7469_v22, %s13533_s19  ;;  %v13074_v41 = vld [vmem:[%s13515_s5 + $0x2] ss:$0 sm:$0xff] }
0x52f6   : > { %7495 = vrot.lane.b32.xlu1 %v7472_v18, %s13531_s9  ;;  %7491 = vrot.lane.b32.xlu0 %v7471_v61, %s13540_s15 }
0x52fa   : > { %7530 = vrot.lane.b32.xlu1 %v7449_v31, %s13541_s18  ;;  %7499 = vrot.lane.b32.xlu0 %v7473_v24, %s13538_s13 }
0x52fe   : > { %7609 = vrot.lane.b32.xlu0 %v7376_v11, %s13541_s18 }
0x5360   : > { %v7480_v44 = vpop.permute.xlu1 %7479  ;;  %v7476_v1 = vpop.permute.xlu0 %7475 }
0x5361   : > { %v7502_v45 = vsel %vm585_vm5, %v7466_v9, %v7476_v1  ;;  %v13085_v9 = vld [vmem:[%s13515_s5 + $0x3] ss:$0 sm:$0xff] }
0x5362   : > { %v7503_v14 = vsel %vm634_vm14, %v7502_v45, %v7480_v44 }
0x5364   : > { %v7484_v3 = vpop.permute.xlu0 %7483  ;;  %v7488_v39 = vpop.permute.xlu1 %7487 }
0x5365   : > { %v7504_v6 = vsel %vm636_vm15, %v7503_v14, %v7484_v3 }
0x5366   : > { %v7505_v27 = vsel %vm638_vm0, %v7504_v6, %v7488_v39 }
0x5368   : > { %v7492_v58 = vpop.permute.xlu0 %7491  ;;  %v7496_v31 = vpop.permute.xlu1 %7495 }
0x5369   : > { %v7506_v37 = vsel %vm640_vm4, %v7505_v27, %v7492_v58 }
0x536a   : > { %v7507_v46 = vsel %vm642_vm8, %v7506_v37, %v7496_v31 }
0x536c   : > { %v7500_v62 = vpop.permute.xlu0 %7499  ;;  %v7531_v10 = vpop.permute.xlu1 %7530 }
0x536d   : > { %v7508_v11 = vsel %vm644_vm6, %v7496_v31, %v7500_v62  ;;  %v7794_v31 = vstv %s7793_s22  ;;  %s11250_s22 = smov 48  }
0x536e   : > { %9710 = vmatprep.mubr.msk.f32.mxu1 %vm670_vm7, %v7508_v11  ;;  %vm7795_vm13 = vcmp.eq.s32.totalorder %v7794_v31, 1 }
0x536f   : > { %7601 = vmatmul.mubr.f32.vlgmr.msra.gmra.mrb[78].mxu1 %v7507_v46 }
0x5370   : > { %10328 = vmatpush3.msra.mxu1 %v13065_v59  ;;  %10329 = vmatprep.mubr.msk.f32.mxu1 %vm11230_vm2, %v11229_v4  ;;  %v7610_v61 = vpop.permute.xlu0 %7609 }
0x5371   : > { %10898 = vmatprep.subr.bf16.mxu1 %v11231_v8 }
0x5442   : > { %v7602_v43 = vpop.f32.mrb[78].mxu1 }
0x5443   : > { %v7603_v36 = vadd.f32 %v7602_v43, %v7531_v10  ;;  %v7604_v57 = vpop.f32.mrb[79].mxu1 }
0x5445   : > { %v7606_v22 = vadd.f32 %v13074_v41, %v7603_v36 }
0x5447   : > { %v7607_v18 = vmax.f32 %v7606_v22, 0.0 }
0x5449   : > { %10301 = vmatmul.mubr.msk.f32.vlgmr.msra.gmra.mrb[72].mxu0 %vm355_vm1, %v7607_v18 }
0x544a   : > { %10864 = vmatpush3.bf16.msra.mxu0 %v11593_v30  ;;  %10307 = vmatprep.mubr.msk.f32.mxu0 %vm11230_vm2, %v11229_v4 }
0x544b   : > { %10310 = vmatprep.subr.mxu0 %v11229_v4 }
0x551c   : > { %v7681_v24 = vpop.f32.mrb[72].mxu0 }
0x551d   : > { %v7682_v44 = vadd.f32 %v7681_v24, %v7610_v61  ;;  %v10302_v1 = vpop.f32.mrb[73].mxu0 }
0x551f   : > { %v7685_v45 = vadd.f32 %v13085_v9, %v7682_v44 }
0x5521   : > { %v9712_v3 = vmul.f32 -1.442695, %v7685_v45  ;;  %11152 = vtanh.f32 %v7685_v45 }
0x5523   : > { %11154 = vpow2.f32 %v9712_v3 }
0x552b   : > { %v11153_v39 = vpop.eup %11152 }
0x552c   : > { %7699 = vrot.lane.b32.xlu0 %v11153_v39, %s11235_s26 }
0x552d   : > { %v11155_v14 = vpop.eup %11154 }
0x552e   : > { %v7689_v6 = vadd.f32 1.0, %v11155_v14 }
0x5530   : > { %11156 = vrcp.f32 %v7689_v6 }
0x553a   : > { %v11157_v58 = vpop.eup %11156 }
0x553b   : > { %7694 = vrot.lane.b32.xlu1 %v11157_v58, %s13539_s16 }
0x559e   : > { %v7700_v27 = vpop.permute.xlu0 %7699 }
0x559f   : > { %v7702_v62 = vmul.f32 %v11157_v58, %v7700_v27 }
0x55ad   : > { %v7695_v37 = vpop.permute.xlu1 %7694 }
0x55ae   : > { %v7697_v11 = vmul.f32 %v7695_v37, %v12980_v53 }
0x55b0   : > { %v7703_v46 = vadd.f32 %v7702_v62, %v7697_v11 }
0x55b2   : > { %11158 = vtanh.f32 %v7703_v46  ;;  %v13093_v10 = vsel %vm7795_vm13, %v7703_v46, %v12980_v53  ;;  %v9714_v53 = vld [vmem:[%s11322_s17 + $0x68] sm:$0xff] }
0x55bc   : > { %v11159_v43 = vpop.eup %11158 }
0x55bd   : > { %7706 = vrot.lane.b32.xlu1 %v11159_v43, %s13536_s24 }
0x562f   : > { %v7707_v36 = vpop.permute.xlu1 %7706 }
0x5630   : > { %v7709_v57 = vmul.f32 %v11157_v58, %v7707_v36 }
0x5632   : > { %7711 = vrot.lane.b32.xlu0 %v7709_v57, %s13537_s12  ;;  %v13098_v22 = vsel %vm7795_vm13, %v7709_v57, %v12985_v48 }
0x5633   : > { %7877 = vrot.lane.b32.xlu1 %v13098_v22, %s13537_s12 }
0x56a4   : > { %v7712_v18 = vpop.permute.xlu0 %7711 }
0x56a5   : > { %10308 = vmatmul.mubr.msk.f32.vlgmr.msra.gmra.mrb[74].mxu0 %vm432_vm3, %v7712_v18  ;;  %v7878_v48 = vpop.permute.xlu1 %7877 }
0x56a6   : > { %10311 = vmatpush3.msra.mxu0 %v12797_v12  ;;  %10312 = vmatprep.mubr.msk.f32.mxu0 %vm11230_vm2, %v11229_v4 }
0x56a7   : > { %10865 = vmatprep.subr.bf16.mxu0 %v11231_v8 }
0x56a9   : > { %10313 = vmatmul.mubr.msk.f32.vlgmr.msra.gmra.mrb[76].mxu0 %vm355_vm1, %v9714_v53 }
0x56aa   : > { %10867 = vmatpush3.bf16.msra.mxu0 %v11347_v7  ;;  %10319 = vmatprep.mubr.msk.f32.mxu0 %vm11230_vm2, %v11229_v4 }
0x56ab   : > { %10322 = vmatprep.subr.mxu0 %v11229_v4 }
0x56ad   : > { %10320 = vmatmul.mubr.msk.f32.vlgmr.msra.gmra.mrb[78].mxu0 %vm432_vm3, %v7878_v48 }
0x56ae   : > { %10323 = vmatpush3.msra.mxu0 %v13004_v38  ;;  %10324 = vmatprep.mubr.msk.f32.mxu0 %vm11230_vm2, %v11229_v4 }
0x56af   : > { %10868 = vmatprep.subr.bf16.mxu0 %v11231_v8 }
0x5778   : > { %v13118_v61 = vpop.f32.mrb[74].mxu0 }
0x5779   : > { %v10309_v24 = vpop.f32.mrb[75].mxu0 }
0x577c   : > { %v7869_v44 = vpop.f32.mrb[76].mxu0 }
0x577d   : > { %v7870_v1 = vadd.f32 %v12819_v34, %v7869_v44  ;;  %v10314_v45 = vpop.f32.mrb[77].mxu0 }
0x577f   : > { %vm7873_vm9 = vcmp.gt.f32.partialorder %v7870_v1, 0.0  ;;  %v7874_v3 = vmul.f32 0.01, %v7870_v1 }
0x5780   : > { %v7947_v39 = vpop.f32.mrb[78].mxu0 }
0x5781   : > { %v7875_v14 = vsel %vm7873_vm9, %v7870_v1, %v7874_v3  ;;  %v10321_v6 = vpop.f32.mrb[79].mxu0  ;;  %vm6647_vm9 = vcmask 720512  }
0x5782   : > { %10325 = vmatmul.mubr.msk.f32.vlgmr.msra.gmra.mrb[80].mxu0 %vm355_vm1, %v7875_v14 }
0x5783   : > { %10870 = vmatpush1.bf16.msra.mxu0 %v12846_v32 }
0x5784   : > { %10871 = vmatprep.subr.bf16.mxu0 %v11231_v8 }
0x5787   : > { %10873 = vmatpush1.bf16.msra.mxu0 %v12852_v15 }
0x5788   : > { %10874 = vmatprep.subr.bf16.mxu0 %v11231_v8 }
0x578b   : > { %10876 = vmatpush1.bf16.msra.mxu0 %v12862_v5 }
0x578c   : > { %10877 = vmatprep.subr.bf16.mxu0 %v11231_v8 }
0x578f   : > { %10879 = vmatpush1.bf16.msra.mxu0 %v12872_v40 }
0x5790   : > { %10880 = vmatprep.subr.bf16.mxu0 %v11231_v8 }
0x5793   : > { %10882 = vmatpush1.bf16.msra.mxu0 %v12882_v33 }
0x5794   : > { %10883 = vmatprep.subr.bf16.mxu0 %v11231_v8 }
0x5797   : > { %10885 = vmatpush1.bf16.msra.mxu0 %v12892_v51 }
0x5798   : > { %10886 = vmatprep.subr.bf16.mxu0 %v11231_v8 }
0x579b   : > { %10888 = vmatpush1.bf16.msra.mxu0 %v12902_v52 }
0x579c   : > { %10889 = vmatprep.subr.bf16.mxu0 %v11231_v8 }
0x579f   : > { %10891 = vmatpush1.bf16.msra.mxu0 %v12913_v60 }
0x57a0   : > { %10892 = vmatprep.subr.bf16.mxu0 %v11231_v8 }
0x57a3   : > { %10894 = vmatpush1.bf16.msra.mxu0 %v12923_v0 }
0x57a4   : > { %10895 = vmatprep.subr.bf16.mxu0 %v11231_v8 }
0x57a7   : > { %10897 = vmatpush1.bf16.msra.mxu0 %v12933_v25 }
0x57a8   : > { %10356 = vmatprep.subr.mxu0 %v11229_v4 }
0x5855   : > { %v8020_v58 = vpop.f32.mrb[80].mxu0 }
0x5856   : > { %v8024_v27 = vadd.f32 %v8020_v58, %v7947_v39  ;;  %v10326_v31 = vpop.f32.mrb[81].mxu0 }
0x5858   : > { %v8025_v37 = vadd.f32 %v12832_v20, %v8024_v27 }
0x585a   : > { %v8026_v62 = vsel %vm585_vm5, %v8025_v37, -inf }
0x585b   : > { %8027 = vmax.xlane.f32.xlu0 %v8026_v62 }
0x58e8   : > { %v8028_v11 = vpop.xlane.xlu0 %8027 }
0x58e9   : > { %v8029_v46 = vsub.f32 %v8025_v37, %v8028_v11 }
0x58eb   : > { %v8030_v43 = vmul.f32 1.442695, %v8029_v46 }
0x58ed   : > { %11160 = vpow2.f32 %v8030_v43 }
0x58f7   : > { %v11161_v36 = vpop.eup %11160 }
0x58f8   : > { %v8032_v57 = vsel %vm585_vm5, %v11161_v36, 0.0 }
0x58f9   : > { %8033 = vadd.xlane.f32.xlu1 %v8032_v57 }
0x5986   : > { %v8034_v18 = vpop.xlane.xlu1 %8033 }
0x5987   : > { %11162 = vrcp.f32 %v8034_v18 }
0x5991   : > { %v11163_v53 = vpop.eup %11162 }
0x5992   : > { %v8036_v48 = vmul.f32 %v11163_v53, %v11161_v36 }
0x5994   : > { %v8039_v24 = vmul.f32 %v11485_v63, %v8036_v48  ;;  %v8038_v44 = vmul.f32 %v11469_v56, %v8036_v48  ;;  %v8041_v1 = vmul.f32 %v11508_v13, %v8036_v48  ;;  %v8040_v45 = vmul.f32 %v11466_v55, %v8036_v48 }
0x5995   : > { %v8043_v3 = vmul.f32 %v11525_v21, %v8036_v48  ;;  %v8042_v14 = vmul.f32 %v11518_v16, %v8036_v48  ;;  %v8044_v6 = vmul.f32 %v11531_v23, %v8036_v48  ;;  %v8037_v37 = vmul.f32 %v11542_v28, %v8036_v48 }
0x5996   : > { %8050 = vrot.lane.b32.xlu1 %v8039_v24, %s11234_s25  ;;  %8046 = vrot.lane.b32.xlu0 %v8038_v44, %s11233_s20 }
0x599a   : > { %8058 = vrot.lane.b32.xlu1 %v8041_v1, %s11235_s26  ;;  %8054 = vrot.lane.b32.xlu0 %v8040_v45, %s13533_s19 }
0x599e   : > { %8066 = vrot.lane.b32.xlu1 %v8043_v3, %s13531_s9  ;;  %8062 = vrot.lane.b32.xlu0 %v8042_v14, %s13540_s15 }
0x59a2   : > { %8101 = vrot.lane.b32.xlu1 %v8020_v58, %s13541_s18  ;;  %8070 = vrot.lane.b32.xlu0 %v8044_v6, %s13538_s13 }
0x59a6   : > { %8180 = vrot.lane.b32.xlu0 %v7947_v39, %s13541_s18 }
0x5a08   : > { %v8051_v27 = vpop.permute.xlu1 %8050  ;;  %v8047_v31 = vpop.permute.xlu0 %8046 }
0x5a09   : > { %v8073_v62 = vsel %vm585_vm5, %v8037_v37, %v8047_v31 }
0x5a0a   : > { %v8074_v43 = vsel %vm634_vm14, %v8073_v62, %v8051_v27 }
0x5a0c   : > { %v8055_v11 = vpop.permute.xlu0 %8054  ;;  %v8059_v46 = vpop.permute.xlu1 %8058 }
0x5a0d   : > { %v8075_v36 = vsel %vm636_vm15, %v8074_v43, %v8055_v11 }
0x5a0e   : > { %v8076_v18 = vsel %vm638_vm0, %v8075_v36, %v8059_v46 }
0x5a10   : > { %v8063_v57 = vpop.permute.xlu0 %8062  ;;  %v8067_v58 = vpop.permute.xlu1 %8066 }
0x5a11   : > { %v8077_v53 = vsel %vm640_vm4, %v8076_v18, %v8063_v57 }
0x5a12   : > { %v8078_v48 = vsel %vm642_vm8, %v8077_v53, %v8067_v58  ;;  %v8365_v53 = vstv %s8364_s23  ;;  %s11244_s23 = smov 24  }
0x5a13   : > { %vm8366_vm10 = vcmp.eq.s32.totalorder %v8365_v53, 1 }
0x5a14   : > { %v8071_v24 = vpop.permute.xlu0 %8070  ;;  %v8102_v44 = vpop.permute.xlu1 %8101 }
0x5a15   : > { %v8079_v39 = vsel %vm644_vm6, %v8067_v58, %v8071_v24 }
0x5a16   : > { %9718 = vmatprep.mubr.msk.f32.mxu0 %vm670_vm7, %v8079_v39 }
0x5a17   : > { %8172 = vmatmul.mubr.f32.vlgmr.msra.gmra.mrb[82].mxu0 %v8078_v48 }
0x5a18   : > { %10357 = vmatpush3.msra.mxu0 %v13065_v59  ;;  %10358 = vmatprep.mubr.msk.f32.mxu0 %vm11230_vm2, %v11229_v4  ;;  %v8181_v27 = vpop.permute.xlu0 %8180 }
0x5a19   : > { %10934 = vmatprep.subr.bf16.mxu0 %v11231_v8 }
0x5aea   : > { %v8173_v1 = vpop.f32.mrb[82].mxu0 }
0x5aeb   : > { %v8174_v45 = vadd.f32 %v8173_v1, %v8102_v44  ;;  %v8175_v3 = vpop.f32.mrb[83].mxu0 }
0x5aed   : > { %v8177_v14 = vadd.f32 %v13074_v41, %v8174_v45 }
0x5aef   : > { %v8178_v6 = vmax.f32 %v8177_v14, 0.0 }
0x5af1   : > { %10330 = vmatmul.mubr.msk.f32.vlgmr.msra.gmra.mrb[80].mxu1 %vm355_vm1, %v8178_v6 }
0x5af2   : > { %10900 = vmatpush3.bf16.msra.mxu1 %v11593_v30  ;;  %10336 = vmatprep.mubr.msk.f32.mxu1 %vm11230_vm2, %v11229_v4 }
0x5af3   : > { %10339 = vmatprep.subr.mxu1 %v11229_v4 }
0x5bc4   : > { %v8252_v31 = vpop.f32.mrb[80].mxu1 }
0x5bc5   : > { %v8253_v37 = vadd.f32 %v8252_v31, %v8181_v27  ;;  %v10331_v62 = vpop.f32.mrb[81].mxu1 }
0x5bc7   : > { %v8256_v11 = vadd.f32 %v13085_v9, %v8253_v37 }
0x5bc9   : > { %v9720_v46 = vmul.f32 -1.442695, %v8256_v11  ;;  %11164 = vtanh.f32 %v8256_v11 }
0x5bcb   : > { %11166 = vpow2.f32 %v9720_v46 }
0x5bd3   : > { %v11165_v43 = vpop.eup %11164 }
0x5bd4   : > { %8270 = vrot.lane.b32.xlu0 %v11165_v43, %s11235_s26 }
0x5bd5   : > { %v11167_v36 = vpop.eup %11166 }
0x5bd6   : > { %v8260_v57 = vadd.f32 1.0, %v11167_v36 }
0x5bd8   : > { %11168 = vrcp.f32 %v8260_v57 }
0x5be2   : > { %v11169_v18 = vpop.eup %11168 }
0x5be3   : > { %8265 = vrot.lane.b32.xlu1 %v11169_v18, %s13539_s16 }
0x5c46   : > { %v8271_v58 = vpop.permute.xlu0 %8270 }
0x5c47   : > { %v8273_v39 = vmul.f32 %v11169_v18, %v8271_v58 }
0x5c55   : > { %v8266_v24 = vpop.permute.xlu1 %8265 }
0x5c56   : > { %v8268_v48 = vmul.f32 %v8266_v24, %v13093_v10 }
0x5c58   : > { %v8274_v44 = vadd.f32 %v8273_v39, %v8268_v48 }
0x5c5a   : > { %11170 = vtanh.f32 %v8274_v44  ;;  %v13186_v1 = vsel %vm8366_vm10, %v8274_v44, %v13093_v10  ;;  %v9722_v10 = vld [vmem:[%s11322_s17 + $0x70] sm:$0xff] }
0x5c64   : > { %v11171_v45 = vpop.eup %11170 }
0x5c65   : > { %8277 = vrot.lane.b32.xlu1 %v11171_v45, %s13536_s24 }
0x5cd7   : > { %v8278_v3 = vpop.permute.xlu1 %8277 }
0x5cd8   : > { %v8280_v14 = vmul.f32 %v11169_v18, %v8278_v3 }
0x5cda   : > { %8282 = vrot.lane.b32.xlu0 %v8280_v14, %s13537_s12  ;;  %v13191_v6 = vsel %vm8366_vm10, %v8280_v14, %v13098_v22  ;;  %vm7218_vm10 = vcmask 786112  }
0x5cdb   : > { %8448 = vrot.lane.b32.xlu1 %v13191_v6, %s13537_s12 }
0x5d4c   : > { %v8283_v27 = vpop.permute.xlu0 %8282 }
0x5d4d   : > { %10337 = vmatmul.mubr.msk.f32.vlgmr.msra.gmra.mrb[82].mxu1 %vm432_vm3, %v8283_v27  ;;  %v8449_v22 = vpop.permute.xlu1 %8448 }
0x5d4e   : > { %10340 = vmatpush3.msra.mxu1 %v12797_v12  ;;  %10341 = vmatprep.mubr.msk.f32.mxu1 %vm11230_vm2, %v11229_v4 }
0x5d4f   : > { %10901 = vmatprep.subr.bf16.mxu1 %v11231_v8 }
0x5d51   : > { %10342 = vmatmul.mubr.msk.f32.vlgmr.msra.gmra.mrb[84].mxu1 %vm355_vm1, %v9722_v10 }
0x5d52   : > { %10903 = vmatpush3.bf16.msra.mxu1 %v11347_v7  ;;  %10348 = vmatprep.mubr.msk.f32.mxu1 %vm11230_vm2, %v11229_v4 }
0x5d53   : > { %10351 = vmatprep.subr.mxu1 %v11229_v4 }
0x5d55   : > { %10349 = vmatmul.mubr.msk.f32.vlgmr.msra.gmra.mrb[86].mxu1 %vm432_vm3, %v8449_v22 }
0x5d56   : > { %10352 = vmatpush3.msra.mxu1 %v13004_v38  ;;  %10353 = vmatprep.mubr.msk.f32.mxu1 %vm11230_vm2, %v11229_v4 }
0x5d57   : > { %10904 = vmatprep.subr.bf16.mxu1 %v11231_v8 }
0x5e20   : > { %v13211_v12 = vpop.f32.mrb[82].mxu1 }
0x5e21   : > { %v10338_v31 = vpop.f32.mrb[83].mxu1 }
0x5e24   : > { %v8440_v37 = vpop.f32.mrb[84].mxu1 }
0x5e25   : > { %v8441_v62 = vadd.f32 %v12819_v34, %v8440_v37  ;;  %v10343_v11 = vpop.f32.mrb[85].mxu1 }
0x5e27   : > { %vm8444_vm11 = vcmp.gt.f32.partialorder %v8441_v62, 0.0  ;;  %v8445_v46 = vmul.f32 0.01, %v8441_v62 }
0x5e28   : > { %v8518_v43 = vpop.f32.mrb[86].mxu1 }
0x5e29   : > { %v8446_v36 = vsel %vm8444_vm11, %v8441_v62, %v8445_v46  ;;  %v10350_v57 = vpop.f32.mrb[87].mxu1  ;;  %vm7789_vm11 = vcmask 851712  }
0x5e2a   : > { %10354 = vmatmul.mubr.msk.f32.vlgmr.msra.gmra.mrb[88].mxu1 %vm355_vm1, %v8446_v36 }
0x5e2b   : > { %10906 = vmatpush1.bf16.msra.mxu1 %v12846_v32 }
0x5e2c   : > { %10907 = vmatprep.subr.bf16.mxu1 %v11231_v8 }
0x5e2f   : > { %10909 = vmatpush1.bf16.msra.mxu1 %v12852_v15 }
0x5e30   : > { %10910 = vmatprep.subr.bf16.mxu1 %v11231_v8 }
0x5e33   : > { %10912 = vmatpush1.bf16.msra.mxu1 %v12862_v5 }
0x5e34   : > { %10913 = vmatprep.subr.bf16.mxu1 %v11231_v8 }
0x5e37   : > { %10915 = vmatpush1.bf16.msra.mxu1 %v12872_v40 }
0x5e38   : > { %10916 = vmatprep.subr.bf16.mxu1 %v11231_v8 }
0x5e3b   : > { %10918 = vmatpush1.bf16.msra.mxu1 %v12882_v33 }
0x5e3c   : > { %10919 = vmatprep.subr.bf16.mxu1 %v11231_v8 }
0x5e3f   : > { %10921 = vmatpush1.bf16.msra.mxu1 %v12892_v51 }
0x5e40   : > { %10922 = vmatprep.subr.bf16.mxu1 %v11231_v8 }
0x5e43   : > { %10924 = vmatpush1.bf16.msra.mxu1 %v12902_v52 }
0x5e44   : > { %10925 = vmatprep.subr.bf16.mxu1 %v11231_v8 }
0x5e47   : > { %10927 = vmatpush1.bf16.msra.mxu1 %v12913_v60 }
0x5e48   : > { %10928 = vmatprep.subr.bf16.mxu1 %v11231_v8 }
0x5e4b   : > { %10930 = vmatpush1.bf16.msra.mxu1 %v12923_v0 }
0x5e4c   : > { %10931 = vmatprep.subr.bf16.mxu1 %v11231_v8 }
0x5e4f   : > { %10933 = vmatpush1.bf16.msra.mxu1 %v12933_v25 }
0x5e50   : > { %10385 = vmatprep.subr.mxu1 %v11229_v4 }
0x5efd   : > { %v8591_v34 = vpop.f32.mrb[88].mxu1 }
0x5efe   : > { %v8595_v32 = vadd.f32 %v8591_v34, %v8518_v43  ;;  %v10355_v15 = vpop.f32.mrb[89].mxu1 }
0x5f00   : > { %v8596_v5 = vadd.f32 %v12832_v20, %v8595_v32 }
0x5f02   : > { %v8597_v40 = vsel %vm585_vm5, %v8596_v5, -inf }
0x5f03   : > { %8598 = vmax.xlane.f32.xlu0 %v8597_v40 }
0x5f90   : > { %v8599_v33 = vpop.xlane.xlu0 %8598 }
0x5f91   : > { %v8600_v51 = vsub.f32 %v8596_v5, %v8599_v33 }
0x5f93   : > { %v8601_v52 = vmul.f32 1.442695, %v8600_v51 }
0x5f95   : > { %11172 = vpow2.f32 %v8601_v52 }
0x5f9f   : > { %v11173_v60 = vpop.eup %11172 }
0x5fa0   : > { %v8603_v0 = vsel %vm585_vm5, %v11173_v60, 0.0 }
0x5fa1   : > { %8604 = vadd.xlane.f32.xlu1 %v8603_v0 }
0x602e   : > { %v8605_v18 = vpop.xlane.xlu1 %8604 }
0x602f   : > { %11174 = vrcp.f32 %v8605_v18 }
0x6039   : > { %v11175_v25 = vpop.eup %11174 }
0x603a   : > { %v8607_v58 = vmul.f32 %v11175_v25, %v11173_v60 }
0x603c   : > { %v8610_v53 = vmul.f32 %v11485_v63, %v8607_v58  ;;  %v8609_v24 = vmul.f32 %v11469_v56, %v8607_v58  ;;  %v8612_v20 = vmul.f32 %v11508_v13, %v8607_v58  ;;  %v8611_v39 = vmul.f32 %v11466_v55, %v8607_v58 }
0x603d   : > { %v8614_v48 = vmul.f32 %v11525_v21, %v8607_v58  ;;  %v8613_v44 = vmul.f32 %v11518_v16, %v8607_v58  ;;  %v8615_v45 = vmul.f32 %v11531_v23, %v8607_v58  ;;  %v8608_v27 = vmul.f32 %v11542_v28, %v8607_v58 }
0x603e   : > { %8621 = vrot.lane.b32.xlu1 %v8610_v53, %s11234_s25  ;;  %8617 = vrot.lane.b32.xlu0 %v8609_v24, %s11233_s20 }
0x6042   : > { %8629 = vrot.lane.b32.xlu1 %v8612_v20, %s11235_s26  ;;  %8625 = vrot.lane.b32.xlu0 %v8611_v39, %s13533_s19  ;;  %s11245_s19 = smov 56  }
0x6046   : > { %8637 = vrot.lane.b32.xlu1 %v8614_v48, %s13531_s9  ;;  %8633 = vrot.lane.b32.xlu0 %v8613_v44, %s13540_s15  ;;  %v8936_v44 = vstv %s8935_s11  ;;  %s13543_s9 = smov 120   ;;  %s11247_s11 = smov 88  }
0x6047   : > { %vm8937_vm12 = vcmp.eq.s32.totalorder %v8936_v44, 1 }
0x604a   : > { %8672 = vrot.lane.b32.xlu1 %v8591_v34, %s13541_s18  ;;  %8641 = vrot.lane.b32.xlu0 %v8615_v45, %s13538_s13 }
0x604e   : > { %8751 = vrot.lane.b32.xlu0 %v8518_v43, %s13541_s18 }
0x60b0   : > { %v8622_v3 = vpop.permute.xlu1 %8621  ;;  %v8618_v14 = vpop.permute.xlu0 %8617 }
0x60b1   : > { %v8644_v10 = vsel %vm585_vm5, %v8608_v27, %v8618_v14 }
0x60b2   : > { %v8645_v37 = vsel %vm634_vm14, %v8644_v10, %v8622_v3 }
0x60b4   : > { %v8626_v22 = vpop.permute.xlu0 %8625  ;;  %v8630_v31 = vpop.permute.xlu1 %8629 }
0x60b5   : > { %v8646_v62 = vsel %vm636_vm15, %v8645_v37, %v8626_v22 }
0x60b6   : > { %v8647_v46 = vsel %vm638_vm0, %v8646_v62, %v8630_v31 }
0x60b8   : > { %v8634_v11 = vpop.permute.xlu0 %8633  ;;  %v8638_v36 = vpop.permute.xlu1 %8637 }
0x60b9   : > { %v8648_v57 = vsel %vm640_vm4, %v8647_v46, %v8634_v11  ;;  %v9730_v46 = vld [vmem:[%s11322_s17 + $0x78] sm:$0xff]  ;;  %s11251_s17 = smov 64  }
0x60ba   : > { %v8649_v32 = vsel %vm642_vm8, %v8648_v57, %v8638_v36 }
0x60bc   : > { %v8642_v34 = vpop.permute.xlu0 %8641  ;;  %v8673_v15 = vpop.permute.xlu1 %8672 }
0x60bd   : > { %v8650_v43 = vsel %vm644_vm6, %v8638_v36, %v8642_v34 }
0x60be   : > { %9726 = vmatprep.mubr.msk.f32.mxu1 %vm670_vm7, %v8650_v43 }
0x60bf   : > { %8743 = vmatmul.mubr.f32.vlgmr.msra.gmra.mrb[90].mxu1 %v8649_v32 }
0x60c0   : > { %10386 = vmatpush3.msra.mxu1 %v13065_v59  ;;  %10387 = vmatprep.mubr.msk.f32.mxu1 %vm11230_vm2, %v11229_v4  ;;  %v8752_v59 = vpop.permute.xlu0 %8751 }
0x60c1   : > { %10970 = vmatprep.subr.bf16.mxu1 %v11231_v8 }
0x6192   : > { %v8744_v5 = vpop.f32.mrb[90].mxu1 }
0x6193   : > { %v8745_v40 = vadd.f32 %v8744_v5, %v8673_v15  ;;  %v8746_v33 = vpop.f32.mrb[91].mxu1 }
0x6195   : > { %v8748_v51 = vadd.f32 %v13074_v41, %v8745_v40 }
0x6197   : > { %v8749_v52 = vmax.f32 %v8748_v51, 0.0 }
0x6199   : > { %10359 = vmatmul.mubr.msk.f32.vlgmr.msra.gmra.mrb[84].mxu0 %vm355_vm1, %v8749_v52 }
0x619a   : > { %10936 = vmatpush3.bf16.msra.mxu0 %v11593_v30  ;;  %10365 = vmatprep.mubr.msk.f32.mxu0 %vm11230_vm2, %v11229_v4 }
0x619b   : > { %10368 = vmatprep.subr.mxu0 %v11229_v4 }
0x626c   : > { %v8823_v60 = vpop.f32.mrb[84].mxu0 }
0x626d   : > { %v8824_v0 = vadd.f32 %v8823_v60, %v8752_v59  ;;  %v10360_v18 = vpop.f32.mrb[85].mxu0  ;;  %v11219_v59 = vld [vmem:[%s13515_s5 + $0x1] ss:$0 sm:$0xff] }
0x626f   : > { %v8827_v25 = vadd.f32 %v13085_v9, %v8824_v0 }
0x6271   : > { %v9728_v58 = vmul.f32 -1.442695, %v8827_v25  ;;  %11176 = vtanh.f32 %v8827_v25 }
0x6273   : > { %11178 = vpow2.f32 %v9728_v58 }
0x627b   : > { %v11177_v53 = vpop.eup %11176 }
0x627c   : > { %8841 = vrot.lane.b32.xlu0 %v11177_v53, %s11235_s26 }
0x627d   : > { %v11179_v24 = vpop.eup %11178 }
0x627e   : > { %v8831_v20 = vadd.f32 1.0, %v11179_v24 }
0x6280   : > { %11180 = vrcp.f32 %v8831_v20  ;;  %v9222_v20 = vld [vmem:[%s13513_s3] sm:$0xff] }
0x628a   : > { %v11181_v39 = vpop.eup %11180 }
0x628b   : > { %8836 = vrot.lane.b32.xlu1 %v11181_v39, %s13539_s16 }
0x62ee   : > { %v8842_v48 = vpop.permute.xlu0 %8841 }
0x62ef   : > { %v8844_v3 = vmul.f32 %v11181_v39, %v8842_v48  ;;  %v9224_v48 = vld [vmem:[%s13513_s3 + $0x10] sm:$0xff] }
0x62fd   : > { %v8837_v45 = vpop.permute.xlu1 %8836 }
0x62fe   : > { %v8839_v14 = vmul.f32 %v8837_v45, %v13186_v1  ;;  %v9225_v45 = vld [vmem:[%s13513_s3 + $0x18] sm:$0xff] }
0x6300   : > { %v8845_v27 = vadd.f32 %v8844_v3, %v8839_v14  ;;  %v10944_v3 = vpack.c.bf16 %v9225_v45, %v9224_v48  ;;  %v9226_v14 = vld [vmem:[%s13513_s3 + $0x20] sm:$0xff] }
0x6302   : > { %11182 = vtanh.f32 %v8845_v27  ;;  %v13279_v10 = vsel %vm8937_vm12, %v8845_v27, %v13186_v1  ;;  %v11217_v1 = vld [vmem:[%s13514_s4] sm:$0xff]  ;;  %v9227_v27 = vld [vmem:[%s13513_s3 + $0x28] sm:$0xff] }
0x630c   : > { %v11183_v22 = vpop.eup %11182 }
0x630d   : > { %8848 = vrot.lane.b32.xlu1 %v11183_v22, %s13536_s24  ;;  %v10947_v22 = vpack.c.bf16 %v9227_v27, %v9226_v14 }
0x637f   : > { %v8849_v31 = vpop.permute.xlu1 %8848 }
0x6380   : > { %v8851_v37 = vmul.f32 %v11181_v39, %v8849_v31  ;;  %v9223_v39 = vld [vmem:[%s13513_s3 + $0x8] sm:$0xff]  ;;  %v9228_v31 = vld [vmem:[%s13513_s3 + $0x30] sm:$0xff] }
0x6381   : > { %v10941_v44 = vpack.c.bf16 %v9223_v39, %v9222_v20 }
0x6382   : > { %8853 = vrot.lane.b32.xlu0 %v8851_v37, %s13537_s12  ;;  %v13284_v62 = vsel %vm8937_vm12, %v8851_v37, %v13191_v6  ;;  %v9229_v37 = vld [vmem:[%s13513_s3 + $0x38] sm:$0xff]  ;;  %vm8360_vm12 = vcmask 917312  }
0x6383   : > { %9019 = vrot.lane.b32.xlu1 %v13284_v62, %s13537_s12 }
0x63f4   : > { %v8854_v11 = vpop.permute.xlu0 %8853 }
0x63f5   : > { %10366 = vmatmul.mubr.msk.f32.vlgmr.msra.gmra.mrb[86].mxu0 %vm432_vm3, %v8854_v11  ;;  %v9020_v6 = vpop.permute.xlu1 %9019  ;;  %v10950_v11 = vpack.c.bf16 %v9229_v37, %v9228_v31 }
0x63f6   : > { %10369 = vmatpush3.msra.mxu0 %v11217_v1  ;;  %10370 = vmatprep.mubr.msk.f32.mxu0 %vm11230_vm2, %v11229_v4  ;;  %v9230_v1 = vld [vmem:[%s13513_s3 + $0x40] sm:$0xff] }
0x63f7   : > { %10937 = vmatprep.subr.bf16.mxu0 %v11231_v8 }
0x63f9   : > { %10371 = vmatmul.mubr.msk.f32.vlgmr.msra.gmra.mrb[88].mxu0 %vm355_vm1, %v9730_v46  ;;  %v9231_v46 = vld [vmem:[%s13513_s3 + $0x48] sm:$0xff] }
0x63fa   : > { %10939 = vmatpush3.bf16.msra.mxu0 %v11347_v7  ;;  %10377 = vmatprep.mubr.msk.f32.mxu0 %vm11230_vm2, %v11229_v4  ;;  %v11218_v7 = vld [vmem:[%s13515_s5] ss:$0 sm:$0xff] }
0x63fb   : > { %10380 = vmatprep.subr.mxu0 %v11229_v4 }
0x63fd   : > { %10378 = vmatmul.mubr.msk.f32.vlgmr.msra.gmra.mrb[90].mxu0 %vm432_vm3, %v9020_v6  ;;  %v10953_v6 = vpack.c.bf16 %v9231_v46, %v9230_v1 }
0x63fe   : > { %10381 = vmatpush3.msra.mxu0 %v13004_v38  ;;  %10382 = vmatprep.mubr.msk.f32.mxu0 %vm11230_vm2, %v11229_v4 }
0x63ff   : > { %10940 = vmatprep.subr.bf16.mxu0 %v11231_v8 }
0x64c8   : > { %v13306_v36 = vpop.f32.mrb[86].mxu0 }
0x64c9   : > { %v10367_v57 = vpop.f32.mrb[87].mxu0 }
0x64ca   : > { %v9232_v57 = vld [vmem:[%s13513_s3 + $0x50] sm:$0xff] }
0x64cc   : > { %v9011_v34 = vpop.f32.mrb[88].mxu0 }
0x64cd   : > { %v9012_v43 = vadd.f32 %v11218_v7, %v9011_v34  ;;  %v10372_v32 = vpop.f32.mrb[89].mxu0  ;;  %v9233_v34 = vld [vmem:[%s13513_s3 + $0x58] sm:$0xff] }
0x64ce   : > { %v10956_v7 = vpack.c.bf16 %v9233_v34, %v9232_v57  ;;  %v9235_v32 = vld [vmem:[%s13513_s3 + $0x68] sm:$0xff] }
0x64cf   : > { %vm9015_vm13 = vcmp.gt.f32.partialorder %v9012_v43, 0.0  ;;  %v9016_v15 = vmul.f32 0.01, %v9012_v43 }
0x64d0   : > { %v13311_v5 = vpop.f32.mrb[90].mxu0 }
0x64d1   : > { %v9017_v38 = vsel %vm9015_vm13, %v9012_v43, %v9016_v15  ;;  %v10379_v40 = vpop.f32.mrb[91].mxu0  ;;  %v9234_v43 = vld [vmem:[%s13513_s3 + $0x60] sm:$0xff]  ;;  %vm8931_vm13 = vcmask 982912  }
0x64d2   : > { %10383 = vmatmul.mubr.msk.f32.vlgmr.msra.gmra.mrb[92].mxu0 %vm355_vm1, %v9017_v38  ;;  %v10959_v15 = vpack.c.bf16 %v9235_v32, %v9234_v43  ;;  %v9236_v40 = vld [vmem:[%s13513_s3 + $0x70] sm:$0xff] }
0x64d3   : > { %10942 = vmatpush1.bf16.msra.mxu0 %v10941_v44 }
0x64d4   : > { %10943 = vmatprep.subr.bf16.mxu0 %v11231_v8 }
0x64d7   : > { %10945 = vmatpush1.bf16.msra.mxu0 %v10944_v3 }
0x64d8   : > { %10946 = vmatprep.subr.bf16.mxu0 %v11231_v8 }
0x64db   : > { %10948 = vmatpush1.bf16.msra.mxu0 %v10947_v22 }
0x64dc   : > { %10949 = vmatprep.subr.bf16.mxu0 %v11231_v8 }
0x64df   : > { %10951 = vmatpush1.bf16.msra.mxu0 %v10950_v11 }
0x64e0   : > { %10952 = vmatprep.subr.bf16.mxu0 %v11231_v8 }
0x64e3   : > { %10954 = vmatpush1.bf16.msra.mxu0 %v10953_v6 }
0x64e4   : > { %10955 = vmatprep.subr.bf16.mxu0 %v11231_v8 }
0x64e7   : > { %10957 = vmatpush1.bf16.msra.mxu0 %v10956_v7 }
0x64e8   : > { %10958 = vmatprep.subr.bf16.mxu0 %v11231_v8 }
0x64eb   : > { %10960 = vmatpush1.bf16.msra.mxu0 %v10959_v15 }
0x64ec   : > { %10961 = vmatprep.subr.bf16.mxu0 %v11231_v8 }
0x65a5   : > { %v13314_v33 = vpop.f32.mrb[92].mxu0 }
0x65a6   : > { %v9166_v51 = vadd.f32 %v13314_v33, %v13311_v5  ;;  %v10384_v52 = vpop.f32.mrb[93].mxu0 }
0x65a8   : > { %v9167_v60 = vadd.f32 %v11219_v59, %v9166_v51  ;;  %v9237_v51 = vld [vmem:[%s13513_s3 + $0x78] sm:$0xff]  ;;  %v9238_v59 = vld [vmem:[%s13513_s3 + $0x80] sm:$0xff] }
0x65a9   : > { %v10962_v52 = vpack.c.bf16 %v9237_v51, %v9236_v40 }
0x65aa   : > { %v9168_v0 = vsel %vm585_vm5, %v9167_v60, -inf }
0x65ab   : > { %9169 = vmax.xlane.f32.xlu0 %v9168_v0  ;;  %10963 = vmatpush1.bf16.msra.mxu0 %v10962_v52 }
0x65ac   : > { %10964 = vmatprep.subr.bf16.mxu0 %v11231_v8 }
0x6638   : > { %v9170_v18 = vpop.xlane.xlu0 %9169 }
0x6639   : > { %v9171_v25 = vsub.f32 %v9167_v60, %v9170_v18  ;;  %v9239_v60 = vld [vmem:[%s13513_s3 + $0x88] sm:$0xff] }
0x663a   : > { %v10965_v0 = vpack.c.bf16 %v9239_v60, %v9238_v59 }
0x663b   : > { %v9172_v58 = vmul.f32 1.442695, %v9171_v25  ;;  %v9240_v25 = vld [vmem:[%s13513_s3 + $0x90] sm:$0xff] }
0x663c   : > { %10966 = vmatpush1.bf16.msra.mxu0 %v10965_v0 }
0x663d   : > { %11184 = vpow2.f32 %v9172_v58  ;;  %10967 = vmatprep.subr.bf16.mxu0 %v11231_v8  ;;  %v9241_v58 = vld [vmem:[%s13513_s3 + $0x98] sm:$0xff] }
0x663e   : > { %v10968_v20 = vpack.c.bf16 %v9241_v58, %v9240_v25 }
0x6640   : > { %10969 = vmatpush1.bf16.msra.mxu0 %v10968_v20 }
0x6647   : > { %v11185_v53 = vpop.eup %11184 }
0x6648   : > { %v9174_v24 = vsel %vm585_vm5, %v11185_v53, 0.0 }
0x6649   : > { %9175 = vadd.xlane.f32.xlu1 %v9174_v24 }
0x66d6   : > { %v9176_v38 = vpop.xlane.xlu1 %9175 }
0x66d7   : > { %11186 = vrcp.f32 %v9176_v38 }
0x66e1   : > { %v11187_v18 = vpop.eup %11186 }
0x66e2   : > { %v9178_v24 = vmul.f32 %v11187_v18, %v11185_v53 }
0x66e4   : > { %v9181_v39 = vmul.f32 %v11485_v63, %v9178_v24  ;;  %v9180_v48 = vmul.f32 %v11469_v56, %v9178_v24  ;;  %v9183_v8 = vmul.f32 %v11508_v13, %v9178_v24  ;;  %v9182_v44 = vmul.f32 %v11466_v55, %v9178_v24 }
0x66e5   : > { %v9185_v53 = vmul.f32 %v11525_v21, %v9178_v24  ;;  %v9184_v45 = vmul.f32 %v11518_v16, %v9178_v24  ;;  %v9186_v56 = vmul.f32 %v11531_v23, %v9178_v24  ;;  %v9179_v13 = vmul.f32 %v11542_v28, %v9178_v24  ;;  %v13439_v24 = vld [vmem:[%s13515_s5 + $0x4] ss:$0 sm:$0xff] }
0x66e6   : > { %9192 = vrot.lane.b32.xlu1 %v9181_v39, %s11234_s25  ;;  %9188 = vrot.lane.b32.xlu0 %v9180_v48, %s11233_s20  ;;  %s9504_s20 = sadd.s32 15, %s11308_s29  ;;  %v1501_v20 = vadd.f32 %v13439_v24, %v11726_v2  ;;  %v3785_v39 = vadd.f32 %v13439_v24, %v12221_v54  ;;  %v4927_v48 = vadd.f32 %v13439_v24, %v12515_v50 }
0x66e7   : > { %p9505_p7 = scmp.lt.s32.totalorder %s9504_s20, 20  ;;  %v6069_v2 = vadd.f32 %v13439_v24, %v12716_v26  ;;  %v8353_v54 = vadd.f32 %v13439_v24, %v13211_v12  ;;  %v2072_v26 = vadd.f32 %v13439_v24, %v11824_v17  ;;  %v4356_v12 = vadd.f32 %v13439_v24, %v12319_v47 }
0x66e8   : > { %v6640_v17 = vadd.f32 %v13439_v24, %v12814_v35  ;;  %v8924_v47 = vadd.f32 %v13439_v24, %v13306_v36 }
0x66ea   : > { %9200 = vrot.lane.b32.xlu1 %v9183_v8, %s11235_s26  ;;  %9196 = vrot.lane.b32.xlu0 %v9182_v44, %s13542_s21 }
0x66ee   : > { %9208 = vrot.lane.b32.xlu1 %v9185_v53, %s13543_s9  ;;  %9204 = vrot.lane.b32.xlu0 %v9184_v45, %s13540_s15  ;;  %v5498_v53 = vadd.f32 %v13439_v24, %v12623_v42 }
0x66f2   : > { %9243 = vrot.lane.b32.xlu1 %v13314_v33, %s13541_s18  ;;  %9212 = vrot.lane.b32.xlu0 %v9186_v56, %s13538_s13  ;;  %s9506_s13 = scalar_select %p9505_p7, 1, 0 }
0x66f4   : > { %v9507_v59 = vstv %s9506_s13 }
0x66f6   : > { %9322 = vrot.lane.b32.xlu0 %v13311_v5, %s13541_s18  ;;  %s11243_s18 = smov 8  }
0x6758   : > { %v9193_v55 = vpop.permute.xlu1 %9192  ;;  %v9189_v63 = vpop.permute.xlu0 %9188 }
0x6759   : > { %v9215_v16 = vsel %vm585_vm5, %v9179_v13, %v9189_v63  ;;  %vm2079_vm5 = vcmask 195712  }
0x675a   : > { %v9216_v14 = vsel %vm634_vm14, %v9215_v16, %v9193_v55  ;;  %vm2650_vm14 = vcmask 261312  }
0x675c   : > { %v9197_v21 = vpop.permute.xlu0 %9196  ;;  %v9201_v3 = vpop.permute.xlu1 %9200 }
0x675d   : > { %v9217_v23 = vsel %vm636_vm15, %v9216_v14, %v9197_v21  ;;  %vm3221_vm15 = vcmask 326912  }
0x675e   : > { %v9218_v33 = vsel %vm638_vm0, %v9217_v23, %v9201_v3  ;;  %vm3792_vm0 = vcmask 392512  }
0x6760   : > { %v9205_v27 = vpop.permute.xlu0 %9204  ;;  %v9209_v22 = vpop.permute.xlu1 %9208 }
0x6761   : > { %v9219_v31 = vsel %vm640_vm4, %v9218_v33, %v9205_v27  ;;  %vm4363_vm4 = vcmask 458112  }
0x6762   : > { %v9220_v28 = vsel %vm642_vm8, %v9219_v31, %v9209_v22  ;;  %vm6076_vm8 = vcmask 654912  }
0x6764   : > { %v9213_v37 = vpop.permute.xlu0 %9212  ;;  %v9244_v11 = vpop.permute.xlu1 %9243 }
0x6765   : > { %v9221_v5 = vsel %vm644_vm6, %v9209_v22, %v9213_v37  ;;  %vm4934_vm6 = vcmask 523712  }
0x6766   : > { %9734 = vmatprep.mubr.msk.f32.mxu0 %vm670_vm7, %v9221_v5  ;;  %vm5505_vm7 = vcmask 589312  }
0x6767   : > { %9314 = vmatmul.mubr.f32.vlgmr.msra.gmra.mrb[94].mxu0 %v9220_v28 }
0x6768   : > { %v9323_v7 = vpop.permute.xlu0 %9322 }
0x683a   : > { %v9315_v1 = vpop.f32.mrb[94].mxu0 }
0x683b   : > { %v9316_v46 = vadd.f32 %v9315_v1, %v9244_v11  ;;  %v9317_v6 = vpop.f32.mrb[95].mxu0 }
0x683d   : > { %v9319_v57 = vadd.f32 %v13074_v41, %v9316_v46 }
0x683f   : > { %v9320_v34 = vmax.f32 %v9319_v57, 0.0 }
0x6841   : > { %10388 = vmatmul.mubr.msk.f32.vlgmr.msra.gmra.mrb[92].mxu1 %vm355_vm1, %v9320_v34  ;;  %vm9508_vm1 = vcmp.eq.s32.totalorder %v9507_v59, 1 }
0x6842   : > { %10972 = vmatpush3.bf16.msra.mxu1 %v11593_v30  ;;  %10394 = vmatprep.mubr.msk.f32.mxu1 %vm11230_vm2, %v11229_v4  ;;  %vm1508_vm2 = vcmask 130112  }
0x6914   : > { %v9394_v43 = vpop.f32.mrb[92].mxu1 }
0x6915   : > { %v9395_v32 = vadd.f32 %v9394_v43, %v9323_v7  ;;  %v10389_v15 = vpop.f32.mrb[93].mxu1 }
0x6917   : > { %v9398_v38 = vadd.f32 %v13085_v9, %v9395_v32 }
0x6919   : > { %v9736_v40 = vmul.f32 -1.442695, %v9398_v38  ;;  %11188 = vtanh.f32 %v9398_v38 }
0x691b   : > { %11190 = vpow2.f32 %v9736_v40 }
0x6923   : > { %v11189_v51 = vpop.eup %11188 }
0x6924   : > { %9412 = vrot.lane.b32.xlu0 %v11189_v51, %s11235_s26 }
0x6925   : > { %v11191_v41 = vpop.eup %11190 }
0x6926   : > { %v9402_v52 = vadd.f32 1.0, %v11191_v41 }
0x6928   : > { %11192 = vrcp.f32 %v9402_v52 }
0x6932   : > { %v11193_v30 = vpop.eup %11192 }
0x6933   : > { %9407 = vrot.lane.b32.xlu1 %v11193_v30, %s13539_s16 }
0x6996   : > { %v9413_v4 = vpop.permute.xlu0 %9412 }
0x6997   : > { %v9415_v0 = vmul.f32 %v11193_v30, %v9413_v4 }
0x69a5   : > { %v9408_v60 = vpop.permute.xlu1 %9407 }
0x69a6   : > { %v9410_v9 = vmul.f32 %v9408_v60, %v13279_v10 }
0x69a8   : > { %v9416_v18 = vadd.f32 %v9415_v0, %v9410_v9 }
0x69aa   : > { %11194 = vtanh.f32 %v9416_v18  ;;  %v13431_v25 = vsel %vm9508_vm1, %v9416_v18, %v13279_v10  ;;  %v2643_v10 = vadd.f32 %v13439_v24, %v12020_v49  ;;  %v7211_v49 = vadd.f32 %v13439_v24, %v13010_v19 }
0x69ab   : > { %9516 = vst.msk [vmem:[#allocation3] sm:$0xff] %vm432_vm3, %v13431_v25  ;;  %v3214_v19 = vadd.f32 %v13439_v24, %v12128_v29  ;;  %v7782_v29 = vadd.f32 %v13439_v24, %v13118_v61  ;;  %9522 = vst.msk [vmem:[%s13518_s8] sm:$0xff] (!%p9738_p8), %vm432_vm3, %v13431_v25 }
0x69b4   : > { %v11195_v58 = vpop.eup %11194 }
0x69b5   : > { %9419 = vrot.lane.b32.xlu1 %v11195_v58, %s13536_s24 }
0x69b9   : > { %1505 = vrot.lane.b32.xlu1 %v1501_v20, %s11243_s18 }
0x69bd   : > { %2647 = vrot.lane.b32.xlu1 %v2643_v10, %s11244_s23 }
0x69c1   : > { %3789 = vrot.lane.b32.xlu1 %v3785_v39, %s11234_s25  ;;  %s11248_s25 = smov 104  }
0x69c5   : > { %4931 = vrot.lane.b32.xlu1 %v4927_v48, %s11245_s19 }
0x69c9   : > { %6073 = vrot.lane.b32.xlu1 %v6069_v2, %s11246_s30 }
0x69cd   : > { %7215 = vrot.lane.b32.xlu1 %v7211_v49, %s11247_s11 }
0x69d1   : > { %8357 = vrot.lane.b32.xlu1 %v8353_v54, %s11248_s25 }
0x6a27   : > { %v9420_v8 = vpop.permute.xlu1 %9419 }
0x6a28   : > { %v9422_v50 = vmul.f32 %v11193_v30, %v9420_v8 }
0x6a2a   : > { %9424 = vrot.lane.b32.xlu0 %v9422_v50, %s13537_s12  ;;  %v9509_v42 = vsel %vm9508_vm1, %v9422_v50, %v13284_v62  ;;  %vm9502_vm1 = vcmask 1048512  }
0x6a2b   : > { %v1506_v44 = vpop.permute.xlu1 %1505 }
0x6a2c   : > { %1509 = vst.msk [vmem:[%s11317_s14] sm:$0xff] %vm1508_vm2, %v1506_v44 }
0x6a2e   : > { %2076 = vrot.lane.b32.xlu0 %v2072_v26, %s11249_s10 }
0x6a2f   : > { %v2648_v35 = vpop.permute.xlu1 %2647 }
0x6a32   : > { %3218 = vrot.lane.b32.xlu0 %v3214_v19, %s13536_s24 }
0x6a33   : > { %v3790_v56 = vpop.permute.xlu1 %3789 }
0x6a36   : > { %4360 = vrot.lane.b32.xlu0 %v4356_v12, %s11250_s22 }
0x6a37   : > { %v4932_v36 = vpop.permute.xlu1 %4931 }
0x6a3a   : > { %5502 = vrot.lane.b32.xlu0 %v5498_v53, %s11251_s17 }
0x6a3b   : > { %v6074_v63 = vpop.permute.xlu1 %6073 }
0x6a3e   : > { %6644 = vrot.lane.b32.xlu0 %v6640_v17, %s11235_s26 }
0x6a3f   : > { %v7216_v16 = vpop.permute.xlu1 %7215 }
0x6a42   : > { %7786 = vrot.lane.b32.xlu0 %v7782_v29, %s13537_s12 }
0x6a43   : > { %v8358_v14 = vpop.permute.xlu1 %8357 }
0x6a46   : > { %8928 = vrot.lane.b32.xlu0 %v8924_v47, %s13539_s16 }
0x6a4a   : > { %9512 = vrot.lane.b32.xlu0 %v9509_v42, %s13537_s12 }
0x6a9c   : > { %v9425_v45 = vpop.permute.xlu0 %9424 }
0x6a9d   : > { %10395 = vmatmul.mubr.msk.f32.vlgmr.msra.gmra.mrb[94].mxu1 %vm432_vm3, %v9425_v45 }
0x6aa0   : > { %v2077_v61 = vpop.permute.xlu0 %2076 }
0x6aa1   : > { %2080 = vst.msk [vmem:[%s11317_s14] sm:$0xff] %vm2079_vm5, %v2077_v61 }
0x6aa2   : > { %2651 = vst.msk [vmem:[%s11317_s14] sm:$0xff] %vm2650_vm14, %v2648_v35 }
0x6aa4   : > { %v3219_v62 = vpop.permute.xlu0 %3218 }
0x6aa5   : > { %3222 = vst.msk [vmem:[%s11317_s14] sm:$0xff] %vm3221_vm15, %v3219_v62 }
0x6aa6   : > { %3793 = vst.msk [vmem:[%s11317_s14] sm:$0xff] %vm3792_vm0, %v3790_v56 }
0x6aa8   : > { %v4361_v55 = vpop.permute.xlu0 %4360 }
0x6aa9   : > { %4364 = vst.msk [vmem:[%s11317_s14] sm:$0xff] %vm4363_vm4, %v4361_v55 }
0x6aaa   : > { %4935 = vst.msk [vmem:[%s11317_s14] sm:$0xff] %vm4934_vm6, %v4932_v36 }
0x6aac   : > { %v5503_v13 = vpop.permute.xlu0 %5502 }
0x6aad   : > { %5506 = vst.msk [vmem:[%s11317_s14] sm:$0xff] %vm5505_vm7, %v5503_v13 }
0x6aae   : > { %6077 = vst.msk [vmem:[%s11317_s14] sm:$0xff] %vm6076_vm8, %v6074_v63 }
0x6ab0   : > { %v6645_v21 = vpop.permute.xlu0 %6644 }
0x6ab1   : > { %6648 = vst.msk [vmem:[%s11317_s14] sm:$0xff] %vm6647_vm9, %v6645_v21 }
0x6ab2   : > { %7219 = vst.msk [vmem:[%s11317_s14] sm:$0xff] %vm7218_vm10, %v7216_v16 }
0x6ab4   : > { %v7787_v3 = vpop.permute.xlu0 %7786 }
0x6ab5   : > { %7790 = vst.msk [vmem:[%s11317_s14] sm:$0xff] %vm7789_vm11, %v7787_v3 }
0x6ab6   : > { %8361 = vst.msk [vmem:[%s11317_s14] sm:$0xff] %vm8360_vm12, %v8358_v14 }
0x6ab8   : > { %v8929_v23 = vpop.permute.xlu0 %8928 }
0x6ab9   : > { %8932 = vst.msk [vmem:[%s11317_s14] sm:$0xff] %vm8931_vm13, %v8929_v23 }
0x6abc   : > { %v9513_v27 = vpop.permute.xlu0 %9512 }
0x6abd   : > { %9515 = vst.msk [vmem:[#allocation2] sm:$0xff] %vm432_vm3, %v9513_v27  ;;  %9521 = vst.msk [vmem:[%s13517_s7] sm:$0xff] (!%p9738_p8), %vm432_vm3, %v9513_v27 }
0x6b70   : > { %v9494_v33 = vpop.f32.mrb[94].mxu1 }
0x6b71   : > { %v9495_v22 = vadd.f32 %v13439_v24, %v9494_v33  ;;  %v10396_v31 = vpop.f32.mrb[95].mxu1 }
0x6b73   : > { %9499 = vrot.lane.b32.xlu1 %v9495_v22, %s13543_s9 }
0x6be0   : > { %9520 = sbr.rel (%p9738_p8) target bundleno = 27623 (0x6be7), region = 52 }
0x6be5   : > { %v9500_v37 = vpop.permute.xlu1 %9499 }
0x6be6   : > { %9503 = vst.msk [vmem:[%s11317_s14] sm:$0xff] %vm9502_vm1, %v9500_v37 }
0x6be7 PF: > { %s19_s27 = sadd.s32 1, %s11227_s27  }
0x6be8   : > { %p16_p9 = scmp.ge.s32.totalorder %s19_s27, 4  }
0x6bea   :  { %18 = sbr.rel (!%p16_p9) target bundleno = 1 (0x1), region = 113 }

</bundles_post_ra>
